<compile_context>
chip_gen: v6e
topology: v6e:2x2x1
jax: 0.10.0
libtpu: 0.0.40
codegen_flags: <defaults>
</compile_context>

<pallas_src>
import functools

import jax
import jax.numpy as jnp
from jax.experimental import pallas as pl
from jax.experimental.pallas import tpu as pltpu

EPS = 1e-5


def _round_up(x, m):
    return (x + m - 1) // m * m


# ----------------------------------------------------------------------------
# Pallas kernels
# ----------------------------------------------------------------------------
def _matmul_stats_kernel(x_ref, w_ref, z_ref, s_ref, q_ref, acc_ref):
    """Tiled matmul with per-M-tile channel statistics.

    grid = (num_m_tiles, num_k_tiles); K is the reduction ("arbitrary") axis.
    x: [tm, tk] bf16, w: [tk, Cout] bf16 -> acc [tm, Cout] f32 scratch.
    On the last K step: write the z tile plus per-tile sum / sum-of-squares
    (replicated over 8 sublane rows so the stats block stays (8, Cout)).
    """
    k = pl.program_id(1)

    @pl.when(k == 0)
    def _():
        acc_ref[...] = jnp.zeros_like(acc_ref)

    acc_ref[...] += jnp.dot(x_ref[...], w_ref[...],
                            preferred_element_type=jnp.float32)

    @pl.when(k == pl.num_programs(1) - 1)
    def _():
        z = acc_ref[...]
        cout = z.shape[-1]
        z_ref[...] = z
        s_ref[...] = jnp.broadcast_to(
            jnp.sum(z, axis=0, keepdims=True), (8, cout))
        q_ref[...] = jnp.broadcast_to(
            jnp.sum(z * z, axis=0, keepdims=True), (8, cout))


def _win_conv_stats_kernel(xp_ref, w_ref, z_ref, s_ref, q_ref, *, oh, ow, kh, kw):
    """3x3 stride-1 conv for one image without im2col.

    xp: [1, OH+2, OW+2, Cin] f32 padded activation (VMEM-resident, read from
    HBM exactly once); w: [KH*KW, Cin, Cout] bf16. The conv is a sum of
    KH*KW statically sliced window matmuls accumulated in f32.
    """
    cin = xp_ref.shape[-1]
    cout = w_ref.shape[-1]
    acc = jnp.zeros((oh * ow, cout), jnp.float32)
    for di in range(kh):
        for dj in range(kw):
            win = xp_ref[0, di:di + oh, dj:dj + ow, :]        # (oh, ow, cin) f32
            x2 = win.reshape(oh * ow, cin).astype(jnp.bfloat16)
            acc = acc + jnp.dot(x2, w_ref[di * kw + dj],
                                preferred_element_type=jnp.float32)
    z_ref[0] = acc
    s_ref[...] = jnp.broadcast_to(
        jnp.sum(acc, axis=0, keepdims=True), (8, cout))
    q_ref[...] = jnp.broadcast_to(
        jnp.sum(acc * acc, axis=0, keepdims=True), (8, cout))


def _bn_apply_kernel(z_ref, s_ref, q_ref, g_ref, b_ref, o_ref, *, inv_count, relu):
    # Finalize training-mode BN stats from the per-tile partials (tiny, f32)
    # and apply y = z * scale + shift, optional ReLU -- all inside the kernel.
    mean = jnp.sum(s_ref[...], axis=0, keepdims=True) * inv_count   # (1, C)
    ex2 = jnp.sum(q_ref[...], axis=0, keepdims=True) * inv_count
    var = jnp.maximum(ex2 - mean * mean, 0.0)
    scale = g_ref[...] * jax.lax.rsqrt(var + EPS)
    shift = b_ref[...] - mean * scale
    y = z_ref[...] * scale + shift
    if relu:
        y = jnp.maximum(y, 0.0)
    o_ref[...] = y


def _bn_apply_res_kernel(z_ref, s_ref, q_ref, g_ref, b_ref, r_ref, o_ref, *,
                         inv_count):
    # y = relu(z * scale + shift + residual), BN finalize fused in-kernel.
    mean = jnp.sum(s_ref[...], axis=0, keepdims=True) * inv_count
    ex2 = jnp.sum(q_ref[...], axis=0, keepdims=True) * inv_count
    var = jnp.maximum(ex2 - mean * mean, 0.0)
    scale = g_ref[...] * jax.lax.rsqrt(var + EPS)
    shift = b_ref[...] - mean * scale
    y = z_ref[...] * scale + shift + r_ref[...]
    o_ref[...] = jnp.maximum(y, 0.0)


def _avgpool_fc_kernel(x_ref, w_ref, b_ref, o_ref):
    # x: [Np, HW, C] -> adaptive avg pool -> Linear(C, lane-padded 128)
    pooled = jnp.mean(x_ref[...], axis=1)                     # (Np, C) f32
    o_ref[...] = jnp.dot(pooled.astype(jnp.bfloat16), w_ref[...],
                         preferred_element_type=jnp.float32) + b_ref[...]


# ----------------------------------------------------------------------------
# Conv + BN wrappers (two-pass: matmul+stats, then fused BN finalize+apply)
# ----------------------------------------------------------------------------
def _im2col_slices(x, kh, kw, stride, pad, pad_value=0.0):
    # x: [N, H, W, C] -> list (kh*kw) of strided [N, OH, OW, C] windows
    N, H, W, C = x.shape
    xp = jnp.pad(x, ((0, 0), (pad, pad), (pad, pad), (0, 0)),
                 constant_values=pad_value)
    OH = (H + 2 * pad - kh) // stride + 1
    OW = (W + 2 * pad - kw) // stride + 1
    cols = []
    for i in range(kh):
        for j in range(kw):
            sl = jax.lax.slice(
                xp,
                (0, i, j, 0),
                (N, i + stride * (OH - 1) + 1, j + stride * (OW - 1) + 1, C),
                (1, stride, stride, 1))
            cols.append(sl)
    return cols, OH, OW


def _conv_pass1_generic(x, w, stride, pad):
    """im2col + tiled matmul-with-stats (7x7 stem, strided 3x3, 1x1 ds)."""
    KH, KW, Cin, Cout = w.shape
    N = x.shape[0]
    # bf16 im2col: the patches were cast to bf16 for the MXU anyway, so
    # materializing them in bf16 halves the im2col HBM footprint/traffic.
    cols, OH, OW = _im2col_slices(x.astype(jnp.bfloat16), KH, KW, stride, pad)
    M = N * OH * OW
    K = KH * KW * Cin
    patches = jnp.concatenate(cols, axis=-1).reshape(M, K)
    w_mat = w.reshape(K, Cout)

    Kp = _round_up(K, 128)                       # lane-align the K dim
    if Kp != K:
        patches = jnp.pad(patches, ((0, 0), (0, Kp - K)))
        w_mat = jnp.pad(w_mat, ((0, Kp - K), (0, 0)))
    w_mat = w_mat.astype(jnp.bfloat16)

    tm = 128 if (M >= 128 and M % 128 == 0) else M
    tk = 256 if Kp % 256 == 0 else 128
    nm, nk = M // tm, Kp // tk

    z, s, q = pl.pallas_call(
        _matmul_stats_kernel,
        out_shape=(jax.ShapeDtypeStruct((M, Cout), jnp.float32),
                   jax.ShapeDtypeStruct((nm * 8, Cout), jnp.float32),
                   jax.ShapeDtypeStruct((nm * 8, Cout), jnp.float32)),
        grid=(nm, nk),
        in_specs=[pl.BlockSpec((tm, tk), lambda m, k: (m, k)),
                  pl.BlockSpec((tk, Cout), lambda m, k: (k, 0))],
        out_specs=(pl.BlockSpec((tm, Cout), lambda m, k: (m, 0)),
                   pl.BlockSpec((8, Cout), lambda m, k: (m, 0)),
                   pl.BlockSpec((8, Cout), lambda m, k: (m, 0))),
        scratch_shapes=[pltpu.VMEM((tm, Cout), jnp.float32)],
        compiler_params=pltpu.CompilerParams(
            dimension_semantics=("parallel", "arbitrary")),
    )(patches, w_mat)
    return z, s, q, OH, OW


def _conv_pass1_win3x3(x, w):
    """3x3 stride-1 pad-1 conv without im2col; grid over images (parallel)."""
    KH, KW, Cin, Cout = w.shape
    N, H, W_, _ = x.shape
    OH, OW = H, W_
    Mi = OH * OW
    xp = jnp.pad(x, ((0, 0), (1, 1), (1, 1), (0, 0)))
    Hp, Wp = H + 2, W_ + 2
    w3 = w.reshape(KH * KW, Cin, Cout).astype(jnp.bfloat16)

    kern = functools.partial(_win_conv_stats_kernel, oh=OH, ow=OW, kh=KH, kw=KW)
    z, s, q = pl.pallas_call(
        kern,
        out_shape=(jax.ShapeDtypeStruct((N, Mi, Cout), jnp.float32),
                   jax.ShapeDtypeStruct((N * 8, Cout), jnp.float32),
                   jax.ShapeDtypeStruct((N * 8, Cout), jnp.float32)),
        grid=(N,),
        in_specs=[pl.BlockSpec((1, Hp, Wp, Cin), lambda n: (n, 0, 0, 0)),
                  pl.BlockSpec((KH * KW, Cin, Cout), lambda n: (0, 0, 0))],
        out_specs=(pl.BlockSpec((1, Mi, Cout), lambda n: (n, 0, 0)),
                   pl.BlockSpec((8, Cout), lambda n: (n, 0)),
                   pl.BlockSpec((8, Cout), lambda n: (n, 0))),
        compiler_params=pltpu.CompilerParams(
            dimension_semantics=("parallel",)),
    )(xp, w3)
    return z.reshape(N * Mi, Cout), s, q, OH, OW


def _bn_apply(z, s, q, gamma, beta, m_true, residual=None, relu=True):
    # Pass 2: finalize BN stats in-kernel, then y = z*scale + shift
    # (+residual) (+ReLU), tiled over M.
    Mp, C = z.shape
    nstat = s.shape[0]
    if Mp >= 256 and Mp % 256 == 0:
        tm = 256
    elif Mp >= 128 and Mp % 128 == 0:
        tm = 128
    else:
        tm = Mp
    nm = Mp // tm
    row_spec = pl.BlockSpec((tm, C), lambda m: (m, 0))
    stat_spec = pl.BlockSpec((nstat, C), lambda m: (0, 0))
    vec_spec = pl.BlockSpec((1, C), lambda m: (0, 0))
    g2 = gamma.reshape(1, C).astype(jnp.float32)
    b2 = beta.reshape(1, C).astype(jnp.float32)
    # Per-tile sums are replicated across 8 sublane rows -> divide by 8*M.
    inv_count = 1.0 / (8.0 * float(m_true))
    if residual is None:
        kern = functools.partial(_bn_apply_kernel, inv_count=inv_count, relu=relu)
        operands = (z, s, q, g2, b2)
        in_specs = [row_spec, stat_spec, stat_spec, vec_spec, vec_spec]
    else:
        kern = functools.partial(_bn_apply_res_kernel, inv_count=inv_count)
        operands = (z, s, q, g2, b2, residual)
        in_specs = [row_spec, stat_spec, stat_spec, vec_spec, vec_spec, row_spec]
    return pl.pallas_call(
        kern,
        out_shape=jax.ShapeDtypeStruct((Mp, C), jnp.float32),
        grid=(nm,),
        in_specs=in_specs,
        out_specs=row_spec,
        compiler_params=pltpu.CompilerParams(
            dimension_semantics=("parallel",)),
    )(*operands)


def conv_bn(x, w, gamma, beta, *, stride, pad, relu=True, residual=None):
    """Conv2d(bias=False) + BatchNorm2d(training mode) [+ residual] [+ ReLU]."""
    KH, KW, Cin, Cout = w.shape
    N = x.shape[0]
    if KH == 3 and KW == 3 and stride == 1 and pad == 1 and x.shape[2] % 8 == 0:
        z, s, q, OH, OW = _conv_pass1_win3x3(x, w)
    else:
        # TODO(synk): extend the no-im2col window path to strided convs and to
        # OW % 8 != 0 spatial sizes; those layers have tiny activations here.
        z, s, q, OH, OW = _conv_pass1_generic(x, w, stride, pad)
    M = N * OH * OW
    res2 = None if residual is None else residual.reshape(M, Cout)
    y = _bn_apply(z, s, q, gamma, beta, M, residual=res2, relu=relu)
    return y.reshape(N, OH, OW, Cout)


# ----------------------------------------------------------------------------
# Max-pool and avg-pool + FC
# ----------------------------------------------------------------------------
def maxpool_3x3_s2_p1(x):
    # F.max_pool2d(kernel=3, stride=2, pad=1) as 9 strided running maxima in
    # the wrapper (no [9, M, C] stack, no extra HBM copy, no kernel needed).
    N, H, W, C = x.shape
    xp = jnp.pad(x, ((0, 0), (1, 1), (1, 1), (0, 0)),
                 constant_values=-jnp.inf)
    OH = (H + 2 - 3) // 2 + 1
    OW = (W + 2 - 3) // 2 + 1
    out = None
    for i in range(3):
        for j in range(3):
            sl = jax.lax.slice(
                xp, (0, i, j, 0),
                (N, i + 2 * (OH - 1) + 1, j + 2 * (OW - 1) + 1, C),
                (1, 2, 2, 1))
            out = sl if out is None else jnp.maximum(out, sl)
    return out


def avgpool_fc(x, w, b):
    # adaptive_avg_pool2d([1,1]) -> flatten -> Linear(512, 47)
    N, H, W, C = x.shape
    num_out = w.shape[1]
    Cp = _round_up(num_out, 128)          # lane-dense FC output (47 -> 128)
    Np = _round_up(N, 8)                  # fill the 8 sublanes
    x3 = x.reshape(N, H * W, C)
    if Np != N:
        x3 = jnp.pad(x3, ((0, Np - N), (0, 0), (0, 0)))
    wp = jnp.pad(w, ((0, 0), (0, Cp - num_out))).astype(jnp.bfloat16)
    bp = jnp.pad(b, (0, Cp - num_out)).reshape(1, Cp).astype(jnp.float32)

    out = pl.pallas_call(
        _avgpool_fc_kernel,
        out_shape=jax.ShapeDtypeStruct((Np, Cp), jnp.float32),
        grid=(1,),
        in_specs=[pl.BlockSpec(x3.shape, lambda i: (0, 0, 0)),
                  pl.BlockSpec(wp.shape, lambda i: (0, 0)),
                  pl.BlockSpec(bp.shape, lambda i: (0, 0))],
        out_specs=pl.BlockSpec((Np, Cp), lambda i: (0, 0)),
    )(x3, wp, bp)
    return out[:N, :num_out]


# ----------------------------------------------------------------------------
# ResNet18 definition (parameters + forward)
# ----------------------------------------------------------------------------
BLOCK_CFG = [
    (64, 64, 1), (64, 64, 1),
    (64, 128, 2), (128, 128, 1),
    (128, 256, 2), (256, 256, 1),
    (256, 512, 2), (512, 512, 1),
]


def init_params(key):
    keys = iter(jax.random.split(key, 64))

    def conv_w(kh, kw, cin, cout):
        fan_in = kh * kw * cin
        return jax.random.normal(next(keys), (kh, kw, cin, cout), jnp.float32) * (
            1.0 / jnp.sqrt(fan_in))

    params = {
        "conv1_w": conv_w(7, 7, 3, 64),
        "bn1_g": jnp.ones((64,), jnp.float32),
        "bn1_b": jnp.zeros((64,), jnp.float32),
        "blocks": [],
    }
    for cin, cout, _ in BLOCK_CFG:
        blk = {
            "conv1_w": conv_w(3, 3, cin, cout),
            "bn1_g": jnp.ones((cout,), jnp.float32),
            "bn1_b": jnp.zeros((cout,), jnp.float32),
            "conv2_w": conv_w(3, 3, cout, cout),
            "bn2_g": jnp.ones((cout,), jnp.float32),
            "bn2_b": jnp.zeros((cout,), jnp.float32),
        }
        if cin != cout:  # downsample: 1x1 conv + BN
            blk["ds_w"] = conv_w(1, 1, cin, cout)
            blk["ds_g"] = jnp.ones((cout,), jnp.float32)
            blk["ds_b"] = jnp.zeros((cout,), jnp.float32)
        params["blocks"].append(blk)

    params["fc_w"] = jax.random.normal(next(keys), (512, 47), jnp.float32) * (
        1.0 / jnp.sqrt(512.0))
    params["fc_b"] = jax.random.normal(next(keys), (47,), jnp.float32) * 0.01
    return params


def resblk_forward(x, p, stride):
    identity = x
    h = conv_bn(x, p["conv1_w"], p["bn1_g"], p["bn1_b"],
                stride=stride, pad=1, relu=True)
    if "ds_w" in p:  # shapes differ -> downsample(identity)
        identity = conv_bn(x, p["ds_w"], p["ds_g"], p["ds_b"],
                           stride=stride, pad=0, relu=False)
    # conv2 + bn2 + residual add + relu: BN finalize / apply / add / ReLU all
    # fused inside the pass-2 kernel.
    # TODO(synk): fuse the whole residual block into a single pallas_call
    # (needs cross-conv staging of training-mode BN statistics).
    return conv_bn(h, p["conv2_w"], p["bn2_g"], p["bn2_b"],
                   stride=1, pad=1, residual=identity)


@jax.jit
def resnet18_forward(params, x_nchw):
    # NCHW (PyTorch) -> NHWC (channels on the TPU lane dim)
    x = jnp.transpose(x_nchw, (0, 2, 3, 1)).astype(jnp.float32)
    x = conv_bn(x, params["conv1_w"], params["bn1_g"], params["bn1_b"],
                stride=2, pad=3, relu=True)
    x = maxpool_3x3_s2_p1(x)
    for p, (_, _, stride) in zip(params["blocks"], BLOCK_CFG):
        x = resblk_forward(x, p, stride)
    return avgpool_fc(x, params["fc_w"], params["fc_b"])  # [N, 47]


# ----------------------------------------------------------------------------
if __name__ == "__main__":
    key = jax.random.PRNGKey(0)
    k_params, k_x = jax.random.split(key)
    params = init_params(k_params)

    # Small NCHW input consistent with the module (3 input channels).
    x = jax.random.normal(k_x, (2, 3, 32, 32), jnp.float32)

    logits = resnet18_forward(params, x)
    logits = jax.block_until_ready(logits)

    assert logits.shape == (2, 47), logits.shape
    assert bool(jnp.all(jnp.isfinite(logits)))
    print("KERNEL_OK")
</pallas_src>

<mosaic_0001>
module attributes {stable_mosaic.version = 11 : i64} {
  func.func @_matmul_stats_kernel(%arg0: i32, %arg1: i32, %arg2: memref<128x256xbf16, #tpu.memory_space<vmem>>, %arg3: memref<256x64xbf16, #tpu.memory_space<vmem>>, %arg4: memref<128x64xf32, #tpu.memory_space<vmem>>, %arg5: memref<8x64xf32, #tpu.memory_space<vmem>>, %arg6: memref<8x64xf32, #tpu.memory_space<vmem>>, %arg7: memref<128x64xf32, #tpu.memory_space<vmem>>) attributes {dimension_semantics = [#tpu.dimension_semantics<parallel>, #tpu.dimension_semantics<arbitrary>], iteration_bounds = array<i64: 4, 1>, scalar_prefetch = 0 : i64, scratch_operands = 1 : i64, tpu.core_type = #tpu.core_type<tc>, window_params = [{transform_indices = @transform_0, window_bounds = array<i64: 128, 256>}, {transform_indices = @transform_1, window_bounds = array<i64: 256, 64>}, {transform_indices = @transform_2, window_bounds = array<i64: 128, 64>}, {transform_indices = @transform_3, window_bounds = array<i64: 8, 64>}, {transform_indices = @transform_4, window_bounds = array<i64: 8, 64>}]} {
    %c0_i32 = arith.constant 0 : i32
    %0 = arith.cmpi eq, %arg1, %c0_i32 : i32
    %1 = arith.extui %0 : i1 to i32
    %c0_i32_0 = arith.constant 0 : i32
    %2 = arith.cmpi ne, %1, %c0_i32_0 : i32
    scf.if %2 {
      %cst_10 = arith.constant 0.000000e+00 : f32
      %12 = vector.broadcast %cst_10 : f32 to vector<128x64xf32>
      %c0_11 = arith.constant 0 : index
      %c0_12 = arith.constant 0 : index
      %13 = vector.load %arg7[%c0_11, %c0_12] : memref<128x64xf32, #tpu.memory_space<vmem>>, vector<128x64xf32>
      tpu.vector_store %arg7[%c0_11, %c0_12], %12 {strides = array<i32>} : memref<128x64xf32, #tpu.memory_space<vmem>>, vector<128x64xf32>,
    } else {
    }
    %c0 = arith.constant 0 : index
    %c0_1 = arith.constant 0 : index
    %3 = vector.load %arg7[%c0, %c0_1] : memref<128x64xf32, #tpu.memory_space<vmem>>, vector<128x64xf32>
    %c0_2 = arith.constant 0 : index
    %c0_3 = arith.constant 0 : index
    %4 = vector.load %arg2[%c0_2, %c0_3] : memref<128x256xbf16, #tpu.memory_space<vmem>>, vector<128x256xbf16>
    %c0_4 = arith.constant 0 : index
    %c0_5 = arith.constant 0 : index
    %5 = vector.load %arg3[%c0_4, %c0_5] : memref<256x64xbf16, #tpu.memory_space<vmem>>, vector<256x64xbf16>
    %cst = arith.constant dense<0.000000e+00> : vector<128x64xf32>
    %6 = tpu.matmul %4, %5, %cst {dimension_numbers = #tpu.dot_dimension_numbers<[1], [0], [0], [1], [0, 0, 1, 1], [], []>} : vector<128x256xbf16>, vector<256x64xbf16>, vector<128x64xf32> -> vector<128x64xf32>
    %7 = arith.addf %3, %6 : vector<128x64xf32>
    %c0_6 = arith.constant 0 : index
    %c0_7 = arith.constant 0 : index
    %8 = vector.load %arg7[%c0_6, %c0_7] : memref<128x64xf32, #tpu.memory_space<vmem>>, vector<128x64xf32>
    tpu.vector_store %arg7[%c0_6, %c0_7], %7 {strides = array<i32>} : memref<128x64xf32, #tpu.memory_space<vmem>>, vector<128x64xf32>,
    %c0_i32_8 = arith.constant 0 : i32
    %9 = arith.cmpi eq, %arg1, %c0_i32_8 : i32
    %10 = arith.extui %9 : i1 to i32
    %c0_i32_9 = arith.constant 0 : i32
    %11 = arith.cmpi ne, %10, %c0_i32_9 : i32
    scf.if %11 {
      %c0_10 = arith.constant 0 : index
      %c0_11 = arith.constant 0 : index
      %12 = vector.load %arg7[%c0_10, %c0_11] : memref<128x64xf32, #tpu.memory_space<vmem>>, vector<128x64xf32>
      %c0_12 = arith.constant 0 : index
      %c0_13 = arith.constant 0 : index
      %13 = vector.load %arg4[%c0_12, %c0_13] : memref<128x64xf32, #tpu.memory_space<vmem>>, vector<128x64xf32>
      tpu.vector_store %arg4[%c0_12, %c0_13], %12 {strides = array<i32>} : memref<128x64xf32, #tpu.memory_space<vmem>>, vector<128x64xf32>,
      %cst_14 = arith.constant dense<0.000000e+00> : vector<64xf32>
      %14 = vector.multi_reduction <add>, %12, %cst_14 [0] : vector<128x64xf32> to vector<64xf32>
      %15 = vector.shape_cast %14 : vector<64xf32> to vector<1x64xf32>
      %16 = vector.shape_cast %15 : vector<1x64xf32> to vector<1x64xf32>
      %17 = vector.broadcast %16 : vector<1x64xf32> to vector<8x64xf32>
      %c0_15 = arith.constant 0 : index
      %c0_16 = arith.constant 0 : index
      %18 = vector.load %arg5[%c0_15, %c0_16] : memref<8x64xf32, #tpu.memory_space<vmem>>, vector<8x64xf32>
      tpu.vector_store %arg5[%c0_15, %c0_16], %17 {strides = array<i32>} : memref<8x64xf32, #tpu.memory_space<vmem>>, vector<8x64xf32>,
      %19 = arith.mulf %12, %12 : vector<128x64xf32>
      %cst_17 = arith.constant dense<0.000000e+00> : vector<64xf32>
      %20 = vector.multi_reduction <add>, %19, %cst_17 [0] : vector<128x64xf32> to vector<64xf32>
      %21 = vector.shape_cast %20 : vector<64xf32> to vector<1x64xf32>
      %22 = vector.shape_cast %21 : vector<1x64xf32> to vector<1x64xf32>
      %23 = vector.broadcast %22 : vector<1x64xf32> to vector<8x64xf32>
      %c0_18 = arith.constant 0 : index
      %c0_19 = arith.constant 0 : index
      %24 = vector.load %arg6[%c0_18, %c0_19] : memref<8x64xf32, #tpu.memory_space<vmem>>, vector<8x64xf32>
      tpu.vector_store %arg6[%c0_18, %c0_19], %23 {strides = array<i32>} : memref<8x64xf32, #tpu.memory_space<vmem>>, vector<8x64xf32>,
    } else {
    }
    return
  }
  func.func @transform_0(%arg0: i32, %arg1: i32) -> (i32, i32) {
    %c0_i32 = arith.constant 0 : i32
    return %arg0, %arg1 : i32, i32
  }
  func.func @transform_1(%arg0: i32, %arg1: i32) -> (i32, i32) {
    %c0_i32 = arith.constant 0 : i32
    %c0_i32_0 = arith.constant 0 : i32
    return %arg1, %c0_i32 : i32, i32
  }
  func.func @transform_2(%arg0: i32, %arg1: i32) -> (i32, i32) {
    %c0_i32 = arith.constant 0 : i32
    %c0_i32_0 = arith.constant 0 : i32
    return %arg0, %c0_i32 : i32, i32
  }
  func.func @transform_3(%arg0: i32, %arg1: i32) -> (i32, i32) {
    %c0_i32 = arith.constant 0 : i32
    %c0_i32_0 = arith.constant 0 : i32
    return %arg0, %c0_i32 : i32, i32
  }
  func.func @transform_4(%arg0: i32, %arg1: i32) -> (i32, i32) {
    %c0_i32 = arith.constant 0 : i32
    %c0_i32_0 = arith.constant 0 : i32
    return %arg0, %c0_i32 : i32, i32
  }
}

module attributes {stable_mosaic.version = 11 : i64} {
  func.func @_bn_apply_kernel(%arg0: i32, %arg1: memref<256x64xf32, #tpu.memory_space<vmem>>, %arg2: memref<32x64xf32, #tpu.memory_space<vmem>>, %arg3: memref<32x64xf32, #tpu.memory_space<vmem>>, %arg4: memref<1x64xf32, #tpu.memory_space<vmem>>, %arg5: memref<1x64xf32, #tpu.memory_space<vmem>>, %arg6: memref<256x64xf32, #tpu.memory_space<vmem>>) attributes {dimension_semantics = [#tpu.dimension_semantics<parallel>], iteration_bounds = array<i64: 2>, scalar_prefetch = 0 : i64, scratch_operands = 0 : i64, tpu.core_type = #tpu.core_type<tc>, window_params = [{transform_indices = @transform_0, window_bounds = array<i64: 256, 64>}, {pipeline_mode = #tpu.pipeline_mode<synchronous>, transform_indices = @transform_1, window_bounds = array<i64: 32, 64>}, {pipeline_mode = #tpu.pipeline_mode<synchronous>, transform_indices = @transform_2, window_bounds = array<i64: 32, 64>}, {pipeline_mode = #tpu.pipeline_mode<synchronous>, transform_indices = @transform_3, window_bounds = array<i64: 1, 64>}, {pipeline_mode = #tpu.pipeline_mode<synchronous>, transform_indices = @transform_4, window_bounds = array<i64: 1, 64>}, {transform_indices = @transform_5, window_bounds = array<i64: 256, 64>}]} {
    %c0 = arith.constant 0 : index
    %c0_0 = arith.constant 0 : index
    %0 = vector.load %arg2[%c0, %c0_0] : memref<32x64xf32, #tpu.memory_space<vmem>>, vector<32x64xf32>
    %cst = arith.constant dense<0.000000e+00> : vector<64xf32>
    %1 = vector.multi_reduction <add>, %0, %cst [0] : vector<32x64xf32> to vector<64xf32>
    %2 = vector.shape_cast %1 : vector<64xf32> to vector<1x64xf32>
    %cst_1 = arith.constant 2.44140625E-4 : f32
    %3 = vector.broadcast %cst_1 : f32 to vector<1x64xf32>
    %4 = arith.mulf %2, %3 : vector<1x64xf32>
    %c0_2 = arith.constant 0 : index
    %c0_3 = arith.constant 0 : index
    %5 = vector.load %arg3[%c0_2, %c0_3] : memref<32x64xf32, #tpu.memory_space<vmem>>, vector<32x64xf32>
    %cst_4 = arith.constant dense<0.000000e+00> : vector<64xf32>
    %6 = vector.multi_reduction <add>, %5, %cst_4 [0] : vector<32x64xf32> to vector<64xf32>
    %7 = vector.shape_cast %6 : vector<64xf32> to vector<1x64xf32>
    %cst_5 = arith.constant 2.44140625E-4 : f32
    %8 = vector.broadcast %cst_5 : f32 to vector<1x64xf32>
    %9 = arith.mulf %7, %8 : vector<1x64xf32>
    %10 = arith.mulf %4, %4 : vector<1x64xf32>
    %11 = arith.subf %9, %10 : vector<1x64xf32>
    %cst_6 = arith.constant 0.000000e+00 : f32
    %12 = vector.broadcast %cst_6 : f32 to vector<1x64xf32>
    %13 = arith.maximumf %11, %12 : vector<1x64xf32>
    %c0_7 = arith.constant 0 : index
    %c0_8 = arith.constant 0 : index
    %14 = vector.load %arg4[%c0_7, %c0_8] : memref<1x64xf32, #tpu.memory_space<vmem>>, vector<1x64xf32>
    %cst_9 = arith.constant 9.99999974E-6 : f32
    %15 = vector.broadcast %cst_9 : f32 to vector<1x64xf32>
    %16 = arith.addf %13, %15 : vector<1x64xf32>
    %17 = math.rsqrt %16 : vector<1x64xf32>
    %18 = arith.mulf %14, %17 : vector<1x64xf32>
    %c0_10 = arith.constant 0 : index
    %c0_11 = arith.constant 0 : index
    %19 = vector.load %arg5[%c0_10, %c0_11] : memref<1x64xf32, #tpu.memory_space<vmem>>, vector<1x64xf32>
    %20 = arith.mulf %4, %18 : vector<1x64xf32>
    %21 = arith.subf %19, %20 : vector<1x64xf32>
    %c0_12 = arith.constant 0 : index
    %c0_13 = arith.constant 0 : index
    %22 = vector.load %arg1[%c0_12, %c0_13] : memref<256x64xf32, #tpu.memory_space<vmem>>, vector<256x64xf32>
    %23 = vector.broadcast %18 : vector<1x64xf32> to vector<256x64xf32>
    %24 = arith.mulf %22, %23 : vector<256x64xf32>
    %25 = vector.broadcast %21 : vector<1x64xf32> to vector<256x64xf32>
    %26 = arith.addf %24, %25 : vector<256x64xf32>
    %cst_14 = arith.constant 0.000000e+00 : f32
    %27 = vector.broadcast %cst_14 : f32 to vector<256x64xf32>
    %28 = arith.maximumf %26, %27 : vector<256x64xf32>
    %c0_15 = arith.constant 0 : index
    %c0_16 = arith.constant 0 : index
    %29 = vector.load %arg6[%c0_15, %c0_16] : memref<256x64xf32, #tpu.memory_space<vmem>>, vector<256x64xf32>
    tpu.vector_store %arg6[%c0_15, %c0_16], %28 {strides = array<i32>} : memref<256x64xf32, #tpu.memory_space<vmem>>, vector<256x64xf32>,
    return
  }
  func.func @transform_0(%arg0: i32) -> (i32, i32) {
    %c0_i32 = arith.constant 0 : i32
    %c0_i32_0 = arith.constant 0 : i32
    return %arg0, %c0_i32 : i32, i32
  }
  func.func @transform_1(%arg0: i32) -> (i32, i32) {
    %c0_i32 = arith.constant 0 : i32
    %c0_i32_0 = arith.constant 0 : i32
    %c0_i32_1 = arith.constant 0 : i32
    return %c0_i32, %c0_i32_0 : i32, i32
  }
  func.func @transform_2(%arg0: i32) -> (i32, i32) {
    %c0_i32 = arith.constant 0 : i32
    %c0_i32_0 = arith.constant 0 : i32
    %c0_i32_1 = arith.constant 0 : i32
    return %c0_i32, %c0_i32_0 : i32, i32
  }
  func.func @transform_3(%arg0: i32) -> (i32, i32) {
    %c0_i32 = arith.constant 0 : i32
    %c0_i32_0 = arith.constant 0 : i32
    %c0_i32_1 = arith.constant 0 : i32
    return %c0_i32, %c0_i32_0 : i32, i32
  }
  func.func @transform_4(%arg0: i32) -> (i32, i32) {
    %c0_i32 = arith.constant 0 : i32
    %c0_i32_0 = arith.constant 0 : i32
    %c0_i32_1 = arith.constant 0 : i32
    return %c0_i32, %c0_i32_0 : i32, i32
  }
  func.func @transform_5(%arg0: i32) -> (i32, i32) {
    %c0_i32 = arith.constant 0 : i32
    %c0_i32_0 = arith.constant 0 : i32
    return %arg0, %c0_i32 : i32, i32
  }
}

module attributes {stable_mosaic.version = 11 : i64} {
  func.func @_bn_apply_res_kernel(%arg0: i32, %arg1: memref<128x64xf32, #tpu.memory_space<vmem>>, %arg2: memref<16x64xf32, #tpu.memory_space<vmem>>, %arg3: memref<16x64xf32, #tpu.memory_space<vmem>>, %arg4: memref<1x64xf32, #tpu.memory_space<vmem>>, %arg5: memref<1x64xf32, #tpu.memory_space<vmem>>, %arg6: memref<128x64xf32, #tpu.memory_space<vmem>>, %arg7: memref<128x64xf32, #tpu.memory_space<vmem>>) attributes {dimension_semantics = [#tpu.dimension_semantics<parallel>], iteration_bounds = array<i64: 1>, scalar_prefetch = 0 : i64, scratch_operands = 0 : i64, tpu.core_type = #tpu.core_type<tc>, window_params = [{transform_indices = @transform_0, window_bounds = array<i64: 128, 64>}, {pipeline_mode = #tpu.pipeline_mode<synchronous>, transform_indices = @transform_1, window_bounds = array<i64: 16, 64>}, {pipeline_mode = #tpu.pipeline_mode<synchronous>, transform_indices = @transform_2, window_bounds = array<i64: 16, 64>}, {pipeline_mode = #tpu.pipeline_mode<synchronous>, transform_indices = @transform_3, window_bounds = array<i64: 1, 64>}, {pipeline_mode = #tpu.pipeline_mode<synchronous>, transform_indices = @transform_4, window_bounds = array<i64: 1, 64>}, {transform_indices = @transform_5, window_bounds = array<i64: 128, 64>}, {transform_indices = @transform_6, window_bounds = array<i64: 128, 64>}]} {
    %c0 = arith.constant 0 : index
    %c0_0 = arith.constant 0 : index
    %0 = vector.load %arg2[%c0, %c0_0] : memref<16x64xf32, #tpu.memory_space<vmem>>, vector<16x64xf32>
    %cst = arith.constant dense<0.000000e+00> : vector<64xf32>
    %1 = vector.multi_reduction <add>, %0, %cst [0] : vector<16x64xf32> to vector<64xf32>
    %2 = vector.shape_cast %1 : vector<64xf32> to vector<1x64xf32>
    %cst_1 = arith.constant 9.765625E-4 : f32
    %3 = vector.broadcast %cst_1 : f32 to vector<1x64xf32>
    %4 = arith.mulf %2, %3 : vector<1x64xf32>
    %c0_2 = arith.constant 0 : index
    %c0_3 = arith.constant 0 : index
    %5 = vector.load %arg3[%c0_2, %c0_3] : memref<16x64xf32, #tpu.memory_space<vmem>>, vector<16x64xf32>
    %cst_4 = arith.constant dense<0.000000e+00> : vector<64xf32>
    %6 = vector.multi_reduction <add>, %5, %cst_4 [0] : vector<16x64xf32> to vector<64xf32>
    %7 = vector.shape_cast %6 : vector<64xf32> to vector<1x64xf32>
    %cst_5 = arith.constant 9.765625E-4 : f32
    %8 = vector.broadcast %cst_5 : f32 to vector<1x64xf32>
    %9 = arith.mulf %7, %8 : vector<1x64xf32>
    %10 = arith.mulf %4, %4 : vector<1x64xf32>
    %11 = arith.subf %9, %10 : vector<1x64xf32>
    %cst_6 = arith.constant 0.000000e+00 : f32
    %12 = vector.broadcast %cst_6 : f32 to vector<1x64xf32>
    %13 = arith.maximumf %11, %12 : vector<1x64xf32>
    %c0_7 = arith.constant 0 : index
    %c0_8 = arith.constant 0 : index
    %14 = vector.load %arg4[%c0_7, %c0_8] : memref<1x64xf32, #tpu.memory_space<vmem>>, vector<1x64xf32>
    %cst_9 = arith.constant 9.99999974E-6 : f32
    %15 = vector.broadcast %cst_9 : f32 to vector<1x64xf32>
    %16 = arith.addf %13, %15 : vector<1x64xf32>
    %17 = math.rsqrt %16 : vector<1x64xf32>
    %18 = arith.mulf %14, %17 : vector<1x64xf32>
    %c0_10 = arith.constant 0 : index
    %c0_11 = arith.constant 0 : index
    %19 = vector.load %arg5[%c0_10, %c0_11] : memref<1x64xf32, #tpu.memory_space<vmem>>, vector<1x64xf32>
    %20 = arith.mulf %4, %18 : vector<1x64xf32>
    %21 = arith.subf %19, %20 : vector<1x64xf32>
    %c0_12 = arith.constant 0 : index
    %c0_13 = arith.constant 0 : index
    %22 = vector.load %arg1[%c0_12, %c0_13] : memref<128x64xf32, #tpu.memory_space<vmem>>, vector<128x64xf32>
    %23 = vector.broadcast %18 : vector<1x64xf32> to vector<128x64xf32>
    %24 = arith.mulf %22, %23 : vector<128x64xf32>
    %25 = vector.broadcast %21 : vector<1x64xf32> to vector<128x64xf32>
    %26 = arith.addf %24, %25 : vector<128x64xf32>
    %c0_14 = arith.constant 0 : index
    %c0_15 = arith.constant 0 : index
    %27 = vector.load %arg6[%c0_14, %c0_15] : memref<128x64xf32, #tpu.memory_space<vmem>>, vector<128x64xf32>
    %28 = arith.addf %26, %27 : vector<128x64xf32>
    %cst_16 = arith.constant 0.000000e+00 : f32
    %29 = vector.broadcast %cst_16 : f32 to vector<128x64xf32>
    %30 = arith.maximumf %28, %29 : vector<128x64xf32>
    %c0_17 = arith.constant 0 : index
    %c0_18 = arith.constant 0 : index
    %31 = vector.load %arg7[%c0_17, %c0_18] : memref<128x64xf32, #tpu.memory_space<vmem>>, vector<128x64xf32>
    tpu.vector_store %arg7[%c0_17, %c0_18], %30 {strides = array<i32>} : memref<128x64xf32, #tpu.memory_space<vmem>>, vector<128x64xf32>,
    return
  }
  func.func @transform_0(%arg0: i32) -> (i32, i32) {
    %c0_i32 = arith.constant 0 : i32
    %c0_i32_0 = arith.constant 0 : i32
    return %arg0, %c0_i32 : i32, i32
  }
  func.func @transform_1(%arg0: i32) -> (i32, i32) {
    %c0_i32 = arith.constant 0 : i32
    %c0_i32_0 = arith.constant 0 : i32
    %c0_i32_1 = arith.constant 0 : i32
    return %c0_i32, %c0_i32_0 : i32, i32
  }
  func.func @transform_2(%arg0: i32) -> (i32, i32) {
    %c0_i32 = arith.constant 0 : i32
    %c0_i32_0 = arith.constant 0 : i32
    %c0_i32_1 = arith.constant 0 : i32
    return %c0_i32, %c0_i32_0 : i32, i32
  }
  func.func @transform_3(%arg0: i32) -> (i32, i32) {
    %c0_i32 = arith.constant 0 : i32
    %c0_i32_0 = arith.constant 0 : i32
    %c0_i32_1 = arith.constant 0 : i32
    return %c0_i32, %c0_i32_0 : i32, i32
  }
  func.func @transform_4(%arg0: i32) -> (i32, i32) {
    %c0_i32 = arith.constant 0 : i32
    %c0_i32_0 = arith.constant 0 : i32
    %c0_i32_1 = arith.constant 0 : i32
    return %c0_i32, %c0_i32_0 : i32, i32
  }
  func.func @transform_5(%arg0: i32) -> (i32, i32) {
    %c0_i32 = arith.constant 0 : i32
    %c0_i32_0 = arith.constant 0 : i32
    return %arg0, %c0_i32 : i32, i32
  }
  func.func @transform_6(%arg0: i32) -> (i32, i32) {
    %c0_i32 = arith.constant 0 : i32
    %c0_i32_0 = arith.constant 0 : i32
    return %arg0, %c0_i32 : i32, i32
  }
}

module attributes {stable_mosaic.version = 11 : i64} {
  func.func @_bn_apply_kernel(%arg0: i32, %arg1: memref<128x64xf32, #tpu.memory_space<vmem>>, %arg2: memref<16x64xf32, #tpu.memory_space<vmem>>, %arg3: memref<16x64xf32, #tpu.memory_space<vmem>>, %arg4: memref<1x64xf32, #tpu.memory_space<vmem>>, %arg5: memref<1x64xf32, #tpu.memory_space<vmem>>, %arg6: memref<128x64xf32, #tpu.memory_space<vmem>>) attributes {dimension_semantics = [#tpu.dimension_semantics<parallel>], iteration_bounds = array<i64: 1>, scalar_prefetch = 0 : i64, scratch_operands = 0 : i64, tpu.core_type = #tpu.core_type<tc>, window_params = [{transform_indices = @transform_0, window_bounds = array<i64: 128, 64>}, {pipeline_mode = #tpu.pipeline_mode<synchronous>, transform_indices = @transform_1, window_bounds = array<i64: 16, 64>}, {pipeline_mode = #tpu.pipeline_mode<synchronous>, transform_indices = @transform_2, window_bounds = array<i64: 16, 64>}, {pipeline_mode = #tpu.pipeline_mode<synchronous>, transform_indices = @transform_3, window_bounds = array<i64: 1, 64>}, {pipeline_mode = #tpu.pipeline_mode<synchronous>, transform_indices = @transform_4, window_bounds = array<i64: 1, 64>}, {transform_indices = @transform_5, window_bounds = array<i64: 128, 64>}]} {
    %c0 = arith.constant 0 : index
    %c0_0 = arith.constant 0 : index
    %0 = vector.load %arg2[%c0, %c0_0] : memref<16x64xf32, #tpu.memory_space<vmem>>, vector<16x64xf32>
    %cst = arith.constant dense<0.000000e+00> : vector<64xf32>
    %1 = vector.multi_reduction <add>, %0, %cst [0] : vector<16x64xf32> to vector<64xf32>
    %2 = vector.shape_cast %1 : vector<64xf32> to vector<1x64xf32>
    %cst_1 = arith.constant 9.765625E-4 : f32
    %3 = vector.broadcast %cst_1 : f32 to vector<1x64xf32>
    %4 = arith.mulf %2, %3 : vector<1x64xf32>
    %c0_2 = arith.constant 0 : index
    %c0_3 = arith.constant 0 : index
    %5 = vector.load %arg3[%c0_2, %c0_3] : memref<16x64xf32, #tpu.memory_space<vmem>>, vector<16x64xf32>
    %cst_4 = arith.constant dense<0.000000e+00> : vector<64xf32>
    %6 = vector.multi_reduction <add>, %5, %cst_4 [0] : vector<16x64xf32> to vector<64xf32>
    %7 = vector.shape_cast %6 : vector<64xf32> to vector<1x64xf32>
    %cst_5 = arith.constant 9.765625E-4 : f32
    %8 = vector.broadcast %cst_5 : f32 to vector<1x64xf32>
    %9 = arith.mulf %7, %8 : vector<1x64xf32>
    %10 = arith.mulf %4, %4 : vector<1x64xf32>
    %11 = arith.subf %9, %10 : vector<1x64xf32>
    %cst_6 = arith.constant 0.000000e+00 : f32
    %12 = vector.broadcast %cst_6 : f32 to vector<1x64xf32>
    %13 = arith.maximumf %11, %12 : vector<1x64xf32>
    %c0_7 = arith.constant 0 : index
    %c0_8 = arith.constant 0 : index
    %14 = vector.load %arg4[%c0_7, %c0_8] : memref<1x64xf32, #tpu.memory_space<vmem>>, vector<1x64xf32>
    %cst_9 = arith.constant 9.99999974E-6 : f32
    %15 = vector.broadcast %cst_9 : f32 to vector<1x64xf32>
    %16 = arith.addf %13, %15 : vector<1x64xf32>
    %17 = math.rsqrt %16 : vector<1x64xf32>
    %18 = arith.mulf %14, %17 : vector<1x64xf32>
    %c0_10 = arith.constant 0 : index
    %c0_11 = arith.constant 0 : index
    %19 = vector.load %arg5[%c0_10, %c0_11] : memref<1x64xf32, #tpu.memory_space<vmem>>, vector<1x64xf32>
    %20 = arith.mulf %4, %18 : vector<1x64xf32>
    %21 = arith.subf %19, %20 : vector<1x64xf32>
    %c0_12 = arith.constant 0 : index
    %c0_13 = arith.constant 0 : index
    %22 = vector.load %arg1[%c0_12, %c0_13] : memref<128x64xf32, #tpu.memory_space<vmem>>, vector<128x64xf32>
    %23 = vector.broadcast %18 : vector<1x64xf32> to vector<128x64xf32>
    %24 = arith.mulf %22, %23 : vector<128x64xf32>
    %25 = vector.broadcast %21 : vector<1x64xf32> to vector<128x64xf32>
    %26 = arith.addf %24, %25 : vector<128x64xf32>
    %cst_14 = arith.constant 0.000000e+00 : f32
    %27 = vector.broadcast %cst_14 : f32 to vector<128x64xf32>
    %28 = arith.maximumf %26, %27 : vector<128x64xf32>
    %c0_15 = arith.constant 0 : index
    %c0_16 = arith.constant 0 : index
    %29 = vector.load %arg6[%c0_15, %c0_16] : memref<128x64xf32, #tpu.memory_space<vmem>>, vector<128x64xf32>
    tpu.vector_store %arg6[%c0_15, %c0_16], %28 {strides = array<i32>} : memref<128x64xf32, #tpu.memory_space<vmem>>, vector<128x64xf32>,
    return
  }
  func.func @transform_0(%arg0: i32) -> (i32, i32) {
    %c0_i32 = arith.constant 0 : i32
    %c0_i32_0 = arith.constant 0 : i32
    return %arg0, %c0_i32 : i32, i32
  }
  func.func @transform_1(%arg0: i32) -> (i32, i32) {
    %c0_i32 = arith.constant 0 : i32
    %c0_i32_0 = arith.constant 0 : i32
    %c0_i32_1 = arith.constant 0 : i32
    return %c0_i32, %c0_i32_0 : i32, i32
  }
  func.func @transform_2(%arg0: i32) -> (i32, i32) {
    %c0_i32 = arith.constant 0 : i32
    %c0_i32_0 = arith.constant 0 : i32
    %c0_i32_1 = arith.constant 0 : i32
    return %c0_i32, %c0_i32_0 : i32, i32
  }
  func.func @transform_3(%arg0: i32) -> (i32, i32) {
    %c0_i32 = arith.constant 0 : i32
    %c0_i32_0 = arith.constant 0 : i32
    %c0_i32_1 = arith.constant 0 : i32
    return %c0_i32, %c0_i32_0 : i32, i32
  }
  func.func @transform_4(%arg0: i32) -> (i32, i32) {
    %c0_i32 = arith.constant 0 : i32
    %c0_i32_0 = arith.constant 0 : i32
    %c0_i32_1 = arith.constant 0 : i32
    return %c0_i32, %c0_i32_0 : i32, i32
  }
  func.func @transform_5(%arg0: i32) -> (i32, i32) {
    %c0_i32 = arith.constant 0 : i32
    %c0_i32_0 = arith.constant 0 : i32
    return %arg0, %c0_i32 : i32, i32
  }
}

module attributes {stable_mosaic.version = 11 : i64} {
  func.func @_win_conv_stats_kernel(%arg0: i32, %arg1: memref<1x10x10x64xf32, #tpu.memory_space<vmem>>, %arg2: memref<9x64x64xbf16, #tpu.memory_space<vmem>>, %arg3: memref<1x64x64xf32, #tpu.memory_space<vmem>>, %arg4: memref<8x64xf32, #tpu.memory_space<vmem>>, %arg5: memref<8x64xf32, #tpu.memory_space<vmem>>) attributes {dimension_semantics = [#tpu.dimension_semantics<parallel>], iteration_bounds = array<i64: 2>, scalar_prefetch = 0 : i64, scratch_operands = 0 : i64, tpu.core_type = #tpu.core_type<tc>, window_params = [{transform_indices = @transform_0, window_bounds = array<i64: 1, 10, 10, 64>}, {pipeline_mode = #tpu.pipeline_mode<synchronous>, transform_indices = @transform_1, window_bounds = array<i64: 9, 64, 64>}, {transform_indices = @transform_2, window_bounds = array<i64: 1, 64, 64>}, {transform_indices = @transform_3, window_bounds = array<i64: 8, 64>}, {transform_indices = @transform_4, window_bounds = array<i64: 8, 64>}]} {
    %cst = arith.constant 0.000000e+00 : f32
    %0 = vector.broadcast %cst : f32 to vector<64x64xf32>
    %c0 = arith.constant 0 : index
    %c0_0 = arith.constant 0 : index
    %c0_1 = arith.constant 0 : index
    %c0_2 = arith.constant 0 : index
    %1 = vector.load %arg1[%c0, %c0_0, %c0_1, %c0_2] : memref<1x10x10x64xf32, #tpu.memory_space<vmem>>, vector<1x8x8x64xf32>
    %2 = vector.shape_cast %1 : vector<1x8x8x64xf32> to vector<8x8x64xf32>
    %3 = vector.shape_cast %2 : vector<8x8x64xf32> to vector<64x64xf32>
    %4 = arith.truncf %3 : vector<64x64xf32> to vector<64x64xbf16>
    %c0_3 = arith.constant 0 : index
    %c0_4 = arith.constant 0 : index
    %c0_5 = arith.constant 0 : index
    %5 = vector.load %arg2[%c0_3, %c0_4, %c0_5] : memref<9x64x64xbf16, #tpu.memory_space<vmem>>, vector<1x64x64xbf16>
    %6 = vector.shape_cast %5 : vector<1x64x64xbf16> to vector<64x64xbf16>
    %cst_6 = arith.constant dense<0.000000e+00> : vector<64x64xf32>
    %7 = tpu.matmul %4, %6, %cst_6 {dimension_numbers = #tpu.dot_dimension_numbers<[1], [0], [0], [1], [0, 0, 1, 1], [], []>} : vector<64x64xbf16>, vector<64x64xbf16>, vector<64x64xf32> -> vector<64x64xf32>
    %8 = arith.addf %0, %7 : vector<64x64xf32>
    %c0_7 = arith.constant 0 : index
    %c0_8 = arith.constant 0 : index
    %c1 = arith.constant 1 : index
    %c0_9 = arith.constant 0 : index
    %9 = vector.load %arg1[%c0_7, %c0_8, %c1, %c0_9] : memref<1x10x10x64xf32, #tpu.memory_space<vmem>>, vector<1x8x8x64xf32>
    %10 = vector.shape_cast %9 : vector<1x8x8x64xf32> to vector<8x8x64xf32>
    %11 = vector.shape_cast %10 : vector<8x8x64xf32> to vector<64x64xf32>
    %12 = arith.truncf %11 : vector<64x64xf32> to vector<64x64xbf16>
    %c1_10 = arith.constant 1 : index
    %c0_11 = arith.constant 0 : index
    %c0_12 = arith.constant 0 : index
    %13 = vector.load %arg2[%c1_10, %c0_11, %c0_12] : memref<9x64x64xbf16, #tpu.memory_space<vmem>>, vector<1x64x64xbf16>
    %14 = vector.shape_cast %13 : vector<1x64x64xbf16> to vector<64x64xbf16>
    %cst_13 = arith.constant dense<0.000000e+00> : vector<64x64xf32>
    %15 = tpu.matmul %12, %14, %cst_13 {dimension_numbers = #tpu.dot_dimension_numbers<[1], [0], [0], [1], [0, 0, 1, 1], [], []>} : vector<64x64xbf16>, vector<64x64xbf16>, vector<64x64xf32> -> vector<64x64xf32>
    %16 = arith.addf %8, %15 : vector<64x64xf32>
    %c0_14 = arith.constant 0 : index
    %c0_15 = arith.constant 0 : index
    %c2 = arith.constant 2 : index
    %c0_16 = arith.constant 0 : index
    %17 = vector.load %arg1[%c0_14, %c0_15, %c2, %c0_16] : memref<1x10x10x64xf32, #tpu.memory_space<vmem>>, vector<1x8x8x64xf32>
    %18 = vector.shape_cast %17 : vector<1x8x8x64xf32> to vector<8x8x64xf32>
    %19 = vector.shape_cast %18 : vector<8x8x64xf32> to vector<64x64xf32>
    %20 = arith.truncf %19 : vector<64x64xf32> to vector<64x64xbf16>
    %c2_17 = arith.constant 2 : index
    %c0_18 = arith.constant 0 : index
    %c0_19 = arith.constant 0 : index
    %21 = vector.load %arg2[%c2_17, %c0_18, %c0_19] : memref<9x64x64xbf16, #tpu.memory_space<vmem>>, vector<1x64x64xbf16>
    %22 = vector.shape_cast %21 : vector<1x64x64xbf16> to vector<64x64xbf16>
    %cst_20 = arith.constant dense<0.000000e+00> : vector<64x64xf32>
    %23 = tpu.matmul %20, %22, %cst_20 {dimension_numbers = #tpu.dot_dimension_numbers<[1], [0], [0], [1], [0, 0, 1, 1], [], []>} : vector<64x64xbf16>, vector<64x64xbf16>, vector<64x64xf32> -> vector<64x64xf32>
    %24 = arith.addf %16, %23 : vector<64x64xf32>
    %c0_21 = arith.constant 0 : index
    %c1_22 = arith.constant 1 : index
    %c0_23 = arith.constant 0 : index
    %c0_24 = arith.constant 0 : index
    %25 = vector.load %arg1[%c0_21, %c1_22, %c0_23, %c0_24] : memref<1x10x10x64xf32, #tpu.memory_space<vmem>>, vector<1x8x8x64xf32>
    %26 = vector.shape_cast %25 : vector<1x8x8x64xf32> to vector<8x8x64xf32>
    %27 = vector.shape_cast %26 : vector<8x8x64xf32> to vector<64x64xf32>
    %28 = arith.truncf %27 : vector<64x64xf32> to vector<64x64xbf16>
    %c3 = arith.constant 3 : index
    %c0_25 = arith.constant 0 : index
    %c0_26 = arith.constant 0 : index
    %29 = vector.load %arg2[%c3, %c0_25, %c0_26] : memref<9x64x64xbf16, #tpu.memory_space<vmem>>, vector<1x64x64xbf16>
    %30 = vector.shape_cast %29 : vector<1x64x64xbf16> to vector<64x64xbf16>
    %cst_27 = arith.constant dense<0.000000e+00> : vector<64x64xf32>
    %31 = tpu.matmul %28, %30, %cst_27 {dimension_numbers = #tpu.dot_dimension_numbers<[1], [0], [0], [1], [0, 0, 1, 1], [], []>} : vector<64x64xbf16>, vector<64x64xbf16>, vector<64x64xf32> -> vector<64x64xf32>
    %32 = arith.addf %24, %31 : vector<64x64xf32>
    %c0_28 = arith.constant 0 : index
    %c1_29 = arith.constant 1 : index
    %c1_30 = arith.constant 1 : index
    %c0_31 = arith.constant 0 : index
    %33 = vector.load %arg1[%c0_28, %c1_29, %c1_30, %c0_31] : memref<1x10x10x64xf32, #tpu.memory_space<vmem>>, vector<1x8x8x64xf32>
    %34 = vector.shape_cast %33 : vector<1x8x8x64xf32> to vector<8x8x64xf32>
    %35 = vector.shape_cast %34 : vector<8x8x64xf32> to vector<64x64xf32>
    %36 = arith.truncf %35 : vector<64x64xf32> to vector<64x64xbf16>
    %c4 = arith.constant 4 : index
    %c0_32 = arith.constant 0 : index
    %c0_33 = arith.constant 0 : index
    %37 = vector.load %arg2[%c4, %c0_32, %c0_33] : memref<9x64x64xbf16, #tpu.memory_space<vmem>>, vector<1x64x64xbf16>
    %38 = vector.shape_cast %37 : vector<1x64x64xbf16> to vector<64x64xbf16>
    %cst_34 = arith.constant dense<0.000000e+00> : vector<64x64xf32>
    %39 = tpu.matmul %36, %38, %cst_34 {dimension_numbers = #tpu.dot_dimension_numbers<[1], [0], [0], [1], [0, 0, 1, 1], [], []>} : vector<64x64xbf16>, vector<64x64xbf16>, vector<64x64xf32> -> vector<64x64xf32>
    %40 = arith.addf %32, %39 : vector<64x64xf32>
    %c0_35 = arith.constant 0 : index
    %c1_36 = arith.constant 1 : index
    %c2_37 = arith.constant 2 : index
    %c0_38 = arith.constant 0 : index
    %41 = vector.load %arg1[%c0_35, %c1_36, %c2_37, %c0_38] : memref<1x10x10x64xf32, #tpu.memory_space<vmem>>, vector<1x8x8x64xf32>
    %42 = vector.shape_cast %41 : vector<1x8x8x64xf32> to vector<8x8x64xf32>
    %43 = vector.shape_cast %42 : vector<8x8x64xf32> to vector<64x64xf32>
    %44 = arith.truncf %43 : vector<64x64xf32> to vector<64x64xbf16>
    %c5 = arith.constant 5 : index
    %c0_39 = arith.constant 0 : index
    %c0_40 = arith.constant 0 : index
    %45 = vector.load %arg2[%c5, %c0_39, %c0_40] : memref<9x64x64xbf16, #tpu.memory_space<vmem>>, vector<1x64x64xbf16>
    %46 = vector.shape_cast %45 : vector<1x64x64xbf16> to vector<64x64xbf16>
    %cst_41 = arith.constant dense<0.000000e+00> : vector<64x64xf32>
    %47 = tpu.matmul %44, %46, %cst_41 {dimension_numbers = #tpu.dot_dimension_numbers<[1], [0], [0], [1], [0, 0, 1, 1], [], []>} : vector<64x64xbf16>, vector<64x64xbf16>, vector<64x64xf32> -> vector<64x64xf32>
    %48 = arith.addf %40, %47 : vector<64x64xf32>
    %c0_42 = arith.constant 0 : index
    %c2_43 = arith.constant 2 : index
    %c0_44 = arith.constant 0 : index
    %c0_45 = arith.constant 0 : index
    %49 = vector.load %arg1[%c0_42, %c2_43, %c0_44, %c0_45] : memref<1x10x10x64xf32, #tpu.memory_space<vmem>>, vector<1x8x8x64xf32>
    %50 = vector.shape_cast %49 : vector<1x8x8x64xf32> to vector<8x8x64xf32>
    %51 = vector.shape_cast %50 : vector<8x8x64xf32> to vector<64x64xf32>
    %52 = arith.truncf %51 : vector<64x64xf32> to vector<64x64xbf16>
    %c6 = arith.constant 6 : index
    %c0_46 = arith.constant 0 : index
    %c0_47 = arith.constant 0 : index
    %53 = vector.load %arg2[%c6, %c0_46, %c0_47] : memref<9x64x64xbf16, #tpu.memory_space<vmem>>, vector<1x64x64xbf16>
    %54 = vector.shape_cast %53 : vector<1x64x64xbf16> to vector<64x64xbf16>
    %cst_48 = arith.constant dense<0.000000e+00> : vector<64x64xf32>
    %55 = tpu.matmul %52, %54, %cst_48 {dimension_numbers = #tpu.dot_dimension_numbers<[1], [0], [0], [1], [0, 0, 1, 1], [], []>} : vector<64x64xbf16>, vector<64x64xbf16>, vector<64x64xf32> -> vector<64x64xf32>
    %56 = arith.addf %48, %55 : vector<64x64xf32>
    %c0_49 = arith.constant 0 : index
    %c2_50 = arith.constant 2 : index
    %c1_51 = arith.constant 1 : index
    %c0_52 = arith.constant 0 : index
    %57 = vector.load %arg1[%c0_49, %c2_50, %c1_51, %c0_52] : memref<1x10x10x64xf32, #tpu.memory_space<vmem>>, vector<1x8x8x64xf32>
    %58 = vector.shape_cast %57 : vector<1x8x8x64xf32> to vector<8x8x64xf32>
    %59 = vector.shape_cast %58 : vector<8x8x64xf32> to vector<64x64xf32>
    %60 = arith.truncf %59 : vector<64x64xf32> to vector<64x64xbf16>
    %c7 = arith.constant 7 : index
    %c0_53 = arith.constant 0 : index
    %c0_54 = arith.constant 0 : index
    %61 = vector.load %arg2[%c7, %c0_53, %c0_54] : memref<9x64x64xbf16, #tpu.memory_space<vmem>>, vector<1x64x64xbf16>
    %62 = vector.shape_cast %61 : vector<1x64x64xbf16> to vector<64x64xbf16>
    %cst_55 = arith.constant dense<0.000000e+00> : vector<64x64xf32>
    %63 = tpu.matmul %60, %62, %cst_55 {dimension_numbers = #tpu.dot_dimension_numbers<[1], [0], [0], [1], [0, 0, 1, 1], [], []>} : vector<64x64xbf16>, vector<64x64xbf16>, vector<64x64xf32> -> vector<64x64xf32>
    %64 = arith.addf %56, %63 : vector<64x64xf32>
    %c0_56 = arith.constant 0 : index
    %c2_57 = arith.constant 2 : index
    %c2_58 = arith.constant 2 : index
    %c0_59 = arith.constant 0 : index
    %65 = vector.load %arg1[%c0_56, %c2_57, %c2_58, %c0_59] : memref<1x10x10x64xf32, #tpu.memory_space<vmem>>, vector<1x8x8x64xf32>
    %66 = vector.shape_cast %65 : vector<1x8x8x64xf32> to vector<8x8x64xf32>
    %67 = vector.shape_cast %66 : vector<8x8x64xf32> to vector<64x64xf32>
    %68 = arith.truncf %67 : vector<64x64xf32> to vector<64x64xbf16>
    %c8 = arith.constant 8 : index
    %c0_60 = arith.constant 0 : index
    %c0_61 = arith.constant 0 : index
    %69 = vector.load %arg2[%c8, %c0_60, %c0_61] : memref<9x64x64xbf16, #tpu.memory_space<vmem>>, vector<1x64x64xbf16>
    %70 = vector.shape_cast %69 : vector<1x64x64xbf16> to vector<64x64xbf16>
    %cst_62 = arith.constant dense<0.000000e+00> : vector<64x64xf32>
    %71 = tpu.matmul %68, %70, %cst_62 {dimension_numbers = #tpu.dot_dimension_numbers<[1], [0], [0], [1], [0, 0, 1, 1], [], []>} : vector<64x64xbf16>, vector<64x64xbf16>, vector<64x64xf32> -> vector<64x64xf32>
    %72 = arith.addf %64, %71 : vector<64x64xf32>
    %c0_63 = arith.constant 0 : index
    %c0_64 = arith.constant 0 : index
    %c0_65 = arith.constant 0 : index
    %73 = vector.load %arg3[%c0_63, %c0_64, %c0_65] : memref<1x64x64xf32, #tpu.memory_space<vmem>>, vector<1x64x64xf32>
    %74 = vector.shape_cast %73 : vector<1x64x64xf32> to vector<64x64xf32>
    %75 = vector.shape_cast %72 : vector<64x64xf32> to vector<1x64x64xf32>
    tpu.vector_store %arg3[%c0_63, %c0_64, %c0_65], %75 {strides = array<i32>} : memref<1x64x64xf32, #tpu.memory_space<vmem>>, vector<1x64x64xf32>,
    %cst_66 = arith.constant dense<0.000000e+00> : vector<64xf32>
    %76 = vector.multi_reduction <add>, %72, %cst_66 [0] : vector<64x64xf32> to vector<64xf32>
    %77 = vector.shape_cast %76 : vector<64xf32> to vector<1x64xf32>
    %78 = vector.shape_cast %77 : vector<1x64xf32> to vector<1x64xf32>
    %79 = vector.broadcast %78 : vector<1x64xf32> to vector<8x64xf32>
    %c0_67 = arith.constant 0 : index
    %c0_68 = arith.constant 0 : index
    %80 = vector.load %arg4[%c0_67, %c0_68] : memref<8x64xf32, #tpu.memory_space<vmem>>, vector<8x64xf32>
    tpu.vector_store %arg4[%c0_67, %c0_68], %79 {strides = array<i32>} : memref<8x64xf32, #tpu.memory_space<vmem>>, vector<8x64xf32>,
    %81 = arith.mulf %72, %72 : vector<64x64xf32>
    %cst_69 = arith.constant dense<0.000000e+00> : vector<64xf32>
    %82 = vector.multi_reduction <add>, %81, %cst_69 [0] : vector<64x64xf32> to vector<64xf32>
    %83 = vector.shape_cast %82 : vector<64xf32> to vector<1x64xf32>
    %84 = vector.shape_cast %83 : vector<1x64xf32> to vector<1x64xf32>
    %85 = vector.broadcast %84 : vector<1x64xf32> to vector<8x64xf32>
    %c0_70 = arith.constant 0 : index
    %c0_71 = arith.constant 0 : index
    %86 = vector.load %arg5[%c0_70, %c0_71] : memref<8x64xf32, #tpu.memory_space<vmem>>, vector<8x64xf32>
    tpu.vector_store %arg5[%c0_70, %c0_71], %85 {strides = array<i32>} : memref<8x64xf32, #tpu.memory_space<vmem>>, vector<8x64xf32>,
    return
  }
  func.func @transform_0(%arg0: i32) -> (i32, i32, i32, i32) {
    %c0_i32 = arith.constant 0 : i32
    %c0_i32_0 = arith.constant 0 : i32
    %c0_i32_1 = arith.constant 0 : i32
    %c0_i32_2 = arith.constant 0 : i32
    return %arg0, %c0_i32, %c0_i32_0, %c0_i32_1 : i32, i32, i32, i32
  }
  func.func @transform_1(%arg0: i32) -> (i32, i32, i32) {
    %c0_i32 = arith.constant 0 : i32
    %c0_i32_0 = arith.constant 0 : i32
    %c0_i32_1 = arith.constant 0 : i32
    %c0_i32_2 = arith.constant 0 : i32
    return %c0_i32, %c0_i32_0, %c0_i32_1 : i32, i32, i32
  }
  func.func @transform_2(%arg0: i32) -> (i32, i32, i32) {
    %c0_i32 = arith.constant 0 : i32
    %c0_i32_0 = arith.constant 0 : i32
    %c0_i32_1 = arith.constant 0 : i32
    return %arg0, %c0_i32, %c0_i32_0 : i32, i32, i32
  }
  func.func @transform_3(%arg0: i32) -> (i32, i32) {
    %c0_i32 = arith.constant 0 : i32
    %c0_i32_0 = arith.constant 0 : i32
    return %arg0, %c0_i32 : i32, i32
  }
  func.func @transform_4(%arg0: i32) -> (i32, i32) {
    %c0_i32 = arith.constant 0 : i32
    %c0_i32_0 = arith.constant 0 : i32
    return %arg0, %c0_i32 : i32, i32
  }
}

module attributes {stable_mosaic.version = 11 : i64} {
  func.func @_matmul_stats_kernel(%arg0: i32, %arg1: i32, %arg2: memref<32x128xbf16, #tpu.memory_space<vmem>>, %arg3: memref<128x128xbf16, #tpu.memory_space<vmem>>, %arg4: memref<32x128xf32, #tpu.memory_space<vmem>>, %arg5: memref<8x128xf32, #tpu.memory_space<vmem>>, %arg6: memref<8x128xf32, #tpu.memory_space<vmem>>, %arg7: memref<32x128xf32, #tpu.memory_space<vmem>>) attributes {dimension_semantics = [#tpu.dimension_semantics<parallel>, #tpu.dimension_semantics<arbitrary>], iteration_bounds = array<i64: 1, 1>, scalar_prefetch = 0 : i64, scratch_operands = 1 : i64, tpu.core_type = #tpu.core_type<tc>, window_params = [{transform_indices = @transform_0, window_bounds = array<i64: 32, 128>}, {transform_indices = @transform_1, window_bounds = array<i64: 128, 128>}, {transform_indices = @transform_2, window_bounds = array<i64: 32, 128>}, {transform_indices = @transform_3, window_bounds = array<i64: 8, 128>}, {transform_indices = @transform_4, window_bounds = array<i64: 8, 128>}]} {
    %c0_i32 = arith.constant 0 : i32
    %0 = arith.cmpi eq, %arg1, %c0_i32 : i32
    %1 = arith.extui %0 : i1 to i32
    %c0_i32_0 = arith.constant 0 : i32
    %2 = arith.cmpi ne, %1, %c0_i32_0 : i32
    scf.if %2 {
      %cst_10 = arith.constant 0.000000e+00 : f32
      %12 = vector.broadcast %cst_10 : f32 to vector<32x128xf32>
      %c0_11 = arith.constant 0 : index
      %c0_12 = arith.constant 0 : index
      %13 = vector.load %arg7[%c0_11, %c0_12] : memref<32x128xf32, #tpu.memory_space<vmem>>, vector<32x128xf32>
      tpu.vector_store %arg7[%c0_11, %c0_12], %12 {strides = array<i32>} : memref<32x128xf32, #tpu.memory_space<vmem>>, vector<32x128xf32>,
    } else {
    }
    %c0 = arith.constant 0 : index
    %c0_1 = arith.constant 0 : index
    %3 = vector.load %arg7[%c0, %c0_1] : memref<32x128xf32, #tpu.memory_space<vmem>>, vector<32x128xf32>
    %c0_2 = arith.constant 0 : index
    %c0_3 = arith.constant 0 : index
    %4 = vector.load %arg2[%c0_2, %c0_3] : memref<32x128xbf16, #tpu.memory_space<vmem>>, vector<32x128xbf16>
    %c0_4 = arith.constant 0 : index
    %c0_5 = arith.constant 0 : index
    %5 = vector.load %arg3[%c0_4, %c0_5] : memref<128x128xbf16, #tpu.memory_space<vmem>>, vector<128x128xbf16>
    %cst = arith.constant dense<0.000000e+00> : vector<32x128xf32>
    %6 = tpu.matmul %4, %5, %cst {dimension_numbers = #tpu.dot_dimension_numbers<[1], [0], [0], [1], [0, 0, 1, 1], [], []>} : vector<32x128xbf16>, vector<128x128xbf16>, vector<32x128xf32> -> vector<32x128xf32>
    %7 = arith.addf %3, %6 : vector<32x128xf32>
    %c0_6 = arith.constant 0 : index
    %c0_7 = arith.constant 0 : index
    %8 = vector.load %arg7[%c0_6, %c0_7] : memref<32x128xf32, #tpu.memory_space<vmem>>, vector<32x128xf32>
    tpu.vector_store %arg7[%c0_6, %c0_7], %7 {strides = array<i32>} : memref<32x128xf32, #tpu.memory_space<vmem>>, vector<32x128xf32>,
    %c0_i32_8 = arith.constant 0 : i32
    %9 = arith.cmpi eq, %arg1, %c0_i32_8 : i32
    %10 = arith.extui %9 : i1 to i32
    %c0_i32_9 = arith.constant 0 : i32
    %11 = arith.cmpi ne, %10, %c0_i32_9 : i32
    scf.if %11 {
      %c0_10 = arith.constant 0 : index
      %c0_11 = arith.constant 0 : index
      %12 = vector.load %arg7[%c0_10, %c0_11] : memref<32x128xf32, #tpu.memory_space<vmem>>, vector<32x128xf32>
      %c0_12 = arith.constant 0 : index
      %c0_13 = arith.constant 0 : index
      %13 = vector.load %arg4[%c0_12, %c0_13] : memref<32x128xf32, #tpu.memory_space<vmem>>, vector<32x128xf32>
      tpu.vector_store %arg4[%c0_12, %c0_13], %12 {strides = array<i32>} : memref<32x128xf32, #tpu.memory_space<vmem>>, vector<32x128xf32>,
      %cst_14 = arith.constant dense<0.000000e+00> : vector<128xf32>
      %14 = vector.multi_reduction <add>, %12, %cst_14 [0] : vector<32x128xf32> to vector<128xf32>
      %15 = vector.shape_cast %14 : vector<128xf32> to vector<1x128xf32>
      %16 = vector.shape_cast %15 : vector<1x128xf32> to vector<1x128xf32>
      %17 = vector.broadcast %16 : vector<1x128xf32> to vector<8x128xf32>
      %c0_15 = arith.constant 0 : index
      %c0_16 = arith.constant 0 : index
      %18 = vector.load %arg5[%c0_15, %c0_16] : memref<8x128xf32, #tpu.memory_space<vmem>>, vector<8x128xf32>
      tpu.vector_store %arg5[%c0_15, %c0_16], %17 {strides = array<i32>} : memref<8x128xf32, #tpu.memory_space<vmem>>, vector<8x128xf32>,
      %19 = arith.mulf %12, %12 : vector<32x128xf32>
      %cst_17 = arith.constant dense<0.000000e+00> : vector<128xf32>
      %20 = vector.multi_reduction <add>, %19, %cst_17 [0] : vector<32x128xf32> to vector<128xf32>
      %21 = vector.shape_cast %20 : vector<128xf32> to vector<1x128xf32>
      %22 = vector.shape_cast %21 : vector<1x128xf32> to vector<1x128xf32>
      %23 = vector.broadcast %22 : vector<1x128xf32> to vector<8x128xf32>
      %c0_18 = arith.constant 0 : index
      %c0_19 = arith.constant 0 : index
      %24 = vector.load %arg6[%c0_18, %c0_19] : memref<8x128xf32, #tpu.memory_space<vmem>>, vector<8x128xf32>
      tpu.vector_store %arg6[%c0_18, %c0_19], %23 {strides = array<i32>} : memref<8x128xf32, #tpu.memory_space<vmem>>, vector<8x128xf32>,
    } else {
    }
    return
  }
  func.func @transform_0(%arg0: i32, %arg1: i32) -> (i32, i32) {
    %c0_i32 = arith.constant 0 : i32
    return %arg0, %arg1 : i32, i32
  }
  func.func @transform_1(%arg0: i32, %arg1: i32) -> (i32, i32) {
    %c0_i32 = arith.constant 0 : i32
    %c0_i32_0 = arith.constant 0 : i32
    return %arg1, %c0_i32 : i32, i32
  }
  func.func @transform_2(%arg0: i32, %arg1: i32) -> (i32, i32) {
    %c0_i32 = arith.constant 0 : i32
    %c0_i32_0 = arith.constant 0 : i32
    return %arg0, %c0_i32 : i32, i32
  }
  func.func @transform_3(%arg0: i32, %arg1: i32) -> (i32, i32) {
    %c0_i32 = arith.constant 0 : i32
    %c0_i32_0 = arith.constant 0 : i32
    return %arg0, %c0_i32 : i32, i32
  }
  func.func @transform_4(%arg0: i32, %arg1: i32) -> (i32, i32) {
    %c0_i32 = arith.constant 0 : i32
    %c0_i32_0 = arith.constant 0 : i32
    return %arg0, %c0_i32 : i32, i32
  }
}

module attributes {stable_mosaic.version = 11 : i64} {
  func.func @_bn_apply_kernel(%arg0: i32, %arg1: memref<32x128xf32, #tpu.memory_space<vmem>>, %arg2: memref<8x128xf32, #tpu.memory_space<vmem>>, %arg3: memref<8x128xf32, #tpu.memory_space<vmem>>, %arg4: memref<1x128xf32, #tpu.memory_space<vmem>>, %arg5: memref<1x128xf32, #tpu.memory_space<vmem>>, %arg6: memref<32x128xf32, #tpu.memory_space<vmem>>) attributes {dimension_semantics = [#tpu.dimension_semantics<parallel>], iteration_bounds = array<i64: 1>, scalar_prefetch = 0 : i64, scratch_operands = 0 : i64, tpu.core_type = #tpu.core_type<tc>, window_params = [{transform_indices = @transform_0, window_bounds = array<i64: 32, 128>}, {pipeline_mode = #tpu.pipeline_mode<synchronous>, transform_indices = @transform_1, window_bounds = array<i64: 8, 128>}, {pipeline_mode = #tpu.pipeline_mode<synchronous>, transform_indices = @transform_2, window_bounds = array<i64: 8, 128>}, {pipeline_mode = #tpu.pipeline_mode<synchronous>, transform_indices = @transform_3, window_bounds = array<i64: 1, 128>}, {pipeline_mode = #tpu.pipeline_mode<synchronous>, transform_indices = @transform_4, window_bounds = array<i64: 1, 128>}, {transform_indices = @transform_5, window_bounds = array<i64: 32, 128>}]} {
    %c0 = arith.constant 0 : index
    %c0_0 = arith.constant 0 : index
    %0 = vector.load %arg2[%c0, %c0_0] : memref<8x128xf32, #tpu.memory_space<vmem>>, vector<8x128xf32>
    %cst = arith.constant dense<0.000000e+00> : vector<128xf32>
    %1 = vector.multi_reduction <add>, %0, %cst [0] : vector<8x128xf32> to vector<128xf32>
    %2 = vector.shape_cast %1 : vector<128xf32> to vector<1x128xf32>
    %cst_1 = arith.constant 3.906250e-03 : f32
    %3 = vector.broadcast %cst_1 : f32 to vector<1x128xf32>
    %4 = arith.mulf %2, %3 : vector<1x128xf32>
    %c0_2 = arith.constant 0 : index
    %c0_3 = arith.constant 0 : index
    %5 = vector.load %arg3[%c0_2, %c0_3] : memref<8x128xf32, #tpu.memory_space<vmem>>, vector<8x128xf32>
    %cst_4 = arith.constant dense<0.000000e+00> : vector<128xf32>
    %6 = vector.multi_reduction <add>, %5, %cst_4 [0] : vector<8x128xf32> to vector<128xf32>
    %7 = vector.shape_cast %6 : vector<128xf32> to vector<1x128xf32>
    %cst_5 = arith.constant 3.906250e-03 : f32
    %8 = vector.broadcast %cst_5 : f32 to vector<1x128xf32>
    %9 = arith.mulf %7, %8 : vector<1x128xf32>
    %10 = arith.mulf %4, %4 : vector<1x128xf32>
    %11 = arith.subf %9, %10 : vector<1x128xf32>
    %cst_6 = arith.constant 0.000000e+00 : f32
    %12 = vector.broadcast %cst_6 : f32 to vector<1x128xf32>
    %13 = arith.maximumf %11, %12 : vector<1x128xf32>
    %c0_7 = arith.constant 0 : index
    %c0_8 = arith.constant 0 : index
    %14 = vector.load %arg4[%c0_7, %c0_8] : memref<1x128xf32, #tpu.memory_space<vmem>>, vector<1x128xf32>
    %cst_9 = arith.constant 9.99999974E-6 : f32
    %15 = vector.broadcast %cst_9 : f32 to vector<1x128xf32>
    %16 = arith.addf %13, %15 : vector<1x128xf32>
    %17 = math.rsqrt %16 : vector<1x128xf32>
    %18 = arith.mulf %14, %17 : vector<1x128xf32>
    %c0_10 = arith.constant 0 : index
    %c0_11 = arith.constant 0 : index
    %19 = vector.load %arg5[%c0_10, %c0_11] : memref<1x128xf32, #tpu.memory_space<vmem>>, vector<1x128xf32>
    %20 = arith.mulf %4, %18 : vector<1x128xf32>
    %21 = arith.subf %19, %20 : vector<1x128xf32>
    %c0_12 = arith.constant 0 : index
    %c0_13 = arith.constant 0 : index
    %22 = vector.load %arg1[%c0_12, %c0_13] : memref<32x128xf32, #tpu.memory_space<vmem>>, vector<32x128xf32>
    %23 = vector.broadcast %18 : vector<1x128xf32> to vector<32x128xf32>
    %24 = arith.mulf %22, %23 : vector<32x128xf32>
    %25 = vector.broadcast %21 : vector<1x128xf32> to vector<32x128xf32>
    %26 = arith.addf %24, %25 : vector<32x128xf32>
    %c0_14 = arith.constant 0 : index
    %c0_15 = arith.constant 0 : index
    %27 = vector.load %arg6[%c0_14, %c0_15] : memref<32x128xf32, #tpu.memory_space<vmem>>, vector<32x128xf32>
    tpu.vector_store %arg6[%c0_14, %c0_15], %26 {strides = array<i32>} : memref<32x128xf32, #tpu.memory_space<vmem>>, vector<32x128xf32>,
    return
  }
  func.func @transform_0(%arg0: i32) -> (i32, i32) {
    %c0_i32 = arith.constant 0 : i32
    %c0_i32_0 = arith.constant 0 : i32
    return %arg0, %c0_i32 : i32, i32
  }
  func.func @transform_1(%arg0: i32) -> (i32, i32) {
    %c0_i32 = arith.constant 0 : i32
    %c0_i32_0 = arith.constant 0 : i32
    %c0_i32_1 = arith.constant 0 : i32
    return %c0_i32, %c0_i32_0 : i32, i32
  }
  func.func @transform_2(%arg0: i32) -> (i32, i32) {
    %c0_i32 = arith.constant 0 : i32
    %c0_i32_0 = arith.constant 0 : i32
    %c0_i32_1 = arith.constant 0 : i32
    return %c0_i32, %c0_i32_0 : i32, i32
  }
  func.func @transform_3(%arg0: i32) -> (i32, i32) {
    %c0_i32 = arith.constant 0 : i32
    %c0_i32_0 = arith.constant 0 : i32
    %c0_i32_1 = arith.constant 0 : i32
    return %c0_i32, %c0_i32_0 : i32, i32
  }
  func.func @transform_4(%arg0: i32) -> (i32, i32) {
    %c0_i32 = arith.constant 0 : i32
    %c0_i32_0 = arith.constant 0 : i32
    %c0_i32_1 = arith.constant 0 : i32
    return %c0_i32, %c0_i32_0 : i32, i32
  }
  func.func @transform_5(%arg0: i32) -> (i32, i32) {
    %c0_i32 = arith.constant 0 : i32
    %c0_i32_0 = arith.constant 0 : i32
    return %arg0, %c0_i32 : i32, i32
  }
}

module attributes {stable_mosaic.version = 11 : i64} {
  func.func @_matmul_stats_kernel(%arg0: i32, %arg1: i32, %arg2: memref<32x128xbf16, #tpu.memory_space<vmem>>, %arg3: memref<128x128xbf16, #tpu.memory_space<vmem>>, %arg4: memref<32x128xf32, #tpu.memory_space<vmem>>, %arg5: memref<8x128xf32, #tpu.memory_space<vmem>>, %arg6: memref<8x128xf32, #tpu.memory_space<vmem>>, %arg7: memref<32x128xf32, #tpu.memory_space<vmem>>) attributes {dimension_semantics = [#tpu.dimension_semantics<parallel>, #tpu.dimension_semantics<arbitrary>], iteration_bounds = array<i64: 1, 5>, scalar_prefetch = 0 : i64, scratch_operands = 1 : i64, tpu.core_type = #tpu.core_type<tc>, window_params = [{transform_indices = @transform_0, window_bounds = array<i64: 32, 128>}, {transform_indices = @transform_1, window_bounds = array<i64: 128, 128>}, {transform_indices = @transform_2, window_bounds = array<i64: 32, 128>}, {transform_indices = @transform_3, window_bounds = array<i64: 8, 128>}, {transform_indices = @transform_4, window_bounds = array<i64: 8, 128>}]} {
    %c0_i32 = arith.constant 0 : i32
    %0 = arith.cmpi eq, %arg1, %c0_i32 : i32
    %1 = arith.extui %0 : i1 to i32
    %c0_i32_0 = arith.constant 0 : i32
    %2 = arith.cmpi ne, %1, %c0_i32_0 : i32
    scf.if %2 {
      %cst_9 = arith.constant 0.000000e+00 : f32
      %12 = vector.broadcast %cst_9 : f32 to vector<32x128xf32>
      %c0_10 = arith.constant 0 : index
      %c0_11 = arith.constant 0 : index
      %13 = vector.load %arg7[%c0_10, %c0_11] : memref<32x128xf32, #tpu.memory_space<vmem>>, vector<32x128xf32>
      tpu.vector_store %arg7[%c0_10, %c0_11], %12 {strides = array<i32>} : memref<32x128xf32, #tpu.memory_space<vmem>>, vector<32x128xf32>,
    } else {
    }
    %c0 = arith.constant 0 : index
    %c0_1 = arith.constant 0 : index
    %3 = vector.load %arg7[%c0, %c0_1] : memref<32x128xf32, #tpu.memory_space<vmem>>, vector<32x128xf32>
    %c0_2 = arith.constant 0 : index
    %c0_3 = arith.constant 0 : index
    %4 = vector.load %arg2[%c0_2, %c0_3] : memref<32x128xbf16, #tpu.memory_space<vmem>>, vector<32x128xbf16>
    %c0_4 = arith.constant 0 : index
    %c0_5 = arith.constant 0 : index
    %5 = vector.load %arg3[%c0_4, %c0_5] : memref<128x128xbf16, #tpu.memory_space<vmem>>, vector<128x128xbf16>
    %cst = arith.constant dense<0.000000e+00> : vector<32x128xf32>
    %6 = tpu.matmul %4, %5, %cst {dimension_numbers = #tpu.dot_dimension_numbers<[1], [0], [0], [1], [0, 0, 1, 1], [], []>} : vector<32x128xbf16>, vector<128x128xbf16>, vector<32x128xf32> -> vector<32x128xf32>
    %7 = arith.addf %3, %6 : vector<32x128xf32>
    %c0_6 = arith.constant 0 : index
    %c0_7 = arith.constant 0 : index
    %8 = vector.load %arg7[%c0_6, %c0_7] : memref<32x128xf32, #tpu.memory_space<vmem>>, vector<32x128xf32>
    tpu.vector_store %arg7[%c0_6, %c0_7], %7 {strides = array<i32>} : memref<32x128xf32, #tpu.memory_space<vmem>>, vector<32x128xf32>,
    %c4_i32 = arith.constant 4 : i32
    %9 = arith.cmpi eq, %arg1, %c4_i32 : i32
    %10 = arith.extui %9 : i1 to i32
    %c0_i32_8 = arith.constant 0 : i32
    %11 = arith.cmpi ne, %10, %c0_i32_8 : i32
    scf.if %11 {
      %c0_9 = arith.constant 0 : index
      %c0_10 = arith.constant 0 : index
      %12 = vector.load %arg7[%c0_9, %c0_10] : memref<32x128xf32, #tpu.memory_space<vmem>>, vector<32x128xf32>
      %c0_11 = arith.constant 0 : index
      %c0_12 = arith.constant 0 : index
      %13 = vector.load %arg4[%c0_11, %c0_12] : memref<32x128xf32, #tpu.memory_space<vmem>>, vector<32x128xf32>
      tpu.vector_store %arg4[%c0_11, %c0_12], %12 {strides = array<i32>} : memref<32x128xf32, #tpu.memory_space<vmem>>, vector<32x128xf32>,
      %cst_13 = arith.constant dense<0.000000e+00> : vector<128xf32>
      %14 = vector.multi_reduction <add>, %12, %cst_13 [0] : vector<32x128xf32> to vector<128xf32>
      %15 = vector.shape_cast %14 : vector<128xf32> to vector<1x128xf32>
      %16 = vector.shape_cast %15 : vector<1x128xf32> to vector<1x128xf32>
      %17 = vector.broadcast %16 : vector<1x128xf32> to vector<8x128xf32>
      %c0_14 = arith.constant 0 : index
      %c0_15 = arith.constant 0 : index
      %18 = vector.load %arg5[%c0_14, %c0_15] : memref<8x128xf32, #tpu.memory_space<vmem>>, vector<8x128xf32>
      tpu.vector_store %arg5[%c0_14, %c0_15], %17 {strides = array<i32>} : memref<8x128xf32, #tpu.memory_space<vmem>>, vector<8x128xf32>,
      %19 = arith.mulf %12, %12 : vector<32x128xf32>
      %cst_16 = arith.constant dense<0.000000e+00> : vector<128xf32>
      %20 = vector.multi_reduction <add>, %19, %cst_16 [0] : vector<32x128xf32> to vector<128xf32>
      %21 = vector.shape_cast %20 : vector<128xf32> to vector<1x128xf32>
      %22 = vector.shape_cast %21 : vector<1x128xf32> to vector<1x128xf32>
      %23 = vector.broadcast %22 : vector<1x128xf32> to vector<8x128xf32>
      %c0_17 = arith.constant 0 : index
      %c0_18 = arith.constant 0 : index
      %24 = vector.load %arg6[%c0_17, %c0_18] : memref<8x128xf32, #tpu.memory_space<vmem>>, vector<8x128xf32>
      tpu.vector_store %arg6[%c0_17, %c0_18], %23 {strides = array<i32>} : memref<8x128xf32, #tpu.memory_space<vmem>>, vector<8x128xf32>,
    } else {
    }
    return
  }
  func.func @transform_0(%arg0: i32, %arg1: i32) -> (i32, i32) {
    %c0_i32 = arith.constant 0 : i32
    return %arg0, %arg1 : i32, i32
  }
  func.func @transform_1(%arg0: i32, %arg1: i32) -> (i32, i32) {
    %c0_i32 = arith.constant 0 : i32
    %c0_i32_0 = arith.constant 0 : i32
    return %arg1, %c0_i32 : i32, i32
  }
  func.func @transform_2(%arg0: i32, %arg1: i32) -> (i32, i32) {
    %c0_i32 = arith.constant 0 : i32
    %c0_i32_0 = arith.constant 0 : i32
    return %arg0, %c0_i32 : i32, i32
  }
  func.func @transform_3(%arg0: i32, %arg1: i32) -> (i32, i32) {
    %c0_i32 = arith.constant 0 : i32
    %c0_i32_0 = arith.constant 0 : i32
    return %arg0, %c0_i32 : i32, i32
  }
  func.func @transform_4(%arg0: i32, %arg1: i32) -> (i32, i32) {
    %c0_i32 = arith.constant 0 : i32
    %c0_i32_0 = arith.constant 0 : i32
    return %arg0, %c0_i32 : i32, i32
  }
}

module attributes {stable_mosaic.version = 11 : i64} {
  func.func @_bn_apply_kernel(%arg0: i32, %arg1: memref<32x128xf32, #tpu.memory_space<vmem>>, %arg2: memref<8x128xf32, #tpu.memory_space<vmem>>, %arg3: memref<8x128xf32, #tpu.memory_space<vmem>>, %arg4: memref<1x128xf32, #tpu.memory_space<vmem>>, %arg5: memref<1x128xf32, #tpu.memory_space<vmem>>, %arg6: memref<32x128xf32, #tpu.memory_space<vmem>>) attributes {dimension_semantics = [#tpu.dimension_semantics<parallel>], iteration_bounds = array<i64: 1>, scalar_prefetch = 0 : i64, scratch_operands = 0 : i64, tpu.core_type = #tpu.core_type<tc>, window_params = [{transform_indices = @transform_0, window_bounds = array<i64: 32, 128>}, {pipeline_mode = #tpu.pipeline_mode<synchronous>, transform_indices = @transform_1, window_bounds = array<i64: 8, 128>}, {pipeline_mode = #tpu.pipeline_mode<synchronous>, transform_indices = @transform_2, window_bounds = array<i64: 8, 128>}, {pipeline_mode = #tpu.pipeline_mode<synchronous>, transform_indices = @transform_3, window_bounds = array<i64: 1, 128>}, {pipeline_mode = #tpu.pipeline_mode<synchronous>, transform_indices = @transform_4, window_bounds = array<i64: 1, 128>}, {transform_indices = @transform_5, window_bounds = array<i64: 32, 128>}]} {
    %c0 = arith.constant 0 : index
    %c0_0 = arith.constant 0 : index
    %0 = vector.load %arg2[%c0, %c0_0] : memref<8x128xf32, #tpu.memory_space<vmem>>, vector<8x128xf32>
    %cst = arith.constant dense<0.000000e+00> : vector<128xf32>
    %1 = vector.multi_reduction <add>, %0, %cst [0] : vector<8x128xf32> to vector<128xf32>
    %2 = vector.shape_cast %1 : vector<128xf32> to vector<1x128xf32>
    %cst_1 = arith.constant 3.906250e-03 : f32
    %3 = vector.broadcast %cst_1 : f32 to vector<1x128xf32>
    %4 = arith.mulf %2, %3 : vector<1x128xf32>
    %c0_2 = arith.constant 0 : index
    %c0_3 = arith.constant 0 : index
    %5 = vector.load %arg3[%c0_2, %c0_3] : memref<8x128xf32, #tpu.memory_space<vmem>>, vector<8x128xf32>
    %cst_4 = arith.constant dense<0.000000e+00> : vector<128xf32>
    %6 = vector.multi_reduction <add>, %5, %cst_4 [0] : vector<8x128xf32> to vector<128xf32>
    %7 = vector.shape_cast %6 : vector<128xf32> to vector<1x128xf32>
    %cst_5 = arith.constant 3.906250e-03 : f32
    %8 = vector.broadcast %cst_5 : f32 to vector<1x128xf32>
    %9 = arith.mulf %7, %8 : vector<1x128xf32>
    %10 = arith.mulf %4, %4 : vector<1x128xf32>
    %11 = arith.subf %9, %10 : vector<1x128xf32>
    %cst_6 = arith.constant 0.000000e+00 : f32
    %12 = vector.broadcast %cst_6 : f32 to vector<1x128xf32>
    %13 = arith.maximumf %11, %12 : vector<1x128xf32>
    %c0_7 = arith.constant 0 : index
    %c0_8 = arith.constant 0 : index
    %14 = vector.load %arg4[%c0_7, %c0_8] : memref<1x128xf32, #tpu.memory_space<vmem>>, vector<1x128xf32>
    %cst_9 = arith.constant 9.99999974E-6 : f32
    %15 = vector.broadcast %cst_9 : f32 to vector<1x128xf32>
    %16 = arith.addf %13, %15 : vector<1x128xf32>
    %17 = math.rsqrt %16 : vector<1x128xf32>
    %18 = arith.mulf %14, %17 : vector<1x128xf32>
    %c0_10 = arith.constant 0 : index
    %c0_11 = arith.constant 0 : index
    %19 = vector.load %arg5[%c0_10, %c0_11] : memref<1x128xf32, #tpu.memory_space<vmem>>, vector<1x128xf32>
    %20 = arith.mulf %4, %18 : vector<1x128xf32>
    %21 = arith.subf %19, %20 : vector<1x128xf32>
    %c0_12 = arith.constant 0 : index
    %c0_13 = arith.constant 0 : index
    %22 = vector.load %arg1[%c0_12, %c0_13] : memref<32x128xf32, #tpu.memory_space<vmem>>, vector<32x128xf32>
    %23 = vector.broadcast %18 : vector<1x128xf32> to vector<32x128xf32>
    %24 = arith.mulf %22, %23 : vector<32x128xf32>
    %25 = vector.broadcast %21 : vector<1x128xf32> to vector<32x128xf32>
    %26 = arith.addf %24, %25 : vector<32x128xf32>
    %cst_14 = arith.constant 0.000000e+00 : f32
    %27 = vector.broadcast %cst_14 : f32 to vector<32x128xf32>
    %28 = arith.maximumf %26, %27 : vector<32x128xf32>
    %c0_15 = arith.constant 0 : index
    %c0_16 = arith.constant 0 : index
    %29 = vector.load %arg6[%c0_15, %c0_16] : memref<32x128xf32, #tpu.memory_space<vmem>>, vector<32x128xf32>
    tpu.vector_store %arg6[%c0_15, %c0_16], %28 {strides = array<i32>} : memref<32x128xf32, #tpu.memory_space<vmem>>, vector<32x128xf32>,
    return
  }
  func.func @transform_0(%arg0: i32) -> (i32, i32) {
    %c0_i32 = arith.constant 0 : i32
    %c0_i32_0 = arith.constant 0 : i32
    return %arg0, %c0_i32 : i32, i32
  }
  func.func @transform_1(%arg0: i32) -> (i32, i32) {
    %c0_i32 = arith.constant 0 : i32
    %c0_i32_0 = arith.constant 0 : i32
    %c0_i32_1 = arith.constant 0 : i32
    return %c0_i32, %c0_i32_0 : i32, i32
  }
  func.func @transform_2(%arg0: i32) -> (i32, i32) {
    %c0_i32 = arith.constant 0 : i32
    %c0_i32_0 = arith.constant 0 : i32
    %c0_i32_1 = arith.constant 0 : i32
    return %c0_i32, %c0_i32_0 : i32, i32
  }
  func.func @transform_3(%arg0: i32) -> (i32, i32) {
    %c0_i32 = arith.constant 0 : i32
    %c0_i32_0 = arith.constant 0 : i32
    %c0_i32_1 = arith.constant 0 : i32
    return %c0_i32, %c0_i32_0 : i32, i32
  }
  func.func @transform_4(%arg0: i32) -> (i32, i32) {
    %c0_i32 = arith.constant 0 : i32
    %c0_i32_0 = arith.constant 0 : i32
    %c0_i32_1 = arith.constant 0 : i32
    return %c0_i32, %c0_i32_0 : i32, i32
  }
  func.func @transform_5(%arg0: i32) -> (i32, i32) {
    %c0_i32 = arith.constant 0 : i32
    %c0_i32_0 = arith.constant 0 : i32
    return %arg0, %c0_i32 : i32, i32
  }
}

module attributes {stable_mosaic.version = 11 : i64} {
  func.func @_bn_apply_res_kernel(%arg0: i32, %arg1: memref<32x128xf32, #tpu.memory_space<vmem>>, %arg2: memref<8x128xf32, #tpu.memory_space<vmem>>, %arg3: memref<8x128xf32, #tpu.memory_space<vmem>>, %arg4: memref<1x128xf32, #tpu.memory_space<vmem>>, %arg5: memref<1x128xf32, #tpu.memory_space<vmem>>, %arg6: memref<32x128xf32, #tpu.memory_space<vmem>>, %arg7: memref<32x128xf32, #tpu.memory_space<vmem>>) attributes {dimension_semantics = [#tpu.dimension_semantics<parallel>], iteration_bounds = array<i64: 1>, scalar_prefetch = 0 : i64, scratch_operands = 0 : i64, tpu.core_type = #tpu.core_type<tc>, window_params = [{transform_indices = @transform_0, window_bounds = array<i64: 32, 128>}, {pipeline_mode = #tpu.pipeline_mode<synchronous>, transform_indices = @transform_1, window_bounds = array<i64: 8, 128>}, {pipeline_mode = #tpu.pipeline_mode<synchronous>, transform_indices = @transform_2, window_bounds = array<i64: 8, 128>}, {pipeline_mode = #tpu.pipeline_mode<synchronous>, transform_indices = @transform_3, window_bounds = array<i64: 1, 128>}, {pipeline_mode = #tpu.pipeline_mode<synchronous>, transform_indices = @transform_4, window_bounds = array<i64: 1, 128>}, {transform_indices = @transform_5, window_bounds = array<i64: 32, 128>}, {transform_indices = @transform_6, window_bounds = array<i64: 32, 128>}]} {
    %c0 = arith.constant 0 : index
    %c0_0 = arith.constant 0 : index
    %0 = vector.load %arg2[%c0, %c0_0] : memref<8x128xf32, #tpu.memory_space<vmem>>, vector<8x128xf32>
    %cst = arith.constant dense<0.000000e+00> : vector<128xf32>
    %1 = vector.multi_reduction <add>, %0, %cst [0] : vector<8x128xf32> to vector<128xf32>
    %2 = vector.shape_cast %1 : vector<128xf32> to vector<1x128xf32>
    %cst_1 = arith.constant 3.906250e-03 : f32
    %3 = vector.broadcast %cst_1 : f32 to vector<1x128xf32>
    %4 = arith.mulf %2, %3 : vector<1x128xf32>
    %c0_2 = arith.constant 0 : index
    %c0_3 = arith.constant 0 : index
    %5 = vector.load %arg3[%c0_2, %c0_3] : memref<8x128xf32, #tpu.memory_space<vmem>>, vector<8x128xf32>
    %cst_4 = arith.constant dense<0.000000e+00> : vector<128xf32>
    %6 = vector.multi_reduction <add>, %5, %cst_4 [0] : vector<8x128xf32> to vector<128xf32>
    %7 = vector.shape_cast %6 : vector<128xf32> to vector<1x128xf32>
    %cst_5 = arith.constant 3.906250e-03 : f32
    %8 = vector.broadcast %cst_5 : f32 to vector<1x128xf32>
    %9 = arith.mulf %7, %8 : vector<1x128xf32>
    %10 = arith.mulf %4, %4 : vector<1x128xf32>
    %11 = arith.subf %9, %10 : vector<1x128xf32>
    %cst_6 = arith.constant 0.000000e+00 : f32
    %12 = vector.broadcast %cst_6 : f32 to vector<1x128xf32>
    %13 = arith.maximumf %11, %12 : vector<1x128xf32>
    %c0_7 = arith.constant 0 : index
    %c0_8 = arith.constant 0 : index
    %14 = vector.load %arg4[%c0_7, %c0_8] : memref<1x128xf32, #tpu.memory_space<vmem>>, vector<1x128xf32>
    %cst_9 = arith.constant 9.99999974E-6 : f32
    %15 = vector.broadcast %cst_9 : f32 to vector<1x128xf32>
    %16 = arith.addf %13, %15 : vector<1x128xf32>
    %17 = math.rsqrt %16 : vector<1x128xf32>
    %18 = arith.mulf %14, %17 : vector<1x128xf32>
    %c0_10 = arith.constant 0 : index
    %c0_11 = arith.constant 0 : index
    %19 = vector.load %arg5[%c0_10, %c0_11] : memref<1x128xf32, #tpu.memory_space<vmem>>, vector<1x128xf32>
    %20 = arith.mulf %4, %18 : vector<1x128xf32>
    %21 = arith.subf %19, %20 : vector<1x128xf32>
    %c0_12 = arith.constant 0 : index
    %c0_13 = arith.constant 0 : index
    %22 = vector.load %arg1[%c0_12, %c0_13] : memref<32x128xf32, #tpu.memory_space<vmem>>, vector<32x128xf32>
    %23 = vector.broadcast %18 : vector<1x128xf32> to vector<32x128xf32>
    %24 = arith.mulf %22, %23 : vector<32x128xf32>
    %25 = vector.broadcast %21 : vector<1x128xf32> to vector<32x128xf32>
    %26 = arith.addf %24, %25 : vector<32x128xf32>
    %c0_14 = arith.constant 0 : index
    %c0_15 = arith.constant 0 : index
    %27 = vector.load %arg6[%c0_14, %c0_15] : memref<32x128xf32, #tpu.memory_space<vmem>>, vector<32x128xf32>
    %28 = arith.addf %26, %27 : vector<32x128xf32>
    %cst_16 = arith.constant 0.000000e+00 : f32
    %29 = vector.broadcast %cst_16 : f32 to vector<32x128xf32>
    %30 = arith.maximumf %28, %29 : vector<32x128xf32>
    %c0_17 = arith.constant 0 : index
    %c0_18 = arith.constant 0 : index
    %31 = vector.load %arg7[%c0_17, %c0_18] : memref<32x128xf32, #tpu.memory_space<vmem>>, vector<32x128xf32>
    tpu.vector_store %arg7[%c0_17, %c0_18], %30 {strides = array<i32>} : memref<32x128xf32, #tpu.memory_space<vmem>>, vector<32x128xf32>,
    return
  }
  func.func @transform_0(%arg0: i32) -> (i32, i32) {
    %c0_i32 = arith.constant 0 : i32
    %c0_i32_0 = arith.constant 0 : i32
    return %arg0, %c0_i32 : i32, i32
  }
  func.func @transform_1(%arg0: i32) -> (i32, i32) {
    %c0_i32 = arith.constant 0 : i32
    %c0_i32_0 = arith.constant 0 : i32
    %c0_i32_1 = arith.constant 0 : i32
    return %c0_i32, %c0_i32_0 : i32, i32
  }
  func.func @transform_2(%arg0: i32) -> (i32, i32) {
    %c0_i32 = arith.constant 0 : i32
    %c0_i32_0 = arith.constant 0 : i32
    %c0_i32_1 = arith.constant 0 : i32
    return %c0_i32, %c0_i32_0 : i32, i32
  }
  func.func @transform_3(%arg0: i32) -> (i32, i32) {
    %c0_i32 = arith.constant 0 : i32
    %c0_i32_0 = arith.constant 0 : i32
    %c0_i32_1 = arith.constant 0 : i32
    return %c0_i32, %c0_i32_0 : i32, i32
  }
  func.func @transform_4(%arg0: i32) -> (i32, i32) {
    %c0_i32 = arith.constant 0 : i32
    %c0_i32_0 = arith.constant 0 : i32
    %c0_i32_1 = arith.constant 0 : i32
    return %c0_i32, %c0_i32_0 : i32, i32
  }
  func.func @transform_5(%arg0: i32) -> (i32, i32) {
    %c0_i32 = arith.constant 0 : i32
    %c0_i32_0 = arith.constant 0 : i32
    return %arg0, %c0_i32 : i32, i32
  }
  func.func @transform_6(%arg0: i32) -> (i32, i32) {
    %c0_i32 = arith.constant 0 : i32
    %c0_i32_0 = arith.constant 0 : i32
    return %arg0, %c0_i32 : i32, i32
  }
}

module attributes {stable_mosaic.version = 11 : i64} {
  func.func @_matmul_stats_kernel(%arg0: i32, %arg1: i32, %arg2: memref<32x128xbf16, #tpu.memory_space<vmem>>, %arg3: memref<128x128xbf16, #tpu.memory_space<vmem>>, %arg4: memref<32x128xf32, #tpu.memory_space<vmem>>, %arg5: memref<8x128xf32, #tpu.memory_space<vmem>>, %arg6: memref<8x128xf32, #tpu.memory_space<vmem>>, %arg7: memref<32x128xf32, #tpu.memory_space<vmem>>) attributes {dimension_semantics = [#tpu.dimension_semantics<parallel>, #tpu.dimension_semantics<arbitrary>], iteration_bounds = array<i64: 1, 9>, scalar_prefetch = 0 : i64, scratch_operands = 1 : i64, tpu.core_type = #tpu.core_type<tc>, window_params = [{transform_indices = @transform_0, window_bounds = array<i64: 32, 128>}, {transform_indices = @transform_1, window_bounds = array<i64: 128, 128>}, {transform_indices = @transform_2, window_bounds = array<i64: 32, 128>}, {transform_indices = @transform_3, window_bounds = array<i64: 8, 128>}, {transform_indices = @transform_4, window_bounds = array<i64: 8, 128>}]} {
    %c0_i32 = arith.constant 0 : i32
    %0 = arith.cmpi eq, %arg1, %c0_i32 : i32
    %1 = arith.extui %0 : i1 to i32
    %c0_i32_0 = arith.constant 0 : i32
    %2 = arith.cmpi ne, %1, %c0_i32_0 : i32
    scf.if %2 {
      %cst_9 = arith.constant 0.000000e+00 : f32
      %12 = vector.broadcast %cst_9 : f32 to vector<32x128xf32>
      %c0_10 = arith.constant 0 : index
      %c0_11 = arith.constant 0 : index
      %13 = vector.load %arg7[%c0_10, %c0_11] : memref<32x128xf32, #tpu.memory_space<vmem>>, vector<32x128xf32>
      tpu.vector_store %arg7[%c0_10, %c0_11], %12 {strides = array<i32>} : memref<32x128xf32, #tpu.memory_space<vmem>>, vector<32x128xf32>,
    } else {
    }
    %c0 = arith.constant 0 : index
    %c0_1 = arith.constant 0 : index
    %3 = vector.load %arg7[%c0, %c0_1] : memref<32x128xf32, #tpu.memory_space<vmem>>, vector<32x128xf32>
    %c0_2 = arith.constant 0 : index
    %c0_3 = arith.constant 0 : index
    %4 = vector.load %arg2[%c0_2, %c0_3] : memref<32x128xbf16, #tpu.memory_space<vmem>>, vector<32x128xbf16>
    %c0_4 = arith.constant 0 : index
    %c0_5 = arith.constant 0 : index
    %5 = vector.load %arg3[%c0_4, %c0_5] : memref<128x128xbf16, #tpu.memory_space<vmem>>, vector<128x128xbf16>
    %cst = arith.constant dense<0.000000e+00> : vector<32x128xf32>
    %6 = tpu.matmul %4, %5, %cst {dimension_numbers = #tpu.dot_dimension_numbers<[1], [0], [0], [1], [0, 0, 1, 1], [], []>} : vector<32x128xbf16>, vector<128x128xbf16>, vector<32x128xf32> -> vector<32x128xf32>
    %7 = arith.addf %3, %6 : vector<32x128xf32>
    %c0_6 = arith.constant 0 : index
    %c0_7 = arith.constant 0 : index
    %8 = vector.load %arg7[%c0_6, %c0_7] : memref<32x128xf32, #tpu.memory_space<vmem>>, vector<32x128xf32>
    tpu.vector_store %arg7[%c0_6, %c0_7], %7 {strides = array<i32>} : memref<32x128xf32, #tpu.memory_space<vmem>>, vector<32x128xf32>,
    %c8_i32 = arith.constant 8 : i32
    %9 = arith.cmpi eq, %arg1, %c8_i32 : i32
    %10 = arith.extui %9 : i1 to i32
    %c0_i32_8 = arith.constant 0 : i32
    %11 = arith.cmpi ne, %10, %c0_i32_8 : i32
    scf.if %11 {
      %c0_9 = arith.constant 0 : index
      %c0_10 = arith.constant 0 : index
      %12 = vector.load %arg7[%c0_9, %c0_10] : memref<32x128xf32, #tpu.memory_space<vmem>>, vector<32x128xf32>
      %c0_11 = arith.constant 0 : index
      %c0_12 = arith.constant 0 : index
      %13 = vector.load %arg4[%c0_11, %c0_12] : memref<32x128xf32, #tpu.memory_space<vmem>>, vector<32x128xf32>
      tpu.vector_store %arg4[%c0_11, %c0_12], %12 {strides = array<i32>} : memref<32x128xf32, #tpu.memory_space<vmem>>, vector<32x128xf32>,
      %cst_13 = arith.constant dense<0.000000e+00> : vector<128xf32>
      %14 = vector.multi_reduction <add>, %12, %cst_13 [0] : vector<32x128xf32> to vector<128xf32>
      %15 = vector.shape_cast %14 : vector<128xf32> to vector<1x128xf32>
      %16 = vector.shape_cast %15 : vector<1x128xf32> to vector<1x128xf32>
      %17 = vector.broadcast %16 : vector<1x128xf32> to vector<8x128xf32>
      %c0_14 = arith.constant 0 : index
      %c0_15 = arith.constant 0 : index
      %18 = vector.load %arg5[%c0_14, %c0_15] : memref<8x128xf32, #tpu.memory_space<vmem>>, vector<8x128xf32>
      tpu.vector_store %arg5[%c0_14, %c0_15], %17 {strides = array<i32>} : memref<8x128xf32, #tpu.memory_space<vmem>>, vector<8x128xf32>,
      %19 = arith.mulf %12, %12 : vector<32x128xf32>
      %cst_16 = arith.constant dense<0.000000e+00> : vector<128xf32>
      %20 = vector.multi_reduction <add>, %19, %cst_16 [0] : vector<32x128xf32> to vector<128xf32>
      %21 = vector.shape_cast %20 : vector<128xf32> to vector<1x128xf32>
      %22 = vector.shape_cast %21 : vector<1x128xf32> to vector<1x128xf32>
      %23 = vector.broadcast %22 : vector<1x128xf32> to vector<8x128xf32>
      %c0_17 = arith.constant 0 : index
      %c0_18 = arith.constant 0 : index
      %24 = vector.load %arg6[%c0_17, %c0_18] : memref<8x128xf32, #tpu.memory_space<vmem>>, vector<8x128xf32>
      tpu.vector_store %arg6[%c0_17, %c0_18], %23 {strides = array<i32>} : memref<8x128xf32, #tpu.memory_space<vmem>>, vector<8x128xf32>,
    } else {
    }
    return
  }
  func.func @transform_0(%arg0: i32, %arg1: i32) -> (i32, i32) {
    %c0_i32 = arith.constant 0 : i32
    return %arg0, %arg1 : i32, i32
  }
  func.func @transform_1(%arg0: i32, %arg1: i32) -> (i32, i32) {
    %c0_i32 = arith.constant 0 : i32
    %c0_i32_0 = arith.constant 0 : i32
    return %arg1, %c0_i32 : i32, i32
  }
  func.func @transform_2(%arg0: i32, %arg1: i32) -> (i32, i32) {
    %c0_i32 = arith.constant 0 : i32
    %c0_i32_0 = arith.constant 0 : i32
    return %arg0, %c0_i32 : i32, i32
  }
  func.func @transform_3(%arg0: i32, %arg1: i32) -> (i32, i32) {
    %c0_i32 = arith.constant 0 : i32
    %c0_i32_0 = arith.constant 0 : i32
    return %arg0, %c0_i32 : i32, i32
  }
  func.func @transform_4(%arg0: i32, %arg1: i32) -> (i32, i32) {
    %c0_i32 = arith.constant 0 : i32
    %c0_i32_0 = arith.constant 0 : i32
    return %arg0, %c0_i32 : i32, i32
  }
}

module attributes {stable_mosaic.version = 11 : i64} {
  func.func @_bn_apply_kernel(%arg0: i32, %arg1: memref<8x256xf32, #tpu.memory_space<vmem>>, %arg2: memref<8x256xf32, #tpu.memory_space<vmem>>, %arg3: memref<8x256xf32, #tpu.memory_space<vmem>>, %arg4: memref<1x256xf32, #tpu.memory_space<vmem>>, %arg5: memref<1x256xf32, #tpu.memory_space<vmem>>, %arg6: memref<8x256xf32, #tpu.memory_space<vmem>>) attributes {dimension_semantics = [#tpu.dimension_semantics<parallel>], iteration_bounds = array<i64: 1>, scalar_prefetch = 0 : i64, scratch_operands = 0 : i64, tpu.core_type = #tpu.core_type<tc>, window_params = [{transform_indices = @transform_0, window_bounds = array<i64: 8, 256>}, {pipeline_mode = #tpu.pipeline_mode<synchronous>, transform_indices = @transform_1, window_bounds = array<i64: 8, 256>}, {pipeline_mode = #tpu.pipeline_mode<synchronous>, transform_indices = @transform_2, window_bounds = array<i64: 8, 256>}, {pipeline_mode = #tpu.pipeline_mode<synchronous>, transform_indices = @transform_3, window_bounds = array<i64: 1, 256>}, {pipeline_mode = #tpu.pipeline_mode<synchronous>, transform_indices = @transform_4, window_bounds = array<i64: 1, 256>}, {transform_indices = @transform_5, window_bounds = array<i64: 8, 256>}]} {
    %c0 = arith.constant 0 : index
    %c0_0 = arith.constant 0 : index
    %0 = vector.load %arg2[%c0, %c0_0] : memref<8x256xf32, #tpu.memory_space<vmem>>, vector<8x256xf32>
    %cst = arith.constant dense<0.000000e+00> : vector<256xf32>
    %1 = vector.multi_reduction <add>, %0, %cst [0] : vector<8x256xf32> to vector<256xf32>
    %2 = vector.shape_cast %1 : vector<256xf32> to vector<1x256xf32>
    %cst_1 = arith.constant 1.562500e-02 : f32
    %3 = vector.broadcast %cst_1 : f32 to vector<1x256xf32>
    %4 = arith.mulf %2, %3 : vector<1x256xf32>
    %c0_2 = arith.constant 0 : index
    %c0_3 = arith.constant 0 : index
    %5 = vector.load %arg3[%c0_2, %c0_3] : memref<8x256xf32, #tpu.memory_space<vmem>>, vector<8x256xf32>
    %cst_4 = arith.constant dense<0.000000e+00> : vector<256xf32>
    %6 = vector.multi_reduction <add>, %5, %cst_4 [0] : vector<8x256xf32> to vector<256xf32>
    %7 = vector.shape_cast %6 : vector<256xf32> to vector<1x256xf32>
    %cst_5 = arith.constant 1.562500e-02 : f32
    %8 = vector.broadcast %cst_5 : f32 to vector<1x256xf32>
    %9 = arith.mulf %7, %8 : vector<1x256xf32>
    %10 = arith.mulf %4, %4 : vector<1x256xf32>
    %11 = arith.subf %9, %10 : vector<1x256xf32>
    %cst_6 = arith.constant 0.000000e+00 : f32
    %12 = vector.broadcast %cst_6 : f32 to vector<1x256xf32>
    %13 = arith.maximumf %11, %12 : vector<1x256xf32>
    %c0_7 = arith.constant 0 : index
    %c0_8 = arith.constant 0 : index
    %14 = vector.load %arg4[%c0_7, %c0_8] : memref<1x256xf32, #tpu.memory_space<vmem>>, vector<1x256xf32>
    %cst_9 = arith.constant 9.99999974E-6 : f32
    %15 = vector.broadcast %cst_9 : f32 to vector<1x256xf32>
    %16 = arith.addf %13, %15 : vector<1x256xf32>
    %17 = math.rsqrt %16 : vector<1x256xf32>
    %18 = arith.mulf %14, %17 : vector<1x256xf32>
    %c0_10 = arith.constant 0 : index
    %c0_11 = arith.constant 0 : index
    %19 = vector.load %arg5[%c0_10, %c0_11] : memref<1x256xf32, #tpu.memory_space<vmem>>, vector<1x256xf32>
    %20 = arith.mulf %4, %18 : vector<1x256xf32>
    %21 = arith.subf %19, %20 : vector<1x256xf32>
    %c0_12 = arith.constant 0 : index
    %c0_13 = arith.constant 0 : index
    %22 = vector.load %arg1[%c0_12, %c0_13] : memref<8x256xf32, #tpu.memory_space<vmem>>, vector<8x256xf32>
    %23 = vector.broadcast %18 : vector<1x256xf32> to vector<8x256xf32>
    %24 = arith.mulf %22, %23 : vector<8x256xf32>
    %25 = vector.broadcast %21 : vector<1x256xf32> to vector<8x256xf32>
    %26 = arith.addf %24, %25 : vector<8x256xf32>
    %c0_14 = arith.constant 0 : index
    %c0_15 = arith.constant 0 : index
    %27 = vector.load %arg6[%c0_14, %c0_15] : memref<8x256xf32, #tpu.memory_space<vmem>>, vector<8x256xf32>
    tpu.vector_store %arg6[%c0_14, %c0_15], %26 {strides = array<i32>} : memref<8x256xf32, #tpu.memory_space<vmem>>, vector<8x256xf32>,
    return
  }
  func.func @transform_0(%arg0: i32) -> (i32, i32) {
    %c0_i32 = arith.constant 0 : i32
    %c0_i32_0 = arith.constant 0 : i32
    return %arg0, %c0_i32 : i32, i32
  }
  func.func @transform_1(%arg0: i32) -> (i32, i32) {
    %c0_i32 = arith.constant 0 : i32
    %c0_i32_0 = arith.constant 0 : i32
    %c0_i32_1 = arith.constant 0 : i32
    return %c0_i32, %c0_i32_0 : i32, i32
  }
  func.func @transform_2(%arg0: i32) -> (i32, i32) {
    %c0_i32 = arith.constant 0 : i32
    %c0_i32_0 = arith.constant 0 : i32
    %c0_i32_1 = arith.constant 0 : i32
    return %c0_i32, %c0_i32_0 : i32, i32
  }
  func.func @transform_3(%arg0: i32) -> (i32, i32) {
    %c0_i32 = arith.constant 0 : i32
    %c0_i32_0 = arith.constant 0 : i32
    %c0_i32_1 = arith.constant 0 : i32
    return %c0_i32, %c0_i32_0 : i32, i32
  }
  func.func @transform_4(%arg0: i32) -> (i32, i32) {
    %c0_i32 = arith.constant 0 : i32
    %c0_i32_0 = arith.constant 0 : i32
    %c0_i32_1 = arith.constant 0 : i32
    return %c0_i32, %c0_i32_0 : i32, i32
  }
  func.func @transform_5(%arg0: i32) -> (i32, i32) {
    %c0_i32 = arith.constant 0 : i32
    %c0_i32_0 = arith.constant 0 : i32
    return %arg0, %c0_i32 : i32, i32
  }
}

module attributes {stable_mosaic.version = 11 : i64} {
  func.func @_matmul_stats_kernel(%arg0: i32, %arg1: i32, %arg2: memref<8x128xbf16, #tpu.memory_space<vmem>>, %arg3: memref<128x256xbf16, #tpu.memory_space<vmem>>, %arg4: memref<8x256xf32, #tpu.memory_space<vmem>>, %arg5: memref<8x256xf32, #tpu.memory_space<vmem>>, %arg6: memref<8x256xf32, #tpu.memory_space<vmem>>, %arg7: memref<8x256xf32, #tpu.memory_space<vmem>>) attributes {dimension_semantics = [#tpu.dimension_semantics<parallel>, #tpu.dimension_semantics<arbitrary>], iteration_bounds = array<i64: 1, 1>, scalar_prefetch = 0 : i64, scratch_operands = 1 : i64, tpu.core_type = #tpu.core_type<tc>, window_params = [{transform_indices = @transform_0, window_bounds = array<i64: 8, 128>}, {transform_indices = @transform_1, window_bounds = array<i64: 128, 256>}, {transform_indices = @transform_2, window_bounds = array<i64: 8, 256>}, {transform_indices = @transform_3, window_bounds = array<i64: 8, 256>}, {transform_indices = @transform_4, window_bounds = array<i64: 8, 256>}]} {
    %c0_i32 = arith.constant 0 : i32
    %0 = arith.cmpi eq, %arg1, %c0_i32 : i32
    %1 = arith.extui %0 : i1 to i32
    %c0_i32_0 = arith.constant 0 : i32
    %2 = arith.cmpi ne, %1, %c0_i32_0 : i32
    scf.if %2 {
      %cst_10 = arith.constant 0.000000e+00 : f32
      %12 = vector.broadcast %cst_10 : f32 to vector<8x256xf32>
      %c0_11 = arith.constant 0 : index
      %c0_12 = arith.constant 0 : index
      %13 = vector.load %arg7[%c0_11, %c0_12] : memref<8x256xf32, #tpu.memory_space<vmem>>, vector<8x256xf32>
      tpu.vector_store %arg7[%c0_11, %c0_12], %12 {strides = array<i32>} : memref<8x256xf32, #tpu.memory_space<vmem>>, vector<8x256xf32>,
    } else {
    }
    %c0 = arith.constant 0 : index
    %c0_1 = arith.constant 0 : index
    %3 = vector.load %arg7[%c0, %c0_1] : memref<8x256xf32, #tpu.memory_space<vmem>>, vector<8x256xf32>
    %c0_2 = arith.constant 0 : index
    %c0_3 = arith.constant 0 : index
    %4 = vector.load %arg2[%c0_2, %c0_3] : memref<8x128xbf16, #tpu.memory_space<vmem>>, vector<8x128xbf16>
    %c0_4 = arith.constant 0 : index
    %c0_5 = arith.constant 0 : index
    %5 = vector.load %arg3[%c0_4, %c0_5] : memref<128x256xbf16, #tpu.memory_space<vmem>>, vector<128x256xbf16>
    %cst = arith.constant dense<0.000000e+00> : vector<8x256xf32>
    %6 = tpu.matmul %4, %5, %cst {dimension_numbers = #tpu.dot_dimension_numbers<[1], [0], [0], [1], [0, 0, 1, 1], [], []>} : vector<8x128xbf16>, vector<128x256xbf16>, vector<8x256xf32> -> vector<8x256xf32>
    %7 = arith.addf %3, %6 : vector<8x256xf32>
    %c0_6 = arith.constant 0 : index
    %c0_7 = arith.constant 0 : index
    %8 = vector.load %arg7[%c0_6, %c0_7] : memref<8x256xf32, #tpu.memory_space<vmem>>, vector<8x256xf32>
    tpu.vector_store %arg7[%c0_6, %c0_7], %7 {strides = array<i32>} : memref<8x256xf32, #tpu.memory_space<vmem>>, vector<8x256xf32>,
    %c0_i32_8 = arith.constant 0 : i32
    %9 = arith.cmpi eq, %arg1, %c0_i32_8 : i32
    %10 = arith.extui %9 : i1 to i32
    %c0_i32_9 = arith.constant 0 : i32
    %11 = arith.cmpi ne, %10, %c0_i32_9 : i32
    scf.if %11 {
      %c0_10 = arith.constant 0 : index
      %c0_11 = arith.constant 0 : index
      %12 = vector.load %arg7[%c0_10, %c0_11] : memref<8x256xf32, #tpu.memory_space<vmem>>, vector<8x256xf32>
      %c0_12 = arith.constant 0 : index
      %c0_13 = arith.constant 0 : index
      %13 = vector.load %arg4[%c0_12, %c0_13] : memref<8x256xf32, #tpu.memory_space<vmem>>, vector<8x256xf32>
      tpu.vector_store %arg4[%c0_12, %c0_13], %12 {strides = array<i32>} : memref<8x256xf32, #tpu.memory_space<vmem>>, vector<8x256xf32>,
      %cst_14 = arith.constant dense<0.000000e+00> : vector<256xf32>
      %14 = vector.multi_reduction <add>, %12, %cst_14 [0] : vector<8x256xf32> to vector<256xf32>
      %15 = vector.shape_cast %14 : vector<256xf32> to vector<1x256xf32>
      %16 = vector.shape_cast %15 : vector<1x256xf32> to vector<1x256xf32>
      %17 = vector.broadcast %16 : vector<1x256xf32> to vector<8x256xf32>
      %c0_15 = arith.constant 0 : index
      %c0_16 = arith.constant 0 : index
      %18 = vector.load %arg5[%c0_15, %c0_16] : memref<8x256xf32, #tpu.memory_space<vmem>>, vector<8x256xf32>
      tpu.vector_store %arg5[%c0_15, %c0_16], %17 {strides = array<i32>} : memref<8x256xf32, #tpu.memory_space<vmem>>, vector<8x256xf32>,
      %19 = arith.mulf %12, %12 : vector<8x256xf32>
      %cst_17 = arith.constant dense<0.000000e+00> : vector<256xf32>
      %20 = vector.multi_reduction <add>, %19, %cst_17 [0] : vector<8x256xf32> to vector<256xf32>
      %21 = vector.shape_cast %20 : vector<256xf32> to vector<1x256xf32>
      %22 = vector.shape_cast %21 : vector<1x256xf32> to vector<1x256xf32>
      %23 = vector.broadcast %22 : vector<1x256xf32> to vector<8x256xf32>
      %c0_18 = arith.constant 0 : index
      %c0_19 = arith.constant 0 : index
      %24 = vector.load %arg6[%c0_18, %c0_19] : memref<8x256xf32, #tpu.memory_space<vmem>>, vector<8x256xf32>
      tpu.vector_store %arg6[%c0_18, %c0_19], %23 {strides = array<i32>} : memref<8x256xf32, #tpu.memory_space<vmem>>, vector<8x256xf32>,
    } else {
    }
    return
  }
  func.func @transform_0(%arg0: i32, %arg1: i32) -> (i32, i32) {
    %c0_i32 = arith.constant 0 : i32
    return %arg0, %arg1 : i32, i32
  }
  func.func @transform_1(%arg0: i32, %arg1: i32) -> (i32, i32) {
    %c0_i32 = arith.constant 0 : i32
    %c0_i32_0 = arith.constant 0 : i32
    return %arg1, %c0_i32 : i32, i32
  }
  func.func @transform_2(%arg0: i32, %arg1: i32) -> (i32, i32) {
    %c0_i32 = arith.constant 0 : i32
    %c0_i32_0 = arith.constant 0 : i32
    return %arg0, %c0_i32 : i32, i32
  }
  func.func @transform_3(%arg0: i32, %arg1: i32) -> (i32, i32) {
    %c0_i32 = arith.constant 0 : i32
    %c0_i32_0 = arith.constant 0 : i32
    return %arg0, %c0_i32 : i32, i32
  }
  func.func @transform_4(%arg0: i32, %arg1: i32) -> (i32, i32) {
    %c0_i32 = arith.constant 0 : i32
    %c0_i32_0 = arith.constant 0 : i32
    return %arg0, %c0_i32 : i32, i32
  }
}

module attributes {stable_mosaic.version = 11 : i64} {
  func.func @_matmul_stats_kernel(%arg0: i32, %arg1: i32, %arg2: memref<8x128xbf16, #tpu.memory_space<vmem>>, %arg3: memref<128x256xbf16, #tpu.memory_space<vmem>>, %arg4: memref<8x256xf32, #tpu.memory_space<vmem>>, %arg5: memref<8x256xf32, #tpu.memory_space<vmem>>, %arg6: memref<8x256xf32, #tpu.memory_space<vmem>>, %arg7: memref<8x256xf32, #tpu.memory_space<vmem>>) attributes {dimension_semantics = [#tpu.dimension_semantics<parallel>, #tpu.dimension_semantics<arbitrary>], iteration_bounds = array<i64: 1, 9>, scalar_prefetch = 0 : i64, scratch_operands = 1 : i64, tpu.core_type = #tpu.core_type<tc>, window_params = [{transform_indices = @transform_0, window_bounds = array<i64: 8, 128>}, {transform_indices = @transform_1, window_bounds = array<i64: 128, 256>}, {transform_indices = @transform_2, window_bounds = array<i64: 8, 256>}, {transform_indices = @transform_3, window_bounds = array<i64: 8, 256>}, {transform_indices = @transform_4, window_bounds = array<i64: 8, 256>}]} {
    %c0_i32 = arith.constant 0 : i32
    %0 = arith.cmpi eq, %arg1, %c0_i32 : i32
    %1 = arith.extui %0 : i1 to i32
    %c0_i32_0 = arith.constant 0 : i32
    %2 = arith.cmpi ne, %1, %c0_i32_0 : i32
    scf.if %2 {
      %cst_9 = arith.constant 0.000000e+00 : f32
      %12 = vector.broadcast %cst_9 : f32 to vector<8x256xf32>
      %c0_10 = arith.constant 0 : index
      %c0_11 = arith.constant 0 : index
      %13 = vector.load %arg7[%c0_10, %c0_11] : memref<8x256xf32, #tpu.memory_space<vmem>>, vector<8x256xf32>
      tpu.vector_store %arg7[%c0_10, %c0_11], %12 {strides = array<i32>} : memref<8x256xf32, #tpu.memory_space<vmem>>, vector<8x256xf32>,
    } else {
    }
    %c0 = arith.constant 0 : index
    %c0_1 = arith.constant 0 : index
    %3 = vector.load %arg7[%c0, %c0_1] : memref<8x256xf32, #tpu.memory_space<vmem>>, vector<8x256xf32>
    %c0_2 = arith.constant 0 : index
    %c0_3 = arith.constant 0 : index
    %4 = vector.load %arg2[%c0_2, %c0_3] : memref<8x128xbf16, #tpu.memory_space<vmem>>, vector<8x128xbf16>
    %c0_4 = arith.constant 0 : index
    %c0_5 = arith.constant 0 : index
    %5 = vector.load %arg3[%c0_4, %c0_5] : memref<128x256xbf16, #tpu.memory_space<vmem>>, vector<128x256xbf16>
    %cst = arith.constant dense<0.000000e+00> : vector<8x256xf32>
    %6 = tpu.matmul %4, %5, %cst {dimension_numbers = #tpu.dot_dimension_numbers<[1], [0], [0], [1], [0, 0, 1, 1], [], []>} : vector<8x128xbf16>, vector<128x256xbf16>, vector<8x256xf32> -> vector<8x256xf32>
    %7 = arith.addf %3, %6 : vector<8x256xf32>
    %c0_6 = arith.constant 0 : index
    %c0_7 = arith.constant 0 : index
    %8 = vector.load %arg7[%c0_6, %c0_7] : memref<8x256xf32, #tpu.memory_space<vmem>>, vector<8x256xf32>
    tpu.vector_store %arg7[%c0_6, %c0_7], %7 {strides = array<i32>} : memref<8x256xf32, #tpu.memory_space<vmem>>, vector<8x256xf32>,
    %c8_i32 = arith.constant 8 : i32
    %9 = arith.cmpi eq, %arg1, %c8_i32 : i32
    %10 = arith.extui %9 : i1 to i32
    %c0_i32_8 = arith.constant 0 : i32
    %11 = arith.cmpi ne, %10, %c0_i32_8 : i32
    scf.if %11 {
      %c0_9 = arith.constant 0 : index
      %c0_10 = arith.constant 0 : index
      %12 = vector.load %arg7[%c0_9, %c0_10] : memref<8x256xf32, #tpu.memory_space<vmem>>, vector<8x256xf32>
      %c0_11 = arith.constant 0 : index
      %c0_12 = arith.constant 0 : index
      %13 = vector.load %arg4[%c0_11, %c0_12] : memref<8x256xf32, #tpu.memory_space<vmem>>, vector<8x256xf32>
      tpu.vector_store %arg4[%c0_11, %c0_12], %12 {strides = array<i32>} : memref<8x256xf32, #tpu.memory_space<vmem>>, vector<8x256xf32>,
      %cst_13 = arith.constant dense<0.000000e+00> : vector<256xf32>
      %14 = vector.multi_reduction <add>, %12, %cst_13 [0] : vector<8x256xf32> to vector<256xf32>
      %15 = vector.shape_cast %14 : vector<256xf32> to vector<1x256xf32>
      %16 = vector.shape_cast %15 : vector<1x256xf32> to vector<1x256xf32>
      %17 = vector.broadcast %16 : vector<1x256xf32> to vector<8x256xf32>
      %c0_14 = arith.constant 0 : index
      %c0_15 = arith.constant 0 : index
      %18 = vector.load %arg5[%c0_14, %c0_15] : memref<8x256xf32, #tpu.memory_space<vmem>>, vector<8x256xf32>
      tpu.vector_store %arg5[%c0_14, %c0_15], %17 {strides = array<i32>} : memref<8x256xf32, #tpu.memory_space<vmem>>, vector<8x256xf32>,
      %19 = arith.mulf %12, %12 : vector<8x256xf32>
      %cst_16 = arith.constant dense<0.000000e+00> : vector<256xf32>
      %20 = vector.multi_reduction <add>, %19, %cst_16 [0] : vector<8x256xf32> to vector<256xf32>
      %21 = vector.shape_cast %20 : vector<256xf32> to vector<1x256xf32>
      %22 = vector.shape_cast %21 : vector<1x256xf32> to vector<1x256xf32>
      %23 = vector.broadcast %22 : vector<1x256xf32> to vector<8x256xf32>
      %c0_17 = arith.constant 0 : index
      %c0_18 = arith.constant 0 : index
      %24 = vector.load %arg6[%c0_17, %c0_18] : memref<8x256xf32, #tpu.memory_space<vmem>>, vector<8x256xf32>
      tpu.vector_store %arg6[%c0_17, %c0_18], %23 {strides = array<i32>} : memref<8x256xf32, #tpu.memory_space<vmem>>, vector<8x256xf32>,
    } else {
    }
    return
  }
  func.func @transform_0(%arg0: i32, %arg1: i32) -> (i32, i32) {
    %c0_i32 = arith.constant 0 : i32
    return %arg0, %arg1 : i32, i32
  }
  func.func @transform_1(%arg0: i32, %arg1: i32) -> (i32, i32) {
    %c0_i32 = arith.constant 0 : i32
    %c0_i32_0 = arith.constant 0 : i32
    return %arg1, %c0_i32 : i32, i32
  }
  func.func @transform_2(%arg0: i32, %arg1: i32) -> (i32, i32) {
    %c0_i32 = arith.constant 0 : i32
    %c0_i32_0 = arith.constant 0 : i32
    return %arg0, %c0_i32 : i32, i32
  }
  func.func @transform_3(%arg0: i32, %arg1: i32) -> (i32, i32) {
    %c0_i32 = arith.constant 0 : i32
    %c0_i32_0 = arith.constant 0 : i32
    return %arg0, %c0_i32 : i32, i32
  }
  func.func @transform_4(%arg0: i32, %arg1: i32) -> (i32, i32) {
    %c0_i32 = arith.constant 0 : i32
    %c0_i32_0 = arith.constant 0 : i32
    return %arg0, %c0_i32 : i32, i32
  }
}

module attributes {stable_mosaic.version = 11 : i64} {
  func.func @_bn_apply_kernel(%arg0: i32, %arg1: memref<8x256xf32, #tpu.memory_space<vmem>>, %arg2: memref<8x256xf32, #tpu.memory_space<vmem>>, %arg3: memref<8x256xf32, #tpu.memory_space<vmem>>, %arg4: memref<1x256xf32, #tpu.memory_space<vmem>>, %arg5: memref<1x256xf32, #tpu.memory_space<vmem>>, %arg6: memref<8x256xf32, #tpu.memory_space<vmem>>) attributes {dimension_semantics = [#tpu.dimension_semantics<parallel>], iteration_bounds = array<i64: 1>, scalar_prefetch = 0 : i64, scratch_operands = 0 : i64, tpu.core_type = #tpu.core_type<tc>, window_params = [{transform_indices = @transform_0, window_bounds = array<i64: 8, 256>}, {pipeline_mode = #tpu.pipeline_mode<synchronous>, transform_indices = @transform_1, window_bounds = array<i64: 8, 256>}, {pipeline_mode = #tpu.pipeline_mode<synchronous>, transform_indices = @transform_2, window_bounds = array<i64: 8, 256>}, {pipeline_mode = #tpu.pipeline_mode<synchronous>, transform_indices = @transform_3, window_bounds = array<i64: 1, 256>}, {pipeline_mode = #tpu.pipeline_mode<synchronous>, transform_indices = @transform_4, window_bounds = array<i64: 1, 256>}, {transform_indices = @transform_5, window_bounds = array<i64: 8, 256>}]} {
    %c0 = arith.constant 0 : index
    %c0_0 = arith.constant 0 : index
    %0 = vector.load %arg2[%c0, %c0_0] : memref<8x256xf32, #tpu.memory_space<vmem>>, vector<8x256xf32>
    %cst = arith.constant dense<0.000000e+00> : vector<256xf32>
    %1 = vector.multi_reduction <add>, %0, %cst [0] : vector<8x256xf32> to vector<256xf32>
    %2 = vector.shape_cast %1 : vector<256xf32> to vector<1x256xf32>
    %cst_1 = arith.constant 1.562500e-02 : f32
    %3 = vector.broadcast %cst_1 : f32 to vector<1x256xf32>
    %4 = arith.mulf %2, %3 : vector<1x256xf32>
    %c0_2 = arith.constant 0 : index
    %c0_3 = arith.constant 0 : index
    %5 = vector.load %arg3[%c0_2, %c0_3] : memref<8x256xf32, #tpu.memory_space<vmem>>, vector<8x256xf32>
    %cst_4 = arith.constant dense<0.000000e+00> : vector<256xf32>
    %6 = vector.multi_reduction <add>, %5, %cst_4 [0] : vector<8x256xf32> to vector<256xf32>
    %7 = vector.shape_cast %6 : vector<256xf32> to vector<1x256xf32>
    %cst_5 = arith.constant 1.562500e-02 : f32
    %8 = vector.broadcast %cst_5 : f32 to vector<1x256xf32>
    %9 = arith.mulf %7, %8 : vector<1x256xf32>
    %10 = arith.mulf %4, %4 : vector<1x256xf32>
    %11 = arith.subf %9, %10 : vector<1x256xf32>
    %cst_6 = arith.constant 0.000000e+00 : f32
    %12 = vector.broadcast %cst_6 : f32 to vector<1x256xf32>
    %13 = arith.maximumf %11, %12 : vector<1x256xf32>
    %c0_7 = arith.constant 0 : index
    %c0_8 = arith.constant 0 : index
    %14 = vector.load %arg4[%c0_7, %c0_8] : memref<1x256xf32, #tpu.memory_space<vmem>>, vector<1x256xf32>
    %cst_9 = arith.constant 9.99999974E-6 : f32
    %15 = vector.broadcast %cst_9 : f32 to vector<1x256xf32>
    %16 = arith.addf %13, %15 : vector<1x256xf32>
    %17 = math.rsqrt %16 : vector<1x256xf32>
    %18 = arith.mulf %14, %17 : vector<1x256xf32>
    %c0_10 = arith.constant 0 : index
    %c0_11 = arith.constant 0 : index
    %19 = vector.load %arg5[%c0_10, %c0_11] : memref<1x256xf32, #tpu.memory_space<vmem>>, vector<1x256xf32>
    %20 = arith.mulf %4, %18 : vector<1x256xf32>
    %21 = arith.subf %19, %20 : vector<1x256xf32>
    %c0_12 = arith.constant 0 : index
    %c0_13 = arith.constant 0 : index
    %22 = vector.load %arg1[%c0_12, %c0_13] : memref<8x256xf32, #tpu.memory_space<vmem>>, vector<8x256xf32>
    %23 = vector.broadcast %18 : vector<1x256xf32> to vector<8x256xf32>
    %24 = arith.mulf %22, %23 : vector<8x256xf32>
    %25 = vector.broadcast %21 : vector<1x256xf32> to vector<8x256xf32>
    %26 = arith.addf %24, %25 : vector<8x256xf32>
    %cst_14 = arith.constant 0.000000e+00 : f32
    %27 = vector.broadcast %cst_14 : f32 to vector<8x256xf32>
    %28 = arith.maximumf %26, %27 : vector<8x256xf32>
    %c0_15 = arith.constant 0 : index
    %c0_16 = arith.constant 0 : index
    %29 = vector.load %arg6[%c0_15, %c0_16] : memref<8x256xf32, #tpu.memory_space<vmem>>, vector<8x256xf32>
    tpu.vector_store %arg6[%c0_15, %c0_16], %28 {strides = array<i32>} : memref<8x256xf32, #tpu.memory_space<vmem>>, vector<8x256xf32>,
    return
  }
  func.func @transform_0(%arg0: i32) -> (i32, i32) {
    %c0_i32 = arith.constant 0 : i32
    %c0_i32_0 = arith.constant 0 : i32
    return %arg0, %c0_i32 : i32, i32
  }
  func.func @transform_1(%arg0: i32) -> (i32, i32) {
    %c0_i32 = arith.constant 0 : i32
    %c0_i32_0 = arith.constant 0 : i32
    %c0_i32_1 = arith.constant 0 : i32
    return %c0_i32, %c0_i32_0 : i32, i32
  }
  func.func @transform_2(%arg0: i32) -> (i32, i32) {
    %c0_i32 = arith.constant 0 : i32
    %c0_i32_0 = arith.constant 0 : i32
    %c0_i32_1 = arith.constant 0 : i32
    return %c0_i32, %c0_i32_0 : i32, i32
  }
  func.func @transform_3(%arg0: i32) -> (i32, i32) {
    %c0_i32 = arith.constant 0 : i32
    %c0_i32_0 = arith.constant 0 : i32
    %c0_i32_1 = arith.constant 0 : i32
    return %c0_i32, %c0_i32_0 : i32, i32
  }
  func.func @transform_4(%arg0: i32) -> (i32, i32) {
    %c0_i32 = arith.constant 0 : i32
    %c0_i32_0 = arith.constant 0 : i32
    %c0_i32_1 = arith.constant 0 : i32
    return %c0_i32, %c0_i32_0 : i32, i32
  }
  func.func @transform_5(%arg0: i32) -> (i32, i32) {
    %c0_i32 = arith.constant 0 : i32
    %c0_i32_0 = arith.constant 0 : i32
    return %arg0, %c0_i32 : i32, i32
  }
}

module attributes {stable_mosaic.version = 11 : i64} {
  func.func @_matmul_stats_kernel(%arg0: i32, %arg1: i32, %arg2: memref<8x256xbf16, #tpu.memory_space<vmem>>, %arg3: memref<256x256xbf16, #tpu.memory_space<vmem>>, %arg4: memref<8x256xf32, #tpu.memory_space<vmem>>, %arg5: memref<8x256xf32, #tpu.memory_space<vmem>>, %arg6: memref<8x256xf32, #tpu.memory_space<vmem>>, %arg7: memref<8x256xf32, #tpu.memory_space<vmem>>) attributes {dimension_semantics = [#tpu.dimension_semantics<parallel>, #tpu.dimension_semantics<arbitrary>], iteration_bounds = array<i64: 1, 9>, scalar_prefetch = 0 : i64, scratch_operands = 1 : i64, tpu.core_type = #tpu.core_type<tc>, window_params = [{transform_indices = @transform_0, window_bounds = array<i64: 8, 256>}, {transform_indices = @transform_1, window_bounds = array<i64: 256, 256>}, {transform_indices = @transform_2, window_bounds = array<i64: 8, 256>}, {transform_indices = @transform_3, window_bounds = array<i64: 8, 256>}, {transform_indices = @transform_4, window_bounds = array<i64: 8, 256>}]} {
    %c0_i32 = arith.constant 0 : i32
    %0 = arith.cmpi eq, %arg1, %c0_i32 : i32
    %1 = arith.extui %0 : i1 to i32
    %c0_i32_0 = arith.constant 0 : i32
    %2 = arith.cmpi ne, %1, %c0_i32_0 : i32
    scf.if %2 {
      %cst_9 = arith.constant 0.000000e+00 : f32
      %12 = vector.broadcast %cst_9 : f32 to vector<8x256xf32>
      %c0_10 = arith.constant 0 : index
      %c0_11 = arith.constant 0 : index
      %13 = vector.load %arg7[%c0_10, %c0_11] : memref<8x256xf32, #tpu.memory_space<vmem>>, vector<8x256xf32>
      tpu.vector_store %arg7[%c0_10, %c0_11], %12 {strides = array<i32>} : memref<8x256xf32, #tpu.memory_space<vmem>>, vector<8x256xf32>,
    } else {
    }
    %c0 = arith.constant 0 : index
    %c0_1 = arith.constant 0 : index
    %3 = vector.load %arg7[%c0, %c0_1] : memref<8x256xf32, #tpu.memory_space<vmem>>, vector<8x256xf32>
    %c0_2 = arith.constant 0 : index
    %c0_3 = arith.constant 0 : index
    %4 = vector.load %arg2[%c0_2, %c0_3] : memref<8x256xbf16, #tpu.memory_space<vmem>>, vector<8x256xbf16>
    %c0_4 = arith.constant 0 : index
    %c0_5 = arith.constant 0 : index
    %5 = vector.load %arg3[%c0_4, %c0_5] : memref<256x256xbf16, #tpu.memory_space<vmem>>, vector<256x256xbf16>
    %cst = arith.constant dense<0.000000e+00> : vector<8x256xf32>
    %6 = tpu.matmul %4, %5, %cst {dimension_numbers = #tpu.dot_dimension_numbers<[1], [0], [0], [1], [0, 0, 1, 1], [], []>} : vector<8x256xbf16>, vector<256x256xbf16>, vector<8x256xf32> -> vector<8x256xf32>
    %7 = arith.addf %3, %6 : vector<8x256xf32>
    %c0_6 = arith.constant 0 : index
    %c0_7 = arith.constant 0 : index
    %8 = vector.load %arg7[%c0_6, %c0_7] : memref<8x256xf32, #tpu.memory_space<vmem>>, vector<8x256xf32>
    tpu.vector_store %arg7[%c0_6, %c0_7], %7 {strides = array<i32>} : memref<8x256xf32, #tpu.memory_space<vmem>>, vector<8x256xf32>,
    %c8_i32 = arith.constant 8 : i32
    %9 = arith.cmpi eq, %arg1, %c8_i32 : i32
    %10 = arith.extui %9 : i1 to i32
    %c0_i32_8 = arith.constant 0 : i32
    %11 = arith.cmpi ne, %10, %c0_i32_8 : i32
    scf.if %11 {
      %c0_9 = arith.constant 0 : index
      %c0_10 = arith.constant 0 : index
      %12 = vector.load %arg7[%c0_9, %c0_10] : memref<8x256xf32, #tpu.memory_space<vmem>>, vector<8x256xf32>
      %c0_11 = arith.constant 0 : index
      %c0_12 = arith.constant 0 : index
      %13 = vector.load %arg4[%c0_11, %c0_12] : memref<8x256xf32, #tpu.memory_space<vmem>>, vector<8x256xf32>
      tpu.vector_store %arg4[%c0_11, %c0_12], %12 {strides = array<i32>} : memref<8x256xf32, #tpu.memory_space<vmem>>, vector<8x256xf32>,
      %cst_13 = arith.constant dense<0.000000e+00> : vector<256xf32>
      %14 = vector.multi_reduction <add>, %12, %cst_13 [0] : vector<8x256xf32> to vector<256xf32>
      %15 = vector.shape_cast %14 : vector<256xf32> to vector<1x256xf32>
      %16 = vector.shape_cast %15 : vector<1x256xf32> to vector<1x256xf32>
      %17 = vector.broadcast %16 : vector<1x256xf32> to vector<8x256xf32>
      %c0_14 = arith.constant 0 : index
      %c0_15 = arith.constant 0 : index
      %18 = vector.load %arg5[%c0_14, %c0_15] : memref<8x256xf32, #tpu.memory_space<vmem>>, vector<8x256xf32>
      tpu.vector_store %arg5[%c0_14, %c0_15], %17 {strides = array<i32>} : memref<8x256xf32, #tpu.memory_space<vmem>>, vector<8x256xf32>,
      %19 = arith.mulf %12, %12 : vector<8x256xf32>
      %cst_16 = arith.constant dense<0.000000e+00> : vector<256xf32>
      %20 = vector.multi_reduction <add>, %19, %cst_16 [0] : vector<8x256xf32> to vector<256xf32>
      %21 = vector.shape_cast %20 : vector<256xf32> to vector<1x256xf32>
      %22 = vector.shape_cast %21 : vector<1x256xf32> to vector<1x256xf32>
      %23 = vector.broadcast %22 : vector<1x256xf32> to vector<8x256xf32>
      %c0_17 = arith.constant 0 : index
      %c0_18 = arith.constant 0 : index
      %24 = vector.load %arg6[%c0_17, %c0_18] : memref<8x256xf32, #tpu.memory_space<vmem>>, vector<8x256xf32>
      tpu.vector_store %arg6[%c0_17, %c0_18], %23 {strides = array<i32>} : memref<8x256xf32, #tpu.memory_space<vmem>>, vector<8x256xf32>,
    } else {
    }
    return
  }
  func.func @transform_0(%arg0: i32, %arg1: i32) -> (i32, i32) {
    %c0_i32 = arith.constant 0 : i32
    return %arg0, %arg1 : i32, i32
  }
  func.func @transform_1(%arg0: i32, %arg1: i32) -> (i32, i32) {
    %c0_i32 = arith.constant 0 : i32
    %c0_i32_0 = arith.constant 0 : i32
    return %arg1, %c0_i32 : i32, i32
  }
  func.func @transform_2(%arg0: i32, %arg1: i32) -> (i32, i32) {
    %c0_i32 = arith.constant 0 : i32
    %c0_i32_0 = arith.constant 0 : i32
    return %arg0, %c0_i32 : i32, i32
  }
  func.func @transform_3(%arg0: i32, %arg1: i32) -> (i32, i32) {
    %c0_i32 = arith.constant 0 : i32
    %c0_i32_0 = arith.constant 0 : i32
    return %arg0, %c0_i32 : i32, i32
  }
  func.func @transform_4(%arg0: i32, %arg1: i32) -> (i32, i32) {
    %c0_i32 = arith.constant 0 : i32
    %c0_i32_0 = arith.constant 0 : i32
    return %arg0, %c0_i32 : i32, i32
  }
}

module attributes {stable_mosaic.version = 11 : i64} {
  func.func @_bn_apply_res_kernel(%arg0: i32, %arg1: memref<8x256xf32, #tpu.memory_space<vmem>>, %arg2: memref<8x256xf32, #tpu.memory_space<vmem>>, %arg3: memref<8x256xf32, #tpu.memory_space<vmem>>, %arg4: memref<1x256xf32, #tpu.memory_space<vmem>>, %arg5: memref<1x256xf32, #tpu.memory_space<vmem>>, %arg6: memref<8x256xf32, #tpu.memory_space<vmem>>, %arg7: memref<8x256xf32, #tpu.memory_space<vmem>>) attributes {dimension_semantics = [#tpu.dimension_semantics<parallel>], iteration_bounds = array<i64: 1>, scalar_prefetch = 0 : i64, scratch_operands = 0 : i64, tpu.core_type = #tpu.core_type<tc>, window_params = [{transform_indices = @transform_0, window_bounds = array<i64: 8, 256>}, {pipeline_mode = #tpu.pipeline_mode<synchronous>, transform_indices = @transform_1, window_bounds = array<i64: 8, 256>}, {pipeline_mode = #tpu.pipeline_mode<synchronous>, transform_indices = @transform_2, window_bounds = array<i64: 8, 256>}, {pipeline_mode = #tpu.pipeline_mode<synchronous>, transform_indices = @transform_3, window_bounds = array<i64: 1, 256>}, {pipeline_mode = #tpu.pipeline_mode<synchronous>, transform_indices = @transform_4, window_bounds = array<i64: 1, 256>}, {transform_indices = @transform_5, window_bounds = array<i64: 8, 256>}, {transform_indices = @transform_6, window_bounds = array<i64: 8, 256>}]} {
    %c0 = arith.constant 0 : index
    %c0_0 = arith.constant 0 : index
    %0 = vector.load %arg2[%c0, %c0_0] : memref<8x256xf32, #tpu.memory_space<vmem>>, vector<8x256xf32>
    %cst = arith.constant dense<0.000000e+00> : vector<256xf32>
    %1 = vector.multi_reduction <add>, %0, %cst [0] : vector<8x256xf32> to vector<256xf32>
    %2 = vector.shape_cast %1 : vector<256xf32> to vector<1x256xf32>
    %cst_1 = arith.constant 1.562500e-02 : f32
    %3 = vector.broadcast %cst_1 : f32 to vector<1x256xf32>
    %4 = arith.mulf %2, %3 : vector<1x256xf32>
    %c0_2 = arith.constant 0 : index
    %c0_3 = arith.constant 0 : index
    %5 = vector.load %arg3[%c0_2, %c0_3] : memref<8x256xf32, #tpu.memory_space<vmem>>, vector<8x256xf32>
    %cst_4 = arith.constant dense<0.000000e+00> : vector<256xf32>
    %6 = vector.multi_reduction <add>, %5, %cst_4 [0] : vector<8x256xf32> to vector<256xf32>
    %7 = vector.shape_cast %6 : vector<256xf32> to vector<1x256xf32>
    %cst_5 = arith.constant 1.562500e-02 : f32
    %8 = vector.broadcast %cst_5 : f32 to vector<1x256xf32>
    %9 = arith.mulf %7, %8 : vector<1x256xf32>
    %10 = arith.mulf %4, %4 : vector<1x256xf32>
    %11 = arith.subf %9, %10 : vector<1x256xf32>
    %cst_6 = arith.constant 0.000000e+00 : f32
    %12 = vector.broadcast %cst_6 : f32 to vector<1x256xf32>
    %13 = arith.maximumf %11, %12 : vector<1x256xf32>
    %c0_7 = arith.constant 0 : index
    %c0_8 = arith.constant 0 : index
    %14 = vector.load %arg4[%c0_7, %c0_8] : memref<1x256xf32, #tpu.memory_space<vmem>>, vector<1x256xf32>
    %cst_9 = arith.constant 9.99999974E-6 : f32
    %15 = vector.broadcast %cst_9 : f32 to vector<1x256xf32>
    %16 = arith.addf %13, %15 : vector<1x256xf32>
    %17 = math.rsqrt %16 : vector<1x256xf32>
    %18 = arith.mulf %14, %17 : vector<1x256xf32>
    %c0_10 = arith.constant 0 : index
    %c0_11 = arith.constant 0 : index
    %19 = vector.load %arg5[%c0_10, %c0_11] : memref<1x256xf32, #tpu.memory_space<vmem>>, vector<1x256xf32>
    %20 = arith.mulf %4, %18 : vector<1x256xf32>
    %21 = arith.subf %19, %20 : vector<1x256xf32>
    %c0_12 = arith.constant 0 : index
    %c0_13 = arith.constant 0 : index
    %22 = vector.load %arg1[%c0_12, %c0_13] : memref<8x256xf32, #tpu.memory_space<vmem>>, vector<8x256xf32>
    %23 = vector.broadcast %18 : vector<1x256xf32> to vector<8x256xf32>
    %24 = arith.mulf %22, %23 : vector<8x256xf32>
    %25 = vector.broadcast %21 : vector<1x256xf32> to vector<8x256xf32>
    %26 = arith.addf %24, %25 : vector<8x256xf32>
    %c0_14 = arith.constant 0 : index
    %c0_15 = arith.constant 0 : index
    %27 = vector.load %arg6[%c0_14, %c0_15] : memref<8x256xf32, #tpu.memory_space<vmem>>, vector<8x256xf32>
    %28 = arith.addf %26, %27 : vector<8x256xf32>
    %cst_16 = arith.constant 0.000000e+00 : f32
    %29 = vector.broadcast %cst_16 : f32 to vector<8x256xf32>
    %30 = arith.maximumf %28, %29 : vector<8x256xf32>
    %c0_17 = arith.constant 0 : index
    %c0_18 = arith.constant 0 : index
    %31 = vector.load %arg7[%c0_17, %c0_18] : memref<8x256xf32, #tpu.memory_space<vmem>>, vector<8x256xf32>
    tpu.vector_store %arg7[%c0_17, %c0_18], %30 {strides = array<i32>} : memref<8x256xf32, #tpu.memory_space<vmem>>, vector<8x256xf32>,
    return
  }
  func.func @transform_0(%arg0: i32) -> (i32, i32) {
    %c0_i32 = arith.constant 0 : i32
    %c0_i32_0 = arith.constant 0 : i32
    return %arg0, %c0_i32 : i32, i32
  }
  func.func @transform_1(%arg0: i32) -> (i32, i32) {
    %c0_i32 = arith.constant 0 : i32
    %c0_i32_0 = arith.constant 0 : i32
    %c0_i32_1 = arith.constant 0 : i32
    return %c0_i32, %c0_i32_0 : i32, i32
  }
  func.func @transform_2(%arg0: i32) -> (i32, i32) {
    %c0_i32 = arith.constant 0 : i32
    %c0_i32_0 = arith.constant 0 : i32
    %c0_i32_1 = arith.constant 0 : i32
    return %c0_i32, %c0_i32_0 : i32, i32
  }
  func.func @transform_3(%arg0: i32) -> (i32, i32) {
    %c0_i32 = arith.constant 0 : i32
    %c0_i32_0 = arith.constant 0 : i32
    %c0_i32_1 = arith.constant 0 : i32
    return %c0_i32, %c0_i32_0 : i32, i32
  }
  func.func @transform_4(%arg0: i32) -> (i32, i32) {
    %c0_i32 = arith.constant 0 : i32
    %c0_i32_0 = arith.constant 0 : i32
    %c0_i32_1 = arith.constant 0 : i32
    return %c0_i32, %c0_i32_0 : i32, i32
  }
  func.func @transform_5(%arg0: i32) -> (i32, i32) {
    %c0_i32 = arith.constant 0 : i32
    %c0_i32_0 = arith.constant 0 : i32
    return %arg0, %c0_i32 : i32, i32
  }
  func.func @transform_6(%arg0: i32) -> (i32, i32) {
    %c0_i32 = arith.constant 0 : i32
    %c0_i32_0 = arith.constant 0 : i32
    return %arg0, %c0_i32 : i32, i32
  }
}

module attributes {stable_mosaic.version = 11 : i64} {
  func.func @_bn_apply_kernel(%arg0: i32, %arg1: memref<2x512xf32, #tpu.memory_space<vmem>>, %arg2: memref<8x512xf32, #tpu.memory_space<vmem>>, %arg3: memref<8x512xf32, #tpu.memory_space<vmem>>, %arg4: memref<1x512xf32, #tpu.memory_space<vmem>>, %arg5: memref<1x512xf32, #tpu.memory_space<vmem>>, %arg6: memref<2x512xf32, #tpu.memory_space<vmem>>) attributes {dimension_semantics = [#tpu.dimension_semantics<parallel>], iteration_bounds = array<i64: 1>, scalar_prefetch = 0 : i64, scratch_operands = 0 : i64, tpu.core_type = #tpu.core_type<tc>, window_params = [{transform_indices = @transform_0, window_bounds = array<i64: 2, 512>}, {pipeline_mode = #tpu.pipeline_mode<synchronous>, transform_indices = @transform_1, window_bounds = array<i64: 8, 512>}, {pipeline_mode = #tpu.pipeline_mode<synchronous>, transform_indices = @transform_2, window_bounds = array<i64: 8, 512>}, {pipeline_mode = #tpu.pipeline_mode<synchronous>, transform_indices = @transform_3, window_bounds = array<i64: 1, 512>}, {pipeline_mode = #tpu.pipeline_mode<synchronous>, transform_indices = @transform_4, window_bounds = array<i64: 1, 512>}, {transform_indices = @transform_5, window_bounds = array<i64: 2, 512>}]} {
    %c0 = arith.constant 0 : index
    %c0_0 = arith.constant 0 : index
    %0 = vector.load %arg2[%c0, %c0_0] : memref<8x512xf32, #tpu.memory_space<vmem>>, vector<8x512xf32>
    %cst = arith.constant dense<0.000000e+00> : vector<512xf32>
    %1 = vector.multi_reduction <add>, %0, %cst [0] : vector<8x512xf32> to vector<512xf32>
    %2 = vector.shape_cast %1 : vector<512xf32> to vector<1x512xf32>
    %cst_1 = arith.constant 6.250000e-02 : f32
    %3 = vector.broadcast %cst_1 : f32 to vector<1x512xf32>
    %4 = arith.mulf %2, %3 : vector<1x512xf32>
    %c0_2 = arith.constant 0 : index
    %c0_3 = arith.constant 0 : index
    %5 = vector.load %arg3[%c0_2, %c0_3] : memref<8x512xf32, #tpu.memory_space<vmem>>, vector<8x512xf32>
    %cst_4 = arith.constant dense<0.000000e+00> : vector<512xf32>
    %6 = vector.multi_reduction <add>, %5, %cst_4 [0] : vector<8x512xf32> to vector<512xf32>
    %7 = vector.shape_cast %6 : vector<512xf32> to vector<1x512xf32>
    %cst_5 = arith.constant 6.250000e-02 : f32
    %8 = vector.broadcast %cst_5 : f32 to vector<1x512xf32>
    %9 = arith.mulf %7, %8 : vector<1x512xf32>
    %10 = arith.mulf %4, %4 : vector<1x512xf32>
    %11 = arith.subf %9, %10 : vector<1x512xf32>
    %cst_6 = arith.constant 0.000000e+00 : f32
    %12 = vector.broadcast %cst_6 : f32 to vector<1x512xf32>
    %13 = arith.maximumf %11, %12 : vector<1x512xf32>
    %c0_7 = arith.constant 0 : index
    %c0_8 = arith.constant 0 : index
    %14 = vector.load %arg4[%c0_7, %c0_8] : memref<1x512xf32, #tpu.memory_space<vmem>>, vector<1x512xf32>
    %cst_9 = arith.constant 9.99999974E-6 : f32
    %15 = vector.broadcast %cst_9 : f32 to vector<1x512xf32>
    %16 = arith.addf %13, %15 : vector<1x512xf32>
    %17 = math.rsqrt %16 : vector<1x512xf32>
    %18 = arith.mulf %14, %17 : vector<1x512xf32>
    %c0_10 = arith.constant 0 : index
    %c0_11 = arith.constant 0 : index
    %19 = vector.load %arg5[%c0_10, %c0_11] : memref<1x512xf32, #tpu.memory_space<vmem>>, vector<1x512xf32>
    %20 = arith.mulf %4, %18 : vector<1x512xf32>
    %21 = arith.subf %19, %20 : vector<1x512xf32>
    %c0_12 = arith.constant 0 : index
    %c0_13 = arith.constant 0 : index
    %22 = vector.load %arg1[%c0_12, %c0_13] : memref<2x512xf32, #tpu.memory_space<vmem>>, vector<2x512xf32>
    %23 = vector.broadcast %18 : vector<1x512xf32> to vector<2x512xf32>
    %24 = arith.mulf %22, %23 : vector<2x512xf32>
    %25 = vector.broadcast %21 : vector<1x512xf32> to vector<2x512xf32>
    %26 = arith.addf %24, %25 : vector<2x512xf32>
    %c0_14 = arith.constant 0 : index
    %c0_15 = arith.constant 0 : index
    %27 = vector.load %arg6[%c0_14, %c0_15] : memref<2x512xf32, #tpu.memory_space<vmem>>, vector<2x512xf32>
    tpu.vector_store %arg6[%c0_14, %c0_15], %26 {strides = array<i32>} : memref<2x512xf32, #tpu.memory_space<vmem>>, vector<2x512xf32>,
    return
  }
  func.func @transform_0(%arg0: i32) -> (i32, i32) {
    %c0_i32 = arith.constant 0 : i32
    %c0_i32_0 = arith.constant 0 : i32
    return %arg0, %c0_i32 : i32, i32
  }
  func.func @transform_1(%arg0: i32) -> (i32, i32) {
    %c0_i32 = arith.constant 0 : i32
    %c0_i32_0 = arith.constant 0 : i32
    %c0_i32_1 = arith.constant 0 : i32
    return %c0_i32, %c0_i32_0 : i32, i32
  }
  func.func @transform_2(%arg0: i32) -> (i32, i32) {
    %c0_i32 = arith.constant 0 : i32
    %c0_i32_0 = arith.constant 0 : i32
    %c0_i32_1 = arith.constant 0 : i32
    return %c0_i32, %c0_i32_0 : i32, i32
  }
  func.func @transform_3(%arg0: i32) -> (i32, i32) {
    %c0_i32 = arith.constant 0 : i32
    %c0_i32_0 = arith.constant 0 : i32
    %c0_i32_1 = arith.constant 0 : i32
    return %c0_i32, %c0_i32_0 : i32, i32
  }
  func.func @transform_4(%arg0: i32) -> (i32, i32) {
    %c0_i32 = arith.constant 0 : i32
    %c0_i32_0 = arith.constant 0 : i32
    %c0_i32_1 = arith.constant 0 : i32
    return %c0_i32, %c0_i32_0 : i32, i32
  }
  func.func @transform_5(%arg0: i32) -> (i32, i32) {
    %c0_i32 = arith.constant 0 : i32
    %c0_i32_0 = arith.constant 0 : i32
    return %arg0, %c0_i32 : i32, i32
  }
}

module attributes {stable_mosaic.version = 11 : i64} {
  func.func @_matmul_stats_kernel(%arg0: i32, %arg1: i32, %arg2: memref<2x256xbf16, #tpu.memory_space<vmem>>, %arg3: memref<256x512xbf16, #tpu.memory_space<vmem>>, %arg4: memref<2x512xf32, #tpu.memory_space<vmem>>, %arg5: memref<8x512xf32, #tpu.memory_space<vmem>>, %arg6: memref<8x512xf32, #tpu.memory_space<vmem>>, %arg7: memref<2x512xf32, #tpu.memory_space<vmem>>) attributes {dimension_semantics = [#tpu.dimension_semantics<parallel>, #tpu.dimension_semantics<arbitrary>], iteration_bounds = array<i64: 1, 1>, scalar_prefetch = 0 : i64, scratch_operands = 1 : i64, tpu.core_type = #tpu.core_type<tc>, window_params = [{transform_indices = @transform_0, window_bounds = array<i64: 2, 256>}, {transform_indices = @transform_1, window_bounds = array<i64: 256, 512>}, {transform_indices = @transform_2, window_bounds = array<i64: 2, 512>}, {transform_indices = @transform_3, window_bounds = array<i64: 8, 512>}, {transform_indices = @transform_4, window_bounds = array<i64: 8, 512>}]} {
    %c0_i32 = arith.constant 0 : i32
    %0 = arith.cmpi eq, %arg1, %c0_i32 : i32
    %1 = arith.extui %0 : i1 to i32
    %c0_i32_0 = arith.constant 0 : i32
    %2 = arith.cmpi ne, %1, %c0_i32_0 : i32
    scf.if %2 {
      %cst_10 = arith.constant 0.000000e+00 : f32
      %12 = vector.broadcast %cst_10 : f32 to vector<2x512xf32>
      %c0_11 = arith.constant 0 : index
      %c0_12 = arith.constant 0 : index
      %13 = vector.load %arg7[%c0_11, %c0_12] : memref<2x512xf32, #tpu.memory_space<vmem>>, vector<2x512xf32>
      tpu.vector_store %arg7[%c0_11, %c0_12], %12 {strides = array<i32>} : memref<2x512xf32, #tpu.memory_space<vmem>>, vector<2x512xf32>,
    } else {
    }
    %c0 = arith.constant 0 : index
    %c0_1 = arith.constant 0 : index
    %3 = vector.load %arg7[%c0, %c0_1] : memref<2x512xf32, #tpu.memory_space<vmem>>, vector<2x512xf32>
    %c0_2 = arith.constant 0 : index
    %c0_3 = arith.constant 0 : index
    %4 = vector.load %arg2[%c0_2, %c0_3] : memref<2x256xbf16, #tpu.memory_space<vmem>>, vector<2x256xbf16>
    %c0_4 = arith.constant 0 : index
    %c0_5 = arith.constant 0 : index
    %5 = vector.load %arg3[%c0_4, %c0_5] : memref<256x512xbf16, #tpu.memory_space<vmem>>, vector<256x512xbf16>
    %cst = arith.constant dense<0.000000e+00> : vector<2x512xf32>
    %6 = tpu.matmul %4, %5, %cst {dimension_numbers = #tpu.dot_dimension_numbers<[1], [0], [0], [1], [0, 0, 1, 1], [], []>} : vector<2x256xbf16>, vector<256x512xbf16>, vector<2x512xf32> -> vector<2x512xf32>
    %7 = arith.addf %3, %6 : vector<2x512xf32>
    %c0_6 = arith.constant 0 : index
    %c0_7 = arith.constant 0 : index
    %8 = vector.load %arg7[%c0_6, %c0_7] : memref<2x512xf32, #tpu.memory_space<vmem>>, vector<2x512xf32>
    tpu.vector_store %arg7[%c0_6, %c0_7], %7 {strides = array<i32>} : memref<2x512xf32, #tpu.memory_space<vmem>>, vector<2x512xf32>,
    %c0_i32_8 = arith.constant 0 : i32
    %9 = arith.cmpi eq, %arg1, %c0_i32_8 : i32
    %10 = arith.extui %9 : i1 to i32
    %c0_i32_9 = arith.constant 0 : i32
    %11 = arith.cmpi ne, %10, %c0_i32_9 : i32
    scf.if %11 {
      %c0_10 = arith.constant 0 : index
      %c0_11 = arith.constant 0 : index
      %12 = vector.load %arg7[%c0_10, %c0_11] : memref<2x512xf32, #tpu.memory_space<vmem>>, vector<2x512xf32>
      %c0_12 = arith.constant 0 : index
      %c0_13 = arith.constant 0 : index
      %13 = vector.load %arg4[%c0_12, %c0_13] : memref<2x512xf32, #tpu.memory_space<vmem>>, vector<2x512xf32>
      tpu.vector_store %arg4[%c0_12, %c0_13], %12 {strides = array<i32>} : memref<2x512xf32, #tpu.memory_space<vmem>>, vector<2x512xf32>,
      %cst_14 = arith.constant dense<0.000000e+00> : vector<512xf32>
      %14 = vector.multi_reduction <add>, %12, %cst_14 [0] : vector<2x512xf32> to vector<512xf32>
      %15 = vector.shape_cast %14 : vector<512xf32> to vector<1x512xf32>
      %16 = vector.shape_cast %15 : vector<1x512xf32> to vector<1x512xf32>
      %17 = vector.broadcast %16 : vector<1x512xf32> to vector<8x512xf32>
      %c0_15 = arith.constant 0 : index
      %c0_16 = arith.constant 0 : index
      %18 = vector.load %arg5[%c0_15, %c0_16] : memref<8x512xf32, #tpu.memory_space<vmem>>, vector<8x512xf32>
      tpu.vector_store %arg5[%c0_15, %c0_16], %17 {strides = array<i32>} : memref<8x512xf32, #tpu.memory_space<vmem>>, vector<8x512xf32>,
      %19 = arith.mulf %12, %12 : vector<2x512xf32>
      %cst_17 = arith.constant dense<0.000000e+00> : vector<512xf32>
      %20 = vector.multi_reduction <add>, %19, %cst_17 [0] : vector<2x512xf32> to vector<512xf32>
      %21 = vector.shape_cast %20 : vector<512xf32> to vector<1x512xf32>
      %22 = vector.shape_cast %21 : vector<1x512xf32> to vector<1x512xf32>
      %23 = vector.broadcast %22 : vector<1x512xf32> to vector<8x512xf32>
      %c0_18 = arith.constant 0 : index
      %c0_19 = arith.constant 0 : index
      %24 = vector.load %arg6[%c0_18, %c0_19] : memref<8x512xf32, #tpu.memory_space<vmem>>, vector<8x512xf32>
      tpu.vector_store %arg6[%c0_18, %c0_19], %23 {strides = array<i32>} : memref<8x512xf32, #tpu.memory_space<vmem>>, vector<8x512xf32>,
    } else {
    }
    return
  }
  func.func @transform_0(%arg0: i32, %arg1: i32) -> (i32, i32) {
    %c0_i32 = arith.constant 0 : i32
    return %arg0, %arg1 : i32, i32
  }
  func.func @transform_1(%arg0: i32, %arg1: i32) -> (i32, i32) {
    %c0_i32 = arith.constant 0 : i32
    %c0_i32_0 = arith.constant 0 : i32
    return %arg1, %c0_i32 : i32, i32
  }
  func.func @transform_2(%arg0: i32, %arg1: i32) -> (i32, i32) {
    %c0_i32 = arith.constant 0 : i32
    %c0_i32_0 = arith.constant 0 : i32
    return %arg0, %c0_i32 : i32, i32
  }
  func.func @transform_3(%arg0: i32, %arg1: i32) -> (i32, i32) {
    %c0_i32 = arith.constant 0 : i32
    %c0_i32_0 = arith.constant 0 : i32
    return %arg0, %c0_i32 : i32, i32
  }
  func.func @transform_4(%arg0: i32, %arg1: i32) -> (i32, i32) {
    %c0_i32 = arith.constant 0 : i32
    %c0_i32_0 = arith.constant 0 : i32
    return %arg0, %c0_i32 : i32, i32
  }
}

module attributes {stable_mosaic.version = 11 : i64} {
  func.func @_matmul_stats_kernel(%arg0: i32, %arg1: i32, %arg2: memref<2x256xbf16, #tpu.memory_space<vmem>>, %arg3: memref<256x512xbf16, #tpu.memory_space<vmem>>, %arg4: memref<2x512xf32, #tpu.memory_space<vmem>>, %arg5: memref<8x512xf32, #tpu.memory_space<vmem>>, %arg6: memref<8x512xf32, #tpu.memory_space<vmem>>, %arg7: memref<2x512xf32, #tpu.memory_space<vmem>>) attributes {dimension_semantics = [#tpu.dimension_semantics<parallel>, #tpu.dimension_semantics<arbitrary>], iteration_bounds = array<i64: 1, 9>, scalar_prefetch = 0 : i64, scratch_operands = 1 : i64, tpu.core_type = #tpu.core_type<tc>, window_params = [{transform_indices = @transform_0, window_bounds = array<i64: 2, 256>}, {transform_indices = @transform_1, window_bounds = array<i64: 256, 512>}, {transform_indices = @transform_2, window_bounds = array<i64: 2, 512>}, {transform_indices = @transform_3, window_bounds = array<i64: 8, 512>}, {transform_indices = @transform_4, window_bounds = array<i64: 8, 512>}]} {
    %c0_i32 = arith.constant 0 : i32
    %0 = arith.cmpi eq, %arg1, %c0_i32 : i32
    %1 = arith.extui %0 : i1 to i32
    %c0_i32_0 = arith.constant 0 : i32
    %2 = arith.cmpi ne, %1, %c0_i32_0 : i32
    scf.if %2 {
      %cst_9 = arith.constant 0.000000e+00 : f32
      %12 = vector.broadcast %cst_9 : f32 to vector<2x512xf32>
      %c0_10 = arith.constant 0 : index
      %c0_11 = arith.constant 0 : index
      %13 = vector.load %arg7[%c0_10, %c0_11] : memref<2x512xf32, #tpu.memory_space<vmem>>, vector<2x512xf32>
      tpu.vector_store %arg7[%c0_10, %c0_11], %12 {strides = array<i32>} : memref<2x512xf32, #tpu.memory_space<vmem>>, vector<2x512xf32>,
    } else {
    }
    %c0 = arith.constant 0 : index
    %c0_1 = arith.constant 0 : index
    %3 = vector.load %arg7[%c0, %c0_1] : memref<2x512xf32, #tpu.memory_space<vmem>>, vector<2x512xf32>
    %c0_2 = arith.constant 0 : index
    %c0_3 = arith.constant 0 : index
    %4 = vector.load %arg2[%c0_2, %c0_3] : memref<2x256xbf16, #tpu.memory_space<vmem>>, vector<2x256xbf16>
    %c0_4 = arith.constant 0 : index
    %c0_5 = arith.constant 0 : index
    %5 = vector.load %arg3[%c0_4, %c0_5] : memref<256x512xbf16, #tpu.memory_space<vmem>>, vector<256x512xbf16>
    %cst = arith.constant dense<0.000000e+00> : vector<2x512xf32>
    %6 = tpu.matmul %4, %5, %cst {dimension_numbers = #tpu.dot_dimension_numbers<[1], [0], [0], [1], [0, 0, 1, 1], [], []>} : vector<2x256xbf16>, vector<256x512xbf16>, vector<2x512xf32> -> vector<2x512xf32>
    %7 = arith.addf %3, %6 : vector<2x512xf32>
    %c0_6 = arith.constant 0 : index
    %c0_7 = arith.constant 0 : index
    %8 = vector.load %arg7[%c0_6, %c0_7] : memref<2x512xf32, #tpu.memory_space<vmem>>, vector<2x512xf32>
    tpu.vector_store %arg7[%c0_6, %c0_7], %7 {strides = array<i32>} : memref<2x512xf32, #tpu.memory_space<vmem>>, vector<2x512xf32>,
    %c8_i32 = arith.constant 8 : i32
    %9 = arith.cmpi eq, %arg1, %c8_i32 : i32
    %10 = arith.extui %9 : i1 to i32
    %c0_i32_8 = arith.constant 0 : i32
    %11 = arith.cmpi ne, %10, %c0_i32_8 : i32
    scf.if %11 {
      %c0_9 = arith.constant 0 : index
      %c0_10 = arith.constant 0 : index
      %12 = vector.load %arg7[%c0_9, %c0_10] : memref<2x512xf32, #tpu.memory_space<vmem>>, vector<2x512xf32>
      %c0_11 = arith.constant 0 : index
      %c0_12 = arith.constant 0 : index
      %13 = vector.load %arg4[%c0_11, %c0_12] : memref<2x512xf32, #tpu.memory_space<vmem>>, vector<2x512xf32>
      tpu.vector_store %arg4[%c0_11, %c0_12], %12 {strides = array<i32>} : memref<2x512xf32, #tpu.memory_space<vmem>>, vector<2x512xf32>,
      %cst_13 = arith.constant dense<0.000000e+00> : vector<512xf32>
      %14 = vector.multi_reduction <add>, %12, %cst_13 [0] : vector<2x512xf32> to vector<512xf32>
      %15 = vector.shape_cast %14 : vector<512xf32> to vector<1x512xf32>
      %16 = vector.shape_cast %15 : vector<1x512xf32> to vector<1x512xf32>
      %17 = vector.broadcast %16 : vector<1x512xf32> to vector<8x512xf32>
      %c0_14 = arith.constant 0 : index
      %c0_15 = arith.constant 0 : index
      %18 = vector.load %arg5[%c0_14, %c0_15] : memref<8x512xf32, #tpu.memory_space<vmem>>, vector<8x512xf32>
      tpu.vector_store %arg5[%c0_14, %c0_15], %17 {strides = array<i32>} : memref<8x512xf32, #tpu.memory_space<vmem>>, vector<8x512xf32>,
      %19 = arith.mulf %12, %12 : vector<2x512xf32>
      %cst_16 = arith.constant dense<0.000000e+00> : vector<512xf32>
      %20 = vector.multi_reduction <add>, %19, %cst_16 [0] : vector<2x512xf32> to vector<512xf32>
      %21 = vector.shape_cast %20 : vector<512xf32> to vector<1x512xf32>
      %22 = vector.shape_cast %21 : vector<1x512xf32> to vector<1x512xf32>
      %23 = vector.broadcast %22 : vector<1x512xf32> to vector<8x512xf32>
      %c0_17 = arith.constant 0 : index
      %c0_18 = arith.constant 0 : index
      %24 = vector.load %arg6[%c0_17, %c0_18] : memref<8x512xf32, #tpu.memory_space<vmem>>, vector<8x512xf32>
      tpu.vector_store %arg6[%c0_17, %c0_18], %23 {strides = array<i32>} : memref<8x512xf32, #tpu.memory_space<vmem>>, vector<8x512xf32>,
    } else {
    }
    return
  }
  func.func @transform_0(%arg0: i32, %arg1: i32) -> (i32, i32) {
    %c0_i32 = arith.constant 0 : i32
    return %arg0, %arg1 : i32, i32
  }
  func.func @transform_1(%arg0: i32, %arg1: i32) -> (i32, i32) {
    %c0_i32 = arith.constant 0 : i32
    %c0_i32_0 = arith.constant 0 : i32
    return %arg1, %c0_i32 : i32, i32
  }
  func.func @transform_2(%arg0: i32, %arg1: i32) -> (i32, i32) {
    %c0_i32 = arith.constant 0 : i32
    %c0_i32_0 = arith.constant 0 : i32
    return %arg0, %c0_i32 : i32, i32
  }
  func.func @transform_3(%arg0: i32, %arg1: i32) -> (i32, i32) {
    %c0_i32 = arith.constant 0 : i32
    %c0_i32_0 = arith.constant 0 : i32
    return %arg0, %c0_i32 : i32, i32
  }
  func.func @transform_4(%arg0: i32, %arg1: i32) -> (i32, i32) {
    %c0_i32 = arith.constant 0 : i32
    %c0_i32_0 = arith.constant 0 : i32
    return %arg0, %c0_i32 : i32, i32
  }
}

module attributes {stable_mosaic.version = 11 : i64} {
  func.func @_bn_apply_kernel(%arg0: i32, %arg1: memref<2x512xf32, #tpu.memory_space<vmem>>, %arg2: memref<8x512xf32, #tpu.memory_space<vmem>>, %arg3: memref<8x512xf32, #tpu.memory_space<vmem>>, %arg4: memref<1x512xf32, #tpu.memory_space<vmem>>, %arg5: memref<1x512xf32, #tpu.memory_space<vmem>>, %arg6: memref<2x512xf32, #tpu.memory_space<vmem>>) attributes {dimension_semantics = [#tpu.dimension_semantics<parallel>], iteration_bounds = array<i64: 1>, scalar_prefetch = 0 : i64, scratch_operands = 0 : i64, tpu.core_type = #tpu.core_type<tc>, window_params = [{transform_indices = @transform_0, window_bounds = array<i64: 2, 512>}, {pipeline_mode = #tpu.pipeline_mode<synchronous>, transform_indices = @transform_1, window_bounds = array<i64: 8, 512>}, {pipeline_mode = #tpu.pipeline_mode<synchronous>, transform_indices = @transform_2, window_bounds = array<i64: 8, 512>}, {pipeline_mode = #tpu.pipeline_mode<synchronous>, transform_indices = @transform_3, window_bounds = array<i64: 1, 512>}, {pipeline_mode = #tpu.pipeline_mode<synchronous>, transform_indices = @transform_4, window_bounds = array<i64: 1, 512>}, {transform_indices = @transform_5, window_bounds = array<i64: 2, 512>}]} {
    %c0 = arith.constant 0 : index
    %c0_0 = arith.constant 0 : index
    %0 = vector.load %arg2[%c0, %c0_0] : memref<8x512xf32, #tpu.memory_space<vmem>>, vector<8x512xf32>
    %cst = arith.constant dense<0.000000e+00> : vector<512xf32>
    %1 = vector.multi_reduction <add>, %0, %cst [0] : vector<8x512xf32> to vector<512xf32>
    %2 = vector.shape_cast %1 : vector<512xf32> to vector<1x512xf32>
    %cst_1 = arith.constant 6.250000e-02 : f32
    %3 = vector.broadcast %cst_1 : f32 to vector<1x512xf32>
    %4 = arith.mulf %2, %3 : vector<1x512xf32>
    %c0_2 = arith.constant 0 : index
    %c0_3 = arith.constant 0 : index
    %5 = vector.load %arg3[%c0_2, %c0_3] : memref<8x512xf32, #tpu.memory_space<vmem>>, vector<8x512xf32>
    %cst_4 = arith.constant dense<0.000000e+00> : vector<512xf32>
    %6 = vector.multi_reduction <add>, %5, %cst_4 [0] : vector<8x512xf32> to vector<512xf32>
    %7 = vector.shape_cast %6 : vector<512xf32> to vector<1x512xf32>
    %cst_5 = arith.constant 6.250000e-02 : f32
    %8 = vector.broadcast %cst_5 : f32 to vector<1x512xf32>
    %9 = arith.mulf %7, %8 : vector<1x512xf32>
    %10 = arith.mulf %4, %4 : vector<1x512xf32>
    %11 = arith.subf %9, %10 : vector<1x512xf32>
    %cst_6 = arith.constant 0.000000e+00 : f32
    %12 = vector.broadcast %cst_6 : f32 to vector<1x512xf32>
    %13 = arith.maximumf %11, %12 : vector<1x512xf32>
    %c0_7 = arith.constant 0 : index
    %c0_8 = arith.constant 0 : index
    %14 = vector.load %arg4[%c0_7, %c0_8] : memref<1x512xf32, #tpu.memory_space<vmem>>, vector<1x512xf32>
    %cst_9 = arith.constant 9.99999974E-6 : f32
    %15 = vector.broadcast %cst_9 : f32 to vector<1x512xf32>
    %16 = arith.addf %13, %15 : vector<1x512xf32>
    %17 = math.rsqrt %16 : vector<1x512xf32>
    %18 = arith.mulf %14, %17 : vector<1x512xf32>
    %c0_10 = arith.constant 0 : index
    %c0_11 = arith.constant 0 : index
    %19 = vector.load %arg5[%c0_10, %c0_11] : memref<1x512xf32, #tpu.memory_space<vmem>>, vector<1x512xf32>
    %20 = arith.mulf %4, %18 : vector<1x512xf32>
    %21 = arith.subf %19, %20 : vector<1x512xf32>
    %c0_12 = arith.constant 0 : index
    %c0_13 = arith.constant 0 : index
    %22 = vector.load %arg1[%c0_12, %c0_13] : memref<2x512xf32, #tpu.memory_space<vmem>>, vector<2x512xf32>
    %23 = vector.broadcast %18 : vector<1x512xf32> to vector<2x512xf32>
    %24 = arith.mulf %22, %23 : vector<2x512xf32>
    %25 = vector.broadcast %21 : vector<1x512xf32> to vector<2x512xf32>
    %26 = arith.addf %24, %25 : vector<2x512xf32>
    %cst_14 = arith.constant 0.000000e+00 : f32
    %27 = vector.broadcast %cst_14 : f32 to vector<2x512xf32>
    %28 = arith.maximumf %26, %27 : vector<2x512xf32>
    %c0_15 = arith.constant 0 : index
    %c0_16 = arith.constant 0 : index
    %29 = vector.load %arg6[%c0_15, %c0_16] : memref<2x512xf32, #tpu.memory_space<vmem>>, vector<2x512xf32>
    tpu.vector_store %arg6[%c0_15, %c0_16], %28 {strides = array<i32>} : memref<2x512xf32, #tpu.memory_space<vmem>>, vector<2x512xf32>,
    return
  }
  func.func @transform_0(%arg0: i32) -> (i32, i32) {
    %c0_i32 = arith.constant 0 : i32
    %c0_i32_0 = arith.constant 0 : i32
    return %arg0, %c0_i32 : i32, i32
  }
  func.func @transform_1(%arg0: i32) -> (i32, i32) {
    %c0_i32 = arith.constant 0 : i32
    %c0_i32_0 = arith.constant 0 : i32
    %c0_i32_1 = arith.constant 0 : i32
    return %c0_i32, %c0_i32_0 : i32, i32
  }
  func.func @transform_2(%arg0: i32) -> (i32, i32) {
    %c0_i32 = arith.constant 0 : i32
    %c0_i32_0 = arith.constant 0 : i32
    %c0_i32_1 = arith.constant 0 : i32
    return %c0_i32, %c0_i32_0 : i32, i32
  }
  func.func @transform_3(%arg0: i32) -> (i32, i32) {
    %c0_i32 = arith.constant 0 : i32
    %c0_i32_0 = arith.constant 0 : i32
    %c0_i32_1 = arith.constant 0 : i32
    return %c0_i32, %c0_i32_0 : i32, i32
  }
  func.func @transform_4(%arg0: i32) -> (i32, i32) {
    %c0_i32 = arith.constant 0 : i32
    %c0_i32_0 = arith.constant 0 : i32
    %c0_i32_1 = arith.constant 0 : i32
    return %c0_i32, %c0_i32_0 : i32, i32
  }
  func.func @transform_5(%arg0: i32) -> (i32, i32) {
    %c0_i32 = arith.constant 0 : i32
    %c0_i32_0 = arith.constant 0 : i32
    return %arg0, %c0_i32 : i32, i32
  }
}

module attributes {stable_mosaic.version = 11 : i64} {
  func.func @_bn_apply_res_kernel(%arg0: i32, %arg1: memref<2x512xf32, #tpu.memory_space<vmem>>, %arg2: memref<8x512xf32, #tpu.memory_space<vmem>>, %arg3: memref<8x512xf32, #tpu.memory_space<vmem>>, %arg4: memref<1x512xf32, #tpu.memory_space<vmem>>, %arg5: memref<1x512xf32, #tpu.memory_space<vmem>>, %arg6: memref<2x512xf32, #tpu.memory_space<vmem>>, %arg7: memref<2x512xf32, #tpu.memory_space<vmem>>) attributes {dimension_semantics = [#tpu.dimension_semantics<parallel>], iteration_bounds = array<i64: 1>, scalar_prefetch = 0 : i64, scratch_operands = 0 : i64, tpu.core_type = #tpu.core_type<tc>, window_params = [{transform_indices = @transform_0, window_bounds = array<i64: 2, 512>}, {pipeline_mode = #tpu.pipeline_mode<synchronous>, transform_indices = @transform_1, window_bounds = array<i64: 8, 512>}, {pipeline_mode = #tpu.pipeline_mode<synchronous>, transform_indices = @transform_2, window_bounds = array<i64: 8, 512>}, {pipeline_mode = #tpu.pipeline_mode<synchronous>, transform_indices = @transform_3, window_bounds = array<i64: 1, 512>}, {pipeline_mode = #tpu.pipeline_mode<synchronous>, transform_indices = @transform_4, window_bounds = array<i64: 1, 512>}, {transform_indices = @transform_5, window_bounds = array<i64: 2, 512>}, {transform_indices = @transform_6, window_bounds = array<i64: 2, 512>}]} {
    %c0 = arith.constant 0 : index
    %c0_0 = arith.constant 0 : index
    %0 = vector.load %arg2[%c0, %c0_0] : memref<8x512xf32, #tpu.memory_space<vmem>>, vector<8x512xf32>
    %cst = arith.constant dense<0.000000e+00> : vector<512xf32>
    %1 = vector.multi_reduction <add>, %0, %cst [0] : vector<8x512xf32> to vector<512xf32>
    %2 = vector.shape_cast %1 : vector<512xf32> to vector<1x512xf32>
    %cst_1 = arith.constant 6.250000e-02 : f32
    %3 = vector.broadcast %cst_1 : f32 to vector<1x512xf32>
    %4 = arith.mulf %2, %3 : vector<1x512xf32>
    %c0_2 = arith.constant 0 : index
    %c0_3 = arith.constant 0 : index
    %5 = vector.load %arg3[%c0_2, %c0_3] : memref<8x512xf32, #tpu.memory_space<vmem>>, vector<8x512xf32>
    %cst_4 = arith.constant dense<0.000000e+00> : vector<512xf32>
    %6 = vector.multi_reduction <add>, %5, %cst_4 [0] : vector<8x512xf32> to vector<512xf32>
    %7 = vector.shape_cast %6 : vector<512xf32> to vector<1x512xf32>
    %cst_5 = arith.constant 6.250000e-02 : f32
    %8 = vector.broadcast %cst_5 : f32 to vector<1x512xf32>
    %9 = arith.mulf %7, %8 : vector<1x512xf32>
    %10 = arith.mulf %4, %4 : vector<1x512xf32>
    %11 = arith.subf %9, %10 : vector<1x512xf32>
    %cst_6 = arith.constant 0.000000e+00 : f32
    %12 = vector.broadcast %cst_6 : f32 to vector<1x512xf32>
    %13 = arith.maximumf %11, %12 : vector<1x512xf32>
    %c0_7 = arith.constant 0 : index
    %c0_8 = arith.constant 0 : index
    %14 = vector.load %arg4[%c0_7, %c0_8] : memref<1x512xf32, #tpu.memory_space<vmem>>, vector<1x512xf32>
    %cst_9 = arith.constant 9.99999974E-6 : f32
    %15 = vector.broadcast %cst_9 : f32 to vector<1x512xf32>
    %16 = arith.addf %13, %15 : vector<1x512xf32>
    %17 = math.rsqrt %16 : vector<1x512xf32>
    %18 = arith.mulf %14, %17 : vector<1x512xf32>
    %c0_10 = arith.constant 0 : index
    %c0_11 = arith.constant 0 : index
    %19 = vector.load %arg5[%c0_10, %c0_11] : memref<1x512xf32, #tpu.memory_space<vmem>>, vector<1x512xf32>
    %20 = arith.mulf %4, %18 : vector<1x512xf32>
    %21 = arith.subf %19, %20 : vector<1x512xf32>
    %c0_12 = arith.constant 0 : index
    %c0_13 = arith.constant 0 : index
    %22 = vector.load %arg1[%c0_12, %c0_13] : memref<2x512xf32, #tpu.memory_space<vmem>>, vector<2x512xf32>
    %23 = vector.broadcast %18 : vector<1x512xf32> to vector<2x512xf32>
    %24 = arith.mulf %22, %23 : vector<2x512xf32>
    %25 = vector.broadcast %21 : vector<1x512xf32> to vector<2x512xf32>
    %26 = arith.addf %24, %25 : vector<2x512xf32>
    %c0_14 = arith.constant 0 : index
    %c0_15 = arith.constant 0 : index
    %27 = vector.load %arg6[%c0_14, %c0_15] : memref<2x512xf32, #tpu.memory_space<vmem>>, vector<2x512xf32>
    %28 = arith.addf %26, %27 : vector<2x512xf32>
    %cst_16 = arith.constant 0.000000e+00 : f32
    %29 = vector.broadcast %cst_16 : f32 to vector<2x512xf32>
    %30 = arith.maximumf %28, %29 : vector<2x512xf32>
    %c0_17 = arith.constant 0 : index
    %c0_18 = arith.constant 0 : index
    %31 = vector.load %arg7[%c0_17, %c0_18] : memref<2x512xf32, #tpu.memory_space<vmem>>, vector<2x512xf32>
    tpu.vector_store %arg7[%c0_17, %c0_18], %30 {strides = array<i32>} : memref<2x512xf32, #tpu.memory_space<vmem>>, vector<2x512xf32>,
    return
  }
  func.func @transform_0(%arg0: i32) -> (i32, i32) {
    %c0_i32 = arith.constant 0 : i32
    %c0_i32_0 = arith.constant 0 : i32
    return %arg0, %c0_i32 : i32, i32
  }
  func.func @transform_1(%arg0: i32) -> (i32, i32) {
    %c0_i32 = arith.constant 0 : i32
    %c0_i32_0 = arith.constant 0 : i32
    %c0_i32_1 = arith.constant 0 : i32
    return %c0_i32, %c0_i32_0 : i32, i32
  }
  func.func @transform_2(%arg0: i32) -> (i32, i32) {
    %c0_i32 = arith.constant 0 : i32
    %c0_i32_0 = arith.constant 0 : i32
    %c0_i32_1 = arith.constant 0 : i32
    return %c0_i32, %c0_i32_0 : i32, i32
  }
  func.func @transform_3(%arg0: i32) -> (i32, i32) {
    %c0_i32 = arith.constant 0 : i32
    %c0_i32_0 = arith.constant 0 : i32
    %c0_i32_1 = arith.constant 0 : i32
    return %c0_i32, %c0_i32_0 : i32, i32
  }
  func.func @transform_4(%arg0: i32) -> (i32, i32) {
    %c0_i32 = arith.constant 0 : i32
    %c0_i32_0 = arith.constant 0 : i32
    %c0_i32_1 = arith.constant 0 : i32
    return %c0_i32, %c0_i32_0 : i32, i32
  }
  func.func @transform_5(%arg0: i32) -> (i32, i32) {
    %c0_i32 = arith.constant 0 : i32
    %c0_i32_0 = arith.constant 0 : i32
    return %arg0, %c0_i32 : i32, i32
  }
  func.func @transform_6(%arg0: i32) -> (i32, i32) {
    %c0_i32 = arith.constant 0 : i32
    %c0_i32_0 = arith.constant 0 : i32
    return %arg0, %c0_i32 : i32, i32
  }
}

module attributes {stable_mosaic.version = 11 : i64} {
  func.func @_matmul_stats_kernel(%arg0: i32, %arg1: i32, %arg2: memref<2x256xbf16, #tpu.memory_space<vmem>>, %arg3: memref<256x512xbf16, #tpu.memory_space<vmem>>, %arg4: memref<2x512xf32, #tpu.memory_space<vmem>>, %arg5: memref<8x512xf32, #tpu.memory_space<vmem>>, %arg6: memref<8x512xf32, #tpu.memory_space<vmem>>, %arg7: memref<2x512xf32, #tpu.memory_space<vmem>>) attributes {dimension_semantics = [#tpu.dimension_semantics<parallel>, #tpu.dimension_semantics<arbitrary>], iteration_bounds = array<i64: 1, 18>, scalar_prefetch = 0 : i64, scratch_operands = 1 : i64, tpu.core_type = #tpu.core_type<tc>, window_params = [{transform_indices = @transform_0, window_bounds = array<i64: 2, 256>}, {transform_indices = @transform_1, window_bounds = array<i64: 256, 512>}, {transform_indices = @transform_2, window_bounds = array<i64: 2, 512>}, {transform_indices = @transform_3, window_bounds = array<i64: 8, 512>}, {transform_indices = @transform_4, window_bounds = array<i64: 8, 512>}]} {
    %c0_i32 = arith.constant 0 : i32
    %0 = arith.cmpi eq, %arg1, %c0_i32 : i32
    %1 = arith.extui %0 : i1 to i32
    %c0_i32_0 = arith.constant 0 : i32
    %2 = arith.cmpi ne, %1, %c0_i32_0 : i32
    scf.if %2 {
      %cst_9 = arith.constant 0.000000e+00 : f32
      %12 = vector.broadcast %cst_9 : f32 to vector<2x512xf32>
      %c0_10 = arith.constant 0 : index
      %c0_11 = arith.constant 0 : index
      %13 = vector.load %arg7[%c0_10, %c0_11] : memref<2x512xf32, #tpu.memory_space<vmem>>, vector<2x512xf32>
      tpu.vector_store %arg7[%c0_10, %c0_11], %12 {strides = array<i32>} : memref<2x512xf32, #tpu.memory_space<vmem>>, vector<2x512xf32>,
    } else {
    }
    %c0 = arith.constant 0 : index
    %c0_1 = arith.constant 0 : index
    %3 = vector.load %arg7[%c0, %c0_1] : memref<2x512xf32, #tpu.memory_space<vmem>>, vector<2x512xf32>
    %c0_2 = arith.constant 0 : index
    %c0_3 = arith.constant 0 : index
    %4 = vector.load %arg2[%c0_2, %c0_3] : memref<2x256xbf16, #tpu.memory_space<vmem>>, vector<2x256xbf16>
    %c0_4 = arith.constant 0 : index
    %c0_5 = arith.constant 0 : index
    %5 = vector.load %arg3[%c0_4, %c0_5] : memref<256x512xbf16, #tpu.memory_space<vmem>>, vector<256x512xbf16>
    %cst = arith.constant dense<0.000000e+00> : vector<2x512xf32>
    %6 = tpu.matmul %4, %5, %cst {dimension_numbers = #tpu.dot_dimension_numbers<[1], [0], [0], [1], [0, 0, 1, 1], [], []>} : vector<2x256xbf16>, vector<256x512xbf16>, vector<2x512xf32> -> vector<2x512xf32>
    %7 = arith.addf %3, %6 : vector<2x512xf32>
    %c0_6 = arith.constant 0 : index
    %c0_7 = arith.constant 0 : index
    %8 = vector.load %arg7[%c0_6, %c0_7] : memref<2x512xf32, #tpu.memory_space<vmem>>, vector<2x512xf32>
    tpu.vector_store %arg7[%c0_6, %c0_7], %7 {strides = array<i32>} : memref<2x512xf32, #tpu.memory_space<vmem>>, vector<2x512xf32>,
    %c17_i32 = arith.constant 17 : i32
    %9 = arith.cmpi eq, %arg1, %c17_i32 : i32
    %10 = arith.extui %9 : i1 to i32
    %c0_i32_8 = arith.constant 0 : i32
    %11 = arith.cmpi ne, %10, %c0_i32_8 : i32
    scf.if %11 {
      %c0_9 = arith.constant 0 : index
      %c0_10 = arith.constant 0 : index
      %12 = vector.load %arg7[%c0_9, %c0_10] : memref<2x512xf32, #tpu.memory_space<vmem>>, vector<2x512xf32>
      %c0_11 = arith.constant 0 : index
      %c0_12 = arith.constant 0 : index
      %13 = vector.load %arg4[%c0_11, %c0_12] : memref<2x512xf32, #tpu.memory_space<vmem>>, vector<2x512xf32>
      tpu.vector_store %arg4[%c0_11, %c0_12], %12 {strides = array<i32>} : memref<2x512xf32, #tpu.memory_space<vmem>>, vector<2x512xf32>,
      %cst_13 = arith.constant dense<0.000000e+00> : vector<512xf32>
      %14 = vector.multi_reduction <add>, %12, %cst_13 [0] : vector<2x512xf32> to vector<512xf32>
      %15 = vector.shape_cast %14 : vector<512xf32> to vector<1x512xf32>
      %16 = vector.shape_cast %15 : vector<1x512xf32> to vector<1x512xf32>
      %17 = vector.broadcast %16 : vector<1x512xf32> to vector<8x512xf32>
      %c0_14 = arith.constant 0 : index
      %c0_15 = arith.constant 0 : index
      %18 = vector.load %arg5[%c0_14, %c0_15] : memref<8x512xf32, #tpu.memory_space<vmem>>, vector<8x512xf32>
      tpu.vector_store %arg5[%c0_14, %c0_15], %17 {strides = array<i32>} : memref<8x512xf32, #tpu.memory_space<vmem>>, vector<8x512xf32>,
      %19 = arith.mulf %12, %12 : vector<2x512xf32>
      %cst_16 = arith.constant dense<0.000000e+00> : vector<512xf32>
      %20 = vector.multi_reduction <add>, %19, %cst_16 [0] : vector<2x512xf32> to vector<512xf32>
      %21 = vector.shape_cast %20 : vector<512xf32> to vector<1x512xf32>
      %22 = vector.shape_cast %21 : vector<1x512xf32> to vector<1x512xf32>
      %23 = vector.broadcast %22 : vector<1x512xf32> to vector<8x512xf32>
      %c0_17 = arith.constant 0 : index
      %c0_18 = arith.constant 0 : index
      %24 = vector.load %arg6[%c0_17, %c0_18] : memref<8x512xf32, #tpu.memory_space<vmem>>, vector<8x512xf32>
      tpu.vector_store %arg6[%c0_17, %c0_18], %23 {strides = array<i32>} : memref<8x512xf32, #tpu.memory_space<vmem>>, vector<8x512xf32>,
    } else {
    }
    return
  }
  func.func @transform_0(%arg0: i32, %arg1: i32) -> (i32, i32) {
    %c0_i32 = arith.constant 0 : i32
    return %arg0, %arg1 : i32, i32
  }
  func.func @transform_1(%arg0: i32, %arg1: i32) -> (i32, i32) {
    %c0_i32 = arith.constant 0 : i32
    %c0_i32_0 = arith.constant 0 : i32
    return %arg1, %c0_i32 : i32, i32
  }
  func.func @transform_2(%arg0: i32, %arg1: i32) -> (i32, i32) {
    %c0_i32 = arith.constant 0 : i32
    %c0_i32_0 = arith.constant 0 : i32
    return %arg0, %c0_i32 : i32, i32
  }
  func.func @transform_3(%arg0: i32, %arg1: i32) -> (i32, i32) {
    %c0_i32 = arith.constant 0 : i32
    %c0_i32_0 = arith.constant 0 : i32
    return %arg0, %c0_i32 : i32, i32
  }
  func.func @transform_4(%arg0: i32, %arg1: i32) -> (i32, i32) {
    %c0_i32 = arith.constant 0 : i32
    %c0_i32_0 = arith.constant 0 : i32
    return %arg0, %c0_i32 : i32, i32
  }
}

module attributes {stable_mosaic.version = 11 : i64} {
  func.func @_avgpool_fc_kernel(%arg0: i32, %arg1: memref<8x1x512xf32, #tpu.memory_space<vmem>>, %arg2: memref<512x128xbf16, #tpu.memory_space<vmem>>, %arg3: memref<1x128xf32, #tpu.memory_space<vmem>>, %arg4: memref<8x128xf32, #tpu.memory_space<vmem>>) attributes {dimension_semantics = [#tpu.dimension_semantics<arbitrary>], iteration_bounds = array<i64: 1>, scalar_prefetch = 0 : i64, scratch_operands = 0 : i64, tpu.core_type = #tpu.core_type<tc>, window_params = [{pipeline_mode = #tpu.pipeline_mode<synchronous>, transform_indices = @transform_0, window_bounds = array<i64: 8, 1, 512>}, {pipeline_mode = #tpu.pipeline_mode<synchronous>, transform_indices = @transform_1, window_bounds = array<i64: 512, 128>}, {pipeline_mode = #tpu.pipeline_mode<synchronous>, transform_indices = @transform_2, window_bounds = array<i64: 1, 128>}, {pipeline_mode = #tpu.pipeline_mode<synchronous>, transform_indices = @transform_3, window_bounds = array<i64: 8, 128>}]} {
    %c0 = arith.constant 0 : index
    %c0_0 = arith.constant 0 : index
    %c0_1 = arith.constant 0 : index
    %0 = vector.load %arg1[%c0, %c0_0, %c0_1] : memref<8x1x512xf32, #tpu.memory_space<vmem>>, vector<8x1x512xf32>
    %cst = arith.constant dense<0.000000e+00> : vector<8x512xf32>
    %1 = vector.multi_reduction <add>, %0, %cst [1] : vector<8x1x512xf32> to vector<8x512xf32>
    %cst_2 = arith.constant 1.000000e+00 : f32
    %2 = vector.broadcast %cst_2 : f32 to vector<8x512xf32>
    %3 = arith.divf %1, %2 : vector<8x512xf32>
    %4 = arith.truncf %3 : vector<8x512xf32> to vector<8x512xbf16>
    %c0_3 = arith.constant 0 : index
    %c0_4 = arith.constant 0 : index
    %5 = vector.load %arg2[%c0_3, %c0_4] : memref<512x128xbf16, #tpu.memory_space<vmem>>, vector<512x128xbf16>
    %cst_5 = arith.constant dense<0.000000e+00> : vector<8x128xf32>
    %6 = tpu.matmul %4, %5, %cst_5 {dimension_numbers = #tpu.dot_dimension_numbers<[1], [0], [0], [1], [0, 0, 1, 1], [], []>} : vector<8x512xbf16>, vector<512x128xbf16>, vector<8x128xf32> -> vector<8x128xf32>
    %c0_6 = arith.constant 0 : index
    %c0_7 = arith.constant 0 : index
    %7 = vector.load %arg3[%c0_6, %c0_7] : memref<1x128xf32, #tpu.memory_space<vmem>>, vector<1x128xf32>
    %8 = vector.broadcast %7 : vector<1x128xf32> to vector<8x128xf32>
    %9 = arith.addf %6, %8 : vector<8x128xf32>
    %c0_8 = arith.constant 0 : index
    %c0_9 = arith.constant 0 : index
    %10 = vector.load %arg4[%c0_8, %c0_9] : memref<8x128xf32, #tpu.memory_space<vmem>>, vector<8x128xf32>
    tpu.vector_store %arg4[%c0_8, %c0_9], %9 {strides = array<i32>} : memref<8x128xf32, #tpu.memory_space<vmem>>, vector<8x128xf32>,
    return
  }
  func.func @transform_0(%arg0: i32) -> (i32, i32, i32) {
    %c0_i32 = arith.constant 0 : i32
    %c0_i32_0 = arith.constant 0 : i32
    %c0_i32_1 = arith.constant 0 : i32
    %c0_i32_2 = arith.constant 0 : i32
    return %c0_i32, %c0_i32_0, %c0_i32_1 : i32, i32, i32
  }
  func.func @transform_1(%arg0: i32) -> (i32, i32) {
    %c0_i32 = arith.constant 0 : i32
    %c0_i32_0 = arith.constant 0 : i32
    %c0_i32_1 = arith.constant 0 : i32
    return %c0_i32, %c0_i32_0 : i32, i32
  }
  func.func @transform_2(%arg0: i32) -> (i32, i32) {
    %c0_i32 = arith.constant 0 : i32
    %c0_i32_0 = arith.constant 0 : i32
    %c0_i32_1 = arith.constant 0 : i32
    return %c0_i32, %c0_i32_0 : i32, i32
  }
  func.func @transform_3(%arg0: i32) -> (i32, i32) {
    %c0_i32 = arith.constant 0 : i32
    %c0_i32_0 = arith.constant 0 : i32
    %c0_i32_1 = arith.constant 0 : i32
    return %c0_i32, %c0_i32_0 : i32, i32
  }
}

</mosaic_0001>

<bundles_post_ra>
// kernel: resnet18_forward.42
= control target key start
LH: loop header
LB: loop body
LE: loop exit
PB: predicated region body
PF: predicated region fallthrough
CT: control target
= control target key end

     0   :  { %s562_s18 = smov 0   ;;  %s794_s0 = inlined_call_operand.vmem [shape: f32[512,64], index: 0, kind: input, shape index: {}]   ;;  %s795_s1 = inlined_call_operand.vmem [shape: f32[32,64], index: 1, kind: input, shape index: {}]   ;;  %s796_s2 = inlined_call_operand.vmem [shape: f32[32,64], index: 2, kind: input, shape index: {}]   ;;  %s797_s3 = inlined_call_operand.vmem [shape: f32[1,64], index: 3, kind: input, shape index: {}]   ;;  %s798_s4 = inlined_call_operand.vmem [shape: f32[1,64], index: 4, kind: input, shape index: {}]   ;;  %s799_s5 = inlined_call_operand.vmem [shape: f32[512,64], index: 5, kind: output, shape index: {}]  }
   0x1 LB: > { %s503_s19 = sadd.s32 4294967295, %s530_s18   ;;  %p507_p0 = scmp.ge.s32.totalorder %s530_s18, 1  ;;  %s530_s18 = sphi %s562_s18, %s15_s18  }
   0x2   : > { %p188_p1 = scmp.lt.s32.totalorder %s530_s18, 3 }
   0x4   : > { %p189_p2 = pnand %p507_p0, %p188_p1 }
   0x5   : > { %s508_s11 = sshll.u32 (!%p189_p2), %s503_s19, 5 }
   0x6   : > { %192 = sbr.rel (%p189_p2) target bundleno = 89 (0x59), region = 40  ;;  %p217_p3 = scmp.lt.s32.totalorder (!%p189_p2), %s508_s11, 63 }
   0xb   : > { %v228_v0 = vld [vmem:[%s795_s1] sm:$0xff]  ;;  %v229_v1 = vld [vmem:[%s795_s1 + $0x8] sm:$0xff]  ;;  %v230_v2 = vld [vmem:[%s795_s1 + $0x10] sm:$0xff]  ;;  %vm232_vm0 = vcmask 523264   ;;  %s801_s11 = smov (!%p217_p3, %s508_s11), 63  ;;  %v308_v40 = vlaneseq }
   0xc   : > { %v231_v3 = vld [vmem:[%s795_s1 + $0x18] sm:$0xff]  ;;  %v233_v4 = vsel %vm232_vm0, %v228_v0, 0.0  ;;  %v234_v5 = vsel %vm232_vm0, %v229_v1, 0.0  ;;  %v236_v6 = vsel %vm232_vm0, %v230_v2, 0.0  ;;  %v247_v7 = vld [vmem:[%s796_s2] sm:$0xff]  ;;  %v248_v9 = vld [vmem:[%s796_s2 + $0x8] sm:$0xff] }
   0xd   : > { %v235_v8 = vadd.f32 %v234_v5, %v233_v4  ;;  %v249_v10 = vld [vmem:[%s796_s2 + $0x10] sm:$0xff]  ;;  %v250_v11 = vld [vmem:[%s796_s2 + $0x18] sm:$0xff]  ;;  %v251_v12 = vsel %vm232_vm0, %v247_v7, 0.0  ;;  %v238_v13 = vsel %vm232_vm0, %v231_v3, 0.0  ;;  %v252_v14 = vsel %vm232_vm0, %v248_v9, 0.0  ;;  %s509_s12 = sshll.u32 %s801_s11, 3 }
   0xe   : > { %v254_v15 = vsel %vm232_vm0, %v249_v10, 0.0  ;;  %v253_v17 = vadd.f32 %v252_v14, %v251_v12  ;;  %v256_v18 = vsel %vm232_vm0, %v250_v11, 0.0  ;;  %v309_v41 = vshrl.u32 %v308_v40, 7  ;;  %s612_s15 = scalar_lea.vmem %s794_s0, %s509_s12  ;;  %v268_v42 = vld [vmem:[%s797_s3] sm:$0x1]  ;;  %s661_s23 = scalar_lea.vmem %s799_s5, %s509_s12 }
   0xf   : > { %v237_v16 = vadd.f32 %v236_v6, %v235_v8  ;;  %v272_v46 = vld [vmem:[%s798_s4] sm:$0x1]  ;;  %v276_v48 = vld [vmem:[%s612_s15 + $0x8] sm:$0xff]  ;;  %v277_v49 = vld [vmem:[%s612_s15 + $0x10] sm:$0xff] }
  0x10   : > { %v255_v20 = vadd.f32 %v254_v15, %v253_v17  ;;  %v310_v43 = vsub.s32 0, %v309_v41  ;;  %v275_v47 = vld [vmem:[%s612_s15] sm:$0xff]  ;;  %v278_v50 = vld [vmem:[%s612_s15 + $0x18] sm:$0xff]  ;;  %v280_v54 = vld [vmem:[%s612_s15 + $0x28] sm:$0xff] }
  0x11   : > { %v239_v19 = vadd.f32 %v238_v13, %v237_v16  ;;  %v279_v51 = vld [vmem:[%s612_s15 + $0x20] sm:$0xff]  ;;  %v281_v55 = vld [vmem:[%s612_s15 + $0x30] sm:$0xff]  ;;  %v282_v56 = vld [vmem:[%s612_s15 + $0x38] sm:$0xff] }
  0x12   : > { %v257_v22 = vadd.f32 %v256_v18, %v255_v20  ;;  %v283_v57 = vld [vmem:[%s612_s15 + $0x40] sm:$0xff]  ;;  %v284_v58 = vld [vmem:[%s612_s15 + $0x48] sm:$0xff]  ;;  %v285_v59 = vld [vmem:[%s612_s15 + $0x50] sm:$0xff] }
  0x13   : > { %v240_v21 = vrot.slane %v239_v19, 4  ;;  %v286_v0 = vld [vmem:[%s612_s15 + $0x58] sm:$0xff]  ;;  %v287_v1 = vld [vmem:[%s612_s15 + $0x60] sm:$0xff]  ;;  %v288_v2 = vld [vmem:[%s612_s15 + $0x68] sm:$0xff] }
  0x14   : > { %v258_v24 = vrot.slane %v257_v22, 4 }
  0x15   : > { %v241_v23 = vadd.f32 %v240_v21, %v239_v19 }
  0x16   : > { %v259_v26 = vadd.f32 %v258_v24, %v257_v22 }
  0x17   : > { %v242_v25 = vrot.slane %v241_v23, 2 }
  0x18   : > { %v260_v28 = vrot.slane %v259_v26, 2 }
  0x19   : > { %v243_v27 = vadd.f32 %v242_v25, %v241_v23 }
  0x1a   : > { %v261_v30 = vadd.f32 %v260_v28, %v259_v26  ;;  %v290_v28 = vld [vmem:[%s612_s15 + $0x78] sm:$0xff] }
  0x1b   : > { %v244_v29 = vrot.slane %v243_v27, 1 }
  0x1c   : > { %v262_v32 = vrot.slane %v261_v30, 1 }
  0x1d   : > { %v245_v31 = vadd.f32 %v244_v29, %v243_v27  ;;  %v289_v27 = vld [vmem:[%s612_s15 + $0x70] sm:$0xff] }
  0x1e   : > { %v263_v34 = vadd.f32 %v262_v32, %v261_v30 }
  0x1f   : > { %v246_v33 = vmul.f32 0.00024414063, %v245_v31 }
  0x20   : > { %v264_v35 = vmul.f32 0.00024414063, %v263_v34 }
  0x21   : > { %v265_v36 = vmul.f32 %v246_v33, %v246_v33 }
  0x23   : > { %v266_v37 = vsub.f32 %v264_v35, %v265_v36 }
  0x25   : > { %v267_v38 = vmax.f32 %v266_v37, 0.0  ;;  %v291_v37 = vld [vmem:[%s612_s15 + $0x80] sm:$0xff] }
  0x27   : > { %v269_v39 = vadd.f32 1e-05, %v267_v38 }
  0x29   : > { %522 = vrsqrt.f32 %v269_v39 }
  0x36   : > { %v523_v44 = vpop.eup %522 }
  0x37   : > { %v271_v45 = vmul.f32 %v523_v44, %v268_v42  ;;  %v292_v42 = vld [vmem:[%s612_s15 + $0x88] sm:$0xff]  ;;  %v294_v44 = vld [vmem:[%s612_s15 + $0x98] sm:$0xff] }
  0x39   : > { %v273_v52 = vmul.f32 %v271_v45, %v246_v33  ;;  %v625_v53 = vrot.slane %v271_v45, %v310_v43 }
  0x3b   : > { %v274_v60 = vsub.f32 %v272_v46, %v273_v52  ;;  %v313_v61 = vmul.f32 %v625_v53, %v275_v47  ;;  %v314_v62 = vmul.f32 %v625_v53, %v276_v48  ;;  %v315_v63 = vmul.f32 %v625_v53, %v277_v49  ;;  %v295_v49 = vld [vmem:[%s612_s15 + $0xa0] sm:$0xff] }
  0x3c   : > { %v316_v3 = vmul.f32 %v625_v53, %v278_v50  ;;  %v317_v4 = vmul.f32 %v625_v53, %v279_v51  ;;  %v318_v5 = vmul.f32 %v625_v53, %v280_v54  ;;  %v319_v6 = vmul.f32 %v625_v53, %v281_v55  ;;  %v296_v50 = vld [vmem:[%s612_s15 + $0xa8] sm:$0xff] }
  0x3d   : > { %v643_v7 = vrot.slane %v274_v60, %v310_v43  ;;  %v320_v8 = vmul.f32 %v625_v53, %v282_v56  ;;  %v321_v9 = vmul.f32 %v625_v53, %v283_v57  ;;  %v322_v10 = vmul.f32 %v625_v53, %v284_v58  ;;  %v293_v43 = vld [vmem:[%s612_s15 + $0x90] sm:$0xff] }
  0x3e   : > { %v323_v11 = vmul.f32 %v625_v53, %v285_v59  ;;  %v324_v12 = vmul.f32 %v625_v53, %v286_v0  ;;  %v325_v13 = vmul.f32 %v625_v53, %v287_v1  ;;  %v326_v14 = vmul.f32 %v625_v53, %v288_v2  ;;  %v297_v60 = vld [vmem:[%s612_s15 + $0xb0] sm:$0xff] }
  0x3f   : > { %v351_v15 = vadd.f32 %v643_v7, %v313_v61  ;;  %v352_v16 = vadd.f32 %v643_v7, %v314_v62  ;;  %v353_v17 = vadd.f32 %v643_v7, %v315_v63  ;;  %v354_v18 = vadd.f32 %v643_v7, %v316_v3  ;;  %v298_v61 = vld [vmem:[%s612_s15 + $0xb8] sm:$0xff] }
  0x40   : > { %v355_v19 = vadd.f32 %v643_v7, %v317_v4  ;;  %v356_v20 = vadd.f32 %v643_v7, %v318_v5  ;;  %v357_v21 = vadd.f32 %v643_v7, %v319_v6  ;;  %v358_v22 = vadd.f32 %v643_v7, %v320_v8  ;;  %v299_v6 = vld [vmem:[%s612_s15 + $0xc0] sm:$0xff] }
  0x41   : > { %v383_v23 = vmax.f32 %v351_v15, 0.0  ;;  %v384_v24 = vmax.f32 %v352_v16, 0.0  ;;  %v385_v25 = vmax.f32 %v353_v17, 0.0  ;;  %v386_v26 = vmax.f32 %v354_v18, 0.0 }
  0x42   : > { %v387_v29 = vmax.f32 %v355_v19, 0.0  ;;  %v388_v30 = vmax.f32 %v356_v20, 0.0  ;;  %v389_v31 = vmax.f32 %v357_v21, 0.0  ;;  %v390_v32 = vmax.f32 %v358_v22, 0.0  ;;  %v303_v19 = vld [vmem:[%s612_s15 + $0xe0] sm:$0xff]  ;;  %v304_v20 = vld [vmem:[%s612_s15 + $0xe8] sm:$0xff] }
  0x43   : > { %415 = vst.msk [vmem:[%s661_s23] sm:$0xff] %vm232_vm0, %v383_v23  ;;  %416 = vst.msk [vmem:[%s661_s23 + $0x8] sm:$0xff] %vm232_vm0, %v384_v24  ;;  %v359_v33 = vadd.f32 %v643_v7, %v321_v9  ;;  %v360_v34 = vadd.f32 %v643_v7, %v322_v10  ;;  %v361_v35 = vadd.f32 %v643_v7, %v323_v11 }
  0x44   : > { %417 = vst.msk [vmem:[%s661_s23 + $0x10] sm:$0xff] %vm232_vm0, %v385_v25  ;;  %418 = vst.msk [vmem:[%s661_s23 + $0x18] sm:$0xff] %vm232_vm0, %v386_v26  ;;  %v362_v36 = vadd.f32 %v643_v7, %v324_v12  ;;  %v363_v38 = vadd.f32 %v643_v7, %v325_v13  ;;  %v364_v39 = vadd.f32 %v643_v7, %v326_v14  ;;  %v300_v12 = vld [vmem:[%s612_s15 + $0xc8] sm:$0xff]  ;;  %v301_v13 = vld [vmem:[%s612_s15 + $0xd0] sm:$0xff] }
  0x45   : > { %419 = vst.msk [vmem:[%s661_s23 + $0x20] sm:$0xff] %vm232_vm0, %v387_v29  ;;  %420 = vst.msk [vmem:[%s661_s23 + $0x28] sm:$0xff] %vm232_vm0, %v388_v30  ;;  %v327_v40 = vmul.f32 %v625_v53, %v289_v27  ;;  %v328_v41 = vmul.f32 %v625_v53, %v290_v28  ;;  %v391_v45 = vmax.f32 %v359_v33, 0.0  ;;  %v392_v46 = vmax.f32 %v360_v34, 0.0  ;;  %v302_v14 = vld [vmem:[%s612_s15 + $0xd8] sm:$0xff]  ;;  %v305_v29 = vld [vmem:[%s612_s15 + $0xf0] sm:$0xff] }
  0x46   : > { %421 = vst.msk [vmem:[%s661_s23 + $0x30] sm:$0xff] %vm232_vm0, %v389_v31  ;;  %422 = vst.msk [vmem:[%s661_s23 + $0x38] sm:$0xff] %vm232_vm0, %v390_v32  ;;  %v393_v47 = vmax.f32 %v361_v35, 0.0  ;;  %v394_v48 = vmax.f32 %v362_v36, 0.0  ;;  %v395_v51 = vmax.f32 %v363_v38, 0.0  ;;  %v396_v52 = vmax.f32 %v364_v39, 0.0 }
  0x47   : > { %v365_v54 = vadd.f32 %v643_v7, %v327_v40  ;;  %v366_v55 = vadd.f32 %v643_v7, %v328_v41  ;;  %423 = vst.msk [vmem:[%s661_s23 + $0x40] sm:$0xff] %vm232_vm0, %v391_v45  ;;  %424 = vst.msk [vmem:[%s661_s23 + $0x48] sm:$0xff] %vm232_vm0, %v392_v46  ;;  %v329_v56 = vmul.f32 %v625_v53, %v291_v37  ;;  %v306_v30 = vld [vmem:[%s612_s15 + $0xf8] sm:$0xff] }
  0x48   : > { %425 = vst.msk [vmem:[%s661_s23 + $0x50] sm:$0xff] %vm232_vm0, %v393_v47  ;;  %426 = vst.msk [vmem:[%s661_s23 + $0x58] sm:$0xff] %vm232_vm0, %v394_v48  ;;  %v330_v57 = vmul.f32 %v625_v53, %v292_v42  ;;  %v331_v58 = vmul.f32 %v625_v53, %v293_v43  ;;  %v332_v59 = vmul.f32 %v625_v53, %v294_v44 }
  0x49   : > { %427 = vst.msk [vmem:[%s661_s23 + $0x60] sm:$0xff] %vm232_vm0, %v395_v51  ;;  %428 = vst.msk [vmem:[%s661_s23 + $0x68] sm:$0xff] %vm232_vm0, %v396_v52  ;;  %v397_v62 = vmax.f32 %v365_v54, 0.0  ;;  %v398_v63 = vmax.f32 %v366_v55, 0.0  ;;  %v333_v0 = vmul.f32 %v625_v53, %v295_v49  ;;  %v334_v1 = vmul.f32 %v625_v53, %v296_v50 }
  0x4a   : > { %v367_v2 = vadd.f32 %v643_v7, %v329_v56  ;;  %v368_v3 = vadd.f32 %v643_v7, %v330_v57  ;;  %v369_v4 = vadd.f32 %v643_v7, %v331_v58  ;;  %v370_v5 = vadd.f32 %v643_v7, %v332_v59 }
  0x4b   : > { %429 = vst.msk [vmem:[%s661_s23 + $0x70] sm:$0xff] %vm232_vm0, %v397_v62  ;;  %430 = vst.msk [vmem:[%s661_s23 + $0x78] sm:$0xff] %vm232_vm0, %v398_v63  ;;  %v371_v8 = vadd.f32 %v643_v7, %v333_v0  ;;  %v372_v9 = vadd.f32 %v643_v7, %v334_v1  ;;  %v335_v10 = vmul.f32 %v625_v53, %v297_v60 }
  0x4c   : > { %v336_v11 = vmul.f32 %v625_v53, %v298_v61  ;;  %v399_v15 = vmax.f32 %v367_v2, 0.0  ;;  %v400_v16 = vmax.f32 %v368_v3, 0.0  ;;  %v401_v17 = vmax.f32 %v369_v4, 0.0 }
  0x4d   : > { %v402_v18 = vmax.f32 %v370_v5, 0.0  ;;  %v403_v21 = vmax.f32 %v371_v8, 0.0  ;;  %v404_v22 = vmax.f32 %v372_v9, 0.0  ;;  %v373_v23 = vadd.f32 %v643_v7, %v335_v10 }
  0x4e   : > { %v374_v24 = vadd.f32 %v643_v7, %v336_v11  ;;  %431 = vst.msk [vmem:[%s661_s23 + $0x80] sm:$0xff] %vm232_vm0, %v399_v15  ;;  %432 = vst.msk [vmem:[%s661_s23 + $0x88] sm:$0xff] %vm232_vm0, %v400_v16  ;;  %v337_v25 = vmul.f32 %v625_v53, %v299_v6  ;;  %v338_v26 = vmul.f32 %v625_v53, %v300_v12 }
  0x4f   : > { %433 = vst.msk [vmem:[%s661_s23 + $0x90] sm:$0xff] %vm232_vm0, %v401_v17  ;;  %434 = vst.msk [vmem:[%s661_s23 + $0x98] sm:$0xff] %vm232_vm0, %v402_v18  ;;  %v339_v27 = vmul.f32 %v625_v53, %v301_v13  ;;  %v340_v28 = vmul.f32 %v625_v53, %v302_v14  ;;  %v405_v31 = vmax.f32 %v373_v23, 0.0  ;;  %v341_v33 = vmul.f32 %v625_v53, %v303_v19 }
  0x50   : > { %435 = vst.msk [vmem:[%s661_s23 + $0xa0] sm:$0xff] %vm232_vm0, %v403_v21  ;;  %436 = vst.msk [vmem:[%s661_s23 + $0xa8] sm:$0xff] %vm232_vm0, %v404_v22  ;;  %v406_v32 = vmax.f32 %v374_v24, 0.0  ;;  %v342_v34 = vmul.f32 %v625_v53, %v304_v20  ;;  %v375_v35 = vadd.f32 %v643_v7, %v337_v25  ;;  %v376_v36 = vadd.f32 %v643_v7, %v338_v26 }
  0x51   : > { %v377_v37 = vadd.f32 %v643_v7, %v339_v27  ;;  %v378_v38 = vadd.f32 %v643_v7, %v340_v28  ;;  %437 = vst.msk [vmem:[%s661_s23 + $0xb0] sm:$0xff] %vm232_vm0, %v405_v31  ;;  %v379_v39 = vadd.f32 %v643_v7, %v341_v33  ;;  %v343_v41 = vmul.f32 %v625_v53, %v305_v29 }
  0x52   : > { %438 = vst.msk [vmem:[%s661_s23 + $0xb8] sm:$0xff] %vm232_vm0, %v406_v32  ;;  %v380_v40 = vadd.f32 %v643_v7, %v342_v34  ;;  %v344_v42 = vmul.f32 %v625_v53, %v306_v30  ;;  %v407_v43 = vmax.f32 %v375_v35, 0.0  ;;  %v408_v44 = vmax.f32 %v376_v36, 0.0 }
  0x53   : > { %v409_v45 = vmax.f32 %v377_v37, 0.0  ;;  %v410_v46 = vmax.f32 %v378_v38, 0.0  ;;  %v411_v47 = vmax.f32 %v379_v39, 0.0  ;;  %v381_v49 = vadd.f32 %v643_v7, %v343_v41 }
  0x54   : > { %v412_v48 = vmax.f32 %v380_v40, 0.0  ;;  %v382_v50 = vadd.f32 %v643_v7, %v344_v42  ;;  %439 = vst.msk [vmem:[%s661_s23 + $0xc0] sm:$0xff] %vm232_vm0, %v407_v43  ;;  %440 = vst.msk [vmem:[%s661_s23 + $0xc8] sm:$0xff] %vm232_vm0, %v408_v44 }
  0x55   : > { %441 = vst.msk [vmem:[%s661_s23 + $0xd0] sm:$0xff] %vm232_vm0, %v409_v45  ;;  %442 = vst.msk [vmem:[%s661_s23 + $0xd8] sm:$0xff] %vm232_vm0, %v410_v46  ;;  %v413_v53 = vmax.f32 %v381_v49, 0.0 }
  0x56   : > { %443 = vst.msk [vmem:[%s661_s23 + $0xe0] sm:$0xff] %vm232_vm0, %v411_v47  ;;  %444 = vst.msk [vmem:[%s661_s23 + $0xe8] sm:$0xff] %vm232_vm0, %v412_v48  ;;  %v414_v51 = vmax.f32 %v382_v50, 0.0 }
  0x57   : > { %445 = vst.msk [vmem:[%s661_s23 + $0xf0] sm:$0xff] %vm232_vm0, %v413_v53 }
  0x58   : > { %446 = vst.msk [vmem:[%s661_s23 + $0xf8] sm:$0xff] %vm232_vm0, %v414_v51 }
  0x59 PF: > { %s15_s18 = sadd.s32 1, %s530_s18  }
  0x5a   : > { %p12_p4 = scmp.ge.s32.totalorder %s15_s18, 4  }
  0x5c   :  { %14 = sbr.rel (!%p12_p4) target bundleno = 1 (0x1), region = 70 }

// kernel: resnet18_forward.41
= control target key start
LH: loop header
LB: loop body
LE: loop exit
PB: predicated region body
PF: predicated region fallthrough
CT: control target
= control target key end

     0   :  { %s1185_s15 = smov 0   ;;  %s1187_s16 = smov 0   ;;  %s1438_s0 = inlined_call_operand.vmem [shape: bf16[512,256], index: 0, kind: input, shape index: {}]   ;;  %s1439_s1 = inlined_call_operand.vmem [shape: bf16[256,64], index: 1, kind: input, shape index: {}]   ;;  %s1440_s2 = inlined_call_operand.vmem [shape: f32[512,64], index: 2, kind: output, shape index: {0}]   ;;  %s1441_s3 = inlined_call_operand.vmem [shape: f32[32,64], index: 3, kind: output, shape index: {1}]   ;;  %s1442_s4 = inlined_call_operand.vmem [shape: f32[32,64], index: 4, kind: output, shape index: {2}]  }
   0x1   :  { %s1189_s17 = smov 0  }
   0x2 LB: > { %s27_s18 = sadd.s32 1, %s1153_s16  ;;  %p947_p0 = scmp.ge.s32.totalorder %s1157_s17, 1  ;;  %s1157_s17 = sphi %s1189_s17, %s15_s17   ;;  %s1153_s16 = sphi %s1187_s16, %s1444_s16   ;;  %s1149_s15 = sphi %s1185_s15, %s1443_s15  }
   0x3   : > { %p29_p1 = scmp.ge.s32.totalorder %s27_s18, 4  ;;  %p199_p2 = scmp.lt.s32.totalorder %s1157_s17, 5 }
   0x5   : > { %s1446_s18 = smov (%p29_p1, %s27_s18), 0  ;;  %p200_p3 = pnand %p947_p0, %p199_p2 }
   0x6   : > { %s948_s21 = sshll.u32 (!%p200_p3), %s1149_s15, 4  ;;  %p267_p5 = scmp.lt.s32.totalorder (!%p200_p3), %s1149_s15, 3 }
   0x7   : > { %203 = sbr.rel (%p200_p3) target bundleno = 314 (0x13a), region = 28  ;;  %p245_p4 = scmp.lt.s32.totalorder (!%p200_p3), %s948_s21, 63 }
   0xc   : > { %v1095_v0 = vld [vmem:[%s1439_s1 + $0x78] sm:$0xff]   ;;  %v1097_v2 = vld [vmem:[%s1439_s1 + $0x70] sm:$0xff]   ;;  %v1099_v4 = vld [vmem:[%s1439_s1 + $0x68] sm:$0xff]   ;;  %s1448_s21 = smov (!%p245_p4, %s948_s21), 63  ;;  %vm280_vm0 = vcmask 523264   ;;  %v1159_v32 = vmov 0.0  }
   0xd   : > { %v1096_v1 = vld [vmem:[%s1439_s1 + $0x38] sm:$0xff]   ;;  %990 = vmatprep.subr.bf16.mxu0 %v1095_v0  ;;  %1054 = vmatprep.subr.bf16.mxu1 %v1095_v0  ;;  %v1098_v3 = vld [vmem:[%s1439_s1 + $0x30] sm:$0xff]   ;;  %v1100_v5 = vld [vmem:[%s1439_s1 + $0x28] sm:$0xff]   ;;  %s989_s10 = sshll.u32 %s1448_s21, 3  ;;  %281 = vst.msk [vmem:[#allocation2] sm:$0xff] %vm280_vm0, %v1159_v32  ;;  %s1450_s15 = smov (!%p267_p5, %s1149_s15), 3 }
   0xe   : > { %991 = vmatpush3.bf16.msra.mxu0 %v1096_v1  ;;  %1062 = vmatpush3.bf16.msra.mxu1 %v1096_v1  ;;  %v1101_v6 = vld [vmem:[%s1439_s1 + $0x60] sm:$0xff]   ;;  %v1103_v8 = vld [vmem:[%s1439_s1 + $0x58] sm:$0xff]   ;;  %s1241_s19 = scalar_lea.vmem %s1438_s0, %s989_s10  ;;  %v1105_v10 = vld [vmem:[%s1439_s1 + $0x50] sm:$0xff]   ;;  %282 = vst.msk [vmem:[#allocation2 + $0x8] sm:$0xff] %vm280_vm0, %v1159_v32  ;;  %s1305_s12 = scalar_lea.vmem %s1440_s2, %s989_s10 }
   0xf   : > { %992 = vmatprep.subr.bf16.mxu0 %v1097_v2  ;;  %1055 = vmatprep.subr.bf16.mxu1 %v1097_v2  ;;  %v1102_v7 = vld [vmem:[%s1439_s1 + $0x20] sm:$0xff]   ;;  %v1104_v9 = vld [vmem:[%s1439_s1 + $0x18] sm:$0xff]   ;;  %v1106_v12 = vld [vmem:[%s1439_s1 + $0x10] sm:$0xff]   ;;  %283 = vst.msk [vmem:[#allocation2 + $0x10] sm:$0xff] %vm280_vm0, %v1159_v32  ;;  %s953_s21 = sshll.u32 %s1450_s15, 3 }
  0x10   : > { %v1113_v11 = vld [vmem:[%s1241_s19 + $0x4] ss:$8 sps:$4 sm:$0xff]   ;;  %v1111_v18 = vld [vmem:[%s1241_s19] ss:$8 sps:$4 sm:$0xff]   ;;  %v1114_v20 = vld [vmem:[%s1241_s19 + $0x14] ss:$8 sps:$4 sm:$0xff]   ;;  %s270_s14 = scalar_lea.vmem %s1441_s3, %s953_s21  ;;  %s274_s22 = scalar_lea.vmem %s1442_s4, %s953_s21 }
  0x11   : > { %v1119_v13 = vld [vmem:[%s1241_s19 + $0x44] ss:$8 sps:$4 sm:$0xff]   ;;  %569 = vmatprep.mubr.bf16.mxu0 %v1113_v11  ;;  %v1117_v19 = vld [vmem:[%s1241_s19 + $0x40] ss:$8 sps:$4 sm:$0xff]   ;;  %v1123_v21 = vld [vmem:[%s1241_s19 + $0x54] ss:$8 sps:$4 sm:$0xff]  }
  0x12   : > { %993 = vmatpush3.bf16.msra.mxu0 %v1098_v3  ;;  %1063 = vmatpush3.bf16.msra.mxu1 %v1098_v3  ;;  %v1107_v14 = vld [vmem:[%s1439_s1 + $0x48] sm:$0xff]   ;;  %v1109_v16 = vld [vmem:[%s1439_s1 + $0x40] sm:$0xff]   ;;  %v1116_v22 = vld [vmem:[%s1241_s19 + $0x10] ss:$8 sps:$4 sm:$0xff]   ;;  %284 = vst.msk [vmem:[#allocation2 + $0x18] sm:$0xff] %vm280_vm0, %v1159_v32 }
  0x13   : > { %994 = vmatprep.subr.bf16.mxu0 %v1099_v4  ;;  %1056 = vmatprep.subr.bf16.mxu1 %v1099_v4  ;;  %v1108_v15 = vld [vmem:[%s1439_s1 + $0x8] sm:$0xff]   ;;  %v1110_v17 = vld [vmem:[%s1439_s1] sm:$0xff]   ;;  %v1125_v23 = vld [vmem:[%s1241_s19 + $0x50] ss:$8 sps:$4 sm:$0xff]   ;;  %285 = vst.msk [vmem:[#allocation2 + $0x20] sm:$0xff] %vm280_vm0, %v1159_v32 }
  0x14   : > { %601 = vmatprep.mubr.bf16.mxu1 %v1119_v13  ;;  %v1120_v24 = vld [vmem:[%s1241_s19 + $0x24] ss:$8 sps:$4 sm:$0xff]   ;;  %v1122_v26 = vld [vmem:[%s1241_s19 + $0x20] ss:$8 sps:$4 sm:$0xff]   ;;  %v1126_v28 = vld [vmem:[%s1241_s19 + $0x34] ss:$8 sps:$4 sm:$0xff]  }
  0x15   : > { %v1129_v25 = vld [vmem:[%s1241_s19 + $0x64] ss:$8 sps:$4 sm:$0xff]   ;;  %v1131_v27 = vld [vmem:[%s1241_s19 + $0x60] ss:$8 sps:$4 sm:$0xff]   ;;  %v1132_v29 = vld [vmem:[%s1241_s19 + $0x74] ss:$8 sps:$4 sm:$0xff]  }
  0x16   : > { %995 = vmatpush3.bf16.msra.mxu0 %v1100_v5  ;;  %1064 = vmatpush3.bf16.msra.mxu1 %v1100_v5  ;;  %v1128_v30 = vld [vmem:[%s1241_s19 + $0x30] ss:$8 sps:$4 sm:$0xff]   ;;  %286 = vst.msk [vmem:[#allocation2 + $0x28] sm:$0xff] %vm280_vm0, %v1159_v32  ;;  %287 = vst.msk [vmem:[#allocation2 + $0x30] sm:$0xff] %vm280_vm0, %v1159_v32  ;;  %v297_v35 = vld [vmem:[#allocation2] sm:$0xff] }
  0x17   : > { %996 = vmatprep.subr.bf16.mxu0 %v1101_v6  ;;  %1057 = vmatprep.subr.bf16.mxu1 %v1101_v6  ;;  %v1134_v31 = vld [vmem:[%s1241_s19 + $0x70] ss:$8 sps:$4 sm:$0xff]   ;;  %288 = vst.msk [vmem:[#allocation2 + $0x38] sm:$0xff] %vm280_vm0, %v1159_v32  ;;  %289 = vst.msk [vmem:[#allocation2 + $0x40] sm:$0xff] %vm280_vm0, %v1159_v32  ;;  %v298_v45 = vld [vmem:[#allocation2 + $0x8] sm:$0xff] }
  0x18   : > { %290 = vst.msk [vmem:[#allocation2 + $0x48] sm:$0xff] %vm280_vm0, %v1159_v32  ;;  %291 = vst.msk [vmem:[#allocation2 + $0x50] sm:$0xff] %vm280_vm0, %v1159_v32  ;;  %v299_v55 = vld [vmem:[#allocation2 + $0x10] sm:$0xff] }
  0x19   : > { %292 = vst.msk [vmem:[#allocation2 + $0x58] sm:$0xff] %vm280_vm0, %v1159_v32  ;;  %293 = vst.msk [vmem:[#allocation2 + $0x60] sm:$0xff] %vm280_vm0, %v1159_v32  ;;  %v300_v5 = vld [vmem:[#allocation2 + $0x18] sm:$0xff] }
  0x1a   : > { %997 = vmatpush3.bf16.msra.mxu0 %v1102_v7  ;;  %1065 = vmatpush3.bf16.msra.mxu1 %v1102_v7  ;;  %294 = vst.msk [vmem:[#allocation2 + $0x68] sm:$0xff] %vm280_vm0, %v1159_v32  ;;  %295 = vst.msk [vmem:[#allocation2 + $0x70] sm:$0xff] %vm280_vm0, %v1159_v32 }
  0x1b   : > { %998 = vmatprep.subr.bf16.mxu0 %v1103_v8  ;;  %1058 = vmatprep.subr.bf16.mxu1 %v1103_v8  ;;  %296 = vst.msk [vmem:[#allocation2 + $0x78] sm:$0xff] %vm280_vm0, %v1159_v32 }
  0x1e   : > { %999 = vmatpush3.bf16.msra.mxu0 %v1104_v9  ;;  %1066 = vmatpush3.bf16.msra.mxu1 %v1104_v9  ;;  %v305_v37 = vld [vmem:[#allocation2 + $0x40] sm:$0xff] }
  0x1f   : > { %1000 = vmatprep.subr.bf16.mxu0 %v1105_v10  ;;  %1059 = vmatprep.subr.bf16.mxu1 %v1105_v10  ;;  %v306_v47 = vld [vmem:[#allocation2 + $0x48] sm:$0xff]  ;;  %v307_v57 = vld [vmem:[#allocation2 + $0x50] sm:$0xff] }
  0x20   : > { %v308_v6 = vld [vmem:[#allocation2 + $0x58] sm:$0xff] }
  0x22   : > { %1001 = vmatpush3.bf16.msra.mxu0 %v1106_v12  ;;  %1067 = vmatpush3.bf16.msra.mxu1 %v1106_v12 }
  0x23   : > { %1002 = vmatprep.subr.bf16.mxu0 %v1107_v14  ;;  %1060 = vmatprep.subr.bf16.mxu1 %v1107_v14 }
  0x26   : > { %1003 = vmatpush3.bf16.msra.mxu0 %v1108_v15  ;;  %1068 = vmatpush3.bf16.msra.mxu1 %v1108_v15 }
  0x27   : > { %1004 = vmatprep.subr.bf16.mxu0 %v1109_v16  ;;  %1061 = vmatprep.subr.bf16.mxu1 %v1109_v16 }
  0x2a   : > { %1005 = vmatpush3.bf16.msra.mxu0 %v1110_v17  ;;  %1069 = vmatpush3.bf16.msra.mxu1 %v1110_v17  ;;  %v301_v17 = vld [vmem:[#allocation2 + $0x20] sm:$0xff] }
  0x2d   : > { %570 = vmatmul.mubr.bf16.vlgmr.msra.gmra.mxu0 %v1111_v18  ;;  %602 = vmatmul.mubr.bf16.vlgmr.msra.gmra.mxu1 %v1117_v19  ;;  %v309_v18 = vld [vmem:[#allocation2 + $0x60] sm:$0xff] }
  0x2e   : > { %577 = vmatprep.mubr.bf16.mxu0 %v1114_v20  ;;  %609 = vmatprep.mubr.bf16.mxu1 %v1123_v21 }
  0x35   : > { %578 = vmatmul.mubr.bf16.gmra.mxu0 %v1116_v22  ;;  %610 = vmatmul.mubr.bf16.gmra.mxu1 %v1125_v23 }
  0x36   : > { %585 = vmatprep.mubr.bf16.mxu0 %v1120_v24  ;;  %617 = vmatprep.mubr.bf16.mxu1 %v1129_v25 }
  0x3d   : > { %586 = vmatmul.mubr.bf16.gmra.mxu0 %v1122_v26  ;;  %618 = vmatmul.mubr.bf16.gmra.mxu1 %v1131_v27 }
  0x3e   : > { %593 = vmatprep.mubr.bf16.mxu0 %v1126_v28  ;;  %625 = vmatprep.mubr.bf16.mxu1 %v1132_v29  ;;  %v302_v29 = vld [vmem:[#allocation2 + $0x28] sm:$0xff] }
  0x45   : > { %594 = vmatmul.mubr.bf16.gmra.mxu0 %v1128_v30  ;;  %626 = vmatmul.mubr.bf16.gmra.mxu1 %v1134_v31  ;;  %v310_v30 = vld [vmem:[#allocation2 + $0x68] sm:$0xff] }
  0xed   : > { %v1006_v33 = vpop.f32.mrf.mxu0  ;;  %v1030_v34 = vpop.f32.mrf.mxu1 }
  0xef   : > { %v1007_v36 = vpop.f32.mrf.mxu0  ;;  %v1031_v38 = vpop.f32.mrf.mxu1 }
  0xf0   : > { %v1008_v39 = vadd.f32 %v1007_v36, %v1006_v33  ;;  %v1032_v40 = vadd.f32 %v1031_v38, %v1030_v34 }
  0xf1   : > { %v1009_v41 = vpop.f32.mrf.mxu0  ;;  %v1033_v42 = vpop.f32.mrf.mxu1 }
  0xf2   : > { %v634_v43 = vadd.f32 %v1008_v39, %v297_v35  ;;  %v642_v44 = vadd.f32 %v1032_v40, %v305_v37  ;;  %v303_v37 = vld [vmem:[#allocation2 + $0x30] sm:$0xff] }
  0xf3   : > { %v1010_v46 = vpop.f32.mrf.mxu0  ;;  %v1034_v48 = vpop.f32.mrf.mxu1  ;;  %v311_v40 = vld [vmem:[#allocation2 + $0x70] sm:$0xff] }
  0xf4   : > { %651 = vst.msk [vmem:[#allocation2] sm:$0xff] %vm280_vm0, %v634_v43  ;;  %v1011_v49 = vadd.f32 %v1010_v46, %v1009_v41  ;;  %659 = vst.msk [vmem:[#allocation2 + $0x40] sm:$0xff] %vm280_vm0, %v642_v44  ;;  %v1035_v50 = vadd.f32 %v1034_v48, %v1033_v42 }
  0xf5   : > { %v1012_v51 = vpop.f32.mrf.mxu0  ;;  %v1036_v52 = vpop.f32.mrf.mxu1 }
  0xf6   : > { %v635_v53 = vadd.f32 %v1011_v49, %v298_v45  ;;  %v643_v54 = vadd.f32 %v1035_v50, %v306_v47 }
  0xf7   : > { %v1013_v56 = vpop.f32.mrf.mxu0  ;;  %v1037_v58 = vpop.f32.mrf.mxu1 }
  0xf8   : > { %652 = vst.msk [vmem:[#allocation2 + $0x8] sm:$0xff] %vm280_vm0, %v635_v53  ;;  %v1014_v59 = vadd.f32 %v1013_v56, %v1012_v51  ;;  %660 = vst.msk [vmem:[#allocation2 + $0x48] sm:$0xff] %vm280_vm0, %v643_v54  ;;  %v1038_v60 = vadd.f32 %v1037_v58, %v1036_v52 }
  0xf9   : > { %v1015_v61 = vpop.f32.mrf.mxu0  ;;  %v1039_v62 = vpop.f32.mrf.mxu1 }
  0xfa   : > { %v636_v63 = vadd.f32 %v1014_v59, %v299_v55  ;;  %v644_v0 = vadd.f32 %v1038_v60, %v307_v57  ;;  %v304_v55 = vld [vmem:[#allocation2 + $0x38] sm:$0xff] }
  0xfb   : > { %v1307_v1 = vld [vmem:[#allocation2] sm:$0xff]  ;;  %v1016_v3 = vpop.f32.mrf.mxu0  ;;  %v1040_v4 = vpop.f32.mrf.mxu1  ;;  %v312_v57 = vld [vmem:[#allocation2 + $0x78] sm:$0xff] }
  0xfc   : > { %v1309_v2 = vld [vmem:[#allocation2 + $0x40] sm:$0xff]  ;;  %686 = vst.msk [vmem:[%s1305_s12] sm:$0xff] %vm280_vm0, %v1307_v1  ;;  %653 = vst.msk [vmem:[#allocation2 + $0x10] sm:$0xff] %vm280_vm0, %v636_v63  ;;  %v1017_v7 = vadd.f32 %v1016_v3, %v1015_v61  ;;  %v1041_v9 = vadd.f32 %v1040_v4, %v1039_v62  ;;  %v740_v46 = vmul.f32 %v1307_v1, %v1307_v1  ;;  %v702_v53 = vsel %vm280_vm0, %v1307_v1, 0.0 }
  0xfd   : > { %694 = vst.msk [vmem:[%s1305_s12 + $0x40] sm:$0xff] %vm280_vm0, %v1309_v2  ;;  %661 = vst.msk [vmem:[#allocation2 + $0x50] sm:$0xff] %vm280_vm0, %v644_v0  ;;  %v1018_v8 = vpop.f32.mrf.mxu0  ;;  %v1042_v10 = vpop.f32.mrf.mxu1 }
  0xfe   : > { %v637_v12 = vadd.f32 %v1017_v7, %v300_v5  ;;  %v645_v15 = vadd.f32 %v1041_v9, %v308_v6  ;;  %v756_v1 = vsel %vm280_vm0, %v740_v46, 0.0 }
  0xff   : > { %v671_v11 = vld [vmem:[#allocation2 + $0x8] sm:$0xff]  ;;  %v1019_v14 = vpop.f32.mrf.mxu0  ;;  %v1043_v16 = vpop.f32.mrf.mxu1 }
 0x100   : > { %v1319_v13 = vld [vmem:[#allocation2 + $0x48] sm:$0xff]  ;;  %687 = vst.msk [vmem:[%s1305_s12 + $0x8] sm:$0xff] %vm280_vm0, %v671_v11  ;;  %654 = vst.msk [vmem:[#allocation2 + $0x18] sm:$0xff] %vm280_vm0, %v637_v12  ;;  %v1020_v19 = vadd.f32 %v1019_v14, %v1018_v8  ;;  %v1044_v21 = vadd.f32 %v1043_v16, %v1042_v10  ;;  %v741_v35 = vmul.f32 %v671_v11, %v671_v11  ;;  %v703_v50 = vsel %vm280_vm0, %v671_v11, 0.0 }
 0x101   : > { %695 = vst.msk [vmem:[%s1305_s12 + $0x48] sm:$0xff] %vm280_vm0, %v1319_v13  ;;  %v1021_v20 = vpop.f32.mrf.mxu0  ;;  %662 = vst.msk [vmem:[#allocation2 + $0x58] sm:$0xff] %vm280_vm0, %v645_v15  ;;  %v1045_v22 = vpop.f32.mrf.mxu1  ;;  %v704_v3 = vadd.f32 %v703_v50, %v702_v53 }
 0x102   : > { %v638_v24 = vadd.f32 %v1020_v19, %v301_v17  ;;  %v646_v27 = vadd.f32 %v1044_v21, %v309_v18  ;;  %v757_v54 = vsel %vm280_vm0, %v741_v35, 0.0 }
 0x103   : > { %v672_v23 = vld [vmem:[#allocation2 + $0x10] sm:$0xff]  ;;  %v1022_v26 = vpop.f32.mrf.mxu0  ;;  %v1046_v28 = vpop.f32.mrf.mxu1  ;;  %v758_v9 = vadd.f32 %v757_v54, %v756_v1 }
 0x104   : > { %v1328_v25 = vld [vmem:[#allocation2 + $0x50] sm:$0xff]  ;;  %688 = vst.msk [vmem:[%s1305_s12 + $0x10] sm:$0xff] %vm280_vm0, %v672_v23  ;;  %655 = vst.msk [vmem:[#allocation2 + $0x20] sm:$0xff] %vm280_vm0, %v638_v24  ;;  %v1023_v31 = vadd.f32 %v1022_v26, %v1021_v20  ;;  %v1047_v33 = vadd.f32 %v1046_v28, %v1045_v22  ;;  %v742_v47 = vmul.f32 %v672_v23, %v672_v23  ;;  %v705_v59 = vsel %vm280_vm0, %v672_v23, 0.0 }
 0x105   : > { %696 = vst.msk [vmem:[%s1305_s12 + $0x50] sm:$0xff] %vm280_vm0, %v1328_v25  ;;  %v1024_v32 = vpop.f32.mrf.mxu0  ;;  %663 = vst.msk [vmem:[#allocation2 + $0x60] sm:$0xff] %vm280_vm0, %v646_v27  ;;  %v1048_v34 = vpop.f32.mrf.mxu1  ;;  %v706_v10 = vadd.f32 %v705_v59, %v704_v3 }
 0x106   : > { %v639_v36 = vadd.f32 %v1023_v31, %v302_v29  ;;  %v647_v39 = vadd.f32 %v1047_v33, %v310_v30  ;;  %v759_v4 = vsel %vm280_vm0, %v742_v47, 0.0 }
 0x107   : > { %v1025_v38 = vpop.f32.mrf.mxu0  ;;  %v1049_v41 = vpop.f32.mrf.mxu1  ;;  %v673_v42 = vld [vmem:[#allocation2 + $0x18] sm:$0xff]  ;;  %v760_v16 = vadd.f32 %v759_v4, %v758_v9 }
 0x108   : > { %v1337_v43 = vld [vmem:[#allocation2 + $0x58] sm:$0xff]  ;;  %v1026_v44 = vadd.f32 %v1025_v38, %v1024_v32  ;;  %v1050_v45 = vadd.f32 %v1049_v41, %v1048_v34  ;;  %689 = vst.msk [vmem:[%s1305_s12 + $0x18] sm:$0xff] %vm280_vm0, %v673_v42  ;;  %656 = vst.msk [vmem:[#allocation2 + $0x28] sm:$0xff] %vm280_vm0, %v639_v36  ;;  %v743_v60 = vmul.f32 %v673_v42, %v673_v42  ;;  %v707_v5 = vsel %vm280_vm0, %v673_v42, 0.0 }
 0x109   : > { %697 = vst.msk [vmem:[%s1305_s12 + $0x58] sm:$0xff] %vm280_vm0, %v1337_v43  ;;  %v1027_v48 = vpop.f32.mrf.mxu0  ;;  %664 = vst.msk [vmem:[#allocation2 + $0x68] sm:$0xff] %vm280_vm0, %v647_v39  ;;  %v1051_v49 = vpop.f32.mrf.mxu1  ;;  %v708_v17 = vadd.f32 %v707_v5, %v706_v10  ;;  %v748_v36 = vmul.f32 %v1309_v2, %v1309_v2  ;;  %v717_v41 = vsel %vm280_vm0, %v1309_v2, 0.0  ;;  %v749_v42 = vmul.f32 %v1319_v13, %v1319_v13 }
 0x10a   : > { %v640_v51 = vadd.f32 %v1026_v44, %v303_v37  ;;  %v648_v52 = vadd.f32 %v1050_v45, %v311_v40  ;;  %v761_v11 = vsel %vm280_vm0, %v743_v60, 0.0  ;;  %v721_v2 = vsel %vm280_vm0, %v1328_v25, 0.0 }
 0x10b   : > { %v1028_v56 = vpop.f32.mrf.mxu0  ;;  %v1052_v58 = vpop.f32.mrf.mxu1  ;;  %v674_v61 = vld [vmem:[#allocation2 + $0x20] sm:$0xff]  ;;  %v762_v21 = vadd.f32 %v761_v11, %v760_v16  ;;  %v771_v47 = vsel %vm280_vm0, %v748_v36, 0.0  ;;  %v751_v53 = vmul.f32 %v1337_v43, %v1337_v43 }
 0x10c   : > { %657 = vst.msk [vmem:[#allocation2 + $0x30] sm:$0xff] %vm280_vm0, %v640_v51  ;;  %v1354_v62 = vld [vmem:[#allocation2 + $0x60] sm:$0xff]  ;;  %v1029_v63 = vadd.f32 %v1028_v56, %v1027_v48  ;;  %665 = vst.msk [vmem:[#allocation2 + $0x70] sm:$0xff] %vm280_vm0, %v648_v52  ;;  %v1053_v0 = vadd.f32 %v1052_v58, %v1051_v49  ;;  %v744_v6 = vmul.f32 %v674_v61, %v674_v61  ;;  %v709_v12 = vsel %vm280_vm0, %v674_v61, 0.0 }
 0x10d   : > { %690 = vst.msk [vmem:[%s1305_s12 + $0x20] sm:$0xff] %vm280_vm0, %v674_v61  ;;  %698 = vst.msk [vmem:[%s1305_s12 + $0x60] sm:$0xff] %vm280_vm0, %v1354_v62  ;;  %v710_v22 = vadd.f32 %v709_v12, %v708_v17  ;;  %v719_v48 = vsel %vm280_vm0, %v1319_v13, 0.0  ;;  %v750_v49 = vmul.f32 %v1328_v25, %v1328_v25  ;;  %v773_v52 = vsel %vm280_vm0, %v749_v42, 0.0 }
 0x10e   : > { %v641_v7 = vadd.f32 %v1029_v63, %v304_v55  ;;  %v649_v8 = vadd.f32 %v1053_v0, %v312_v57  ;;  %v763_v19 = vsel %vm280_vm0, %v744_v6, 0.0  ;;  %v723_v13 = vsel %vm280_vm0, %v1337_v43, 0.0 }
 0x10f   : > { %v675_v14 = vld [vmem:[#allocation2 + $0x28] sm:$0xff]  ;;  %v764_v29 = vadd.f32 %v763_v19, %v762_v21  ;;  %v775_v56 = vsel %vm280_vm0, %v750_v49, 0.0  ;;  %v752_v57 = vmul.f32 %v1354_v62, %v1354_v62  ;;  %v777_v60 = vsel %vm280_vm0, %v751_v53, 0.0 }
 0x110   : > { %658 = vst.msk [vmem:[#allocation2 + $0x38] sm:$0xff] %vm280_vm0, %v641_v7  ;;  %v683_v15 = vld [vmem:[#allocation2 + $0x68] sm:$0xff]  ;;  %666 = vst.msk [vmem:[#allocation2 + $0x78] sm:$0xff] %vm280_vm0, %v649_v8  ;;  %v745_v18 = vmul.f32 %v675_v14, %v675_v14  ;;  %v711_v20 = vsel %vm280_vm0, %v675_v14, 0.0  ;;  %v725_v25 = vsel %vm280_vm0, %v1354_v62, 0.0 }
 0x111   : > { %691 = vst.msk [vmem:[%s1305_s12 + $0x28] sm:$0xff] %vm280_vm0, %v675_v14  ;;  %699 = vst.msk [vmem:[%s1305_s12 + $0x68] sm:$0xff] %vm280_vm0, %v683_v15  ;;  %v712_v30 = vadd.f32 %v711_v20, %v710_v22  ;;  %v753_v61 = vmul.f32 %v683_v15, %v683_v15  ;;  %v779_v1 = vsel %vm280_vm0, %v752_v57, 0.0  ;;  %v727_v3 = vsel %vm280_vm0, %v683_v15, 0.0 }
 0x112   : > { %v765_v26 = vsel %vm280_vm0, %v745_v18, 0.0 }
 0x113   : > { %v676_v23 = vld [vmem:[#allocation2 + $0x30] sm:$0xff]  ;;  %v766_v32 = vadd.f32 %v765_v26, %v764_v29  ;;  %v781_v6 = vsel %vm280_vm0, %v753_v61, 0.0 }
 0x114   : > { %v684_v24 = vld [vmem:[#allocation2 + $0x70] sm:$0xff]  ;;  %692 = vst.msk [vmem:[%s1305_s12 + $0x30] sm:$0xff] %vm280_vm0, %v676_v23  ;;  %v713_v27 = vsel %vm280_vm0, %v676_v23, 0.0  ;;  %v746_v28 = vmul.f32 %v676_v23, %v676_v23 }
 0x115   : > { %700 = vst.msk [vmem:[%s1305_s12 + $0x70] sm:$0xff] %vm280_vm0, %v684_v24  ;;  %v714_v33 = vadd.f32 %v713_v27, %v712_v30  ;;  %v754_v4 = vmul.f32 %v684_v24, %v684_v24  ;;  %v729_v7 = vsel %vm280_vm0, %v684_v24, 0.0 }
 0x116   : > { %v767_v31 = vsel %vm280_vm0, %v746_v28, 0.0 }
 0x117   : > { %v677_v34 = vld [vmem:[#allocation2 + $0x38] sm:$0xff]  ;;  %v768_v39 = vadd.f32 %v767_v31, %v766_v32  ;;  %v783_v62 = vsel %vm280_vm0, %v754_v4, 0.0 }
 0x118   : > { %v685_v35 = vld [vmem:[#allocation2 + $0x78] sm:$0xff]  ;;  %693 = vst.msk [vmem:[%s1305_s12 + $0x38] sm:$0xff] %vm280_vm0, %v677_v34  ;;  %v715_v37 = vsel %vm280_vm0, %v677_v34, 0.0  ;;  %v747_v38 = vmul.f32 %v677_v34, %v677_v34 }
 0x119   : > { %701 = vst.msk [vmem:[%s1305_s12 + $0x78] sm:$0xff] %vm280_vm0, %v685_v35  ;;  %v716_v40 = vadd.f32 %v715_v37, %v714_v33  ;;  %v755_v8 = vmul.f32 %v685_v35, %v685_v35  ;;  %v731_v11 = vsel %vm280_vm0, %v685_v35, 0.0 }
 0x11a   : > { %v769_v44 = vsel %vm280_vm0, %v747_v38, 0.0 }
 0x11b   : > { %v718_v45 = vadd.f32 %v717_v41, %v716_v40  ;;  %v770_v46 = vadd.f32 %v769_v44, %v768_v39  ;;  %v785_v15 = vsel %vm280_vm0, %v755_v8, 0.0 }
 0x11d   : > { %v720_v50 = vadd.f32 %v719_v48, %v718_v45  ;;  %v772_v51 = vadd.f32 %v771_v47, %v770_v46 }
 0x11f   : > { %v774_v54 = vadd.f32 %v773_v52, %v772_v51  ;;  %v722_v55 = vadd.f32 %v721_v2, %v720_v50 }
 0x121   : > { %v724_v58 = vadd.f32 %v723_v13, %v722_v55  ;;  %v776_v59 = vadd.f32 %v775_v56, %v774_v54 }
 0x123   : > { %v726_v63 = vadd.f32 %v725_v25, %v724_v58  ;;  %v778_v0 = vadd.f32 %v777_v60, %v776_v59 }
 0x125   : > { %v728_v43 = vadd.f32 %v727_v3, %v726_v63  ;;  %v780_v5 = vadd.f32 %v779_v1, %v778_v0 }
 0x127   : > { %v782_v9 = vadd.f32 %v781_v6, %v780_v5  ;;  %v730_v10 = vadd.f32 %v729_v7, %v728_v43 }
 0x129   : > { %v784_v12 = vadd.f32 %v783_v62, %v782_v9  ;;  %v732_v14 = vadd.f32 %v731_v11, %v730_v10 }
 0x12b   : > { %v733_v16 = vrot.slane %v732_v14, 4  ;;  %v786_v17 = vadd.f32 %v785_v15, %v784_v12 }
 0x12d   : > { %v734_v18 = vadd.f32 %v733_v16, %v732_v14  ;;  %v787_v19 = vrot.slane %v786_v17, 4 }
 0x12f   : > { %v735_v20 = vrot.slane %v734_v18, 2  ;;  %v788_v21 = vadd.f32 %v787_v19, %v786_v17 }
 0x131   : > { %v736_v22 = vadd.f32 %v735_v20, %v734_v18  ;;  %v789_v23 = vrot.slane %v788_v21, 2 }
 0x133   : > { %v737_v24 = vrot.slane %v736_v22, 1  ;;  %v790_v26 = vadd.f32 %v789_v23, %v788_v21 }
 0x135   : > { %v738_v27 = vadd.f32 %v737_v24, %v736_v22  ;;  %v791_v28 = vrot.slane %v790_v26, 1 }
 0x137   : > { %739 = vst.msk [vmem:[%s270_s14] sm:$0xff] %vm280_vm0, %v738_v27  ;;  %v792_v29 = vadd.f32 %v791_v28, %v790_v26 }
 0x139   : > { %793 = vst.msk [vmem:[%s274_s22] sm:$0xff] %vm280_vm0, %v792_v29 }
 0x13a PF: > { %s15_s17 = sadd.s32 1, %s1157_s17   ;;  %s1443_s15 = smov %s1153_s16 }
 0x13b   : > { %p12_p6 = scmp.ge.s32.totalorder %s15_s17, 6   ;;  %s1444_s16 = smov %s1446_s18 }
 0x13d   :  { %14 = sbr.rel (!%p12_p6) target bundleno = 2 (0x2), region = 93 }

// kernel: resnet18_forward.46
= control target key start
LH: loop header
LB: loop body
LE: loop exit
PB: predicated region body
PF: predicated region fallthrough
CT: control target
= control target key end

     0   :  { %vm25_vm0 = vcmask 523264   ;;  %v75_v28 = vlaneseq  ;;  %s441_s1 = inlined_call_operand.vmem [shape: f32[16,64], index: 1, kind: input, shape index: {}]   ;;  %s442_s2 = inlined_call_operand.vmem [shape: f32[16,64], index: 2, kind: input, shape index: {}]   ;;  %s443_s3 = inlined_call_operand.vmem [shape: f32[1,64], index: 3, kind: input, shape index: {}]   ;;  %s444_s0 = inlined_call_operand.vmem [shape: f32[128,64], index: 0, kind: input, shape index: {}]   ;;  %s445_s4 = inlined_call_operand.vmem [shape: f32[1,64], index: 4, kind: input, shape index: {}]   ;;  %s446_s5 = inlined_call_operand.vmem [shape: f32[128,64], index: 5, kind: input, shape index: {}]   ;;  %s447_s6 = inlined_call_operand.vmem [shape: f32[128,64], index: 6, kind: output, shape index: {}]  }
   0x1   :  { %v23_v0 = vld [vmem:[%s441_s1] sm:$0xff]  ;;  %v24_v1 = vld [vmem:[%s441_s1 + $0x8] sm:$0xff]  ;;  %v60_v37 = vld [vmem:[%s444_s0 + $0x10] sm:$0xff] }
   0x2   :  { %v36_v2 = vld [vmem:[%s442_s2] sm:$0xff]  ;;  %v26_v3 = vsel %vm25_vm0, %v23_v0, 0.0  ;;  %v27_v4 = vsel %vm25_vm0, %v24_v1, 0.0  ;;  %v37_v5 = vld [vmem:[%s442_s2 + $0x8] sm:$0xff]  ;;  %v76_v29 = vshrl.u32 %v75_v28, 7  ;;  %v61_v38 = vld [vmem:[%s444_s0 + $0x18] sm:$0xff] }
   0x3   :  { %v38_v6 = vsel %vm25_vm0, %v36_v2, 0.0  ;;  %v28_v7 = vadd.f32 %v27_v4, %v26_v3  ;;  %v39_v8 = vsel %vm25_vm0, %v37_v5, 0.0  ;;  %v51_v30 = vld [vmem:[%s443_s3] sm:$0x1]  ;;  %v59_v36 = vld [vmem:[%s444_s0 + $0x8] sm:$0xff]  ;;  %v64_v43 = vld [vmem:[%s444_s0 + $0x30] sm:$0xff] }
   0x4   :  { %v40_v9 = vadd.f32 %v39_v8, %v38_v6  ;;  %v77_v31 = vsub.s32 0, %v76_v29  ;;  %v55_v34 = vld [vmem:[%s445_s4] sm:$0x1]  ;;  %v63_v42 = vld [vmem:[%s444_s0 + $0x28] sm:$0xff]  ;;  %v65_v44 = vld [vmem:[%s444_s0 + $0x38] sm:$0xff] }
   0x5   :  { %v29_v10 = vrot.slane %v28_v7, 4  ;;  %v58_v35 = vld [vmem:[%s444_s0] sm:$0xff]  ;;  %v67_v46 = vld [vmem:[%s444_s0 + $0x48] sm:$0xff]  ;;  %v68_v47 = vld [vmem:[%s444_s0 + $0x50] sm:$0xff] }
   0x6   :  { %v41_v11 = vrot.slane %v40_v9, 4  ;;  %v62_v39 = vld [vmem:[%s444_s0 + $0x20] sm:$0xff]  ;;  %v69_v52 = vld [vmem:[%s444_s0 + $0x58] sm:$0xff]  ;;  %v71_v54 = vld [vmem:[%s444_s0 + $0x68] sm:$0xff] }
   0x7   :  { %v30_v12 = vadd.f32 %v29_v10, %v28_v7  ;;  %v66_v45 = vld [vmem:[%s444_s0 + $0x40] sm:$0xff]  ;;  %v119_v61 = vld [vmem:[%s446_s5 + $0x8] sm:$0xff]  ;;  %v120_v1 = vld [vmem:[%s446_s5 + $0x10] sm:$0xff] }
   0x8   :  { %v42_v13 = vadd.f32 %v41_v11, %v40_v9  ;;  %v70_v53 = vld [vmem:[%s444_s0 + $0x60] sm:$0xff]  ;;  %v121_v2 = vld [vmem:[%s446_s5 + $0x18] sm:$0xff]  ;;  %v127_v28 = vld [vmem:[%s446_s5 + $0x48] sm:$0xff] }
   0x9   :  { %v31_v14 = vrot.slane %v30_v12, 2  ;;  %v118_v60 = vld [vmem:[%s446_s5] sm:$0xff] }
   0xa   :  { %v43_v15 = vrot.slane %v42_v13, 2  ;;  %v122_v3 = vld [vmem:[%s446_s5 + $0x20] sm:$0xff] }
   0xb   :  { %v32_v16 = vadd.f32 %v31_v14, %v30_v12  ;;  %v123_v12 = vld [vmem:[%s446_s5 + $0x28] sm:$0xff]  ;;  %v125_v14 = vld [vmem:[%s446_s5 + $0x38] sm:$0xff] }
   0xc   :  { %v44_v17 = vadd.f32 %v43_v15, %v42_v13  ;;  %v124_v13 = vld [vmem:[%s446_s5 + $0x30] sm:$0xff] }
   0xd   :  { %v33_v18 = vrot.slane %v32_v16, 1 }
   0xe   :  { %v45_v19 = vrot.slane %v44_v17, 1 }
   0xf   :  { %v34_v20 = vadd.f32 %v33_v18, %v32_v16 }
  0x10   :  { %v46_v21 = vadd.f32 %v45_v19, %v44_v17 }
  0x11   :  { %v35_v22 = vmul.f32 0.0009765625, %v34_v20 }
  0x12   :  { %v47_v23 = vmul.f32 0.0009765625, %v46_v21 }
  0x13   :  { %v48_v24 = vmul.f32 %v35_v22, %v35_v22 }
  0x15   :  { %v49_v25 = vsub.f32 %v47_v23, %v48_v24 }
  0x17   :  { %v50_v26 = vmax.f32 %v49_v25, 0.0 }
  0x19   :  { %v52_v27 = vadd.f32 1e-05, %v50_v26 }
  0x1b   :  { %186 = vrsqrt.f32 %v52_v27  ;;  %v126_v27 = vld [vmem:[%s446_s5 + $0x40] sm:$0xff] }
  0x28   :  { %v187_v32 = vpop.eup %186 }
  0x29   :  { %v54_v33 = vmul.f32 %v187_v32, %v51_v30 }
  0x2b   :  { %v56_v40 = vmul.f32 %v54_v33, %v35_v22  ;;  %v260_v41 = vrot.slane %v54_v33, %v77_v31  ;;  %v72_v33 = vld [vmem:[%s444_s0 + $0x70] sm:$0xff] }
  0x2d   :  { %v57_v48 = vsub.f32 %v55_v34, %v56_v40  ;;  %v80_v49 = vmul.f32 %v260_v41, %v58_v35  ;;  %v81_v50 = vmul.f32 %v260_v41, %v59_v36  ;;  %v82_v51 = vmul.f32 %v260_v41, %v60_v37  ;;  %v73_v34 = vld [vmem:[%s444_s0 + $0x78] sm:$0xff] }
  0x2e   :  { %v83_v55 = vmul.f32 %v260_v41, %v61_v38  ;;  %v84_v56 = vmul.f32 %v260_v41, %v62_v39  ;;  %v85_v57 = vmul.f32 %v260_v41, %v63_v42  ;;  %v86_v58 = vmul.f32 %v260_v41, %v64_v43  ;;  %v128_v39 = vld [vmem:[%s446_s5 + $0x50] sm:$0xff]  ;;  %v129_v40 = vld [vmem:[%s446_s5 + $0x58] sm:$0xff] }
  0x2f   :  { %v296_v59 = vrot.slane %v57_v48, %v77_v31  ;;  %v87_v62 = vmul.f32 %v260_v41, %v65_v44  ;;  %v88_v63 = vmul.f32 %v260_v41, %v66_v45  ;;  %v89_v0 = vmul.f32 %v260_v41, %v67_v46  ;;  %v130_v46 = vld [vmem:[%s446_s5 + $0x60] sm:$0xff] }
  0x30   :  { %v90_v4 = vmul.f32 %v260_v41, %v68_v47  ;;  %v91_v5 = vmul.f32 %v260_v41, %v69_v52  ;;  %v92_v6 = vmul.f32 %v260_v41, %v70_v53  ;;  %v93_v7 = vmul.f32 %v260_v41, %v71_v54  ;;  %v131_v47 = vld [vmem:[%s446_s5 + $0x68] sm:$0xff] }
  0x31   :  { %v102_v8 = vadd.f32 %v296_v59, %v80_v49  ;;  %v103_v9 = vadd.f32 %v296_v59, %v81_v50  ;;  %v104_v10 = vadd.f32 %v296_v59, %v82_v51  ;;  %v105_v11 = vadd.f32 %v296_v59, %v83_v55 }
  0x32   :  { %v106_v15 = vadd.f32 %v296_v59, %v84_v56  ;;  %v107_v16 = vadd.f32 %v296_v59, %v85_v57  ;;  %v108_v17 = vadd.f32 %v296_v59, %v86_v58  ;;  %v109_v18 = vadd.f32 %v296_v59, %v87_v62  ;;  %v132_v56 = vld [vmem:[%s446_s5 + $0x70] sm:$0xff]  ;;  %v133_v57 = vld [vmem:[%s446_s5 + $0x78] sm:$0xff] }
  0x33   :  { %v134_v19 = vadd.f32 %v118_v60, %v102_v8  ;;  %v135_v20 = vadd.f32 %v119_v61, %v103_v9  ;;  %v136_v21 = vadd.f32 %v120_v1, %v104_v10  ;;  %v137_v22 = vadd.f32 %v121_v2, %v105_v11 }
  0x34   :  { %v138_v23 = vadd.f32 %v122_v3, %v106_v15  ;;  %v139_v24 = vadd.f32 %v123_v12, %v107_v16  ;;  %v140_v25 = vadd.f32 %v124_v13, %v108_v17  ;;  %v141_v26 = vadd.f32 %v125_v14, %v109_v18 }
  0x35   :  { %v150_v29 = vmax.f32 %v134_v19, 0.0  ;;  %v151_v30 = vmax.f32 %v135_v20, 0.0  ;;  %v152_v31 = vmax.f32 %v136_v21, 0.0  ;;  %v153_v32 = vmax.f32 %v137_v22, 0.0 }
  0x36   :  { %v154_v35 = vmax.f32 %v138_v23, 0.0  ;;  %v155_v36 = vmax.f32 %v139_v24, 0.0  ;;  %v156_v37 = vmax.f32 %v140_v25, 0.0  ;;  %v157_v38 = vmax.f32 %v141_v26, 0.0 }
  0x37   :  { %166 = vst.msk [vmem:[%s447_s6] sm:$0xff] %vm25_vm0, %v150_v29  ;;  %167 = vst.msk [vmem:[%s447_s6 + $0x8] sm:$0xff] %vm25_vm0, %v151_v30  ;;  %v110_v42 = vadd.f32 %v296_v59, %v88_v63  ;;  %v111_v43 = vadd.f32 %v296_v59, %v89_v0  ;;  %v112_v44 = vadd.f32 %v296_v59, %v90_v4 }
  0x38   :  { %168 = vst.msk [vmem:[%s447_s6 + $0x10] sm:$0xff] %vm25_vm0, %v152_v31  ;;  %169 = vst.msk [vmem:[%s447_s6 + $0x18] sm:$0xff] %vm25_vm0, %v153_v32  ;;  %v113_v45 = vadd.f32 %v296_v59, %v91_v5  ;;  %v114_v48 = vadd.f32 %v296_v59, %v92_v6  ;;  %v115_v49 = vadd.f32 %v296_v59, %v93_v7 }
  0x39   :  { %170 = vst.msk [vmem:[%s447_s6 + $0x20] sm:$0xff] %vm25_vm0, %v154_v35  ;;  %171 = vst.msk [vmem:[%s447_s6 + $0x28] sm:$0xff] %vm25_vm0, %v155_v36  ;;  %v94_v50 = vmul.f32 %v260_v41, %v72_v33  ;;  %v95_v51 = vmul.f32 %v260_v41, %v73_v34  ;;  %v142_v52 = vadd.f32 %v126_v27, %v110_v42 }
  0x3a   :  { %172 = vst.msk [vmem:[%s447_s6 + $0x30] sm:$0xff] %vm25_vm0, %v156_v37  ;;  %173 = vst.msk [vmem:[%s447_s6 + $0x38] sm:$0xff] %vm25_vm0, %v157_v38  ;;  %v143_v53 = vadd.f32 %v127_v28, %v111_v43  ;;  %v144_v54 = vadd.f32 %v128_v39, %v112_v44  ;;  %v145_v55 = vadd.f32 %v129_v40, %v113_v45 }
  0x3b   :  { %v146_v58 = vadd.f32 %v130_v46, %v114_v48  ;;  %v147_v60 = vadd.f32 %v131_v47, %v115_v49  ;;  %v116_v61 = vadd.f32 %v296_v59, %v94_v50  ;;  %v117_v62 = vadd.f32 %v296_v59, %v95_v51 }
  0x3c   :  { %v158_v63 = vmax.f32 %v142_v52, 0.0  ;;  %v159_v41 = vmax.f32 %v143_v53, 0.0  ;;  %v160_v0 = vmax.f32 %v144_v54, 0.0  ;;  %v161_v1 = vmax.f32 %v145_v55, 0.0 }
  0x3d   :  { %v162_v2 = vmax.f32 %v146_v58, 0.0  ;;  %v163_v3 = vmax.f32 %v147_v60, 0.0  ;;  %v148_v4 = vadd.f32 %v132_v56, %v116_v61  ;;  %v149_v5 = vadd.f32 %v133_v57, %v117_v62 }
  0x3e   :  { %174 = vst.msk [vmem:[%s447_s6 + $0x40] sm:$0xff] %vm25_vm0, %v158_v63  ;;  %175 = vst.msk [vmem:[%s447_s6 + $0x48] sm:$0xff] %vm25_vm0, %v159_v41 }
  0x3f   :  { %176 = vst.msk [vmem:[%s447_s6 + $0x50] sm:$0xff] %vm25_vm0, %v160_v0  ;;  %177 = vst.msk [vmem:[%s447_s6 + $0x58] sm:$0xff] %vm25_vm0, %v161_v1  ;;  %v164_v59 = vmax.f32 %v148_v4, 0.0  ;;  %v165_v6 = vmax.f32 %v149_v5, 0.0 }
  0x40   :  { %178 = vst.msk [vmem:[%s447_s6 + $0x60] sm:$0xff] %vm25_vm0, %v162_v2  ;;  %179 = vst.msk [vmem:[%s447_s6 + $0x68] sm:$0xff] %vm25_vm0, %v163_v3 }
  0x41   :  { %180 = vst.msk [vmem:[%s447_s6 + $0x70] sm:$0xff] %vm25_vm0, %v164_v59  ;;  %181 = vst.msk [vmem:[%s447_s6 + $0x78] sm:$0xff] %vm25_vm0, %v165_v6 }

// kernel: resnet18_forward.44
= control target key start
LH: loop header
LB: loop body
LE: loop exit
PB: predicated region body
PF: predicated region fallthrough
CT: control target
= control target key end

     0   :  { %vm22_vm0 = vcmask 523264   ;;  %v72_v28 = vlaneseq  ;;  %s317_s1 = inlined_call_operand.vmem [shape: f32[16,64], index: 1, kind: input, shape index: {}]   ;;  %s318_s2 = inlined_call_operand.vmem [shape: f32[16,64], index: 2, kind: input, shape index: {}]   ;;  %s319_s3 = inlined_call_operand.vmem [shape: f32[1,64], index: 3, kind: input, shape index: {}]   ;;  %s320_s0 = inlined_call_operand.vmem [shape: f32[128,64], index: 0, kind: input, shape index: {}]   ;;  %s321_s4 = inlined_call_operand.vmem [shape: f32[1,64], index: 4, kind: input, shape index: {}]   ;;  %s322_s5 = inlined_call_operand.vmem [shape: f32[128,64], index: 5, kind: output, shape index: {}]  }
   0x1   :  { %v20_v0 = vld [vmem:[%s317_s1] sm:$0xff]  ;;  %v21_v1 = vld [vmem:[%s317_s1 + $0x8] sm:$0xff]  ;;  %v57_v37 = vld [vmem:[%s320_s0 + $0x10] sm:$0xff] }
   0x2   :  { %v33_v2 = vld [vmem:[%s318_s2] sm:$0xff]  ;;  %v23_v3 = vsel %vm22_vm0, %v20_v0, 0.0  ;;  %v24_v4 = vsel %vm22_vm0, %v21_v1, 0.0  ;;  %v34_v5 = vld [vmem:[%s318_s2 + $0x8] sm:$0xff]  ;;  %v73_v29 = vshrl.u32 %v72_v28, 7  ;;  %v58_v38 = vld [vmem:[%s320_s0 + $0x18] sm:$0xff] }
   0x3   :  { %v35_v6 = vsel %vm22_vm0, %v33_v2, 0.0  ;;  %v25_v7 = vadd.f32 %v24_v4, %v23_v3  ;;  %v36_v8 = vsel %vm22_vm0, %v34_v5, 0.0  ;;  %v48_v30 = vld [vmem:[%s319_s3] sm:$0x1]  ;;  %v56_v36 = vld [vmem:[%s320_s0 + $0x8] sm:$0xff]  ;;  %v61_v43 = vld [vmem:[%s320_s0 + $0x30] sm:$0xff] }
   0x4   :  { %v37_v9 = vadd.f32 %v36_v8, %v35_v6  ;;  %v74_v31 = vsub.s32 0, %v73_v29  ;;  %v52_v34 = vld [vmem:[%s321_s4] sm:$0x1]  ;;  %v60_v42 = vld [vmem:[%s320_s0 + $0x28] sm:$0xff]  ;;  %v62_v44 = vld [vmem:[%s320_s0 + $0x38] sm:$0xff] }
   0x5   :  { %v26_v10 = vrot.slane %v25_v7, 4  ;;  %v55_v35 = vld [vmem:[%s320_s0] sm:$0xff]  ;;  %v64_v46 = vld [vmem:[%s320_s0 + $0x48] sm:$0xff]  ;;  %v65_v47 = vld [vmem:[%s320_s0 + $0x50] sm:$0xff] }
   0x6   :  { %v38_v11 = vrot.slane %v37_v9, 4  ;;  %v59_v39 = vld [vmem:[%s320_s0 + $0x20] sm:$0xff]  ;;  %v66_v52 = vld [vmem:[%s320_s0 + $0x58] sm:$0xff]  ;;  %v68_v54 = vld [vmem:[%s320_s0 + $0x68] sm:$0xff] }
   0x7   :  { %v27_v12 = vadd.f32 %v26_v10, %v25_v7  ;;  %v63_v45 = vld [vmem:[%s320_s0 + $0x40] sm:$0xff] }
   0x8   :  { %v39_v13 = vadd.f32 %v38_v11, %v37_v9  ;;  %v67_v53 = vld [vmem:[%s320_s0 + $0x60] sm:$0xff] }
   0x9   :  { %v28_v14 = vrot.slane %v27_v12, 2 }
   0xa   :  { %v40_v15 = vrot.slane %v39_v13, 2 }
   0xb   :  { %v29_v16 = vadd.f32 %v28_v14, %v27_v12 }
   0xc   :  { %v41_v17 = vadd.f32 %v40_v15, %v39_v13  ;;  %v69_v15 = vld [vmem:[%s320_s0 + $0x70] sm:$0xff] }
   0xd   :  { %v30_v18 = vrot.slane %v29_v16, 1 }
   0xe   :  { %v42_v19 = vrot.slane %v41_v17, 1 }
   0xf   :  { %v31_v20 = vadd.f32 %v30_v18, %v29_v16  ;;  %v70_v16 = vld [vmem:[%s320_s0 + $0x78] sm:$0xff] }
  0x10   :  { %v43_v21 = vadd.f32 %v42_v19, %v41_v17 }
  0x11   :  { %v32_v22 = vmul.f32 0.0009765625, %v31_v20 }
  0x12   :  { %v44_v23 = vmul.f32 0.0009765625, %v43_v21 }
  0x13   :  { %v45_v24 = vmul.f32 %v32_v22, %v32_v22 }
  0x15   :  { %v46_v25 = vsub.f32 %v44_v23, %v45_v24 }
  0x17   :  { %v47_v26 = vmax.f32 %v46_v25, 0.0 }
  0x19   :  { %v49_v27 = vadd.f32 1e-05, %v47_v26 }
  0x1b   :  { %151 = vrsqrt.f32 %v49_v27 }
  0x28   :  { %v152_v32 = vpop.eup %151 }
  0x29   :  { %v51_v33 = vmul.f32 %v152_v32, %v48_v30 }
  0x2b   :  { %v53_v40 = vmul.f32 %v51_v33, %v32_v22  ;;  %v75_v41 = vrot.slane %v51_v33, %v74_v31 }
  0x2d   :  { %v54_v48 = vsub.f32 %v52_v34, %v53_v40  ;;  %v77_v49 = vmul.f32 %v75_v41, %v55_v35  ;;  %v78_v50 = vmul.f32 %v75_v41, %v56_v36  ;;  %v79_v51 = vmul.f32 %v75_v41, %v57_v37 }
  0x2e   :  { %v80_v55 = vmul.f32 %v75_v41, %v58_v38  ;;  %v81_v56 = vmul.f32 %v75_v41, %v59_v39  ;;  %v82_v57 = vmul.f32 %v75_v41, %v60_v42  ;;  %v83_v58 = vmul.f32 %v75_v41, %v61_v43 }
  0x2f   :  { %v97_v59 = vrot.slane %v54_v48, %v74_v31  ;;  %v84_v60 = vmul.f32 %v75_v41, %v62_v44  ;;  %v85_v61 = vmul.f32 %v75_v41, %v63_v45  ;;  %v86_v62 = vmul.f32 %v75_v41, %v64_v46 }
  0x30   :  { %v87_v63 = vmul.f32 %v75_v41, %v65_v47  ;;  %v88_v0 = vmul.f32 %v75_v41, %v66_v52  ;;  %v89_v1 = vmul.f32 %v75_v41, %v67_v53  ;;  %v90_v2 = vmul.f32 %v75_v41, %v68_v54 }
  0x31   :  { %v99_v3 = vadd.f32 %v97_v59, %v77_v49  ;;  %v100_v4 = vadd.f32 %v97_v59, %v78_v50  ;;  %v101_v5 = vadd.f32 %v97_v59, %v79_v51  ;;  %v102_v6 = vadd.f32 %v97_v59, %v80_v55 }
  0x32   :  { %v103_v7 = vadd.f32 %v97_v59, %v81_v56  ;;  %v104_v8 = vadd.f32 %v97_v59, %v82_v57  ;;  %v105_v9 = vadd.f32 %v97_v59, %v83_v58  ;;  %v106_v10 = vadd.f32 %v97_v59, %v84_v60 }
  0x33   :  { %v115_v11 = vmax.f32 %v99_v3, 0.0  ;;  %v116_v12 = vmax.f32 %v100_v4, 0.0  ;;  %v117_v13 = vmax.f32 %v101_v5, 0.0  ;;  %v118_v14 = vmax.f32 %v102_v6, 0.0 }
  0x34   :  { %v119_v17 = vmax.f32 %v103_v7, 0.0  ;;  %v120_v18 = vmax.f32 %v104_v8, 0.0  ;;  %v121_v19 = vmax.f32 %v105_v9, 0.0  ;;  %v122_v20 = vmax.f32 %v106_v10, 0.0 }
  0x35   :  { %131 = vst.msk [vmem:[%s322_s5] sm:$0xff] %vm22_vm0, %v115_v11  ;;  %132 = vst.msk [vmem:[%s322_s5 + $0x8] sm:$0xff] %vm22_vm0, %v116_v12  ;;  %v107_v21 = vadd.f32 %v97_v59, %v85_v61  ;;  %v108_v22 = vadd.f32 %v97_v59, %v86_v62  ;;  %v109_v23 = vadd.f32 %v97_v59, %v87_v63 }
  0x36   :  { %133 = vst.msk [vmem:[%s322_s5 + $0x10] sm:$0xff] %vm22_vm0, %v117_v13  ;;  %134 = vst.msk [vmem:[%s322_s5 + $0x18] sm:$0xff] %vm22_vm0, %v118_v14  ;;  %v110_v24 = vadd.f32 %v97_v59, %v88_v0  ;;  %v111_v25 = vadd.f32 %v97_v59, %v89_v1  ;;  %v112_v26 = vadd.f32 %v97_v59, %v90_v2 }
  0x37   :  { %135 = vst.msk [vmem:[%s322_s5 + $0x20] sm:$0xff] %vm22_vm0, %v119_v17  ;;  %136 = vst.msk [vmem:[%s322_s5 + $0x28] sm:$0xff] %vm22_vm0, %v120_v18  ;;  %v91_v27 = vmul.f32 %v75_v41, %v69_v15  ;;  %v92_v28 = vmul.f32 %v75_v41, %v70_v16  ;;  %v123_v29 = vmax.f32 %v107_v21, 0.0  ;;  %v124_v30 = vmax.f32 %v108_v22, 0.0 }
  0x38   :  { %137 = vst.msk [vmem:[%s322_s5 + $0x30] sm:$0xff] %vm22_vm0, %v121_v19  ;;  %138 = vst.msk [vmem:[%s322_s5 + $0x38] sm:$0xff] %vm22_vm0, %v122_v20  ;;  %v125_v31 = vmax.f32 %v109_v23, 0.0  ;;  %v126_v32 = vmax.f32 %v110_v24, 0.0  ;;  %v127_v33 = vmax.f32 %v111_v25, 0.0  ;;  %v128_v34 = vmax.f32 %v112_v26, 0.0 }
  0x39   :  { %v113_v35 = vadd.f32 %v97_v59, %v91_v27  ;;  %v114_v36 = vadd.f32 %v97_v59, %v92_v28  ;;  %139 = vst.msk [vmem:[%s322_s5 + $0x40] sm:$0xff] %vm22_vm0, %v123_v29  ;;  %140 = vst.msk [vmem:[%s322_s5 + $0x48] sm:$0xff] %vm22_vm0, %v124_v30 }
  0x3a   :  { %141 = vst.msk [vmem:[%s322_s5 + $0x50] sm:$0xff] %vm22_vm0, %v125_v31  ;;  %142 = vst.msk [vmem:[%s322_s5 + $0x58] sm:$0xff] %vm22_vm0, %v126_v32 }
  0x3b   :  { %143 = vst.msk [vmem:[%s322_s5 + $0x60] sm:$0xff] %vm22_vm0, %v127_v33  ;;  %144 = vst.msk [vmem:[%s322_s5 + $0x68] sm:$0xff] %vm22_vm0, %v128_v34  ;;  %v129_v37 = vmax.f32 %v113_v35, 0.0  ;;  %v130_v38 = vmax.f32 %v114_v36, 0.0 }
  0x3d   :  { %145 = vst.msk [vmem:[%s322_s5 + $0x70] sm:$0xff] %vm22_vm0, %v129_v37  ;;  %146 = vst.msk [vmem:[%s322_s5 + $0x78] sm:$0xff] %vm22_vm0, %v130_v38 }

// kernel: resnet18_forward.53
= control target key start
LH: loop header
LB: loop body
LE: loop exit
PB: predicated region body
PF: predicated region fallthrough
CT: control target
= control target key end

     0   :  { %s334_s1 = inlined_call_operand.vmem [shape: bf16[128,128], index: 1, kind: input, shape index: {}]   ;;  %s335_s0 = inlined_call_operand.vmem [shape: bf16[32,128], index: 0, kind: input, shape index: {}]   ;;  %s336_s2 = inlined_call_operand.vmem [shape: f32[32,128], index: 2, kind: output, shape index: {0}]   ;;  %s337_s3 = inlined_call_operand.vmem [shape: f32[8,128], index: 3, kind: output, shape index: {1}]   ;;  %s338_s4 = inlined_call_operand.vmem [shape: f32[8,128], index: 4, kind: output, shape index: {2}]  }
   0x1   :  { %v251_v0 = vld [vmem:[%s334_s1 + $0x38] sm:$0xff]   ;;  %v252_v1 = vld [vmem:[%s334_s1 + $0x30] sm:$0xff]   ;;  %v253_v2 = vld [vmem:[%s334_s1 + $0x28] sm:$0xff]  }
   0x2   :  { %231 = vmatprep.subr.bf16.mxu0 %v251_v0  ;;  %v254_v3 = vld [vmem:[%s334_s1 + $0x20] sm:$0xff]   ;;  %v255_v5 = vld [vmem:[%s334_s1 + $0x18] sm:$0xff]   ;;  %v256_v6 = vld [vmem:[%s334_s1 + $0x10] sm:$0xff]  }
   0x3   :  { %232 = vmatpush3.bf16.msra.mxu0 %v251_v0  ;;  %v259_v4 = vld [vmem:[%s335_s0] sm:$0xff]   ;;  %v257_v7 = vld [vmem:[%s334_s1 + $0x8] sm:$0xff]  }
   0x4   :  { %233 = vmatprep.subr.bf16.mxu0 %v252_v1  ;;  %247 = vmatprep.mubr.bf16.mxu0 %v259_v4  ;;  %v258_v8 = vld [vmem:[%s334_s1] sm:$0xff]   ;;  %v260_v9 = vld [vmem:[%s335_s0 + $0x8] sm:$0xff]  }
   0x7   :  { %234 = vmatpush3.bf16.msra.mxu0 %v252_v1 }
   0x8   :  { %235 = vmatprep.subr.bf16.mxu0 %v253_v2 }
   0xb   :  { %236 = vmatpush3.bf16.msra.mxu0 %v253_v2 }
   0xc   :  { %237 = vmatprep.subr.bf16.mxu0 %v254_v3 }
   0xf   :  { %238 = vmatpush3.bf16.msra.mxu0 %v254_v3 }
  0x10   :  { %239 = vmatprep.subr.bf16.mxu0 %v255_v5 }
  0x13   :  { %240 = vmatpush3.bf16.msra.mxu0 %v255_v5 }
  0x14   :  { %241 = vmatprep.subr.bf16.mxu0 %v256_v6 }
  0x17   :  { %242 = vmatpush3.bf16.msra.mxu0 %v256_v6 }
  0x18   :  { %243 = vmatprep.subr.bf16.mxu0 %v257_v7 }
  0x1b   :  { %244 = vmatpush3.bf16.msra.mxu0 %v257_v7 }
  0x1c   :  { %245 = vmatprep.subr.bf16.mxu0 %v258_v8 }
  0x1f   :  { %246 = vmatpush3.bf16.msra.mxu0 %v258_v8 }
  0x22   :  { %248 = vmatmul.mubr.bf16.vlgmr.msra.gmra.mxu0 %v260_v9 }
  0xe2   :  { %v249_v10 = vpop.f32.mrf.mxu0 }
  0xe3   :  { %173 = vst [vmem:[%s336_s2 + $0x10] sm:$0xff] %v249_v10  ;;  %v187_v17 = vmul.f32 %v249_v10, %v249_v10 }
  0xe4   :  { %v141_v11 = vpop.f32.mrf.mxu0 }
  0xe5   :  { %171 = vst [vmem:[%s336_s2] sm:$0xff] %v141_v11  ;;  %v185_v14 = vmul.f32 %v141_v11, %v141_v11 }
  0xe6   :  { %v250_v12 = vpop.f32.mrf.mxu0 }
  0xe7   :  { %174 = vst [vmem:[%s336_s2 + $0x18] sm:$0xff] %v250_v12  ;;  %v188_v20 = vmul.f32 %v250_v12, %v250_v12 }
  0xe8   :  { %v144_v13 = vpop.f32.mrf.mxu0 }
  0xe9   :  { %172 = vst [vmem:[%s336_s2 + $0x8] sm:$0xff] %v144_v13  ;;  %v175_v15 = vadd.f32 %v144_v13, %v141_v11  ;;  %v186_v16 = vmul.f32 %v144_v13, %v144_v13 }
  0xeb   :  { %v176_v18 = vadd.f32 %v249_v10, %v175_v15  ;;  %v189_v19 = vadd.f32 %v186_v16, %v185_v14 }
  0xed   :  { %v177_v21 = vadd.f32 %v250_v12, %v176_v18  ;;  %v190_v22 = vadd.f32 %v189_v19, %v187_v17 }
  0xef   :  { %v178_v23 = vrot.slane %v177_v21, 4  ;;  %v191_v24 = vadd.f32 %v190_v22, %v188_v20 }
  0xf1   :  { %v179_v25 = vadd.f32 %v178_v23, %v177_v21  ;;  %v192_v26 = vrot.slane %v191_v24, 4 }
  0xf3   :  { %v180_v27 = vrot.slane %v179_v25, 2  ;;  %v193_v28 = vadd.f32 %v192_v26, %v191_v24 }
  0xf5   :  { %v181_v29 = vadd.f32 %v180_v27, %v179_v25  ;;  %v194_v30 = vrot.slane %v193_v28, 2 }
  0xf7   :  { %v182_v31 = vrot.slane %v181_v29, 1  ;;  %v195_v32 = vadd.f32 %v194_v30, %v193_v28 }
  0xf9   :  { %v183_v33 = vadd.f32 %v182_v31, %v181_v29  ;;  %v196_v34 = vrot.slane %v195_v32, 1 }
  0xfb   :  { %184 = vst [vmem:[%s337_s3] sm:$0xff] %v183_v33  ;;  %v197_v35 = vadd.f32 %v196_v34, %v195_v32 }
  0xfd   :  { %198 = vst [vmem:[%s338_s4] sm:$0xff] %v197_v35 }

// kernel: resnet18_forward.54
= control target key start
LH: loop header
LB: loop body
LE: loop exit
PB: predicated region body
PF: predicated region fallthrough
CT: control target
= control target key end

     0   :  { %v51_v20 = vlaneseq  ;;  %s146_s1 = inlined_call_operand.vmem [shape: f32[8,128], index: 1, kind: input, shape index: {}]   ;;  %s147_s2 = inlined_call_operand.vmem [shape: f32[8,128], index: 2, kind: input, shape index: {}]   ;;  %s148_s3 = inlined_call_operand.vmem [shape: f32[1,128], index: 3, kind: input, shape index: {}]   ;;  %s149_s4 = inlined_call_operand.vmem [shape: f32[1,128], index: 4, kind: input, shape index: {}]   ;;  %s150_s0 = inlined_call_operand.vmem [shape: f32[32,128], index: 0, kind: input, shape index: {}]   ;;  %s151_s5 = inlined_call_operand.vmem [shape: f32[32,128], index: 5, kind: output, shape index: {}]  }
   0x1   :  { %v20_v0 = vld [vmem:[%s146_s1] sm:$0xff]  ;;  %v47_v28 = vld [vmem:[%s150_s0 + $0x8] sm:$0xff]  ;;  %v48_v29 = vld [vmem:[%s150_s0 + $0x10] sm:$0xff] }
   0x2   :  { %v28_v1 = vld [vmem:[%s147_s2] sm:$0xff]  ;;  %v21_v2 = vrot.slane %v20_v0, 4  ;;  %v52_v21 = vshrl.u32 %v51_v20, 7  ;;  %v49_v32 = vld [vmem:[%s150_s0 + $0x18] sm:$0xff] }
   0x3   :  { %v29_v3 = vrot.slane %v28_v1, 4  ;;  %v39_v22 = vld [vmem:[%s148_s3] sm:$0x1] }
   0x4   :  { %v22_v4 = vadd.f32 %v21_v2, %v20_v0  ;;  %v53_v23 = vsub.s32 0, %v52_v21  ;;  %v43_v26 = vld [vmem:[%s149_s4] sm:$0x1] }
   0x5   :  { %v30_v5 = vadd.f32 %v29_v3, %v28_v1  ;;  %v46_v27 = vld [vmem:[%s150_s0] sm:$0xff] }
   0x6   :  { %v23_v6 = vrot.slane %v22_v4, 2 }
   0x7   :  { %v31_v7 = vrot.slane %v30_v5, 2 }
   0x8   :  { %v24_v8 = vadd.f32 %v23_v6, %v22_v4 }
   0x9   :  { %v32_v9 = vadd.f32 %v31_v7, %v30_v5 }
   0xa   :  { %v25_v10 = vrot.slane %v24_v8, 1 }
   0xb   :  { %v33_v11 = vrot.slane %v32_v9, 1 }
   0xc   :  { %v26_v12 = vadd.f32 %v25_v10, %v24_v8 }
   0xd   :  { %v34_v13 = vadd.f32 %v33_v11, %v32_v9 }
   0xe   :  { %v27_v14 = vmul.f32 0.00390625, %v26_v12 }
   0xf   :  { %v35_v15 = vmul.f32 0.00390625, %v34_v13 }
  0x10   :  { %v36_v16 = vmul.f32 %v27_v14, %v27_v14 }
  0x12   :  { %v37_v17 = vsub.f32 %v35_v15, %v36_v16 }
  0x14   :  { %v38_v18 = vmax.f32 %v37_v17, 0.0 }
  0x16   :  { %v40_v19 = vadd.f32 1e-05, %v38_v18 }
  0x18   :  { %78 = vrsqrt.f32 %v40_v19 }
  0x25   :  { %v79_v24 = vpop.eup %78 }
  0x26   :  { %v42_v25 = vmul.f32 %v79_v24, %v39_v22 }
  0x28   :  { %v44_v30 = vmul.f32 %v42_v25, %v27_v14  ;;  %v54_v31 = vrot.slane %v42_v25, %v53_v23 }
  0x2a   :  { %v45_v33 = vsub.f32 %v43_v26, %v44_v30  ;;  %v56_v34 = vmul.f32 %v54_v31, %v46_v27  ;;  %v57_v35 = vmul.f32 %v54_v31, %v47_v28  ;;  %v58_v36 = vmul.f32 %v54_v31, %v48_v29 }
  0x2b   :  { %v59_v37 = vmul.f32 %v54_v31, %v49_v32 }
  0x2c   :  { %v64_v38 = vrot.slane %v45_v33, %v53_v23 }
  0x2e   :  { %v66_v39 = vadd.f32 %v64_v38, %v56_v34  ;;  %v67_v40 = vadd.f32 %v64_v38, %v57_v35  ;;  %v68_v41 = vadd.f32 %v64_v38, %v58_v36  ;;  %v69_v42 = vadd.f32 %v64_v38, %v59_v37 }
  0x30   :  { %70 = vst [vmem:[%s151_s5] sm:$0xff] %v66_v39  ;;  %71 = vst [vmem:[%s151_s5 + $0x8] sm:$0xff] %v67_v40 }
  0x31   :  { %72 = vst [vmem:[%s151_s5 + $0x10] sm:$0xff] %v68_v41  ;;  %73 = vst [vmem:[%s151_s5 + $0x18] sm:$0xff] %v69_v42 }

// kernel: resnet18_forward.43
= control target key start
LH: loop header
LB: loop body
LE: loop exit
PB: predicated region body
PF: predicated region fallthrough
CT: control target
= control target key end

     0   :  { %s2052_s15 = smov 0   ;;  %s2395_s0 = inlined_call_operand.vmem [shape: f32[2,10,10,64], index: 0, kind: input, shape index: {}]   ;;  %s2396_s1 = inlined_call_operand.vmem [shape: bf16[9,64,64], index: 1, kind: input, shape index: {}]   ;;  %s2397_s2 = inlined_call_operand.vmem [shape: f32[2,64,64], index: 2, kind: output, shape index: {0}]   ;;  %s2398_s3 = inlined_call_operand.vmem [shape: f32[16,64], index: 3, kind: output, shape index: {1}]   ;;  %s2399_s4 = inlined_call_operand.vmem [shape: f32[16,64], index: 4, kind: output, shape index: {2}]  }
   0x1 LB: > { %s1553_s16 = sadd.s32 4294967295, %s2025_s15   ;;  %p1557_p0 = scmp.ge.s32.totalorder %s2025_s15, 1  ;;  %s2025_s15 = sphi %s2052_s15, %s15_s15  }
   0x2   : > { %p167_p1 = scmp.lt.s32.totalorder %s2025_s15, 3 }
   0x4   : > { %p168_p2 = pnand %p1557_p0, %p167_p1 }
   0x6   : > { %171 = sbr.rel (%p168_p2) target bundleno = 323 (0x143), region = 28 }
   0xb   : > { %v1983_v0 = vld [vmem:[%s2396_s1 + $0x38] sm:$0xff]   ;;  %p201_p3 = scmp.lt.s32.totalorder %s1553_s16, 1  ;;  %v1985_v2 = vld [vmem:[%s2396_s1 + $0x30] sm:$0xff]   ;;  %v1987_v4 = vld [vmem:[%s2396_s1 + $0x28] sm:$0xff]   ;;  %vm285_vm0 = vcmask 523264  }
   0xc   : > { %v1984_v1 = vld [vmem:[%s2396_s1 + $0x18] sm:$0xff]   ;;  %1822 = vmatprep.subr.bf16.mxu0 %v1983_v0  ;;  %v1986_v3 = vld [vmem:[%s2396_s1 + $0x10] sm:$0xff]   ;;  %v1988_v5 = vld [vmem:[%s2396_s1 + $0x8] sm:$0xff]  }
   0xd   : > { %s2403_s16 = smov (!%p201_p3, %s1553_s16), 1  ;;  %1838 = vmatprep.subr.bf16.mxu1 %v1984_v1  ;;  %1823 = vmatpush3.bf16.msra.mxu0 %v1983_v0  ;;  %v1989_v6 = vld [vmem:[%s2396_s1 + $0x20] sm:$0xff]   ;;  %v1991_v18 = vld [vmem:[%s2396_s1 + $0x58] sm:$0xff]   ;;  %v1993_v26 = vld [vmem:[%s2396_s1 + $0x50] sm:$0xff]  }
   0xe   : > { %1839 = vmatpush3.bf16.msra.mxu1 %v1984_v1  ;;  %1824 = vmatprep.subr.bf16.mxu0 %v1985_v2  ;;  %s1974_s27 = smul.u32 160, %s2403_s16  ;;  %v1990_v10 = vld [vmem:[%s2396_s1] sm:$0xff]   ;;  %v1992_v19 = vld [vmem:[%s2396_s1 + $0x78] sm:$0xff]   ;;  %v1994_v27 = vld [vmem:[%s2396_s1 + $0x70] sm:$0xff]   ;;  %s1561_s26 = sshll.u32 %s2403_s16, 3 }
   0xf   : > { %1840 = vmatprep.subr.bf16.mxu1 %v1986_v3  ;;  %v1995_v34 = vld [vmem:[%s2396_s1 + $0x48] sm:$0xff]   ;;  %v1997_v40 = vld [vmem:[%s2396_s1 + $0x40] sm:$0xff]   ;;  %v1999_v46 = vld [vmem:[%s2396_s1 + $0x98] sm:$0xff]   ;;  %s214_s29 = scalar_lea.vmem %s2398_s3, %s1561_s26  ;;  %s218_s7 = scalar_lea.vmem %s2399_s4, %s1561_s26 }
  0x10   : > { %s2084_s6 = scalar_lea.vmem %s2395_s0, %s1974_s27  ;;  %v1996_v35 = vld [vmem:[%s2396_s1 + $0x68] sm:$0xff]   ;;  %v1998_v41 = vld [vmem:[%s2396_s1 + $0x60] sm:$0xff]   ;;  %v2000_v47 = vld [vmem:[%s2396_s1 + $0xb8] sm:$0xff]  }
  0x11   : > { %1825 = vmatpush3.bf16.msra.mxu0 %v1985_v2  ;;  %v240_v7 = vld [vmem:[%s2084_s6 + $0x1] sm:$0xff]  ;;  %v2091_v8 = vld [vmem:[%s2084_s6 + $0x11] sm:$0xff] }
  0x12   : > { %1841 = vmatpush3.bf16.msra.mxu1 %v1986_v3  ;;  %1826 = vmatprep.subr.bf16.mxu0 %v1987_v4  ;;  %v220_v9 = vld [vmem:[%s2084_s6] sm:$0xff]  ;;  %v248_v11 = vpack.c.bf16 %v2091_v8, %v240_v7  ;;  %v2099_v12 = vld [vmem:[%s2084_s6 + $0x10] sm:$0xff]  ;;  %v2003_v59 = vld [vmem:[%s2396_s1 + $0x88] sm:$0xff]  }
  0x13   : > { %1842 = vmatprep.subr.bf16.mxu1 %v1988_v5  ;;  %v2102_v13 = vld [vmem:[%s2084_s6 + $0x21] sm:$0xff]  ;;  %v228_v14 = vpack.c.bf16 %v2099_v12, %v220_v9  ;;  %v2106_v15 = vld [vmem:[%s2084_s6 + $0x31] sm:$0xff] }
  0x14   : > { %v2109_v16 = vld [vmem:[%s2084_s6 + $0x20] sm:$0xff]  ;;  %1830 = vmatprep.mubr.msk.bf16.mxu0 %vm285_vm0, %v248_v11  ;;  %v2113_v17 = vld [vmem:[%s2084_s6 + $0x30] sm:$0xff]  ;;  %v2124_v20 = vpack.c.bf16 %v2106_v15, %v2102_v13  ;;  %v2004_v60 = vld [vmem:[%s2396_s1 + $0xa8] sm:$0xff]   ;;  %v733_v1 = vpack.c.bf16 %v2102_v13, %v2091_v8 }
  0x15   : > { %1827 = vmatpush3.bf16.msra.mxu0 %v1987_v4  ;;  %1846 = vmatprep.mubr.msk.bf16.mxu1 %vm285_vm0, %v228_v14  ;;  %v2127_v21 = vld [vmem:[%s2084_s6 + $0x41] sm:$0xff]  ;;  %v2131_v22 = vpack.c.bf16 %v2113_v17, %v2109_v16  ;;  %v2134_v23 = vld [vmem:[%s2084_s6 + $0x51] sm:$0xff]  ;;  %v603_v43 = vpack.c.bf16 %v2109_v16, %v2099_v12 }
  0x16   : > { %1843 = vmatpush3.bf16.msra.mxu1 %v1988_v5  ;;  %1828 = vmatprep.subr.bf16.mxu0 %v1989_v6  ;;  %v224_v24 = vld [vmem:[%s2084_s6 + $0x40] sm:$0xff]  ;;  %v2138_v25 = vld [vmem:[%s2084_s6 + $0x50] sm:$0xff]  ;;  %v2148_v28 = vpack.c.bf16 %v2134_v23, %v2127_v21  ;;  %v2007_v3 = vld [vmem:[%s2396_s1 + $0xd8] sm:$0xff]   ;;  %v734_v5 = vpack.c.bf16 %v2127_v21, %v2106_v15 }
  0x17   : > { %1844 = vmatprep.subr.bf16.mxu1 %v1990_v10  ;;  %v2151_v29 = vld [vmem:[%s2084_s6 + $0x61] sm:$0xff]  ;;  %v2154_v30 = vld [vmem:[%s2084_s6 + $0x71] sm:$0xff]  ;;  %v2159_v31 = vpack.c.bf16 %v2138_v25, %v224_v24  ;;  %v604_v51 = vpack.c.bf16 %v224_v24, %v2113_v17 }
  0x18   : > { %v226_v32 = vld [vmem:[%s2084_s6 + $0x60] sm:$0xff]  ;;  %v2165_v33 = vld [vmem:[%s2084_s6 + $0x70] sm:$0xff]  ;;  %v2179_v36 = vpack.c.bf16 %v2154_v30, %v2151_v29  ;;  %v2008_v4 = vld [vmem:[%s2396_s1 + $0xf8] sm:$0xff]   ;;  %v735_v9 = vpack.c.bf16 %v2151_v29, %v2134_v23 }
  0x19   : > { %1829 = vmatpush3.bf16.msra.mxu0 %v1989_v6  ;;  %v464_v37 = vld [vmem:[%s2084_s6 + $0x2] sm:$0xff]  ;;  %v2183_v38 = vld [vmem:[%s2084_s6 + $0x12] sm:$0xff]  ;;  %v2186_v39 = vpack.c.bf16 %v2165_v33, %v226_v32  ;;  %v605_v55 = vpack.c.bf16 %v226_v32, %v2138_v25 }
  0x1a   : > { %1845 = vmatpush3.bf16.msra.mxu1 %v1990_v10  ;;  %1854 = vmatprep.subr.bf16.mxu0 %v1991_v18  ;;  %v472_v42 = vpack.c.bf16 %v2183_v38, %v464_v37  ;;  %v466_v44 = vld [vmem:[%s2084_s6 + $0x22] sm:$0xff]  ;;  %v2203_v45 = vld [vmem:[%s2084_s6 + $0x32] sm:$0xff] }
  0x1b   : > { %1870 = vmatprep.subr.bf16.mxu1 %v1992_v19  ;;  %v468_v48 = vld [vmem:[%s2084_s6 + $0x42] sm:$0xff]  ;;  %v2215_v49 = vpack.c.bf16 %v2203_v45, %v466_v44  ;;  %v2218_v50 = vld [vmem:[%s2084_s6 + $0x52] sm:$0xff]  ;;  %v863_v2 = vpack.c.bf16 %v466_v44, %v2183_v38 }
  0x1c   : > { %1831 = vmatmul.mubr.msk.bf16.vlgmr.msra.gmra.mxu0 %vm285_vm0, %v2124_v20  ;;  %v2001_v52 = vld [vmem:[%s2396_s1 + $0x90] sm:$0xff]   ;;  %v2228_v54 = vpack.c.bf16 %v2218_v50, %v468_v48  ;;  %v470_v56 = vld [vmem:[%s2084_s6 + $0x62] sm:$0xff]  ;;  %v864_v6 = vpack.c.bf16 %v468_v48, %v2203_v45 }
  0x1d   : > { %1847 = vmatmul.mubr.msk.bf16.vlgmr.msra.gmra.mxu1 %vm285_vm0, %v2131_v22  ;;  %1855 = vmatpush3.bf16.msra.mxu0 %v1991_v18  ;;  %v2002_v53 = vld [vmem:[%s2396_s1 + $0xb0] sm:$0xff]   ;;  %v2237_v58 = vld [vmem:[%s2084_s6 + $0x80] sm:$0xff]  ;;  %v865_v10 = vpack.c.bf16 %v470_v56, %v2218_v50  ;;  %v2011_v13 = vld [vmem:[%s2396_s1 + $0xc8] sm:$0xff]  }
  0x1e   : > { %1871 = vmatpush3.bf16.msra.mxu1 %v1992_v19  ;;  %1856 = vmatprep.subr.bf16.mxu0 %v1993_v26  ;;  %v471_v57 = vld [vmem:[%s2084_s6 + $0x72] sm:$0xff]  ;;  %v606_v62 = vpack.c.bf16 %v2237_v58, %v2165_v33  ;;  %v2005_v63 = vld [vmem:[%s2396_s1 + $0x80] sm:$0xff]   ;;  %v2012_v14 = vld [vmem:[%s2396_s1 + $0xe8] sm:$0xff]  }
  0x1f   : > { %1872 = vmatprep.subr.bf16.mxu1 %v1994_v27  ;;  %1834 = vmatprep.mubr.msk.bf16.mxu0 %vm285_vm0, %v2148_v28  ;;  %v2248_v61 = vpack.c.bf16 %v471_v57, %v470_v56  ;;  %v2006_v0 = vld [vmem:[%s2396_s1 + $0xa0] sm:$0xff]   ;;  %v2009_v7 = vld [vmem:[%s2396_s1 + $0xd0] sm:$0xff]   ;;  %v2015_v19 = vld [vmem:[%s2396_s1 + $0x118] sm:$0xff]  }
  0x20   : > { %1850 = vmatprep.mubr.msk.bf16.mxu1 %vm285_vm0, %v2159_v31  ;;  %v2010_v8 = vld [vmem:[%s2396_s1 + $0xf0] sm:$0xff]   ;;  %v1634_v11 = vld [vmem:[%s2084_s6 + $0x81] sm:$0xff] }
  0x21   : > { %1857 = vmatpush3.bf16.msra.mxu0 %v1993_v26  ;;  %v1658_v12 = vld [vmem:[%s2084_s6 + $0x82] sm:$0xff]  ;;  %v736_v15 = vpack.c.bf16 %v1634_v11, %v2154_v30  ;;  %v2016_v21 = vld [vmem:[%s2396_s1 + $0x110] sm:$0xff]  }
  0x22   : > { %1873 = vmatpush3.bf16.msra.mxu1 %v1994_v27  ;;  %1858 = vmatprep.subr.bf16.mxu0 %v1995_v34  ;;  %v866_v16 = vpack.c.bf16 %v1658_v12, %v471_v57  ;;  %v2013_v17 = vld [vmem:[%s2396_s1 + $0xc0] sm:$0xff]   ;;  %v1682_v23 = vld [vmem:[%s2084_s6 + $0x90] sm:$0xff] }
  0x23   : > { %1874 = vmatprep.subr.bf16.mxu1 %v1996_v35  ;;  %v2014_v18 = vld [vmem:[%s2396_s1 + $0xe0] sm:$0xff]   ;;  %v997_v24 = vpack.c.bf16 %v1682_v23, %v2237_v58  ;;  %v1730_v27 = vld [vmem:[%s2084_s6 + $0x92] sm:$0xff] }
  0x24   : > { %1835 = vmatmul.mubr.msk.bf16.gmra.mxu0 %vm285_vm0, %v2179_v36  ;;  %v2018_v26 = vld [vmem:[%s2396_s1 + $0x100] sm:$0xff]  }
  0x25   : > { %1851 = vmatmul.mubr.msk.bf16.gmra.mxu1 %vm285_vm0, %v2186_v39  ;;  %1859 = vmatpush3.bf16.msra.mxu0 %v1995_v34 }
  0x26   : > { %1875 = vmatpush3.bf16.msra.mxu1 %v1996_v35  ;;  %1860 = vmatprep.subr.bf16.mxu0 %v1997_v40 }
  0x27   : > { %1876 = vmatprep.subr.bf16.mxu1 %v1998_v41  ;;  %1862 = vmatprep.mubr.msk.bf16.mxu0 %vm285_vm0, %v472_v42 }
  0x28   : > { %1878 = vmatprep.mubr.msk.bf16.mxu1 %vm285_vm0, %v603_v43 }
  0x29   : > { %1861 = vmatpush3.bf16.msra.mxu0 %v1997_v40 }
  0x2a   : > { %1877 = vmatpush3.bf16.msra.mxu1 %v1998_v41  ;;  %1886 = vmatprep.subr.bf16.mxu0 %v1999_v46 }
  0x2b   : > { %1902 = vmatprep.subr.bf16.mxu1 %v2000_v47 }
  0x2c   : > { %1863 = vmatmul.mubr.msk.bf16.vlgmr.msra.gmra.mxu0 %vm285_vm0, %v2215_v49 }
  0x2d   : > { %1879 = vmatmul.mubr.msk.bf16.vlgmr.msra.gmra.mxu1 %vm285_vm0, %v604_v51  ;;  %1887 = vmatpush3.bf16.msra.mxu0 %v1999_v46 }
  0x2e   : > { %1903 = vmatpush3.bf16.msra.mxu1 %v2000_v47  ;;  %1888 = vmatprep.subr.bf16.mxu0 %v2001_v52 }
  0x2f   : > { %1904 = vmatprep.subr.bf16.mxu1 %v2002_v53  ;;  %1866 = vmatprep.mubr.msk.bf16.mxu0 %vm285_vm0, %v2228_v54 }
  0x30   : > { %1882 = vmatprep.mubr.msk.bf16.mxu1 %vm285_vm0, %v605_v55 }
  0x31   : > { %1889 = vmatpush3.bf16.msra.mxu0 %v2001_v52 }
  0x32   : > { %1905 = vmatpush3.bf16.msra.mxu1 %v2002_v53  ;;  %1890 = vmatprep.subr.bf16.mxu0 %v2003_v59 }
  0x33   : > { %1906 = vmatprep.subr.bf16.mxu1 %v2004_v60 }
  0x34   : > { %1867 = vmatmul.mubr.msk.bf16.gmra.mxu0 %vm285_vm0, %v2248_v61 }
  0x35   : > { %1883 = vmatmul.mubr.msk.bf16.gmra.mxu1 %vm285_vm0, %v606_v62  ;;  %1891 = vmatpush3.bf16.msra.mxu0 %v2003_v59 }
  0x36   : > { %1907 = vmatpush3.bf16.msra.mxu1 %v2004_v60  ;;  %1892 = vmatprep.subr.bf16.mxu0 %v2005_v63 }
  0x37   : > { %1908 = vmatprep.subr.bf16.mxu1 %v2006_v0  ;;  %1894 = vmatprep.mubr.msk.bf16.mxu0 %vm285_vm0, %v733_v1 }
  0x38   : > { %1910 = vmatprep.mubr.msk.bf16.mxu1 %vm285_vm0, %v863_v2 }
  0x39   : > { %1893 = vmatpush3.bf16.msra.mxu0 %v2005_v63 }
  0x3a   : > { %1909 = vmatpush3.bf16.msra.mxu1 %v2006_v0  ;;  %1918 = vmatprep.subr.bf16.mxu0 %v2007_v3 }
  0x3b   : > { %1934 = vmatprep.subr.bf16.mxu1 %v2008_v4 }
  0x3c   : > { %1895 = vmatmul.mubr.msk.bf16.vlgmr.msra.gmra.mxu0 %vm285_vm0, %v734_v5 }
  0x3d   : > { %1911 = vmatmul.mubr.msk.bf16.vlgmr.msra.gmra.mxu1 %vm285_vm0, %v864_v6  ;;  %1919 = vmatpush3.bf16.msra.mxu0 %v2007_v3 }
  0x3e   : > { %1935 = vmatpush3.bf16.msra.mxu1 %v2008_v4  ;;  %1920 = vmatprep.subr.bf16.mxu0 %v2009_v7 }
  0x3f   : > { %1936 = vmatprep.subr.bf16.mxu1 %v2010_v8  ;;  %1898 = vmatprep.mubr.msk.bf16.mxu0 %vm285_vm0, %v735_v9 }
  0x40   : > { %1914 = vmatprep.mubr.msk.bf16.mxu1 %vm285_vm0, %v865_v10 }
  0x41   : > { %1921 = vmatpush3.bf16.msra.mxu0 %v2009_v7 }
  0x42   : > { %1937 = vmatpush3.bf16.msra.mxu1 %v2010_v8  ;;  %1922 = vmatprep.subr.bf16.mxu0 %v2011_v13 }
  0x43   : > { %1938 = vmatprep.subr.bf16.mxu1 %v2012_v14 }
  0x44   : > { %1899 = vmatmul.mubr.msk.bf16.gmra.mxu0 %vm285_vm0, %v736_v15 }
  0x45   : > { %1915 = vmatmul.mubr.msk.bf16.gmra.mxu1 %vm285_vm0, %v866_v16  ;;  %1923 = vmatpush3.bf16.msra.mxu0 %v2011_v13 }
  0x46   : > { %1939 = vmatpush3.bf16.msra.mxu1 %v2012_v14  ;;  %1924 = vmatprep.subr.bf16.mxu0 %v2013_v17 }
  0x47   : > { %1940 = vmatprep.subr.bf16.mxu1 %v2014_v18  ;;  %1926 = vmatprep.mubr.msk.bf16.mxu0 %vm285_vm0, %v2131_v22  ;;  %v1706_v22 = vld [vmem:[%s2084_s6 + $0x91] sm:$0xff]  ;;  %s1749_s6 = sshll.u32 %s2403_s16, 6 }
  0x48   : > { %1942 = vmatprep.mubr.msk.bf16.mxu1 %vm285_vm0, %v2124_v20  ;;  %v2017_v20 = vld [vmem:[%s2396_s1 + $0x108] sm:$0xff]   ;;  %v1127_v25 = vpack.c.bf16 %v1706_v22, %v1634_v11  ;;  %s2349_s25 = scalar_lea.vmem %s2397_s2, %s1749_s6 }
  0x49   : > { %1925 = vmatpush3.bf16.msra.mxu0 %v2013_v17 }
  0x4a   : > { %1941 = vmatpush3.bf16.msra.mxu1 %v2014_v18  ;;  %1950 = vmatprep.subr.bf16.mxu0 %v2015_v19 }
  0x4b   : > { %1966 = vmatprep.subr.bf16.mxu1 %v2015_v19 }
  0x4c   : > { %1927 = vmatmul.mubr.msk.bf16.vlgmr.msra.gmra.mxu0 %vm285_vm0, %v2159_v31 }
  0x4d   : > { %1943 = vmatmul.mubr.msk.bf16.vlgmr.msra.gmra.mxu1 %vm285_vm0, %v2148_v28  ;;  %1951 = vmatpush3.bf16.msra.mxu0 %v2015_v19  ;;  %v1257_v28 = vpack.c.bf16 %v1730_v27, %v1658_v12 }
  0x4e   : > { %1970 = vmatpush3.bf16.msra.mxu1 %v2015_v19  ;;  %1952 = vmatprep.subr.bf16.mxu0 %v2016_v21 }
  0x4f   : > { %1967 = vmatprep.subr.bf16.mxu1 %v2016_v21  ;;  %1930 = vmatprep.mubr.msk.bf16.mxu0 %vm285_vm0, %v2186_v39 }
  0x50   : > { %1946 = vmatprep.mubr.msk.bf16.mxu1 %vm285_vm0, %v2179_v36 }
  0x51   : > { %1953 = vmatpush3.bf16.msra.mxu0 %v2016_v21 }
  0x52   : > { %1971 = vmatpush3.bf16.msra.mxu1 %v2016_v21  ;;  %1954 = vmatprep.subr.bf16.mxu0 %v2017_v20 }
  0x53   : > { %1968 = vmatprep.subr.bf16.mxu1 %v2017_v20 }
  0x54   : > { %1931 = vmatmul.mubr.msk.bf16.gmra.mxu0 %vm285_vm0, %v997_v24 }
  0x55   : > { %1947 = vmatmul.mubr.msk.bf16.gmra.mxu1 %vm285_vm0, %v1127_v25  ;;  %1955 = vmatpush3.bf16.msra.mxu0 %v2017_v20 }
  0x56   : > { %1972 = vmatpush3.bf16.msra.mxu1 %v2017_v20  ;;  %1956 = vmatprep.subr.bf16.mxu0 %v2018_v26 }
  0x57   : > { %1969 = vmatprep.subr.bf16.mxu1 %v2018_v26  ;;  %1958 = vmatprep.mubr.msk.bf16.mxu0 %vm285_vm0, %v2215_v49 }
  0x58   : > { %1962 = vmatprep.mubr.msk.bf16.mxu1 %vm285_vm0, %v2248_v61 }
  0x59   : > { %1957 = vmatpush3.bf16.msra.mxu0 %v2018_v26 }
  0x5a   : > { %1973 = vmatpush3.bf16.msra.mxu1 %v2018_v26 }
  0x5c   : > { %1959 = vmatmul.mubr.msk.bf16.vlgmr.msra.gmra.mxu0 %vm285_vm0, %v2228_v54 }
  0x5d   : > { %1963 = vmatmul.mubr.msk.bf16.vlgmr.msra.gmra.mxu1 %vm285_vm0, %v1257_v28 }
  0xdc   : > { %v1832_v29 = vpop.f32.mrf.mxu0 }
  0xdd   : > { %v1848_v30 = vpop.f32.mrf.mxu1 }
  0xde   : > { %v332_v31 = vpop.f32.mrf.mxu0  ;;  %v442_v10 = vadd.f32 %v1848_v30, %v1832_v29 }
  0xdf   : > { %v433_v32 = vpop.f32.mrf.mxu1 }
  0xe0   : > { %v1833_v33 = vpop.f32.mrf.mxu0  ;;  %v434_v14 = vadd.f32 %v433_v32, %v332_v31 }
  0xe1   : > { %v1849_v34 = vpop.f32.mrf.mxu1 }
  0xe2   : > { %v335_v35 = vpop.f32.mrf.mxu0  ;;  %v445_v21 = vadd.f32 %v1849_v34, %v1833_v33 }
  0xe3   : > { %v436_v36 = vpop.f32.mrf.mxu1 }
  0xe4   : > { %v1836_v37 = vpop.f32.mrf.mxu0  ;;  %v437_v26 = vadd.f32 %v436_v36, %v335_v35 }
  0xe5   : > { %v1852_v38 = vpop.f32.mrf.mxu1 }
  0xe6   : > { %v348_v39 = vpop.f32.mrf.mxu0  ;;  %v458_v12 = vadd.f32 %v1852_v38, %v1836_v37 }
  0xe7   : > { %v449_v40 = vpop.f32.mrf.mxu1 }
  0xe8   : > { %v1837_v41 = vpop.f32.mrf.mxu0  ;;  %v450_v17 = vadd.f32 %v449_v40, %v348_v39 }
  0xe9   : > { %v1853_v42 = vpop.f32.mrf.mxu1 }
  0xea   : > { %v351_v43 = vpop.f32.mrf.mxu0  ;;  %v461_v20 = vadd.f32 %v1853_v42, %v1837_v41 }
  0xeb   : > { %v452_v44 = vpop.f32.mrf.mxu1 }
  0xec   : > { %v1864_v45 = vpop.f32.mrf.mxu0  ;;  %v453_v29 = vadd.f32 %v452_v44, %v351_v43 }
  0xed   : > { %v1880_v46 = vpop.f32.mrf.mxu1  ;;  %v588_v15 = vadd.f32 %v1864_v45, %v442_v10 }
  0xee   : > { %v555_v47 = vpop.f32.mrf.mxu0 }
  0xef   : > { %v686_v48 = vpop.f32.mrf.mxu1  ;;  %v586_v23 = vadd.f32 %v555_v47, %v434_v14  ;;  %v719_v27 = vadd.f32 %v1880_v46, %v588_v15 }
  0xf0   : > { %v1865_v49 = vpop.f32.mrf.mxu0 }
  0xf1   : > { %v1881_v50 = vpop.f32.mrf.mxu1  ;;  %v589_v28 = vadd.f32 %v1865_v49, %v445_v21  ;;  %v717_v31 = vadd.f32 %v686_v48, %v586_v23 }
  0xf2   : > { %v558_v51 = vpop.f32.mrf.mxu0 }
  0xf3   : > { %v689_v52 = vpop.f32.mrf.mxu1  ;;  %v587_v32 = vadd.f32 %v558_v51, %v437_v26  ;;  %v720_v47 = vadd.f32 %v1881_v50, %v589_v28 }
  0xf4   : > { %v1868_v53 = vpop.f32.mrf.mxu0 }
  0xf5   : > { %v1884_v54 = vpop.f32.mrf.mxu1  ;;  %v592_v18 = vadd.f32 %v1868_v53, %v458_v12  ;;  %v718_v46 = vadd.f32 %v689_v52, %v587_v32 }
  0xf6   : > { %v571_v55 = vpop.f32.mrf.mxu0 }
  0xf7   : > { %v702_v56 = vpop.f32.mrf.mxu1  ;;  %v590_v24 = vadd.f32 %v571_v55, %v450_v17  ;;  %v723_v30 = vadd.f32 %v1884_v54, %v592_v18 }
  0xf8   : > { %v1869_v57 = vpop.f32.mrf.mxu0 }
  0xf9   : > { %v1885_v58 = vpop.f32.mrf.mxu1  ;;  %v593_v37 = vadd.f32 %v1869_v57, %v461_v20  ;;  %v721_v40 = vadd.f32 %v702_v56, %v590_v24 }
  0xfa   : > { %v574_v59 = vpop.f32.mrf.mxu0 }
  0xfb   : > { %v705_v60 = vpop.f32.mrf.mxu1  ;;  %v591_v53 = vadd.f32 %v574_v59, %v453_v29  ;;  %v724_v55 = vadd.f32 %v1885_v58, %v593_v37 }
  0xfc   : > { %v1896_v61 = vpop.f32.mrf.mxu0 }
  0xfd   : > { %v1912_v62 = vpop.f32.mrf.mxu1  ;;  %v849_v45 = vadd.f32 %v1896_v61, %v719_v27  ;;  %v722_v54 = vadd.f32 %v705_v60, %v591_v53 }
  0xfe   : > { %v816_v63 = vpop.f32.mrf.mxu0 }
  0xff   : > { %v946_v0 = vpop.f32.mrf.mxu1  ;;  %v847_v41 = vadd.f32 %v816_v63, %v717_v31  ;;  %v979_v49 = vadd.f32 %v1912_v62, %v849_v45 }
 0x100   : > { %v1897_v1 = vpop.f32.mrf.mxu0 }
 0x101   : > { %v1913_v2 = vpop.f32.mrf.mxu1  ;;  %v850_v43 = vadd.f32 %v1897_v1, %v720_v47  ;;  %v977_v61 = vadd.f32 %v946_v0, %v847_v41 }
 0x102   : > { %v819_v3 = vpop.f32.mrf.mxu0 }
 0x103   : > { %v2342_v4 = vpop.f32.mrf.mxu1  ;;  %v848_v56 = vadd.f32 %v819_v3, %v718_v46  ;;  %v980_v58 = vadd.f32 %v1913_v2, %v850_v43 }
 0x104   : > { %2400 = vst [vmem:[#allocation2_spill] sm:$0xff] %v2342_v4  ;;  %v1900_v5 = vpop.f32.mrf.mxu0 }
 0x105   : > { %v1916_v6 = vpop.f32.mrf.mxu1  ;;  %v853_v33 = vadd.f32 %v1900_v5, %v723_v30 }
 0x106   : > { %v832_v7 = vpop.f32.mrf.mxu0 }
 0x107   : > { %v962_v8 = vpop.f32.mrf.mxu1  ;;  %v851_v35 = vadd.f32 %v832_v7, %v721_v40  ;;  %v983_v48 = vadd.f32 %v1916_v6, %v853_v33 }
 0x108   : > { %v1901_v9 = vpop.f32.mrf.mxu0 }
 0x109   : > { %v1917_v11 = vpop.f32.mrf.mxu1  ;;  %v854_v51 = vadd.f32 %v1901_v9, %v724_v55  ;;  %v981_v10 = vadd.f32 %v962_v8, %v851_v35 }
 0x10a   : > { %v835_v13 = vpop.f32.mrf.mxu0 }
 0x10b   : > { %v965_v16 = vpop.f32.mrf.mxu1  ;;  %v852_v50 = vadd.f32 %v835_v13, %v722_v54  ;;  %v984_v52 = vadd.f32 %v1917_v11, %v854_v51  ;;  %v2401_v15 = vld [vmem:[#allocation2_spill] sm:$0xff] }
 0x10c   : > { %v1928_v19 = vpop.f32.mrf.mxu0  ;;  %v978_v60 = vadd.f32 %v2401_v15, %v848_v56 }
 0x10d   : > { %v1944_v22 = vpop.f32.mrf.mxu1  ;;  %v1110_v59 = vadd.f32 %v1928_v19, %v979_v49  ;;  %v982_v0 = vadd.f32 %v965_v16, %v852_v50 }
 0x10e   : > { %v1077_v25 = vpop.f32.mrf.mxu0 }
 0x10f   : > { %v1207_v4 = vpop.f32.mrf.mxu1  ;;  %v1108_v7 = vadd.f32 %v1077_v25, %v977_v61  ;;  %v1240_v6 = vadd.f32 %v1944_v22, %v1110_v59 }
 0x110   : > { %v1929_v38 = vpop.f32.mrf.mxu0 }
 0x111   : > { %v1945_v39 = vpop.f32.mrf.mxu1  ;;  %v1111_v9 = vadd.f32 %v1929_v38, %v980_v58  ;;  %v1238_v8 = vadd.f32 %v1207_v4, %v1108_v7 }
 0x112   : > { %v1080_v34 = vpop.f32.mrf.mxu0 }
 0x113   : > { %v1210_v42 = vpop.f32.mrf.mxu1  ;;  %v1109_v11 = vadd.f32 %v1080_v34, %v978_v60  ;;  %v1241_v20 = vadd.f32 %v1945_v39, %v1111_v9 }
 0x114   : > { %v1932_v36 = vpop.f32.mrf.mxu0 }
 0x115   : > { %v1948_v44 = vpop.f32.mrf.mxu1  ;;  %v1114_v63 = vadd.f32 %v1932_v36, %v983_v48  ;;  %v1239_v28 = vadd.f32 %v1210_v42, %v1109_v11 }
 0x116   : > { %v1093_v57 = vpop.f32.mrf.mxu0 }
 0x117   : > { %v1223_v5 = vpop.f32.mrf.mxu1  ;;  %v1112_v62 = vadd.f32 %v1093_v57, %v981_v10  ;;  %v1244_v3 = vadd.f32 %v1948_v44, %v1114_v63 }
 0x118   : > { %v1933_v12 = vpop.f32.mrf.mxu0 }
 0x119   : > { %v1949_v14 = vpop.f32.mrf.mxu1  ;;  %v1115_v18 = vadd.f32 %v1933_v12, %v984_v52  ;;  %v1242_v21 = vadd.f32 %v1223_v5, %v1112_v62 }
 0x11a   : > { %v1096_v1 = vpop.f32.mrf.mxu0 }
 0x11b   : > { %v1226_v17 = vpop.f32.mrf.mxu1  ;;  %v1113_v23 = vadd.f32 %v1096_v1, %v982_v0  ;;  %v1245_v26 = vadd.f32 %v1949_v14, %v1115_v18 }
 0x11c   : > { %v1960_v2 = vpop.f32.mrf.mxu0 }
 0x11d   : > { %v1370_v13 = vadd.f32 %v1960_v2, %v1240_v6  ;;  %v1964_v19 = vpop.f32.mrf.mxu1  ;;  %v1243_v37 = vadd.f32 %v1226_v17, %v1113_v23 }
 0x11e   : > { %v1374_v22 = vadd.f32 %v1964_v19, %v1244_v3  ;;  %v1337_v16 = vpop.f32.mrf.mxu0 }
 0x11f   : > { %1378 = vst.msk [vmem:[%s2349_s25 + $0x10] sm:$0xff] %vm285_vm0, %v1370_v13  ;;  %v1368_v24 = vadd.f32 %v1337_v16, %v1238_v8  ;;  %v1353_v25 = vpop.f32.mrf.mxu1  ;;  %v1408_v53 = vmul.f32 %v1370_v13, %v1370_v13  ;;  %v1387_v42 = vsel %vm285_vm0, %v1370_v13, 0.0 }
 0x120   : > { %1382 = vst.msk [vmem:[%s2349_s25 + $0x30] sm:$0xff] %vm285_vm0, %v1374_v22  ;;  %v1372_v4 = vadd.f32 %v1353_v25, %v1242_v21  ;;  %v1961_v27 = vpop.f32.mrf.mxu0  ;;  %v1412_v10 = vmul.f32 %v1374_v22, %v1374_v22  ;;  %v1395_v7 = vsel %vm285_vm0, %v1374_v22, 0.0 }
 0x121   : > { %1376 = vst.msk [vmem:[%s2349_s25] sm:$0xff] %vm285_vm0, %v1368_v24  ;;  %v1371_v29 = vadd.f32 %v1961_v27, %v1241_v20  ;;  %v1965_v30 = vpop.f32.mrf.mxu1  ;;  %v1406_v32 = vmul.f32 %v1368_v24, %v1368_v24  ;;  %v1384_v33 = vsel %vm285_vm0, %v1368_v24, 0.0  ;;  %v1417_v43 = vsel %vm285_vm0, %v1408_v53, 0.0 }
 0x122   : > { %1380 = vst.msk [vmem:[%s2349_s25 + $0x20] sm:$0xff] %vm285_vm0, %v1372_v4  ;;  %v1375_v38 = vadd.f32 %v1965_v30, %v1245_v26  ;;  %v1340_v31 = vpop.f32.mrf.mxu0  ;;  %v1410_v44 = vmul.f32 %v1372_v4, %v1372_v4  ;;  %v1391_v57 = vsel %vm285_vm0, %v1372_v4, 0.0  ;;  %v1425_v15 = vsel %vm285_vm0, %v1412_v10, 0.0 }
 0x123   : > { %1379 = vst.msk [vmem:[%s2349_s25 + $0x18] sm:$0xff] %vm285_vm0, %v1371_v29  ;;  %v1369_v45 = vadd.f32 %v1340_v31, %v1239_v28  ;;  %v1356_v39 = vpop.f32.mrf.mxu1  ;;  %v1414_v55 = vsel %vm285_vm0, %v1406_v32, 0.0  ;;  %v1409_v35 = vmul.f32 %v1371_v29, %v1371_v29  ;;  %v1389_v54 = vsel %vm285_vm0, %v1371_v29, 0.0 }
 0x124   : > { %1383 = vst.msk [vmem:[%s2349_s25 + $0x38] sm:$0xff] %vm285_vm0, %v1375_v38  ;;  %v1373_v40 = vadd.f32 %v1356_v39, %v1243_v37  ;;  %v1421_v50 = vsel %vm285_vm0, %v1410_v44, 0.0  ;;  %v1413_v14 = vmul.f32 %v1375_v38, %v1375_v38  ;;  %v1397_v60 = vsel %vm285_vm0, %v1375_v38, 0.0 }
 0x125   : > { %1377 = vst.msk [vmem:[%s2349_s25 + $0x8] sm:$0xff] %vm285_vm0, %v1369_v45  ;;  %v1385_v34 = vsel %vm285_vm0, %v1369_v45, 0.0  ;;  %v1407_v47 = vmul.f32 %v1369_v45, %v1369_v45  ;;  %v1419_v61 = vsel %vm285_vm0, %v1409_v35, 0.0 }
 0x126   : > { %v1386_v41 = vadd.f32 %v1385_v34, %v1384_v33  ;;  %1381 = vst.msk [vmem:[%s2349_s25 + $0x28] sm:$0xff] %vm285_vm0, %v1373_v40  ;;  %v1411_v56 = vmul.f32 %v1373_v40, %v1373_v40  ;;  %v1393_v63 = vsel %vm285_vm0, %v1373_v40, 0.0  ;;  %v1427_v17 = vsel %vm285_vm0, %v1413_v14, 0.0 }
 0x127   : > { %v1415_v36 = vsel %vm285_vm0, %v1407_v47, 0.0 }
 0x128   : > { %v1388_v46 = vadd.f32 %v1387_v42, %v1386_v41  ;;  %v1416_v49 = vadd.f32 %v1415_v36, %v1414_v55  ;;  %v1423_v52 = vsel %vm285_vm0, %v1411_v56, 0.0 }
 0x12a   : > { %v1418_v48 = vadd.f32 %v1417_v43, %v1416_v49  ;;  %v1390_v51 = vadd.f32 %v1389_v54, %v1388_v46 }
 0x12c   : > { %v1392_v59 = vadd.f32 %v1391_v57, %v1390_v51  ;;  %v1420_v5 = vadd.f32 %v1419_v61, %v1418_v48 }
 0x12e   : > { %v1394_v12 = vadd.f32 %v1393_v63, %v1392_v59  ;;  %v1422_v58 = vadd.f32 %v1421_v50, %v1420_v5 }
 0x130   : > { %v1396_v62 = vadd.f32 %v1395_v7, %v1394_v12  ;;  %v1424_v1 = vadd.f32 %v1423_v52, %v1422_v58 }
 0x132   : > { %v1398_v6 = vadd.f32 %v1397_v60, %v1396_v62  ;;  %v1426_v9 = vadd.f32 %v1425_v15, %v1424_v1 }
 0x134   : > { %v1399_v0 = vrot.slane %v1398_v6, 4  ;;  %v1428_v3 = vadd.f32 %v1427_v17, %v1426_v9 }
 0x136   : > { %v1400_v18 = vadd.f32 %v1399_v0, %v1398_v6  ;;  %v1429_v2 = vrot.slane %v1428_v3, 4 }
 0x138   : > { %v1401_v8 = vrot.slane %v1400_v18, 2  ;;  %v1430_v11 = vadd.f32 %v1429_v2, %v1428_v3 }
 0x13a   : > { %v1402_v13 = vadd.f32 %v1401_v8, %v1400_v18  ;;  %v1431_v19 = vrot.slane %v1430_v11, 2 }
 0x13c   : > { %v1403_v21 = vrot.slane %v1402_v13, 1  ;;  %v1432_v23 = vadd.f32 %v1431_v19, %v1430_v11 }
 0x13e   : > { %v1404_v22 = vadd.f32 %v1403_v21, %v1402_v13  ;;  %v1433_v16 = vrot.slane %v1432_v23, 1 }
 0x140   : > { %1405 = vst.msk [vmem:[%s214_s29] sm:$0xff] %vm285_vm0, %v1404_v22  ;;  %v1434_v20 = vadd.f32 %v1433_v16, %v1432_v23 }
 0x142   : > { %1435 = vst.msk [vmem:[%s218_s7] sm:$0xff] %vm285_vm0, %v1434_v20 }
 0x143 PF: > { %s15_s15 = sadd.s32 1, %s2025_s15  }
 0x144   : > { %p12_p4 = scmp.ge.s32.totalorder %s15_s15, 4  }
 0x146   :  { %14 = sbr.rel (!%p12_p4) target bundleno = 1 (0x1), region = 92 }

// kernel: resnet18_forward.52
= control target key start
LH: loop header
LB: loop body
LE: loop exit
PB: predicated region body
PF: predicated region fallthrough
CT: control target
= control target key end

     0   :  { %v51_v20 = vlaneseq  ;;  %s150_s1 = inlined_call_operand.vmem [shape: f32[8,128], index: 1, kind: input, shape index: {}]   ;;  %s151_s2 = inlined_call_operand.vmem [shape: f32[8,128], index: 2, kind: input, shape index: {}]   ;;  %s152_s3 = inlined_call_operand.vmem [shape: f32[1,128], index: 3, kind: input, shape index: {}]   ;;  %s153_s4 = inlined_call_operand.vmem [shape: f32[1,128], index: 4, kind: input, shape index: {}]   ;;  %s154_s0 = inlined_call_operand.vmem [shape: f32[32,128], index: 0, kind: input, shape index: {}]   ;;  %s155_s5 = inlined_call_operand.vmem [shape: f32[32,128], index: 5, kind: output, shape index: {}]  }
   0x1   :  { %v20_v0 = vld [vmem:[%s150_s1] sm:$0xff]  ;;  %v47_v28 = vld [vmem:[%s154_s0 + $0x8] sm:$0xff]  ;;  %v48_v29 = vld [vmem:[%s154_s0 + $0x10] sm:$0xff] }
   0x2   :  { %v28_v1 = vld [vmem:[%s151_s2] sm:$0xff]  ;;  %v21_v2 = vrot.slane %v20_v0, 4  ;;  %v52_v21 = vshrl.u32 %v51_v20, 7  ;;  %v49_v32 = vld [vmem:[%s154_s0 + $0x18] sm:$0xff] }
   0x3   :  { %v29_v3 = vrot.slane %v28_v1, 4  ;;  %v39_v22 = vld [vmem:[%s152_s3] sm:$0x1] }
   0x4   :  { %v22_v4 = vadd.f32 %v21_v2, %v20_v0  ;;  %v53_v23 = vsub.s32 0, %v52_v21  ;;  %v43_v26 = vld [vmem:[%s153_s4] sm:$0x1] }
   0x5   :  { %v30_v5 = vadd.f32 %v29_v3, %v28_v1  ;;  %v46_v27 = vld [vmem:[%s154_s0] sm:$0xff] }
   0x6   :  { %v23_v6 = vrot.slane %v22_v4, 2 }
   0x7   :  { %v31_v7 = vrot.slane %v30_v5, 2 }
   0x8   :  { %v24_v8 = vadd.f32 %v23_v6, %v22_v4 }
   0x9   :  { %v32_v9 = vadd.f32 %v31_v7, %v30_v5 }
   0xa   :  { %v25_v10 = vrot.slane %v24_v8, 1 }
   0xb   :  { %v33_v11 = vrot.slane %v32_v9, 1 }
   0xc   :  { %v26_v12 = vadd.f32 %v25_v10, %v24_v8 }
   0xd   :  { %v34_v13 = vadd.f32 %v33_v11, %v32_v9 }
   0xe   :  { %v27_v14 = vmul.f32 0.00390625, %v26_v12 }
   0xf   :  { %v35_v15 = vmul.f32 0.00390625, %v34_v13 }
  0x10   :  { %v36_v16 = vmul.f32 %v27_v14, %v27_v14 }
  0x12   :  { %v37_v17 = vsub.f32 %v35_v15, %v36_v16 }
  0x14   :  { %v38_v18 = vmax.f32 %v37_v17, 0.0 }
  0x16   :  { %v40_v19 = vadd.f32 1e-05, %v38_v18 }
  0x18   :  { %82 = vrsqrt.f32 %v40_v19 }
  0x25   :  { %v83_v24 = vpop.eup %82 }
  0x26   :  { %v42_v25 = vmul.f32 %v83_v24, %v39_v22 }
  0x28   :  { %v44_v30 = vmul.f32 %v42_v25, %v27_v14  ;;  %v54_v31 = vrot.slane %v42_v25, %v53_v23 }
  0x2a   :  { %v45_v33 = vsub.f32 %v43_v26, %v44_v30  ;;  %v56_v34 = vmul.f32 %v54_v31, %v46_v27  ;;  %v57_v35 = vmul.f32 %v54_v31, %v47_v28  ;;  %v58_v36 = vmul.f32 %v54_v31, %v48_v29 }
  0x2b   :  { %v59_v37 = vmul.f32 %v54_v31, %v49_v32 }
  0x2c   :  { %v64_v38 = vrot.slane %v45_v33, %v53_v23 }
  0x2e   :  { %v66_v39 = vadd.f32 %v64_v38, %v56_v34  ;;  %v67_v40 = vadd.f32 %v64_v38, %v57_v35  ;;  %v68_v41 = vadd.f32 %v64_v38, %v58_v36  ;;  %v69_v42 = vadd.f32 %v64_v38, %v59_v37 }
  0x30   :  { %v70_v43 = vmax.f32 %v66_v39, 0.0  ;;  %v71_v44 = vmax.f32 %v67_v40, 0.0  ;;  %v72_v45 = vmax.f32 %v68_v41, 0.0  ;;  %v73_v46 = vmax.f32 %v69_v42, 0.0 }
  0x32   :  { %74 = vst [vmem:[%s155_s5] sm:$0xff] %v70_v43  ;;  %75 = vst [vmem:[%s155_s5 + $0x8] sm:$0xff] %v71_v44 }
  0x33   :  { %76 = vst [vmem:[%s155_s5 + $0x10] sm:$0xff] %v72_v45  ;;  %77 = vst [vmem:[%s155_s5 + $0x18] sm:$0xff] %v73_v46 }

// kernel: resnet18_forward.51
= control target key start
LH: loop header
LB: loop body
LE: loop exit
PB: predicated region body
PF: predicated region fallthrough
CT: control target
= control target key end

     0   :  { %s813_s15 = smov 0   ;;  %s815_s16 = smov 0   ;;  %s915_s0 = inlined_call_operand.vmem [shape: bf16[32,640], index: 0, kind: input, shape index: {}]   ;;  %s916_s1 = inlined_call_operand.vmem [shape: bf16[640,128], index: 1, kind: input, shape index: {}]   ;;  %s917_s2 = inlined_call_operand.vmem [shape: f32[32,128], index: 2, kind: output, shape index: {0}]   ;;  %s918_s3 = inlined_call_operand.vmem [shape: f32[8,128], index: 3, kind: output, shape index: {1}]   ;;  %s919_s4 = inlined_call_operand.vmem [shape: f32[8,128], index: 4, kind: output, shape index: {2}]  }
   0x1   :  { %s817_s17 = smov 0   ;;  %s819_s18 = smov 0  }
   0x2   :  { %s821_s19 = smov 0  }
   0x3 LB: > { %s24_s20 = sadd.s32 1, %s781_s18  ;;  %p43_p1 = scmp.ne.s32.totalorder %s773_s16, %s769_s15  ;;  %s785_s19 = sphi %s821_s19, %s15_s19   ;;  %s781_s18 = sphi %s819_s18, %s923_s18   ;;  %s777_s17 = sphi %s817_s17, %s922_s17   ;;  %s773_s16 = sphi %s815_s16, %s921_s16   ;;  %s769_s15 = sphi %s813_s15, %s920_s15  }
   0x4   : > { %p25_p0 = scmp.ge.s32.totalorder %s24_s20, 5  ;;  %p44_p2 = scmp.eq.s32.totalorder %s785_s19, 0 }
   0x5   : > { %s36_s22 = sadd.s32 1, %s773_s16  ;;  %p641_p5 = scmp.ge.s32.totalorder %s785_s19, 5 }
   0x6   : > { %s925_s20 = smov (%p25_p0, %s24_s20), 0  ;;  %p45_p3 = por %p44_p2, %p43_p1 }
   0x7   : > { %s32_s21 = ssub.s32 %s781_s18, %s925_s20  ;;  %173 = sbr.rel (%p641_p5) target bundleno = 18 (0x12), region = 16 }
   0x8   : > { %p34_p4 = scmp.eq.s32.totalorder %s32_s21, 0 }
   0xa   : > { %s848_s23 = scalar_select %p34_p4, %s773_s16, %s36_s22  }
   0xc   : > { %176 = sbr.rel (!%p45_p3) target bundleno = 18 (0x12), region = 20  ;;  %s178_s24 = sand.u32 (%p45_p3), 1, %s773_s16  }
   0xd   : > { %s643_s25 = sshll.u32 (%p45_p3), %s781_s18, 2  ;;  %s642_s26 = sshll.u32 (%p45_p3), %s178_s24, 4 }
   0xe   : > { %s185_s29 = scalar_lea.vmem (%p45_p3), %s915_s0, %s643_s25  ;;  %s180_s30 = scalar_lea.vmem (%p45_p3), [#allocation3], %s642_s26 }
   0xf   : > { %v202_v0 = vld [vmem:[%s185_s29] sm:$0xf] (%p45_p3)  ;;  %v204_v1 = vld [vmem:[%s185_s29 + $0x14] sm:$0xf] (%p45_p3)  ;;  %v206_v2 = vld [vmem:[%s185_s29 + $0x28] sm:$0xf] (%p45_p3) }
  0x10   : > { %203 = vst [vmem:[%s180_s30] sm:$0xf] (%p45_p3), %v202_v0  ;;  %205 = vst [vmem:[%s180_s30 + $0x4] sm:$0xf] (%p45_p3), %v204_v1  ;;  %v208_v3 = vld [vmem:[%s185_s29 + $0x3c] sm:$0xf] (%p45_p3) }
  0x11   : > { %207 = vst [vmem:[%s180_s30 + $0x8] sm:$0xf] %v206_v2  ;;  %209 = vst [vmem:[%s180_s30 + $0xc] sm:$0xf] %v208_v3 }
  0x12 PF: > { %p644_p6 = scmp.ge.s32.totalorder %s785_s19, 1  ;;  %p249_p7 = scmp.lt.s32.totalorder %s785_s19, 6 }
  0x14   : > { %p250_p8 = pnand %p644_p6, %p249_p7 }
  0x15   : > { %s256_s5 = sand.u32 (!%p250_p8), 1, %s769_s15   ;;  %s646_s6 = sshll.u32 (!%p250_p8), %s777_s17, 4 }
  0x16   : > { %253 = sbr.rel (%p250_p8) target bundleno = 298 (0x12a), region = 65  ;;  %s860_s7 = sshll.u32 (!%p250_p8), %s256_s5, 4 }
  0x17   : > { %p296_p9 = scmp.lt.s32.totalorder (!%p250_p8), %s646_s6, 79  ;;  %s258_s12 = scalar_lea.vmem (!%p250_p8), [#allocation3], %s860_s7 }
  0x18   : > { %p648_p10 = scmp.ne.s32.totalorder (!%p250_p8), %s777_s17, 0 }
  0x1b   : > { %s927_s6 = smov (!%p296_p9, %s646_s6), 79  ;;  %319 = sbr.rel (%p648_p10) target bundleno = 35 (0x23), region = 73 }
  0x1c   : > { %s647_s8 = sshll.u32 %s927_s6, 2 }
  0x1d   : > { %s865_s11 = scalar_lea.vmem %s916_s1, %s647_s8 }
  0x20   : > { %v787_v4 = vmov 0.0  }
  0x21   : > { %320 = vst [vmem:[#allocation2 + $0x10] sm:$0xff] %v787_v4  ;;  %321 = vst [vmem:[#allocation2] sm:$0xff] %v787_v4 }
  0x22   : > { %322 = vst [vmem:[#allocation2 + $0x18] sm:$0xff] %v787_v4  ;;  %323 = vst [vmem:[#allocation2 + $0x8] sm:$0xff] %v787_v4 }
  0x23 PF: > { %v737_v5 = vld [vmem:[%s865_s11 + $0x38] sm:$0xff]   ;;  %v738_v6 = vld [vmem:[%s865_s11 + $0x30] sm:$0xff]   ;;  %v739_v7 = vld [vmem:[%s865_s11 + $0x28] sm:$0xff]   ;;  %p659_p11 = scmp.ne.s32.totalorder %s777_s17, 4 }
  0x24   : > { %676 = vmatprep.subr.bf16.mxu0 %v737_v5  ;;  %v740_v8 = vld [vmem:[%s865_s11 + $0x20] sm:$0xff]   ;;  %v741_v10 = vld [vmem:[%s865_s11 + $0x18] sm:$0xff]   ;;  %v742_v11 = vld [vmem:[%s865_s11 + $0x10] sm:$0xff]  }
  0x25   : > { %677 = vmatpush3.bf16.msra.mxu0 %v737_v5  ;;  %v745_v9 = vld [vmem:[%s258_s12] sm:$0xff]   ;;  %v743_v12 = vld [vmem:[%s865_s11 + $0x8] sm:$0xff]  }
  0x26   : > { %678 = vmatprep.subr.bf16.mxu0 %v738_v6  ;;  %692 = vmatprep.mubr.bf16.mxu0 %v745_v9  ;;  %v744_v13 = vld [vmem:[%s865_s11] sm:$0xff]   ;;  %v746_v14 = vld [vmem:[%s258_s12 + $0x8] sm:$0xff]  }
  0x28   : > { %v324_v17 = vld [vmem:[#allocation2 + $0x10] sm:$0xff]  ;;  %v325_v23 = vld [vmem:[#allocation2] sm:$0xff] }
  0x29   : > { %679 = vmatpush3.bf16.msra.mxu0 %v738_v6  ;;  %v326_v15 = vld [vmem:[#allocation2 + $0x18] sm:$0xff]  ;;  %v327_v20 = vld [vmem:[#allocation2 + $0x8] sm:$0xff] }
  0x2a   : > { %680 = vmatprep.subr.bf16.mxu0 %v739_v7 }
  0x2d   : > { %681 = vmatpush3.bf16.msra.mxu0 %v739_v7 }
  0x2e   : > { %682 = vmatprep.subr.bf16.mxu0 %v740_v8 }
  0x31   : > { %683 = vmatpush3.bf16.msra.mxu0 %v740_v8 }
  0x32   : > { %684 = vmatprep.subr.bf16.mxu0 %v741_v10 }
  0x35   : > { %685 = vmatpush3.bf16.msra.mxu0 %v741_v10 }
  0x36   : > { %686 = vmatprep.subr.bf16.mxu0 %v742_v11 }
  0x39   : > { %687 = vmatpush3.bf16.msra.mxu0 %v742_v11 }
  0x3a   : > { %688 = vmatprep.subr.bf16.mxu0 %v743_v12 }
  0x3d   : > { %689 = vmatpush3.bf16.msra.mxu0 %v743_v12 }
  0x3e   : > { %690 = vmatprep.subr.bf16.mxu0 %v744_v13 }
  0x41   : > { %691 = vmatpush3.bf16.msra.mxu0 %v744_v13 }
  0x44   : > { %693 = vmatmul.mubr.bf16.vlgmr.msra.gmra.mxu0 %v746_v14 }
 0x104   : > { %v694_v16 = vpop.f32.mrf.mxu0 }
 0x105   : > { %v459_v18 = vadd.f32 %v694_v16, %v326_v15 }
 0x106   : > { %v442_v19 = vpop.f32.mrf.mxu0 }
 0x107   : > { %463 = vst [vmem:[#allocation2 + $0x18] sm:$0xff] %v459_v18  ;;  %v457_v21 = vadd.f32 %v442_v19, %v324_v17 }
 0x108   : > { %v695_v22 = vpop.f32.mrf.mxu0 }
 0x109   : > { %461 = vst [vmem:[#allocation2 + $0x10] sm:$0xff] %v457_v21  ;;  %v460_v24 = vadd.f32 %v695_v22, %v327_v20  ;;  %468 = sbr.rel (%p659_p11) target bundleno = 298 (0x12a), region = 77 }
 0x10a   : > { %v445_v25 = vpop.f32.mrf.mxu0 }
 0x10b   : > { %464 = vst [vmem:[#allocation2 + $0x8] sm:$0xff] %v460_v24  ;;  %v458_v26 = vadd.f32 %v445_v25, %v325_v23 }
 0x10d   : > { %462 = vst [vmem:[#allocation2] sm:$0xff] %v458_v26 }
 0x10e   : > { %v471_v29 = vld [vmem:[#allocation2 + $0x18] sm:$0xff] }
 0x10f   : > { %475 = vst [vmem:[%s917_s2 + $0x10] sm:$0xff] %v471_v29  ;;  %v489_v33 = vmul.f32 %v471_v29, %v471_v29 }
 0x110   : > { %v469_v27 = vld [vmem:[#allocation2 + $0x10] sm:$0xff] }
 0x111   : > { %473 = vst [vmem:[%s917_s2] sm:$0xff] %v469_v27  ;;  %v487_v30 = vmul.f32 %v469_v27, %v469_v27 }
 0x112   : > { %v472_v34 = vld [vmem:[#allocation2 + $0x8] sm:$0xff] }
 0x113   : > { %476 = vst [vmem:[%s917_s2 + $0x18] sm:$0xff] %v472_v34  ;;  %v490_v37 = vmul.f32 %v472_v34, %v472_v34 }
 0x114   : > { %v470_v28 = vld [vmem:[#allocation2] sm:$0xff] }
 0x115   : > { %474 = vst [vmem:[%s917_s2 + $0x8] sm:$0xff] %v470_v28  ;;  %v477_v31 = vadd.f32 %v470_v28, %v469_v27  ;;  %v488_v32 = vmul.f32 %v470_v28, %v470_v28 }
 0x117   : > { %v491_v35 = vadd.f32 %v488_v32, %v487_v30  ;;  %v478_v36 = vadd.f32 %v477_v31, %v471_v29 }
 0x119   : > { %v492_v38 = vadd.f32 %v491_v35, %v489_v33  ;;  %v479_v39 = vadd.f32 %v478_v36, %v472_v34 }
 0x11b   : > { %v480_v40 = vrot.slane %v479_v39, 4  ;;  %v493_v41 = vadd.f32 %v492_v38, %v490_v37 }
 0x11d   : > { %v481_v42 = vadd.f32 %v480_v40, %v479_v39  ;;  %v494_v43 = vrot.slane %v493_v41, 4 }
 0x11f   : > { %v482_v44 = vrot.slane %v481_v42, 2  ;;  %v495_v45 = vadd.f32 %v494_v43, %v493_v41 }
 0x121   : > { %v483_v46 = vadd.f32 %v482_v44, %v481_v42  ;;  %v496_v47 = vrot.slane %v495_v45, 2 }
 0x123   : > { %v484_v48 = vrot.slane %v483_v46, 1  ;;  %v497_v49 = vadd.f32 %v496_v47, %v495_v45 }
 0x125   : > { %v485_v50 = vadd.f32 %v484_v48, %v483_v46  ;;  %v498_v51 = vrot.slane %v497_v49, 1 }
 0x127   : > { %486 = vst [vmem:[%s918_s3] sm:$0xff] %v485_v50  ;;  %v499_v52 = vadd.f32 %v498_v51, %v497_v49 }
 0x129   : > { %500 = vst [vmem:[%s919_s4] sm:$0xff] %v499_v52 }
 0x12a PF: > { %s15_s19 = sadd.s32 1, %s785_s19   ;;  %s920_s15 = smov %s773_s16 }
 0x12b   : > { %p12_p12 = scmp.ge.s32.totalorder %s15_s19, 7   ;;  %s921_s16 = smov %s848_s23 }
 0x12c   : > { %s922_s17 = smov %s781_s18  ;;  %s923_s18 = smov %s925_s20 }
 0x12d   :  { %14 = sbr.rel (!%p12_p12) target bundleno = 3 (0x3), region = 139 }

// kernel: resnet18_forward.56
= control target key start
LH: loop header
LB: loop body
LE: loop exit
PB: predicated region body
PF: predicated region fallthrough
CT: control target
= control target key end

     0   :  { %v54_v20 = vlaneseq  ;;  %s178_s1 = inlined_call_operand.vmem [shape: f32[8,128], index: 1, kind: input, shape index: {}]   ;;  %s179_s2 = inlined_call_operand.vmem [shape: f32[8,128], index: 2, kind: input, shape index: {}]   ;;  %s180_s3 = inlined_call_operand.vmem [shape: f32[1,128], index: 3, kind: input, shape index: {}]   ;;  %s181_s4 = inlined_call_operand.vmem [shape: f32[1,128], index: 4, kind: input, shape index: {}]   ;;  %s182_s0 = inlined_call_operand.vmem [shape: f32[32,128], index: 0, kind: input, shape index: {}]   ;;  %s183_s5 = inlined_call_operand.vmem [shape: f32[32,128], index: 5, kind: input, shape index: {}]   ;;  %s184_s6 = inlined_call_operand.vmem [shape: f32[32,128], index: 6, kind: output, shape index: {}]  }
   0x1   :  { %v23_v0 = vld [vmem:[%s178_s1] sm:$0xff]  ;;  %v50_v28 = vld [vmem:[%s182_s0 + $0x8] sm:$0xff]  ;;  %v51_v29 = vld [vmem:[%s182_s0 + $0x10] sm:$0xff] }
   0x2   :  { %v31_v1 = vld [vmem:[%s179_s2] sm:$0xff]  ;;  %v24_v2 = vrot.slane %v23_v0, 4  ;;  %v55_v21 = vshrl.u32 %v54_v20, 7  ;;  %v52_v32 = vld [vmem:[%s182_s0 + $0x18] sm:$0xff]  ;;  %v74_v40 = vld [vmem:[%s183_s5 + $0x8] sm:$0xff] }
   0x3   :  { %v32_v3 = vrot.slane %v31_v1, 4  ;;  %v42_v22 = vld [vmem:[%s180_s3] sm:$0x1]  ;;  %v75_v41 = vld [vmem:[%s183_s5 + $0x10] sm:$0xff]  ;;  %v76_v42 = vld [vmem:[%s183_s5 + $0x18] sm:$0xff] }
   0x4   :  { %v25_v4 = vadd.f32 %v24_v2, %v23_v0  ;;  %v56_v23 = vsub.s32 0, %v55_v21  ;;  %v46_v26 = vld [vmem:[%s181_s4] sm:$0x1] }
   0x5   :  { %v33_v5 = vadd.f32 %v32_v3, %v31_v1  ;;  %v49_v27 = vld [vmem:[%s182_s0] sm:$0xff] }
   0x6   :  { %v26_v6 = vrot.slane %v25_v4, 2  ;;  %v73_v39 = vld [vmem:[%s183_s5] sm:$0xff] }
   0x7   :  { %v34_v7 = vrot.slane %v33_v5, 2 }
   0x8   :  { %v27_v8 = vadd.f32 %v26_v6, %v25_v4 }
   0x9   :  { %v35_v9 = vadd.f32 %v34_v7, %v33_v5 }
   0xa   :  { %v28_v10 = vrot.slane %v27_v8, 1 }
   0xb   :  { %v36_v11 = vrot.slane %v35_v9, 1 }
   0xc   :  { %v29_v12 = vadd.f32 %v28_v10, %v27_v8 }
   0xd   :  { %v37_v13 = vadd.f32 %v36_v11, %v35_v9 }
   0xe   :  { %v30_v14 = vmul.f32 0.00390625, %v29_v12 }
   0xf   :  { %v38_v15 = vmul.f32 0.00390625, %v37_v13 }
  0x10   :  { %v39_v16 = vmul.f32 %v30_v14, %v30_v14 }
  0x12   :  { %v40_v17 = vsub.f32 %v38_v15, %v39_v16 }
  0x14   :  { %v41_v18 = vmax.f32 %v40_v17, 0.0 }
  0x16   :  { %v43_v19 = vadd.f32 1e-05, %v41_v18 }
  0x18   :  { %93 = vrsqrt.f32 %v43_v19 }
  0x25   :  { %v94_v24 = vpop.eup %93 }
  0x26   :  { %v45_v25 = vmul.f32 %v94_v24, %v42_v22 }
  0x28   :  { %v47_v30 = vmul.f32 %v45_v25, %v30_v14  ;;  %v57_v31 = vrot.slane %v45_v25, %v56_v23 }
  0x2a   :  { %v48_v33 = vsub.f32 %v46_v26, %v47_v30  ;;  %v59_v34 = vmul.f32 %v57_v31, %v49_v27  ;;  %v60_v35 = vmul.f32 %v57_v31, %v50_v28  ;;  %v61_v36 = vmul.f32 %v57_v31, %v51_v29 }
  0x2b   :  { %v62_v37 = vmul.f32 %v57_v31, %v52_v32 }
  0x2c   :  { %v67_v38 = vrot.slane %v48_v33, %v56_v23 }
  0x2e   :  { %v69_v43 = vadd.f32 %v67_v38, %v59_v34  ;;  %v70_v44 = vadd.f32 %v67_v38, %v60_v35  ;;  %v71_v45 = vadd.f32 %v67_v38, %v61_v36  ;;  %v72_v46 = vadd.f32 %v67_v38, %v62_v37 }
  0x30   :  { %v77_v47 = vadd.f32 %v73_v39, %v69_v43  ;;  %v78_v48 = vadd.f32 %v74_v40, %v70_v44  ;;  %v79_v49 = vadd.f32 %v75_v41, %v71_v45  ;;  %v80_v50 = vadd.f32 %v76_v42, %v72_v46 }
  0x32   :  { %v81_v51 = vmax.f32 %v77_v47, 0.0  ;;  %v82_v52 = vmax.f32 %v78_v48, 0.0  ;;  %v83_v53 = vmax.f32 %v79_v49, 0.0  ;;  %v84_v54 = vmax.f32 %v80_v50, 0.0 }
  0x34   :  { %85 = vst [vmem:[%s184_s6] sm:$0xff] %v81_v51  ;;  %86 = vst [vmem:[%s184_s6 + $0x8] sm:$0xff] %v82_v52 }
  0x35   :  { %87 = vst [vmem:[%s184_s6 + $0x10] sm:$0xff] %v83_v53  ;;  %88 = vst [vmem:[%s184_s6 + $0x18] sm:$0xff] %v84_v54 }

// kernel: resnet18_forward.55
= control target key start
LH: loop header
LB: loop body
LE: loop exit
PB: predicated region body
PF: predicated region fallthrough
CT: control target
= control target key end

     0   :  { %s813_s15 = smov 0   ;;  %s815_s16 = smov 0   ;;  %s915_s0 = inlined_call_operand.vmem [shape: bf16[32,1152], index: 0, kind: input, shape index: {}]   ;;  %s916_s1 = inlined_call_operand.vmem [shape: bf16[1152,128], index: 1, kind: input, shape index: {}]   ;;  %s917_s2 = inlined_call_operand.vmem [shape: f32[32,128], index: 2, kind: output, shape index: {0}]   ;;  %s918_s3 = inlined_call_operand.vmem [shape: f32[8,128], index: 3, kind: output, shape index: {1}]   ;;  %s919_s4 = inlined_call_operand.vmem [shape: f32[8,128], index: 4, kind: output, shape index: {2}]  }
   0x1   :  { %s817_s17 = smov 0   ;;  %s819_s18 = smov 0  }
   0x2   :  { %s821_s19 = smov 0  }
   0x3 LB: > { %s24_s20 = sadd.s32 1, %s781_s18  ;;  %p43_p1 = scmp.ne.s32.totalorder %s773_s16, %s769_s15  ;;  %s785_s19 = sphi %s821_s19, %s15_s19   ;;  %s781_s18 = sphi %s819_s18, %s923_s18   ;;  %s777_s17 = sphi %s817_s17, %s922_s17   ;;  %s773_s16 = sphi %s815_s16, %s921_s16   ;;  %s769_s15 = sphi %s813_s15, %s920_s15  }
   0x4   : > { %p25_p0 = scmp.ge.s32.totalorder %s24_s20, 9  ;;  %p44_p2 = scmp.eq.s32.totalorder %s785_s19, 0 }
   0x5   : > { %s36_s22 = sadd.s32 1, %s773_s16  ;;  %p641_p5 = scmp.ge.s32.totalorder %s785_s19, 9 }
   0x6   : > { %s925_s20 = smov (%p25_p0, %s24_s20), 0  ;;  %p45_p3 = por %p44_p2, %p43_p1 }
   0x7   : > { %s32_s21 = ssub.s32 %s781_s18, %s925_s20  ;;  %173 = sbr.rel (%p641_p5) target bundleno = 18 (0x12), region = 16 }
   0x8   : > { %p34_p4 = scmp.eq.s32.totalorder %s32_s21, 0 }
   0xa   : > { %s848_s23 = scalar_select %p34_p4, %s773_s16, %s36_s22  }
   0xc   : > { %176 = sbr.rel (!%p45_p3) target bundleno = 18 (0x12), region = 20  ;;  %s178_s24 = sand.u32 (%p45_p3), 1, %s773_s16  }
   0xd   : > { %s643_s25 = sshll.u32 (%p45_p3), %s781_s18, 2  ;;  %s642_s26 = sshll.u32 (%p45_p3), %s178_s24, 4 }
   0xe   : > { %s185_s29 = scalar_lea.vmem (%p45_p3), %s915_s0, %s643_s25  ;;  %s180_s30 = scalar_lea.vmem (%p45_p3), [#allocation3], %s642_s26 }
   0xf   : > { %v202_v0 = vld [vmem:[%s185_s29] sm:$0xf] (%p45_p3)  ;;  %v204_v1 = vld [vmem:[%s185_s29 + $0x24] sm:$0xf] (%p45_p3)  ;;  %v206_v2 = vld [vmem:[%s185_s29 + $0x48] sm:$0xf] (%p45_p3) }
  0x10   : > { %203 = vst [vmem:[%s180_s30] sm:$0xf] (%p45_p3), %v202_v0  ;;  %205 = vst [vmem:[%s180_s30 + $0x4] sm:$0xf] (%p45_p3), %v204_v1  ;;  %v208_v3 = vld [vmem:[%s185_s29 + $0x6c] sm:$0xf] (%p45_p3) }
  0x11   : > { %207 = vst [vmem:[%s180_s30 + $0x8] sm:$0xf] %v206_v2  ;;  %209 = vst [vmem:[%s180_s30 + $0xc] sm:$0xf] %v208_v3 }
  0x12 PF: > { %p644_p6 = scmp.ge.s32.totalorder %s785_s19, 1  ;;  %p249_p7 = scmp.lt.s32.totalorder %s785_s19, 10 }
  0x14   : > { %p250_p8 = pnand %p644_p6, %p249_p7 }
  0x15   : > { %s256_s5 = sand.u32 (!%p250_p8), 1, %s769_s15   ;;  %s646_s6 = sshll.u32 (!%p250_p8), %s777_s17, 4 }
  0x16   : > { %253 = sbr.rel (%p250_p8) target bundleno = 298 (0x12a), region = 65  ;;  %s860_s7 = sshll.u32 (!%p250_p8), %s256_s5, 4 }
  0x17   : > { %p296_p9 = scmp.lt.s32.totalorder (!%p250_p8), %s646_s6, 143  ;;  %s258_s12 = scalar_lea.vmem (!%p250_p8), [#allocation3], %s860_s7 }
  0x18   : > { %p648_p10 = scmp.ne.s32.totalorder (!%p250_p8), %s777_s17, 0 }
  0x1b   : > { %s927_s6 = smov (!%p296_p9, %s646_s6), 143  ;;  %319 = sbr.rel (%p648_p10) target bundleno = 35 (0x23), region = 73 }
  0x1c   : > { %s647_s8 = sshll.u32 %s927_s6, 2 }
  0x1d   : > { %s865_s11 = scalar_lea.vmem %s916_s1, %s647_s8 }
  0x20   : > { %v787_v4 = vmov 0.0  }
  0x21   : > { %320 = vst [vmem:[#allocation2 + $0x10] sm:$0xff] %v787_v4  ;;  %321 = vst [vmem:[#allocation2] sm:$0xff] %v787_v4 }
  0x22   : > { %322 = vst [vmem:[#allocation2 + $0x18] sm:$0xff] %v787_v4  ;;  %323 = vst [vmem:[#allocation2 + $0x8] sm:$0xff] %v787_v4 }
  0x23 PF: > { %v737_v5 = vld [vmem:[%s865_s11 + $0x38] sm:$0xff]   ;;  %v738_v6 = vld [vmem:[%s865_s11 + $0x30] sm:$0xff]   ;;  %v739_v7 = vld [vmem:[%s865_s11 + $0x28] sm:$0xff]   ;;  %p659_p11 = scmp.ne.s32.totalorder %s777_s17, 8 }
  0x24   : > { %676 = vmatprep.subr.bf16.mxu0 %v737_v5  ;;  %v740_v8 = vld [vmem:[%s865_s11 + $0x20] sm:$0xff]   ;;  %v741_v10 = vld [vmem:[%s865_s11 + $0x18] sm:$0xff]   ;;  %v742_v11 = vld [vmem:[%s865_s11 + $0x10] sm:$0xff]  }
  0x25   : > { %677 = vmatpush3.bf16.msra.mxu0 %v737_v5  ;;  %v745_v9 = vld [vmem:[%s258_s12] sm:$0xff]   ;;  %v743_v12 = vld [vmem:[%s865_s11 + $0x8] sm:$0xff]  }
  0x26   : > { %678 = vmatprep.subr.bf16.mxu0 %v738_v6  ;;  %692 = vmatprep.mubr.bf16.mxu0 %v745_v9  ;;  %v744_v13 = vld [vmem:[%s865_s11] sm:$0xff]   ;;  %v746_v14 = vld [vmem:[%s258_s12 + $0x8] sm:$0xff]  }
  0x28   : > { %v324_v17 = vld [vmem:[#allocation2 + $0x10] sm:$0xff]  ;;  %v325_v23 = vld [vmem:[#allocation2] sm:$0xff] }
  0x29   : > { %679 = vmatpush3.bf16.msra.mxu0 %v738_v6  ;;  %v326_v15 = vld [vmem:[#allocation2 + $0x18] sm:$0xff]  ;;  %v327_v20 = vld [vmem:[#allocation2 + $0x8] sm:$0xff] }
  0x2a   : > { %680 = vmatprep.subr.bf16.mxu0 %v739_v7 }
  0x2d   : > { %681 = vmatpush3.bf16.msra.mxu0 %v739_v7 }
  0x2e   : > { %682 = vmatprep.subr.bf16.mxu0 %v740_v8 }
  0x31   : > { %683 = vmatpush3.bf16.msra.mxu0 %v740_v8 }
  0x32   : > { %684 = vmatprep.subr.bf16.mxu0 %v741_v10 }
  0x35   : > { %685 = vmatpush3.bf16.msra.mxu0 %v741_v10 }
  0x36   : > { %686 = vmatprep.subr.bf16.mxu0 %v742_v11 }
  0x39   : > { %687 = vmatpush3.bf16.msra.mxu0 %v742_v11 }
  0x3a   : > { %688 = vmatprep.subr.bf16.mxu0 %v743_v12 }
  0x3d   : > { %689 = vmatpush3.bf16.msra.mxu0 %v743_v12 }
  0x3e   : > { %690 = vmatprep.subr.bf16.mxu0 %v744_v13 }
  0x41   : > { %691 = vmatpush3.bf16.msra.mxu0 %v744_v13 }
  0x44   : > { %693 = vmatmul.mubr.bf16.vlgmr.msra.gmra.mxu0 %v746_v14 }
 0x104   : > { %v694_v16 = vpop.f32.mrf.mxu0 }
 0x105   : > { %v459_v18 = vadd.f32 %v694_v16, %v326_v15 }
 0x106   : > { %v442_v19 = vpop.f32.mrf.mxu0 }
 0x107   : > { %463 = vst [vmem:[#allocation2 + $0x18] sm:$0xff] %v459_v18  ;;  %v457_v21 = vadd.f32 %v442_v19, %v324_v17 }
 0x108   : > { %v695_v22 = vpop.f32.mrf.mxu0 }
 0x109   : > { %461 = vst [vmem:[#allocation2 + $0x10] sm:$0xff] %v457_v21  ;;  %v460_v24 = vadd.f32 %v695_v22, %v327_v20  ;;  %468 = sbr.rel (%p659_p11) target bundleno = 298 (0x12a), region = 77 }
 0x10a   : > { %v445_v25 = vpop.f32.mrf.mxu0 }
 0x10b   : > { %464 = vst [vmem:[#allocation2 + $0x8] sm:$0xff] %v460_v24  ;;  %v458_v26 = vadd.f32 %v445_v25, %v325_v23 }
 0x10d   : > { %462 = vst [vmem:[#allocation2] sm:$0xff] %v458_v26 }
 0x10e   : > { %v471_v29 = vld [vmem:[#allocation2 + $0x18] sm:$0xff] }
 0x10f   : > { %475 = vst [vmem:[%s917_s2 + $0x10] sm:$0xff] %v471_v29  ;;  %v489_v33 = vmul.f32 %v471_v29, %v471_v29 }
 0x110   : > { %v469_v27 = vld [vmem:[#allocation2 + $0x10] sm:$0xff] }
 0x111   : > { %473 = vst [vmem:[%s917_s2] sm:$0xff] %v469_v27  ;;  %v487_v30 = vmul.f32 %v469_v27, %v469_v27 }
 0x112   : > { %v472_v34 = vld [vmem:[#allocation2 + $0x8] sm:$0xff] }
 0x113   : > { %476 = vst [vmem:[%s917_s2 + $0x18] sm:$0xff] %v472_v34  ;;  %v490_v37 = vmul.f32 %v472_v34, %v472_v34 }
 0x114   : > { %v470_v28 = vld [vmem:[#allocation2] sm:$0xff] }
 0x115   : > { %474 = vst [vmem:[%s917_s2 + $0x8] sm:$0xff] %v470_v28  ;;  %v477_v31 = vadd.f32 %v470_v28, %v469_v27  ;;  %v488_v32 = vmul.f32 %v470_v28, %v470_v28 }
 0x117   : > { %v491_v35 = vadd.f32 %v488_v32, %v487_v30  ;;  %v478_v36 = vadd.f32 %v477_v31, %v471_v29 }
 0x119   : > { %v492_v38 = vadd.f32 %v491_v35, %v489_v33  ;;  %v479_v39 = vadd.f32 %v478_v36, %v472_v34 }
 0x11b   : > { %v480_v40 = vrot.slane %v479_v39, 4  ;;  %v493_v41 = vadd.f32 %v492_v38, %v490_v37 }
 0x11d   : > { %v481_v42 = vadd.f32 %v480_v40, %v479_v39  ;;  %v494_v43 = vrot.slane %v493_v41, 4 }
 0x11f   : > { %v482_v44 = vrot.slane %v481_v42, 2  ;;  %v495_v45 = vadd.f32 %v494_v43, %v493_v41 }
 0x121   : > { %v483_v46 = vadd.f32 %v482_v44, %v481_v42  ;;  %v496_v47 = vrot.slane %v495_v45, 2 }
 0x123   : > { %v484_v48 = vrot.slane %v483_v46, 1  ;;  %v497_v49 = vadd.f32 %v496_v47, %v495_v45 }
 0x125   : > { %v485_v50 = vadd.f32 %v484_v48, %v483_v46  ;;  %v498_v51 = vrot.slane %v497_v49, 1 }
 0x127   : > { %486 = vst [vmem:[%s918_s3] sm:$0xff] %v485_v50  ;;  %v499_v52 = vadd.f32 %v498_v51, %v497_v49 }
 0x129   : > { %500 = vst [vmem:[%s919_s4] sm:$0xff] %v499_v52 }
 0x12a PF: > { %s15_s19 = sadd.s32 1, %s785_s19   ;;  %s920_s15 = smov %s773_s16 }
 0x12b   : > { %p12_p12 = scmp.ge.s32.totalorder %s15_s19, 11   ;;  %s921_s16 = smov %s848_s23 }
 0x12c   : > { %s922_s17 = smov %s781_s18  ;;  %s923_s18 = smov %s925_s20 }
 0x12d   :  { %14 = sbr.rel (!%p12_p12) target bundleno = 3 (0x3), region = 139 }

// kernel: resnet18_forward.64
= control target key start
LH: loop header
LB: loop body
LE: loop exit
PB: predicated region body
PF: predicated region fallthrough
CT: control target
= control target key end

     0   :  { %v143_v40 = vmov 1966171168   ;;  %v69_v42 = vlaneseq  ;;  %s204_s1 = inlined_call_operand.vmem [shape: f32[8,256], index: 1, kind: input, shape index: {}]   ;;  %s205_s2 = inlined_call_operand.vmem [shape: f32[8,256], index: 2, kind: input, shape index: {}]   ;;  %s206_s3 = inlined_call_operand.vmem [shape: f32[1,256], index: 3, kind: input, shape index: {}]   ;;  %s207_s0 = inlined_call_operand.vmem [shape: f32[8,256], index: 0, kind: input, shape index: {}]   ;;  %s208_s4 = inlined_call_operand.vmem [shape: f32[1,256], index: 4, kind: input, shape index: {}]   ;;  %s209_s5 = inlined_call_operand.vmem [shape: f32[8,256], index: 5, kind: output, shape index: {}]  }
   0x1   :  { %v20_v0 = vld [vmem:[%s204_s1] sm:$0xff]  ;;  %v21_v1 = vld [vmem:[%s204_s1 + $0x8] sm:$0xff]  ;;  %v67_v41 = vunpack.c.l.s4 %v143_v40 }
   0x2   :  { %v36_v2 = vld [vmem:[%s205_s2] sm:$0xff]  ;;  %v22_v3 = vrot.slane %v20_v0, 4  ;;  %v28_v4 = vrot.slane %v21_v1, 4  ;;  %v37_v5 = vld [vmem:[%s205_s2 + $0x8] sm:$0xff]  ;;  %v70_v44 = vshrl.u32 %v69_v42, 7 }
   0x3   :  { %v38_v6 = vrot.slane %v36_v2, 4  ;;  %v44_v7 = vrot.slane %v37_v5, 4  ;;  %v68_v43 = vunpack.c.0.s8 %v67_v41  ;;  %v58_v50 = vld [vmem:[%s206_s3] sm:$0x3]  ;;  %v116_v63 = vld [vmem:[%s207_s0 + $0x8] sm:$0xff] }
   0x4   :  { %v23_v8 = vadd.f32 %v22_v3, %v20_v0  ;;  %v29_v9 = vadd.f32 %v28_v4, %v21_v1  ;;  %v86_v52 = vsub.s32 0, %v70_v44  ;;  %v90_v53 = vsub.s32 1, %v70_v44  ;;  %v82_v61 = vld [vmem:[%s208_s4] sm:$0x3] }
   0x5   :  { %v39_v10 = vadd.f32 %v38_v6, %v36_v2  ;;  %v45_v11 = vadd.f32 %v44_v7, %v37_v5  ;;  %v71_v46 = vsub.s32 %v68_v43, %v70_v44  ;;  %v115_v62 = vld [vmem:[%s207_s0] sm:$0xff] }
   0x6   :  { %v24_v12 = vrot.slane %v23_v8, 2  ;;  %v30_v13 = vrot.slane %v29_v9, 2 }
   0x7   :  { %v40_v14 = vrot.slane %v39_v10, 2  ;;  %v46_v15 = vrot.slane %v45_v11, 2 }
   0x8   :  { %v25_v16 = vadd.f32 %v24_v12, %v23_v8  ;;  %v31_v17 = vadd.f32 %v30_v13, %v29_v9 }
   0x9   :  { %v41_v18 = vadd.f32 %v40_v14, %v39_v10  ;;  %v47_v19 = vadd.f32 %v46_v15, %v45_v11 }
   0xa   :  { %v26_v20 = vrot.slane %v25_v16, 1  ;;  %v32_v21 = vrot.slane %v31_v17, 1 }
   0xb   :  { %v42_v22 = vrot.slane %v41_v18, 1  ;;  %v48_v23 = vrot.slane %v47_v19, 1 }
   0xc   :  { %v27_v24 = vadd.f32 %v26_v20, %v25_v16  ;;  %v33_v25 = vadd.f32 %v32_v21, %v31_v17 }
   0xd   :  { %v43_v26 = vadd.f32 %v42_v22, %v41_v18  ;;  %v49_v27 = vadd.f32 %v48_v23, %v47_v19 }
   0xe   :  { %v34_v28 = vmul.f32 0.015625, %v27_v24  ;;  %v35_v29 = vmul.f32 0.015625, %v33_v25 }
   0xf   :  { %v50_v30 = vmul.f32 0.015625, %v43_v26  ;;  %v51_v31 = vmul.f32 0.015625, %v49_v27 }
  0x10   :  { %v52_v32 = vmul.f32 %v34_v28, %v34_v28  ;;  %v53_v33 = vmul.f32 %v35_v29, %v35_v29 }
  0x12   :  { %v54_v34 = vsub.f32 %v50_v30, %v52_v32  ;;  %v55_v35 = vsub.f32 %v51_v31, %v53_v33 }
  0x14   :  { %v56_v36 = vmax.f32 %v54_v34, 0.0  ;;  %v57_v37 = vmax.f32 %v55_v35, 0.0 }
  0x16   :  { %v59_v38 = vadd.f32 1e-05, %v56_v36  ;;  %v60_v39 = vadd.f32 1e-05, %v57_v37 }
  0x18   :  { %139 = vrsqrt.f32 %v59_v38 }
  0x19   :  { %141 = vrsqrt.f32 %v60_v39 }
  0x25   :  { %v140_v45 = vpop.eup %139 }
  0x26   :  { %v142_v47 = vpop.eup %141 }
  0x27   :  { %v65_v48 = vcombine.low %v140_v45, %v142_v47 }
  0x29   :  { %v72_v49 = vrot.slane %v65_v48, %v71_v46 }
  0x2b   :  { %v79_v51 = vrot.slane %v72_v49, %v71_v46 }
  0x2d   :  { %v81_v54 = vmul.f32 %v79_v51, %v58_v50 }
  0x2f   :  { %v87_v55 = vrot.slane %v81_v54, %v86_v52  ;;  %v91_v56 = vrot.slane %v81_v54, %v90_v53 }
  0x31   :  { %v94_v57 = vmul.f32 %v87_v55, %v34_v28  ;;  %v95_v58 = vmul.f32 %v91_v56, %v35_v29  ;;  %v117_v2 = vmul.f32 %v115_v62, %v87_v55  ;;  %v118_v3 = vmul.f32 %v116_v63, %v91_v56 }
  0x33   :  { %v98_v59 = vcombine.low %v94_v57, %v95_v58 }
  0x35   :  { %v105_v60 = vrot.slane %v98_v59, %v71_v46 }
  0x37   :  { %v112_v0 = vrot.slane %v105_v60, %v71_v46 }
  0x39   :  { %v114_v1 = vsub.f32 %v82_v61, %v112_v0 }
  0x3b   :  { %v123_v4 = vrot.slane %v114_v1, %v86_v52  ;;  %v127_v5 = vrot.slane %v114_v1, %v90_v53 }
  0x3d   :  { %v130_v6 = vadd.f32 %v123_v4, %v117_v2  ;;  %v131_v7 = vadd.f32 %v127_v5, %v118_v3 }
  0x3f   :  { %132 = vst [vmem:[%s209_s5] sm:$0xff] %v130_v6  ;;  %133 = vst [vmem:[%s209_s5 + $0x8] sm:$0xff] %v131_v7 }

// kernel: resnet18_forward.63
= control target key start
LH: loop header
LB: loop body
LE: loop exit
PB: predicated region body
PF: predicated region fallthrough
CT: control target
= control target key end

     0   :  { %v255_v1 = vmov 0   ;;  %s350_s1 = inlined_call_operand.vmem [shape: bf16[128,256], index: 1, kind: input, shape index: {}]   ;;  %s351_s0 = inlined_call_operand.vmem [shape: bf16[8,128], index: 0, kind: input, shape index: {}]   ;;  %s352_s2 = inlined_call_operand.vmem [shape: f32[8,256], index: 2, kind: output, shape index: {0}]   ;;  %s353_s3 = inlined_call_operand.vmem [shape: f32[8,256], index: 3, kind: output, shape index: {1}]   ;;  %s354_s4 = inlined_call_operand.vmem [shape: f32[8,256], index: 4, kind: output, shape index: {2}]  }
   0x1   :  { %v231_v0 = vld [vmem:[%s350_s1 + $0x74] ss:$8 sps:$4 sm:$0xff]   ;;  %152 = vmatprep.mubr.bf16.mxu0 %v255_v1  ;;  %v233_v2 = vld [vmem:[%s350_s1 + $0x70] ss:$8 sps:$4 sm:$0xff]   ;;  %v234_v3 = vld [vmem:[%s350_s1 + $0x64] ss:$8 sps:$4 sm:$0xff]  }
   0x2   :  { %120 = vmatprep.subr.bf16.mxu0 %v231_v0  ;;  %v236_v4 = vld [vmem:[%s350_s1 + $0x60] ss:$8 sps:$4 sm:$0xff]   ;;  %v237_v5 = vld [vmem:[%s350_s1 + $0x54] ss:$8 sps:$4 sm:$0xff]   ;;  %v239_v6 = vld [vmem:[%s350_s1 + $0x50] ss:$8 sps:$4 sm:$0xff]  }
   0x3   :  { %121 = vmatpush1.bf16.msra.mxu0 %v233_v2  ;;  %v240_v7 = vld [vmem:[%s350_s1 + $0x44] ss:$8 sps:$4 sm:$0xff]   ;;  %v242_v8 = vld [vmem:[%s350_s1 + $0x40] ss:$8 sps:$4 sm:$0xff]   ;;  %v243_v9 = vld [vmem:[%s350_s1 + $0x34] ss:$8 sps:$4 sm:$0xff]  }
   0x4   :  { %122 = vmatprep.subr.bf16.mxu0 %v234_v3  ;;  %v245_v10 = vld [vmem:[%s350_s1 + $0x30] ss:$8 sps:$4 sm:$0xff]   ;;  %v246_v11 = vld [vmem:[%s350_s1 + $0x24] ss:$8 sps:$4 sm:$0xff]   ;;  %v248_v12 = vld [vmem:[%s350_s1 + $0x20] ss:$8 sps:$4 sm:$0xff]  }
   0x5   :  { %v249_v13 = vld [vmem:[%s350_s1 + $0x14] ss:$8 sps:$4 sm:$0xff]   ;;  %v251_v14 = vld [vmem:[%s350_s1 + $0x10] ss:$8 sps:$4 sm:$0xff]   ;;  %v252_v15 = vld [vmem:[%s350_s1 + $0x4] ss:$8 sps:$4 sm:$0xff]  }
   0x6   :  { %v254_v16 = vld [vmem:[%s350_s1] ss:$8 sps:$4 sm:$0xff]  }
   0x7   :  { %123 = vmatpush1.bf16.msra.mxu0 %v236_v4  ;;  %v23_v17 = vld [vmem:[%s351_s0] sm:$0xf] }
   0x8   :  { %124 = vmatprep.subr.bf16.mxu0 %v237_v5 }
   0xb   :  { %125 = vmatpush1.bf16.msra.mxu0 %v239_v6 }
   0xc   :  { %126 = vmatprep.subr.bf16.mxu0 %v240_v7 }
   0xf   :  { %127 = vmatpush1.bf16.msra.mxu0 %v242_v8 }
  0x10   :  { %128 = vmatprep.subr.bf16.mxu0 %v243_v9 }
  0x13   :  { %129 = vmatpush1.bf16.msra.mxu0 %v245_v10 }
  0x14   :  { %130 = vmatprep.subr.bf16.mxu0 %v246_v11 }
  0x17   :  { %131 = vmatpush1.bf16.msra.mxu0 %v248_v12 }
  0x18   :  { %132 = vmatprep.subr.bf16.mxu0 %v249_v13 }
  0x1b   :  { %133 = vmatpush1.bf16.msra.mxu0 %v251_v14 }
  0x1c   :  { %134 = vmatprep.subr.bf16.mxu0 %v252_v15 }
  0x1f   :  { %135 = vmatpush1.bf16.msra.mxu0 %v254_v16 }
  0x22   :  { %153 = vmatmul.mubr.bf16.vlgmr.msra.gmra.mxu0 %v23_v17 }
  0xe2   :  { %v154_v18 = vpop.f32.mrf.mxu0 }
  0xe3   :  { %170 = vst [vmem:[%s352_s2] sm:$0xff] %v154_v18  ;;  %v172_v19 = vrot.slane %v154_v18, 4  ;;  %v186_v20 = vmul.f32 %v154_v18, %v154_v18 }
  0xe4   :  { %v156_v21 = vpop.f32.mrf.mxu0 }
  0xe5   :  { %v173_v22 = vadd.f32 %v172_v19, %v154_v18  ;;  %v188_v23 = vrot.slane %v186_v20, 4  ;;  %171 = vst [vmem:[%s352_s2 + $0x8] sm:$0xff] %v156_v21  ;;  %v178_v24 = vrot.slane %v156_v21, 4  ;;  %v187_v25 = vmul.f32 %v156_v21, %v156_v21 }
  0xe6   :  { %v158_v26 = vpop.f32.mrf.mxu0 }
  0xe7   :  { %v174_v27 = vrot.slane %v173_v22, 2  ;;  %v189_v28 = vadd.f32 %v188_v23, %v186_v20  ;;  %v179_v29 = vadd.f32 %v178_v24, %v156_v21  ;;  %v194_v30 = vrot.slane %v187_v25, 4 }
  0xe8   :  { %v159_v31 = vpop.f32.mrf.mxu0 }
  0xe9   :  { %v175_v32 = vadd.f32 %v174_v27, %v173_v22  ;;  %v190_v33 = vrot.slane %v189_v28, 2  ;;  %v180_v34 = vrot.slane %v179_v29, 2  ;;  %v195_v35 = vadd.f32 %v194_v30, %v187_v25 }
  0xeb   :  { %v176_v36 = vrot.slane %v175_v32, 1  ;;  %v191_v37 = vadd.f32 %v190_v33, %v189_v28  ;;  %v181_v38 = vadd.f32 %v180_v34, %v179_v29  ;;  %v196_v39 = vrot.slane %v195_v35, 2 }
  0xed   :  { %v177_v40 = vadd.f32 %v176_v36, %v175_v32  ;;  %v192_v41 = vrot.slane %v191_v37, 1  ;;  %v182_v42 = vrot.slane %v181_v38, 1  ;;  %v197_v43 = vadd.f32 %v196_v39, %v195_v35 }
  0xef   :  { %184 = vst [vmem:[%s353_s3] sm:$0xff] %v177_v40  ;;  %v193_v44 = vadd.f32 %v192_v41, %v191_v37  ;;  %v183_v45 = vadd.f32 %v182_v42, %v181_v38  ;;  %v198_v46 = vrot.slane %v197_v43, 1 }
  0xf1   :  { %200 = vst [vmem:[%s354_s4] sm:$0xff] %v193_v44  ;;  %185 = vst [vmem:[%s353_s3 + $0x8] sm:$0xff] %v183_v45  ;;  %v199_v47 = vadd.f32 %v198_v46, %v197_v43 }
  0xf3   :  { %201 = vst [vmem:[%s354_s4 + $0x8] sm:$0xff] %v199_v47 }

// kernel: resnet18_forward.62
= control target key start
LH: loop header
LB: loop body
LE: loop exit
PB: predicated region body
PF: predicated region fallthrough
CT: control target
= control target key end

     0   :  { %v145_v40 = vmov 1966171168   ;;  %v69_v42 = vlaneseq  ;;  %s206_s1 = inlined_call_operand.vmem [shape: f32[8,256], index: 1, kind: input, shape index: {}]   ;;  %s207_s2 = inlined_call_operand.vmem [shape: f32[8,256], index: 2, kind: input, shape index: {}]   ;;  %s208_s3 = inlined_call_operand.vmem [shape: f32[1,256], index: 3, kind: input, shape index: {}]   ;;  %s209_s0 = inlined_call_operand.vmem [shape: f32[8,256], index: 0, kind: input, shape index: {}]   ;;  %s210_s4 = inlined_call_operand.vmem [shape: f32[1,256], index: 4, kind: input, shape index: {}]   ;;  %s211_s5 = inlined_call_operand.vmem [shape: f32[8,256], index: 5, kind: output, shape index: {}]  }
   0x1   :  { %v20_v0 = vld [vmem:[%s206_s1] sm:$0xff]  ;;  %v21_v1 = vld [vmem:[%s206_s1 + $0x8] sm:$0xff]  ;;  %v67_v41 = vunpack.c.l.s4 %v145_v40 }
   0x2   :  { %v36_v2 = vld [vmem:[%s207_s2] sm:$0xff]  ;;  %v22_v3 = vrot.slane %v20_v0, 4  ;;  %v28_v4 = vrot.slane %v21_v1, 4  ;;  %v37_v5 = vld [vmem:[%s207_s2 + $0x8] sm:$0xff]  ;;  %v70_v44 = vshrl.u32 %v69_v42, 7 }
   0x3   :  { %v38_v6 = vrot.slane %v36_v2, 4  ;;  %v44_v7 = vrot.slane %v37_v5, 4  ;;  %v68_v43 = vunpack.c.0.s8 %v67_v41  ;;  %v58_v50 = vld [vmem:[%s208_s3] sm:$0x3]  ;;  %v116_v63 = vld [vmem:[%s209_s0 + $0x8] sm:$0xff] }
   0x4   :  { %v23_v8 = vadd.f32 %v22_v3, %v20_v0  ;;  %v29_v9 = vadd.f32 %v28_v4, %v21_v1  ;;  %v86_v52 = vsub.s32 0, %v70_v44  ;;  %v90_v53 = vsub.s32 1, %v70_v44  ;;  %v82_v61 = vld [vmem:[%s210_s4] sm:$0x3] }
   0x5   :  { %v39_v10 = vadd.f32 %v38_v6, %v36_v2  ;;  %v45_v11 = vadd.f32 %v44_v7, %v37_v5  ;;  %v71_v46 = vsub.s32 %v68_v43, %v70_v44  ;;  %v115_v62 = vld [vmem:[%s209_s0] sm:$0xff] }
   0x6   :  { %v24_v12 = vrot.slane %v23_v8, 2  ;;  %v30_v13 = vrot.slane %v29_v9, 2 }
   0x7   :  { %v40_v14 = vrot.slane %v39_v10, 2  ;;  %v46_v15 = vrot.slane %v45_v11, 2 }
   0x8   :  { %v25_v16 = vadd.f32 %v24_v12, %v23_v8  ;;  %v31_v17 = vadd.f32 %v30_v13, %v29_v9 }
   0x9   :  { %v41_v18 = vadd.f32 %v40_v14, %v39_v10  ;;  %v47_v19 = vadd.f32 %v46_v15, %v45_v11 }
   0xa   :  { %v26_v20 = vrot.slane %v25_v16, 1  ;;  %v32_v21 = vrot.slane %v31_v17, 1 }
   0xb   :  { %v42_v22 = vrot.slane %v41_v18, 1  ;;  %v48_v23 = vrot.slane %v47_v19, 1 }
   0xc   :  { %v27_v24 = vadd.f32 %v26_v20, %v25_v16  ;;  %v33_v25 = vadd.f32 %v32_v21, %v31_v17 }
   0xd   :  { %v43_v26 = vadd.f32 %v42_v22, %v41_v18  ;;  %v49_v27 = vadd.f32 %v48_v23, %v47_v19 }
   0xe   :  { %v34_v28 = vmul.f32 0.015625, %v27_v24  ;;  %v35_v29 = vmul.f32 0.015625, %v33_v25 }
   0xf   :  { %v50_v30 = vmul.f32 0.015625, %v43_v26  ;;  %v51_v31 = vmul.f32 0.015625, %v49_v27 }
  0x10   :  { %v52_v32 = vmul.f32 %v34_v28, %v34_v28  ;;  %v53_v33 = vmul.f32 %v35_v29, %v35_v29 }
  0x12   :  { %v54_v34 = vsub.f32 %v50_v30, %v52_v32  ;;  %v55_v35 = vsub.f32 %v51_v31, %v53_v33 }
  0x14   :  { %v56_v36 = vmax.f32 %v54_v34, 0.0  ;;  %v57_v37 = vmax.f32 %v55_v35, 0.0 }
  0x16   :  { %v59_v38 = vadd.f32 1e-05, %v56_v36  ;;  %v60_v39 = vadd.f32 1e-05, %v57_v37 }
  0x18   :  { %141 = vrsqrt.f32 %v59_v38 }
  0x19   :  { %143 = vrsqrt.f32 %v60_v39 }
  0x25   :  { %v142_v45 = vpop.eup %141 }
  0x26   :  { %v144_v47 = vpop.eup %143 }
  0x27   :  { %v65_v48 = vcombine.low %v142_v45, %v144_v47 }
  0x29   :  { %v72_v49 = vrot.slane %v65_v48, %v71_v46 }
  0x2b   :  { %v79_v51 = vrot.slane %v72_v49, %v71_v46 }
  0x2d   :  { %v81_v54 = vmul.f32 %v79_v51, %v58_v50 }
  0x2f   :  { %v87_v55 = vrot.slane %v81_v54, %v86_v52  ;;  %v91_v56 = vrot.slane %v81_v54, %v90_v53 }
  0x31   :  { %v94_v57 = vmul.f32 %v87_v55, %v34_v28  ;;  %v95_v58 = vmul.f32 %v91_v56, %v35_v29  ;;  %v117_v2 = vmul.f32 %v115_v62, %v87_v55  ;;  %v118_v3 = vmul.f32 %v116_v63, %v91_v56 }
  0x33   :  { %v98_v59 = vcombine.low %v94_v57, %v95_v58 }
  0x35   :  { %v105_v60 = vrot.slane %v98_v59, %v71_v46 }
  0x37   :  { %v112_v0 = vrot.slane %v105_v60, %v71_v46 }
  0x39   :  { %v114_v1 = vsub.f32 %v82_v61, %v112_v0 }
  0x3b   :  { %v123_v4 = vrot.slane %v114_v1, %v86_v52  ;;  %v127_v5 = vrot.slane %v114_v1, %v90_v53 }
  0x3d   :  { %v130_v6 = vadd.f32 %v123_v4, %v117_v2  ;;  %v131_v7 = vadd.f32 %v127_v5, %v118_v3 }
  0x3f   :  { %v132_v8 = vmax.f32 %v130_v6, 0.0  ;;  %v133_v9 = vmax.f32 %v131_v7, 0.0 }
  0x41   :  { %134 = vst [vmem:[%s211_s5] sm:$0xff] %v132_v8  ;;  %135 = vst [vmem:[%s211_s5 + $0x8] sm:$0xff] %v133_v9 }

// kernel: resnet18_forward.61
= control target key start
LH: loop header
LB: loop body
LE: loop exit
PB: predicated region body
PF: predicated region fallthrough
CT: control target
= control target key end

     0   :  { %s732_s15 = smov 0   ;;  %s734_s16 = smov 0   ;;  %s811_s0 = inlined_call_operand.vmem [shape: bf16[8,1152], index: 0, kind: input, shape index: {}]   ;;  %s812_s1 = inlined_call_operand.vmem [shape: bf16[1152,256], index: 1, kind: input, shape index: {}]   ;;  %s813_s2 = inlined_call_operand.vmem [shape: f32[8,256], index: 2, kind: output, shape index: {0}]   ;;  %s814_s3 = inlined_call_operand.vmem [shape: f32[8,256], index: 3, kind: output, shape index: {1}]   ;;  %s815_s4 = inlined_call_operand.vmem [shape: f32[8,256], index: 4, kind: output, shape index: {2}]  }
   0x1   :  { %s736_s17 = smov 0  }
   0x2 LB: > { %s24_s18 = sadd.s32 1, %s699_s16  ;;  %p602_p0 = scmp.ge.s32.totalorder %s703_s17, 1  ;;  %s703_s17 = sphi %s736_s17, %s15_s17   ;;  %s699_s16 = sphi %s734_s16, %s817_s16   ;;  %s695_s15 = sphi %s732_s15, %s816_s15  }
   0x3   : > { %p25_p1 = scmp.ge.s32.totalorder %s24_s18, 9  ;;  %p196_p2 = scmp.lt.s32.totalorder %s703_s17, 10 }
   0x5   : > { %s819_s18 = smov (%p25_p1, %s24_s18), 0  ;;  %p197_p3 = pnand %p602_p0, %p196_p2 }
   0x6   : > { %p243_p4 = scmp.lt.s32.totalorder (!%p197_p3), %s695_s15, 8  ;;  %s604_s19 = sshll.u32 (!%p197_p3), %s695_s15, 4 }
   0x7   : > { %200 = sbr.rel (%p197_p3) target bundleno = 273 (0x111), region = 28  ;;  %p250_p5 = scmp.lt.s32.totalorder (!%p197_p3), %s604_s19, 143 }
   0x8   : > { %p607_p6 = scmp.ne.s32.totalorder (!%p197_p3), %s695_s15, 0 }
   0xc   : > { %s244_s20 = scalar_select %p243_p4, %s695_s15, 8 }
   0xd   : > { %s821_s19 = smov (!%p250_p5, %s604_s19), 143  ;;  %275 = sbr.rel (%p607_p6) target bundleno = 20 (0x14), region = 32 }
   0xe   : > { %s603_s21 = sshll.u32 %s244_s20, 2  ;;  %s630_s25 = sshll.u32 %s821_s19, 3 }
   0xf   : > { %s758_s24 = scalar_lea.vmem %s811_s0, %s603_s21  ;;  %s763_s28 = scalar_lea.vmem %s812_s1, %s630_s25 }
  0x12   : > { %v705_v0 = vmov 0.0  }
  0x13   : > { %276 = vst [vmem:[#allocation2] sm:$0xff] %v705_v0  ;;  %277 = vst [vmem:[#allocation2 + $0x8] sm:$0xff] %v705_v0 }
  0x14 PF: > { %v657_v1 = vld [vmem:[%s763_s28 + $0x74] ss:$8 sps:$4 sm:$0xff]   ;;  %v659_v2 = vld [vmem:[%s763_s28 + $0x70] ss:$8 sps:$4 sm:$0xff]   ;;  %v706_v3 = vmov 0   ;;  %p624_p7 = scmp.ne.s32.totalorder %s695_s15, 8 }
  0x15   : > { %409 = vmatprep.mubr.bf16.mxu0 %v706_v3  ;;  %377 = vmatprep.subr.bf16.mxu0 %v657_v1  ;;  %v660_v4 = vld [vmem:[%s763_s28 + $0x64] ss:$8 sps:$4 sm:$0xff]   ;;  %v662_v5 = vld [vmem:[%s763_s28 + $0x60] ss:$8 sps:$4 sm:$0xff]   ;;  %v663_v6 = vld [vmem:[%s763_s28 + $0x54] ss:$8 sps:$4 sm:$0xff]  }
  0x16   : > { %378 = vmatpush1.bf16.msra.mxu0 %v659_v2  ;;  %v665_v7 = vld [vmem:[%s763_s28 + $0x50] ss:$8 sps:$4 sm:$0xff]   ;;  %v666_v8 = vld [vmem:[%s763_s28 + $0x44] ss:$8 sps:$4 sm:$0xff]   ;;  %v668_v9 = vld [vmem:[%s763_s28 + $0x40] ss:$8 sps:$4 sm:$0xff]  }
  0x17   : > { %379 = vmatprep.subr.bf16.mxu0 %v660_v4  ;;  %v669_v10 = vld [vmem:[%s763_s28 + $0x34] ss:$8 sps:$4 sm:$0xff]   ;;  %v671_v11 = vld [vmem:[%s763_s28 + $0x30] ss:$8 sps:$4 sm:$0xff]   ;;  %v672_v12 = vld [vmem:[%s763_s28 + $0x24] ss:$8 sps:$4 sm:$0xff]  }
  0x18   : > { %v674_v13 = vld [vmem:[%s763_s28 + $0x20] ss:$8 sps:$4 sm:$0xff]   ;;  %v675_v14 = vld [vmem:[%s763_s28 + $0x14] ss:$8 sps:$4 sm:$0xff]   ;;  %v677_v15 = vld [vmem:[%s763_s28 + $0x10] ss:$8 sps:$4 sm:$0xff]  }
  0x19   : > { %v678_v16 = vld [vmem:[%s763_s28 + $0x4] ss:$8 sps:$4 sm:$0xff]   ;;  %v680_v17 = vld [vmem:[%s763_s28] ss:$8 sps:$4 sm:$0xff]  }
  0x1a   : > { %380 = vmatpush1.bf16.msra.mxu0 %v662_v5  ;;  %v280_v18 = vld [vmem:[%s758_s24] sm:$0xf]  ;;  %v279_v21 = vld [vmem:[#allocation2 + $0x8] sm:$0xff] }
  0x1b   : > { %381 = vmatprep.subr.bf16.mxu0 %v663_v6  ;;  %v278_v19 = vld [vmem:[#allocation2] sm:$0xff] }
  0x1e   : > { %382 = vmatpush1.bf16.msra.mxu0 %v665_v7 }
  0x1f   : > { %383 = vmatprep.subr.bf16.mxu0 %v666_v8 }
  0x22   : > { %384 = vmatpush1.bf16.msra.mxu0 %v668_v9 }
  0x23   : > { %385 = vmatprep.subr.bf16.mxu0 %v669_v10 }
  0x26   : > { %386 = vmatpush1.bf16.msra.mxu0 %v671_v11 }
  0x27   : > { %387 = vmatprep.subr.bf16.mxu0 %v672_v12 }
  0x2a   : > { %388 = vmatpush1.bf16.msra.mxu0 %v674_v13 }
  0x2b   : > { %389 = vmatprep.subr.bf16.mxu0 %v675_v14 }
  0x2e   : > { %390 = vmatpush1.bf16.msra.mxu0 %v677_v15 }
  0x2f   : > { %391 = vmatprep.subr.bf16.mxu0 %v678_v16 }
  0x32   : > { %392 = vmatpush1.bf16.msra.mxu0 %v680_v17 }
  0x35   : > { %410 = vmatmul.mubr.bf16.vlgmr.msra.gmra.mxu0 %v280_v18 }
  0xf5   : > { %v411_v20 = vpop.f32.mrf.mxu0 }
  0xf6   : > { %v418_v22 = vadd.f32 %v411_v20, %v278_v19 }
  0xf7   : > { %v413_v23 = vpop.f32.mrf.mxu0  ;;  %425 = sbr.rel (%p624_p7) target bundleno = 273 (0x111), region = 36 }
  0xf8   : > { %420 = vst [vmem:[#allocation2] sm:$0xff] %v418_v22  ;;  %v419_v24 = vadd.f32 %v413_v23, %v279_v21 }
  0xf9   : > { %v415_v25 = vpop.f32.mrf.mxu0 }
  0xfa   : > { %421 = vst [vmem:[#allocation2 + $0x8] sm:$0xff] %v419_v24 }
  0xfb   : > { %v416_v26 = vpop.f32.mrf.mxu0 }
  0xff   : > { %v426_v27 = vld [vmem:[#allocation2] sm:$0xff] }
 0x100   : > { %428 = vst [vmem:[%s813_s2] sm:$0xff] %v426_v27  ;;  %v430_v29 = vrot.slane %v426_v27, 4  ;;  %v444_v31 = vmul.f32 %v426_v27, %v426_v27 }
 0x101   : > { %v427_v28 = vld [vmem:[#allocation2 + $0x8] sm:$0xff] }
 0x102   : > { %429 = vst [vmem:[%s813_s2 + $0x8] sm:$0xff] %v427_v28  ;;  %v436_v30 = vrot.slane %v427_v28, 4  ;;  %v445_v32 = vmul.f32 %v427_v28, %v427_v28  ;;  %v431_v33 = vadd.f32 %v430_v29, %v426_v27  ;;  %v446_v35 = vrot.slane %v444_v31, 4 }
 0x104   : > { %v437_v34 = vadd.f32 %v436_v30, %v427_v28  ;;  %v452_v36 = vrot.slane %v445_v32, 4  ;;  %v432_v37 = vrot.slane %v431_v33, 2  ;;  %v447_v39 = vadd.f32 %v446_v35, %v444_v31 }
 0x106   : > { %v438_v38 = vrot.slane %v437_v34, 2  ;;  %v453_v40 = vadd.f32 %v452_v36, %v445_v32  ;;  %v433_v41 = vadd.f32 %v432_v37, %v431_v33  ;;  %v448_v43 = vrot.slane %v447_v39, 2 }
 0x108   : > { %v439_v42 = vadd.f32 %v438_v38, %v437_v34  ;;  %v454_v44 = vrot.slane %v453_v40, 2  ;;  %v434_v45 = vrot.slane %v433_v41, 1  ;;  %v449_v47 = vadd.f32 %v448_v43, %v447_v39 }
 0x10a   : > { %v440_v46 = vrot.slane %v439_v42, 1  ;;  %v455_v48 = vadd.f32 %v454_v44, %v453_v40  ;;  %v435_v49 = vadd.f32 %v434_v45, %v433_v41  ;;  %v450_v51 = vrot.slane %v449_v47, 1 }
 0x10c   : > { %v441_v50 = vadd.f32 %v440_v46, %v439_v42  ;;  %v456_v52 = vrot.slane %v455_v48, 1  ;;  %442 = vst [vmem:[%s814_s3] sm:$0xff] %v435_v49  ;;  %v451_v53 = vadd.f32 %v450_v51, %v449_v47 }
 0x10e   : > { %443 = vst [vmem:[%s814_s3 + $0x8] sm:$0xff] %v441_v50  ;;  %v457_v54 = vadd.f32 %v456_v52, %v455_v48  ;;  %458 = vst [vmem:[%s815_s4] sm:$0xff] %v451_v53 }
 0x110   : > { %459 = vst [vmem:[%s815_s4 + $0x8] sm:$0xff] %v457_v54 }
 0x111 PF: > { %s15_s17 = sadd.s32 1, %s703_s17   ;;  %s816_s15 = smov %s699_s16 }
 0x112   : > { %p12_p8 = scmp.ge.s32.totalorder %s15_s17, 11   ;;  %s817_s16 = smov %s819_s18 }
 0x114   :  { %14 = sbr.rel (!%p12_p8) target bundleno = 2 (0x2), region = 93 }

// kernel: resnet18_forward.65
= control target key start
LH: loop header
LB: loop body
LE: loop exit
PB: predicated region body
PF: predicated region fallthrough
CT: control target
= control target key end

     0   :  { %s882_s15 = smov 0   ;;  %s884_s16 = smov 0   ;;  %s976_s0 = inlined_call_operand.vmem [shape: bf16[8,2304], index: 0, kind: input, shape index: {}]   ;;  %s977_s1 = inlined_call_operand.vmem [shape: bf16[2304,256], index: 1, kind: input, shape index: {}]   ;;  %s978_s2 = inlined_call_operand.vmem [shape: f32[8,256], index: 2, kind: output, shape index: {0}]   ;;  %s979_s3 = inlined_call_operand.vmem [shape: f32[8,256], index: 3, kind: output, shape index: {1}]   ;;  %s980_s4 = inlined_call_operand.vmem [shape: f32[8,256], index: 4, kind: output, shape index: {2}]  }
   0x1   :  { %s886_s17 = smov 0  }
   0x2 LB: > { %s24_s18 = sadd.s32 1, %s850_s16  ;;  %p709_p0 = scmp.ge.s32.totalorder %s854_s17, 1  ;;  %s854_s17 = sphi %s886_s17, %s15_s17   ;;  %s850_s16 = sphi %s884_s16, %s982_s16   ;;  %s846_s15 = sphi %s882_s15, %s981_s15  }
   0x3   : > { %p25_p1 = scmp.ge.s32.totalorder %s24_s18, 9  ;;  %p198_p2 = scmp.lt.s32.totalorder %s854_s17, 10 }
   0x5   : > { %s984_s18 = smov (%p25_p1, %s24_s18), 0  ;;  %p199_p3 = pnand %p709_p0, %p198_p2 }
   0x6   : > { %s710_s19 = sshll.u32 (!%p199_p3), %s846_s15, 1  ;;  %s712_s20 = sshll.u32 (!%p199_p3), %s846_s15, 5 }
   0x7   : > { %202 = sbr.rel (%p199_p3) target bundleno = 307 (0x133), region = 28  ;;  %p247_p4 = scmp.lt.s32.totalorder (!%p199_p3), %s710_s19, 17 }
   0x8   : > { %p255_p5 = scmp.lt.s32.totalorder (!%p199_p3), %s712_s20, 287  ;;  %p715_p6 = scmp.ne.s32.totalorder (!%p199_p3), %s846_s15, 0 }
   0xc   : > { %s986_s19 = smov (!%p247_p4, %s710_s19), 17  ;;  %s988_s20 = smov (!%p255_p5, %s712_s20), 287 }
   0xd   : > { %s711_s21 = sshll.u32 %s986_s19, 2  ;;  %s756_s25 = sshll.u32 %s988_s20, 3 }
   0xe   : > { %s907_s24 = scalar_lea.vmem %s976_s0, %s711_s21  ;;  %s912_s28 = scalar_lea.vmem %s977_s1, %s756_s25 }
   0xf   : > { %279 = sbr.rel (%p715_p6) target bundleno = 22 (0x16), region = 32 }
  0x14   : > { %v856_v0 = vmov 0.0  }
  0x15   : > { %280 = vst [vmem:[#allocation2] sm:$0xff] %v856_v0  ;;  %281 = vst [vmem:[#allocation2 + $0x8] sm:$0xff] %v856_v0 }
  0x16 PF: > { %v782_v1 = vld [vmem:[%s912_s28 + $0x74] ss:$8 sps:$4 sm:$0xff]   ;;  %v784_v2 = vld [vmem:[%s912_s28 + $0x70] ss:$8 sps:$4 sm:$0xff]   ;;  %v785_v3 = vld [vmem:[%s912_s28 + $0x64] ss:$8 sps:$4 sm:$0xff]  }
  0x17   : > { %484 = vmatprep.subr.bf16.mxu0 %v782_v1  ;;  %v787_v4 = vld [vmem:[%s912_s28 + $0x60] ss:$8 sps:$4 sm:$0xff]   ;;  %v788_v5 = vld [vmem:[%s912_s28 + $0x54] ss:$8 sps:$4 sm:$0xff]   ;;  %v790_v6 = vld [vmem:[%s912_s28 + $0x50] ss:$8 sps:$4 sm:$0xff]  }
  0x18   : > { %485 = vmatpush1.bf16.msra.mxu0 %v784_v2  ;;  %v791_v7 = vld [vmem:[%s912_s28 + $0x44] ss:$8 sps:$4 sm:$0xff]   ;;  %v793_v8 = vld [vmem:[%s912_s28 + $0x40] ss:$8 sps:$4 sm:$0xff]   ;;  %v794_v9 = vld [vmem:[%s912_s28 + $0x34] ss:$8 sps:$4 sm:$0xff]  }
  0x19   : > { %486 = vmatprep.subr.bf16.mxu0 %v785_v3  ;;  %v796_v10 = vld [vmem:[%s912_s28 + $0x30] ss:$8 sps:$4 sm:$0xff]   ;;  %v797_v11 = vld [vmem:[%s912_s28 + $0x24] ss:$8 sps:$4 sm:$0xff]   ;;  %v799_v12 = vld [vmem:[%s912_s28 + $0x20] ss:$8 sps:$4 sm:$0xff]  }
  0x1a   : > { %v800_v13 = vld [vmem:[%s912_s28 + $0x14] ss:$8 sps:$4 sm:$0xff]   ;;  %v284_v14 = vld [vmem:[%s907_s24] sm:$0xff]  ;;  %v802_v16 = vld [vmem:[%s912_s28 + $0x10] ss:$8 sps:$4 sm:$0xff]   ;;  %p750_p7 = scmp.ne.s32.totalorder %s846_s15, 8 }
  0x1b   : > { %v717_v15 = vcombine.high %v284_v14, %v284_v14  ;;  %v803_v17 = vld [vmem:[%s912_s28 + $0x4] ss:$8 sps:$4 sm:$0xff]   ;;  %v805_v18 = vld [vmem:[%s912_s28] ss:$8 sps:$4 sm:$0xff]   ;;  %v806_v19 = vld [vmem:[%s912_s28 + $0xf4] ss:$8 sps:$4 sm:$0xff]   ;;  %v716_v35 = vcombine.low %v284_v14, %v284_v14 }
  0x1c   : > { %487 = vmatpush1.bf16.msra.mxu0 %v787_v4  ;;  %v808_v20 = vld [vmem:[%s912_s28 + $0xf0] ss:$8 sps:$4 sm:$0xff]   ;;  %v809_v21 = vld [vmem:[%s912_s28 + $0xe4] ss:$8 sps:$4 sm:$0xff]   ;;  %v811_v22 = vld [vmem:[%s912_s28 + $0xe0] ss:$8 sps:$4 sm:$0xff]  }
  0x1d   : > { %488 = vmatprep.subr.bf16.mxu0 %v788_v5  ;;  %516 = vmatprep.mubr.bf16.mxu0 %v717_v15  ;;  %v812_v23 = vld [vmem:[%s912_s28 + $0xd4] ss:$8 sps:$4 sm:$0xff]   ;;  %v814_v24 = vld [vmem:[%s912_s28 + $0xd0] ss:$8 sps:$4 sm:$0xff]   ;;  %v815_v25 = vld [vmem:[%s912_s28 + $0xc4] ss:$8 sps:$4 sm:$0xff]  }
  0x1e   : > { %v817_v26 = vld [vmem:[%s912_s28 + $0xc0] ss:$8 sps:$4 sm:$0xff]   ;;  %v818_v27 = vld [vmem:[%s912_s28 + $0xb4] ss:$8 sps:$4 sm:$0xff]   ;;  %v820_v28 = vld [vmem:[%s912_s28 + $0xb0] ss:$8 sps:$4 sm:$0xff]  }
  0x1f   : > { %v821_v29 = vld [vmem:[%s912_s28 + $0xa4] ss:$8 sps:$4 sm:$0xff]   ;;  %v823_v30 = vld [vmem:[%s912_s28 + $0xa0] ss:$8 sps:$4 sm:$0xff]   ;;  %v824_v31 = vld [vmem:[%s912_s28 + $0x94] ss:$8 sps:$4 sm:$0xff]  }
  0x20   : > { %489 = vmatpush1.bf16.msra.mxu0 %v790_v6  ;;  %v826_v32 = vld [vmem:[%s912_s28 + $0x90] ss:$8 sps:$4 sm:$0xff]   ;;  %v827_v33 = vld [vmem:[%s912_s28 + $0x84] ss:$8 sps:$4 sm:$0xff]   ;;  %v829_v34 = vld [vmem:[%s912_s28 + $0x80] ss:$8 sps:$4 sm:$0xff]  }
  0x21   : > { %490 = vmatprep.subr.bf16.mxu0 %v791_v7  ;;  %v282_v36 = vld [vmem:[#allocation2] sm:$0xff]  ;;  %v283_v38 = vld [vmem:[#allocation2 + $0x8] sm:$0xff] }
  0x24   : > { %491 = vmatpush1.bf16.msra.mxu0 %v793_v8 }
  0x25   : > { %492 = vmatprep.subr.bf16.mxu0 %v794_v9 }
  0x28   : > { %493 = vmatpush1.bf16.msra.mxu0 %v796_v10 }
  0x29   : > { %494 = vmatprep.subr.bf16.mxu0 %v797_v11 }
  0x2c   : > { %495 = vmatpush1.bf16.msra.mxu0 %v799_v12 }
  0x2d   : > { %496 = vmatprep.subr.bf16.mxu0 %v800_v13 }
  0x30   : > { %497 = vmatpush1.bf16.msra.mxu0 %v802_v16 }
  0x31   : > { %498 = vmatprep.subr.bf16.mxu0 %v803_v17 }
  0x34   : > { %499 = vmatpush1.bf16.msra.mxu0 %v805_v18 }
  0x35   : > { %500 = vmatprep.subr.bf16.mxu0 %v806_v19 }
  0x38   : > { %501 = vmatpush2.bf16.msra.mxu0 %v808_v20 }
  0x39   : > { %502 = vmatprep.subr.bf16.mxu0 %v809_v21 }
  0x3c   : > { %503 = vmatpush2.bf16.msra.mxu0 %v811_v22 }
  0x3d   : > { %504 = vmatprep.subr.bf16.mxu0 %v812_v23 }
  0x40   : > { %505 = vmatpush2.bf16.msra.mxu0 %v814_v24 }
  0x41   : > { %506 = vmatprep.subr.bf16.mxu0 %v815_v25 }
  0x44   : > { %507 = vmatpush2.bf16.msra.mxu0 %v817_v26 }
  0x45   : > { %508 = vmatprep.subr.bf16.mxu0 %v818_v27 }
  0x48   : > { %509 = vmatpush2.bf16.msra.mxu0 %v820_v28 }
  0x49   : > { %510 = vmatprep.subr.bf16.mxu0 %v821_v29 }
  0x4c   : > { %511 = vmatpush2.bf16.msra.mxu0 %v823_v30 }
  0x4d   : > { %512 = vmatprep.subr.bf16.mxu0 %v824_v31 }
  0x50   : > { %513 = vmatpush2.bf16.msra.mxu0 %v826_v32 }
  0x51   : > { %514 = vmatprep.subr.bf16.mxu0 %v827_v33 }
  0x54   : > { %515 = vmatpush2.bf16.msra.mxu0 %v829_v34 }
  0x57   : > { %517 = vmatmul.mubr.bf16.vlgmr.msra.gmra.mxu0 %v716_v35 }
 0x117   : > { %v518_v37 = vpop.f32.mrf.mxu0 }
 0x118   : > { %v525_v39 = vadd.f32 %v518_v37, %v282_v36 }
 0x119   : > { %v520_v40 = vpop.f32.mrf.mxu0  ;;  %532 = sbr.rel (%p750_p7) target bundleno = 307 (0x133), region = 36 }
 0x11a   : > { %527 = vst [vmem:[#allocation2] sm:$0xff] %v525_v39  ;;  %v526_v41 = vadd.f32 %v520_v40, %v283_v38 }
 0x11b   : > { %v522_v42 = vpop.f32.mrf.mxu0 }
 0x11c   : > { %528 = vst [vmem:[#allocation2 + $0x8] sm:$0xff] %v526_v41 }
 0x11d   : > { %v523_v43 = vpop.f32.mrf.mxu0 }
 0x121   : > { %v533_v44 = vld [vmem:[#allocation2] sm:$0xff] }
 0x122   : > { %535 = vst [vmem:[%s978_s2] sm:$0xff] %v533_v44  ;;  %v537_v46 = vrot.slane %v533_v44, 4  ;;  %v551_v48 = vmul.f32 %v533_v44, %v533_v44 }
 0x123   : > { %v534_v45 = vld [vmem:[#allocation2 + $0x8] sm:$0xff] }
 0x124   : > { %536 = vst [vmem:[%s978_s2 + $0x8] sm:$0xff] %v534_v45  ;;  %v543_v47 = vrot.slane %v534_v45, 4  ;;  %v552_v49 = vmul.f32 %v534_v45, %v534_v45  ;;  %v538_v50 = vadd.f32 %v537_v46, %v533_v44  ;;  %v553_v52 = vrot.slane %v551_v48, 4 }
 0x126   : > { %v544_v51 = vadd.f32 %v543_v47, %v534_v45  ;;  %v559_v53 = vrot.slane %v552_v49, 4  ;;  %v539_v54 = vrot.slane %v538_v50, 2  ;;  %v554_v56 = vadd.f32 %v553_v52, %v551_v48 }
 0x128   : > { %v545_v55 = vrot.slane %v544_v51, 2  ;;  %v560_v57 = vadd.f32 %v559_v53, %v552_v49  ;;  %v540_v58 = vadd.f32 %v539_v54, %v538_v50  ;;  %v555_v60 = vrot.slane %v554_v56, 2 }
 0x12a   : > { %v546_v59 = vadd.f32 %v545_v55, %v544_v51  ;;  %v561_v61 = vrot.slane %v560_v57, 2  ;;  %v541_v62 = vrot.slane %v540_v58, 1  ;;  %v556_v0 = vadd.f32 %v555_v60, %v554_v56 }
 0x12c   : > { %v547_v63 = vrot.slane %v546_v59, 1  ;;  %v562_v1 = vadd.f32 %v561_v61, %v560_v57  ;;  %v542_v2 = vadd.f32 %v541_v62, %v540_v58  ;;  %v557_v4 = vrot.slane %v556_v0, 1 }
 0x12e   : > { %v548_v3 = vadd.f32 %v547_v63, %v546_v59  ;;  %v563_v5 = vrot.slane %v562_v1, 1  ;;  %549 = vst [vmem:[%s979_s3] sm:$0xff] %v542_v2  ;;  %v558_v6 = vadd.f32 %v557_v4, %v556_v0 }
 0x130   : > { %550 = vst [vmem:[%s979_s3 + $0x8] sm:$0xff] %v548_v3  ;;  %v564_v7 = vadd.f32 %v563_v5, %v562_v1  ;;  %565 = vst [vmem:[%s980_s4] sm:$0xff] %v558_v6 }
 0x132   : > { %566 = vst [vmem:[%s980_s4 + $0x8] sm:$0xff] %v564_v7 }
 0x133 PF: > { %s15_s17 = sadd.s32 1, %s854_s17   ;;  %s981_s15 = smov %s850_s16 }
 0x134   : > { %p12_p8 = scmp.ge.s32.totalorder %s15_s17, 11   ;;  %s982_s16 = smov %s984_s18 }
 0x136   :  { %14 = sbr.rel (!%p12_p8) target bundleno = 2 (0x2), region = 93 }

// kernel: resnet18_forward.66
= control target key start
LH: loop header
LB: loop body
LE: loop exit
PB: predicated region body
PF: predicated region fallthrough
CT: control target
= control target key end

     0   :  { %v152_v40 = vmov 1966171168   ;;  %v72_v42 = vlaneseq  ;;  %s224_s1 = inlined_call_operand.vmem [shape: f32[8,256], index: 1, kind: input, shape index: {}]   ;;  %s225_s2 = inlined_call_operand.vmem [shape: f32[8,256], index: 2, kind: input, shape index: {}]   ;;  %s226_s3 = inlined_call_operand.vmem [shape: f32[1,256], index: 3, kind: input, shape index: {}]   ;;  %s227_s0 = inlined_call_operand.vmem [shape: f32[8,256], index: 0, kind: input, shape index: {}]   ;;  %s228_s4 = inlined_call_operand.vmem [shape: f32[1,256], index: 4, kind: input, shape index: {}]   ;;  %s229_s5 = inlined_call_operand.vmem [shape: f32[8,256], index: 5, kind: input, shape index: {}]   ;;  %s230_s6 = inlined_call_operand.vmem [shape: f32[8,256], index: 6, kind: output, shape index: {}]  }
   0x1   :  { %v23_v0 = vld [vmem:[%s224_s1] sm:$0xff]  ;;  %v24_v1 = vld [vmem:[%s224_s1 + $0x8] sm:$0xff]  ;;  %v70_v41 = vunpack.c.l.s4 %v152_v40 }
   0x2   :  { %v39_v2 = vld [vmem:[%s225_s2] sm:$0xff]  ;;  %v25_v3 = vrot.slane %v23_v0, 4  ;;  %v31_v4 = vrot.slane %v24_v1, 4  ;;  %v40_v5 = vld [vmem:[%s225_s2 + $0x8] sm:$0xff]  ;;  %v73_v44 = vshrl.u32 %v72_v42, 7 }
   0x3   :  { %v41_v6 = vrot.slane %v39_v2, 4  ;;  %v47_v7 = vrot.slane %v40_v5, 4  ;;  %v71_v43 = vunpack.c.0.s8 %v70_v41  ;;  %v61_v50 = vld [vmem:[%s226_s3] sm:$0x3]  ;;  %v119_v63 = vld [vmem:[%s227_s0 + $0x8] sm:$0xff] }
   0x4   :  { %v26_v8 = vadd.f32 %v25_v3, %v23_v0  ;;  %v32_v9 = vadd.f32 %v31_v4, %v24_v1  ;;  %v89_v52 = vsub.s32 0, %v73_v44  ;;  %v93_v53 = vsub.s32 1, %v73_v44  ;;  %v85_v61 = vld [vmem:[%s228_s4] sm:$0x3] }
   0x5   :  { %v42_v10 = vadd.f32 %v41_v6, %v39_v2  ;;  %v48_v11 = vadd.f32 %v47_v7, %v40_v5  ;;  %v74_v46 = vsub.s32 %v71_v43, %v73_v44  ;;  %v118_v62 = vld [vmem:[%s227_s0] sm:$0xff]  ;;  %v136_v7 = vld [vmem:[%s229_s5 + $0x8] sm:$0xff] }
   0x6   :  { %v27_v12 = vrot.slane %v26_v8, 2  ;;  %v33_v13 = vrot.slane %v32_v9, 2  ;;  %v135_v6 = vld [vmem:[%s229_s5] sm:$0xff] }
   0x7   :  { %v43_v14 = vrot.slane %v42_v10, 2  ;;  %v49_v15 = vrot.slane %v48_v11, 2 }
   0x8   :  { %v28_v16 = vadd.f32 %v27_v12, %v26_v8  ;;  %v34_v17 = vadd.f32 %v33_v13, %v32_v9 }
   0x9   :  { %v44_v18 = vadd.f32 %v43_v14, %v42_v10  ;;  %v50_v19 = vadd.f32 %v49_v15, %v48_v11 }
   0xa   :  { %v29_v20 = vrot.slane %v28_v16, 1  ;;  %v35_v21 = vrot.slane %v34_v17, 1 }
   0xb   :  { %v45_v22 = vrot.slane %v44_v18, 1  ;;  %v51_v23 = vrot.slane %v50_v19, 1 }
   0xc   :  { %v30_v24 = vadd.f32 %v29_v20, %v28_v16  ;;  %v36_v25 = vadd.f32 %v35_v21, %v34_v17 }
   0xd   :  { %v46_v26 = vadd.f32 %v45_v22, %v44_v18  ;;  %v52_v27 = vadd.f32 %v51_v23, %v50_v19 }
   0xe   :  { %v37_v28 = vmul.f32 0.015625, %v30_v24  ;;  %v38_v29 = vmul.f32 0.015625, %v36_v25 }
   0xf   :  { %v53_v30 = vmul.f32 0.015625, %v46_v26  ;;  %v54_v31 = vmul.f32 0.015625, %v52_v27 }
  0x10   :  { %v55_v32 = vmul.f32 %v37_v28, %v37_v28  ;;  %v56_v33 = vmul.f32 %v38_v29, %v38_v29 }
  0x12   :  { %v57_v34 = vsub.f32 %v53_v30, %v55_v32  ;;  %v58_v35 = vsub.f32 %v54_v31, %v56_v33 }
  0x14   :  { %v59_v36 = vmax.f32 %v57_v34, 0.0  ;;  %v60_v37 = vmax.f32 %v58_v35, 0.0 }
  0x16   :  { %v62_v38 = vadd.f32 1e-05, %v59_v36  ;;  %v63_v39 = vadd.f32 1e-05, %v60_v37 }
  0x18   :  { %148 = vrsqrt.f32 %v62_v38 }
  0x19   :  { %150 = vrsqrt.f32 %v63_v39 }
  0x25   :  { %v149_v45 = vpop.eup %148 }
  0x26   :  { %v151_v47 = vpop.eup %150 }
  0x27   :  { %v68_v48 = vcombine.low %v149_v45, %v151_v47 }
  0x29   :  { %v75_v49 = vrot.slane %v68_v48, %v74_v46 }
  0x2b   :  { %v82_v51 = vrot.slane %v75_v49, %v74_v46 }
  0x2d   :  { %v84_v54 = vmul.f32 %v82_v51, %v61_v50 }
  0x2f   :  { %v90_v55 = vrot.slane %v84_v54, %v89_v52  ;;  %v94_v56 = vrot.slane %v84_v54, %v93_v53 }
  0x31   :  { %v97_v57 = vmul.f32 %v90_v55, %v37_v28  ;;  %v98_v58 = vmul.f32 %v94_v56, %v38_v29  ;;  %v120_v2 = vmul.f32 %v118_v62, %v90_v55  ;;  %v121_v3 = vmul.f32 %v119_v63, %v94_v56 }
  0x33   :  { %v101_v59 = vcombine.low %v97_v57, %v98_v58 }
  0x35   :  { %v108_v60 = vrot.slane %v101_v59, %v74_v46 }
  0x37   :  { %v115_v0 = vrot.slane %v108_v60, %v74_v46 }
  0x39   :  { %v117_v1 = vsub.f32 %v85_v61, %v115_v0 }
  0x3b   :  { %v126_v4 = vrot.slane %v117_v1, %v89_v52  ;;  %v130_v5 = vrot.slane %v117_v1, %v93_v53 }
  0x3d   :  { %v133_v8 = vadd.f32 %v126_v4, %v120_v2  ;;  %v134_v9 = vadd.f32 %v130_v5, %v121_v3 }
  0x3f   :  { %v137_v10 = vadd.f32 %v135_v6, %v133_v8  ;;  %v138_v11 = vadd.f32 %v136_v7, %v134_v9 }
  0x41   :  { %v139_v12 = vmax.f32 %v137_v10, 0.0  ;;  %v140_v13 = vmax.f32 %v138_v11, 0.0 }
  0x43   :  { %141 = vst [vmem:[%s230_s6] sm:$0xff] %v139_v12  ;;  %142 = vst [vmem:[%s230_s6 + $0x8] sm:$0xff] %v140_v13 }

// kernel: resnet18_forward.74
= control target key start
LH: loop header
LB: loop body
LE: loop exit
PB: predicated region body
PF: predicated region fallthrough
CT: control target
= control target key end

     0   :  { %s330_s1 = inlined_call_operand.vmem [shape: f32[8,512], index: 1, kind: input, shape index: {}]   ;;  %s331_s2 = inlined_call_operand.vmem [shape: f32[8,512], index: 2, kind: input, shape index: {}]   ;;  %s332_s3 = inlined_call_operand.vmem [shape: f32[1,512], index: 3, kind: input, shape index: {}]   ;;  %s333_s4 = inlined_call_operand.vmem [shape: f32[1,512], index: 4, kind: input, shape index: {}]   ;;  %s334_s0 = inlined_call_operand.vmem [shape: f32[2,512], index: 0, kind: input, shape index: {}]   ;;  %s335_s5 = inlined_call_operand.vmem [shape: f32[2,512], index: 5, kind: output, shape index: {}]  }
   0x1   :  { %v20_v0 = vld [vmem:[%s330_s1] sm:$0xff]  ;;  %v21_v1 = vld [vmem:[%s330_s1 + $0x8] sm:$0xff]  ;;  %v22_v2 = vld [vmem:[%s330_s1 + $0x10] sm:$0xff] }
   0x2   :  { %v23_v3 = vld [vmem:[%s330_s1 + $0x18] sm:$0xff]  ;;  %v24_v4 = vrot.slane %v20_v0, 4  ;;  %v30_v5 = vrot.slane %v21_v1, 4  ;;  %v36_v6 = vrot.slane %v22_v2, 4  ;;  %v52_v7 = vld [vmem:[%s331_s2] sm:$0xff]  ;;  %v53_v8 = vld [vmem:[%s331_s2 + $0x8] sm:$0xff] }
   0x3   :  { %v42_v9 = vrot.slane %v23_v3, 4  ;;  %v54_v10 = vld [vmem:[%s331_s2 + $0x10] sm:$0xff]  ;;  %v55_v11 = vld [vmem:[%s331_s2 + $0x18] sm:$0xff]  ;;  %v56_v12 = vrot.slane %v52_v7, 4  ;;  %v62_v13 = vrot.slane %v53_v8, 4 }
   0x4   :  { %v25_v14 = vadd.f32 %v24_v4, %v20_v0  ;;  %v31_v15 = vadd.f32 %v30_v5, %v21_v1  ;;  %v37_v16 = vadd.f32 %v36_v6, %v22_v2  ;;  %v68_v17 = vrot.slane %v54_v10, 4 }
   0x5   :  { %v43_v18 = vadd.f32 %v42_v9, %v23_v3  ;;  %v57_v19 = vadd.f32 %v56_v12, %v52_v7  ;;  %v63_v20 = vadd.f32 %v62_v13, %v53_v8  ;;  %v74_v21 = vrot.slane %v55_v11, 4 }
   0x6   :  { %v26_v22 = vrot.slane %v25_v14, 2  ;;  %v32_v23 = vrot.slane %v31_v15, 2  ;;  %v38_v24 = vrot.slane %v37_v16, 2  ;;  %v69_v25 = vadd.f32 %v68_v17, %v54_v10 }
   0x7   :  { %v44_v26 = vrot.slane %v43_v18, 2  ;;  %v58_v27 = vrot.slane %v57_v19, 2  ;;  %v64_v28 = vrot.slane %v63_v20, 2  ;;  %v75_v29 = vadd.f32 %v74_v21, %v55_v11 }
   0x8   :  { %v27_v30 = vadd.f32 %v26_v22, %v25_v14  ;;  %v33_v31 = vadd.f32 %v32_v23, %v31_v15  ;;  %v39_v32 = vadd.f32 %v38_v24, %v37_v16  ;;  %v70_v33 = vrot.slane %v69_v25, 2 }
   0x9   :  { %v45_v34 = vadd.f32 %v44_v26, %v43_v18  ;;  %v59_v35 = vadd.f32 %v58_v27, %v57_v19  ;;  %v65_v36 = vadd.f32 %v64_v28, %v63_v20  ;;  %v76_v37 = vrot.slane %v75_v29, 2 }
   0xa   :  { %v28_v38 = vrot.slane %v27_v30, 1  ;;  %v34_v39 = vrot.slane %v33_v31, 1  ;;  %v40_v40 = vrot.slane %v39_v32, 1  ;;  %v71_v41 = vadd.f32 %v70_v33, %v69_v25 }
   0xb   :  { %v46_v42 = vrot.slane %v45_v34, 1  ;;  %v60_v43 = vrot.slane %v59_v35, 1  ;;  %v66_v44 = vrot.slane %v65_v36, 1  ;;  %v77_v45 = vadd.f32 %v76_v37, %v75_v29 }
   0xc   :  { %v29_v46 = vadd.f32 %v28_v38, %v27_v30  ;;  %v35_v47 = vadd.f32 %v34_v39, %v33_v31  ;;  %v41_v48 = vadd.f32 %v40_v40, %v39_v32  ;;  %v72_v49 = vrot.slane %v71_v41, 1  ;;  %v96_v31 = vld [vmem:[%s332_s3] sm:$0xf] }
   0xd   :  { %v47_v50 = vadd.f32 %v46_v42, %v45_v34  ;;  %v61_v51 = vadd.f32 %v60_v43, %v59_v35  ;;  %v67_v52 = vadd.f32 %v66_v44, %v65_v36  ;;  %v78_v53 = vrot.slane %v77_v45, 1 }
   0xe   :  { %v48_v54 = vmul.f32 0.0625, %v29_v46  ;;  %v49_v55 = vmul.f32 0.0625, %v35_v47  ;;  %v50_v56 = vmul.f32 0.0625, %v41_v48  ;;  %v73_v57 = vadd.f32 %v72_v49, %v71_v41 }
   0xf   :  { %v51_v58 = vmul.f32 0.0625, %v47_v50  ;;  %v79_v59 = vadd.f32 %v78_v53, %v77_v45  ;;  %v80_v60 = vmul.f32 0.0625, %v61_v51  ;;  %v81_v61 = vmul.f32 0.0625, %v67_v52 }
  0x10   :  { %v82_v62 = vmul.f32 0.0625, %v73_v57  ;;  %v84_v63 = vmul.f32 %v48_v54, %v48_v54  ;;  %v85_v0 = vmul.f32 %v49_v55, %v49_v55  ;;  %v86_v1 = vmul.f32 %v50_v56, %v50_v56 }
  0x11   :  { %v83_v2 = vmul.f32 0.0625, %v79_v59  ;;  %v87_v3 = vmul.f32 %v51_v58, %v51_v58  ;;  %v262_v16 = vmov 1966171168   ;;  %v114_v18 = vlaneseq }
  0x12   :  { %v88_v4 = vsub.f32 %v80_v60, %v84_v63  ;;  %v89_v5 = vsub.f32 %v81_v61, %v85_v0  ;;  %v90_v6 = vsub.f32 %v82_v62, %v86_v1  ;;  %v112_v17 = vunpack.c.l.s4 %v262_v16  ;;  %v135_v61 = vld [vmem:[%s333_s4] sm:$0xf] }
  0x13   :  { %v91_v7 = vsub.f32 %v83_v2, %v87_v3  ;;  %v115_v20 = vshrl.u32 %v114_v18, 7  ;;  %v263_v37 = vmov 1983009808   ;;  %v191_v3 = vld [vmem:[%s334_s0] sm:$0xff] }
  0x14   :  { %v92_v8 = vmax.f32 %v88_v4, 0.0  ;;  %v93_v9 = vmax.f32 %v89_v5, 0.0  ;;  %v94_v10 = vmax.f32 %v90_v6, 0.0  ;;  %v113_v19 = vunpack.c.0.s8 %v112_v17 }
  0x15   :  { %v95_v11 = vmax.f32 %v91_v7, 0.0  ;;  %v139_v32 = vsub.s32 0, %v115_v20  ;;  %v143_v34 = vsub.s32 1, %v115_v20  ;;  %v147_v35 = vsub.s32 2, %v115_v20 }
  0x16   :  { %v97_v12 = vadd.f32 1e-05, %v92_v8  ;;  %v98_v13 = vadd.f32 1e-05, %v93_v9  ;;  %v99_v14 = vadd.f32 1e-05, %v94_v10  ;;  %v116_v22 = vsub.s32 %v113_v19, %v115_v20 }
  0x17   :  { %v100_v15 = vadd.f32 1e-05, %v95_v11  ;;  %v151_v36 = vsub.s32 3, %v115_v20  ;;  %v195_v38 = vunpack.c.l.s4 %v263_v37 }
  0x18   :  { %254 = vrsqrt.f32 %v97_v12 }
  0x19   :  { %256 = vrsqrt.f32 %v98_v13  ;;  %v196_v44 = vunpack.c.0.s8 %v195_v38 }
  0x1a   :  { %258 = vrsqrt.f32 %v99_v14 }
  0x1b   :  { %260 = vrsqrt.f32 %v100_v15  ;;  %v199_v53 = vsub.s32 %v196_v44, %v115_v20 }
  0x25   :  { %v255_v21 = vpop.eup %254 }
  0x26   :  { %v257_v23 = vpop.eup %256 }
  0x27   :  { %v259_v24 = vpop.eup %258  ;;  %v109_v25 = vcombine.low %v255_v21, %v257_v23 }
  0x28   :  { %v261_v26 = vpop.eup %260 }
  0x29   :  { %v110_v27 = vcombine.low %v259_v24, %v261_v26  ;;  %v117_v28 = vrot.slane %v109_v25, %v116_v22 }
  0x2b   :  { %v124_v29 = vrot.slane %v110_v27, %v116_v22 }
  0x2d   :  { %v125_v30 = vcombine.low %v117_v28, %v124_v29 }
  0x2f   :  { %v132_v33 = vrot.slane %v125_v30, %v116_v22 }
  0x31   :  { %v134_v39 = vmul.f32 %v132_v33, %v96_v31 }
  0x33   :  { %v140_v40 = vrot.slane %v134_v39, %v139_v32  ;;  %v144_v41 = vrot.slane %v134_v39, %v143_v34  ;;  %v148_v42 = vrot.slane %v134_v39, %v147_v35  ;;  %v152_v43 = vrot.slane %v134_v39, %v151_v36 }
  0x35   :  { %v157_v45 = vmul.f32 %v140_v40, %v48_v54  ;;  %v158_v46 = vmul.f32 %v144_v41, %v49_v55  ;;  %v159_v47 = vmul.f32 %v148_v42, %v50_v56  ;;  %v160_v48 = vmul.f32 %v152_v43, %v51_v58 }
  0x36   :  { %v192_v51 = vcombine.low %v140_v40, %v144_v41  ;;  %v193_v52 = vcombine.low %v148_v42, %v152_v43 }
  0x37   :  { %v165_v49 = vcombine.low %v157_v45, %v158_v46  ;;  %v166_v50 = vcombine.low %v159_v47, %v160_v48 }
  0x38   :  { %v200_v62 = vrot.slane %v192_v51, %v199_v53  ;;  %v207_v63 = vrot.slane %v193_v52, %v199_v53 }
  0x39   :  { %v173_v57 = vrot.slane %v165_v49, %v116_v22  ;;  %v180_v59 = vrot.slane %v166_v50, %v116_v22 }
  0x3a   :  { %v208_v54 = vcombine.low %v200_v62, %v207_v63 }
  0x3b   :  { %v181_v60 = vcombine.low %v173_v57, %v180_v59 }
  0x3c   :  { %v210_v6 = vmul.f32 %v208_v54, %v191_v3 }
  0x3d   :  { %v188_v0 = vrot.slane %v181_v60, %v116_v22 }
  0x3f   :  { %v190_v1 = vsub.f32 %v135_v61, %v188_v0 }
  0x41   :  { %v215_v55 = vrot.slane %v190_v1, %v139_v32  ;;  %v219_v56 = vrot.slane %v190_v1, %v143_v34  ;;  %v223_v58 = vrot.slane %v190_v1, %v147_v35  ;;  %v227_v2 = vrot.slane %v190_v1, %v151_v36 }
  0x43   :  { %v228_v4 = vcombine.low %v215_v55, %v219_v56  ;;  %v229_v5 = vcombine.low %v223_v58, %v227_v2 }
  0x45   :  { %v236_v7 = vrot.slane %v228_v4, %v199_v53  ;;  %v243_v8 = vrot.slane %v229_v5, %v199_v53 }
  0x47   :  { %v244_v9 = vcombine.low %v236_v7, %v243_v8 }
  0x49   :  { %v246_v10 = vadd.f32 %v244_v9, %v210_v6 }
  0x4b   :  { %247 = vst [vmem:[%s335_s5] sm:$0xff] %v246_v10 }

// kernel: resnet18_forward.73
= control target key start
LH: loop header
LB: loop body
LE: loop exit
PB: predicated region body
PF: predicated region fallthrough
CT: control target
= control target key end

     0   :  { %v827_v38 = vmov 1966171168   ;;  %v97_v40 = vlaneseq  ;;  %vm563_vm0 = vcmask 1041408   ;;  %s1088_s1 = inlined_call_operand.vmem [shape: bf16[256,512], index: 1, kind: input, shape index: {}]   ;;  %s1089_s0 = inlined_call_operand.vmem [shape: bf16[2,256], index: 0, kind: input, shape index: {}]   ;;  %s1090_s2 = inlined_call_operand.vmem [shape: f32[2,512], index: 2, kind: output, shape index: {0}]   ;;  %s1091_s3 = inlined_call_operand.vmem [shape: f32[8,512], index: 3, kind: output, shape index: {1}]   ;;  %s1092_s4 = inlined_call_operand.vmem [shape: f32[8,512], index: 4, kind: output, shape index: {2}]  }
   0x1   :  { %v731_v0 = vld [vmem:[%s1088_s1 + $0xe4] ss:$16 sps:$4 sm:$0xff]   ;;  %v733_v1 = vld [vmem:[%s1088_s1 + $0xec] ss:$16 sps:$4 sm:$0xff]   ;;  %v735_v2 = vld [vmem:[%s1088_s1 + $0xe0] ss:$16 sps:$4 sm:$0xff]   ;;  %v95_v39 = vunpack.c.l.s4 %v827_v38 }
   0x2   :  { %430 = vmatprep.subr.bf16.mxu0 %v731_v0  ;;  %v736_v3 = vld [vmem:[%s1088_s1 + $0xe8] ss:$16 sps:$4 sm:$0xff]   ;;  %471 = vmatprep.subr.bf16.mxu1 %v733_v1  ;;  %v737_v4 = vld [vmem:[%s1088_s1 + $0xc4] ss:$16 sps:$4 sm:$0xff]   ;;  %v739_v5 = vld [vmem:[%s1088_s1 + $0xcc] ss:$16 sps:$4 sm:$0xff]  }
   0x3   :  { %431 = vmatpush1.bf16.msra.mxu0 %v735_v2  ;;  %472 = vmatpush1.bf16.msra.mxu1 %v736_v3  ;;  %v741_v6 = vld [vmem:[%s1088_s1 + $0xc0] ss:$16 sps:$4 sm:$0xff]   ;;  %v742_v7 = vld [vmem:[%s1088_s1 + $0xc8] ss:$16 sps:$4 sm:$0xff]   ;;  %v743_v8 = vld [vmem:[%s1088_s1 + $0xa4] ss:$16 sps:$4 sm:$0xff]   ;;  %v96_v45 = vunpack.c.0.s8 %v95_v39 }
   0x4   :  { %432 = vmatprep.subr.bf16.mxu0 %v737_v4  ;;  %473 = vmatprep.subr.bf16.mxu1 %v739_v5  ;;  %v745_v9 = vld [vmem:[%s1088_s1 + $0xac] ss:$16 sps:$4 sm:$0xff]   ;;  %v747_v10 = vld [vmem:[%s1088_s1 + $0xa0] ss:$16 sps:$4 sm:$0xff]   ;;  %v748_v11 = vld [vmem:[%s1088_s1 + $0xa8] ss:$16 sps:$4 sm:$0xff]  }
   0x5   :  { %v749_v12 = vld [vmem:[%s1088_s1 + $0x84] ss:$16 sps:$4 sm:$0xff]   ;;  %v751_v13 = vld [vmem:[%s1088_s1 + $0x8c] ss:$16 sps:$4 sm:$0xff]   ;;  %v753_v14 = vld [vmem:[%s1088_s1 + $0x80] ss:$16 sps:$4 sm:$0xff]  }
   0x6   :  { %v754_v15 = vld [vmem:[%s1088_s1 + $0x88] ss:$16 sps:$4 sm:$0xff]   ;;  %v755_v16 = vld [vmem:[%s1088_s1 + $0x64] ss:$16 sps:$4 sm:$0xff]   ;;  %v757_v17 = vld [vmem:[%s1088_s1 + $0x6c] ss:$16 sps:$4 sm:$0xff]  }
   0x7   :  { %433 = vmatpush1.bf16.msra.mxu0 %v741_v6  ;;  %474 = vmatpush1.bf16.msra.mxu1 %v742_v7  ;;  %v759_v18 = vld [vmem:[%s1088_s1 + $0x60] ss:$16 sps:$4 sm:$0xff]   ;;  %v760_v19 = vld [vmem:[%s1088_s1 + $0x68] ss:$16 sps:$4 sm:$0xff]   ;;  %v761_v20 = vld [vmem:[%s1088_s1 + $0x44] ss:$16 sps:$4 sm:$0xff]  }
   0x8   :  { %434 = vmatprep.subr.bf16.mxu0 %v743_v8  ;;  %475 = vmatprep.subr.bf16.mxu1 %v745_v9  ;;  %v763_v21 = vld [vmem:[%s1088_s1 + $0x4c] ss:$16 sps:$4 sm:$0xff]   ;;  %v765_v22 = vld [vmem:[%s1088_s1 + $0x40] ss:$16 sps:$4 sm:$0xff]   ;;  %v766_v23 = vld [vmem:[%s1088_s1 + $0x48] ss:$16 sps:$4 sm:$0xff]  }
   0x9   :  { %v767_v24 = vld [vmem:[%s1088_s1 + $0x24] ss:$16 sps:$4 sm:$0xff]   ;;  %v769_v25 = vld [vmem:[%s1088_s1 + $0x2c] ss:$16 sps:$4 sm:$0xff]   ;;  %v771_v26 = vld [vmem:[%s1088_s1 + $0x20] ss:$16 sps:$4 sm:$0xff]  }
   0xa   :  { %v772_v27 = vld [vmem:[%s1088_s1 + $0x28] ss:$16 sps:$4 sm:$0xff]   ;;  %v773_v28 = vld [vmem:[%s1088_s1 + $0x4] ss:$16 sps:$4 sm:$0xff]   ;;  %v775_v29 = vld [vmem:[%s1088_s1 + $0xc] ss:$16 sps:$4 sm:$0xff]  }
   0xb   :  { %435 = vmatpush1.bf16.msra.mxu0 %v747_v10  ;;  %476 = vmatpush1.bf16.msra.mxu1 %v748_v11  ;;  %v777_v30 = vld [vmem:[%s1088_s1] ss:$16 sps:$4 sm:$0xff]   ;;  %v778_v31 = vld [vmem:[%s1088_s1 + $0x8] ss:$16 sps:$4 sm:$0xff]   ;;  %v779_v32 = vld [vmem:[%s1088_s1 + $0x1e4] ss:$16 sps:$4 sm:$0xff]  }
   0xc   :  { %436 = vmatprep.subr.bf16.mxu0 %v749_v12  ;;  %477 = vmatprep.subr.bf16.mxu1 %v751_v13  ;;  %v781_v33 = vld [vmem:[%s1088_s1 + $0x1ec] ss:$16 sps:$4 sm:$0xff]   ;;  %v783_v34 = vld [vmem:[%s1088_s1 + $0x1e0] ss:$16 sps:$4 sm:$0xff]   ;;  %v784_v35 = vld [vmem:[%s1088_s1 + $0x1e8] ss:$16 sps:$4 sm:$0xff]  }
   0xd   :  { %v785_v36 = vld [vmem:[%s1088_s1 + $0x1c4] ss:$16 sps:$4 sm:$0xff]   ;;  %v787_v37 = vld [vmem:[%s1088_s1 + $0x1cc] ss:$16 sps:$4 sm:$0xff]   ;;  %v789_v41 = vld [vmem:[%s1088_s1 + $0x1c0] ss:$16 sps:$4 sm:$0xff]  }
   0xe   :  { %v790_v42 = vld [vmem:[%s1088_s1 + $0x1c8] ss:$16 sps:$4 sm:$0xff]   ;;  %v791_v43 = vld [vmem:[%s1088_s1 + $0x1a4] ss:$16 sps:$4 sm:$0xff]   ;;  %v793_v44 = vld [vmem:[%s1088_s1 + $0x1ac] ss:$16 sps:$4 sm:$0xff]  }
   0xf   :  { %437 = vmatpush1.bf16.msra.mxu0 %v753_v14  ;;  %478 = vmatpush1.bf16.msra.mxu1 %v754_v15  ;;  %v980_v46 = vshrl.u32 %v97_v40, 7  ;;  %v795_v47 = vld [vmem:[%s1088_s1 + $0x1a0] ss:$16 sps:$4 sm:$0xff]   ;;  %v796_v48 = vld [vmem:[%s1088_s1 + $0x1a8] ss:$16 sps:$4 sm:$0xff]  }
  0x10   :  { %438 = vmatprep.subr.bf16.mxu0 %v755_v16  ;;  %479 = vmatprep.subr.bf16.mxu1 %v757_v17  ;;  %v797_v49 = vld [vmem:[%s1088_s1 + $0x184] ss:$16 sps:$4 sm:$0xff]   ;;  %v799_v50 = vld [vmem:[%s1088_s1 + $0x18c] ss:$16 sps:$4 sm:$0xff]   ;;  %v801_v53 = vld [vmem:[%s1088_s1 + $0x180] ss:$16 sps:$4 sm:$0xff]  }
  0x11   :  { %v99_v51 = vsub.s32 %v96_v45, %v980_v46  ;;  %v663_v52 = vld.sshfl [vmem:[%s1089_s0] sm:$0x11 pattern:$0x75316420]  ;;  %v802_v54 = vld [vmem:[%s1088_s1 + $0x188] ss:$16 sps:$4 sm:$0xff]  }
  0x12   :  { %v93_v55 = vcombine.high %v663_v52, %v663_v52  ;;  %v803_v56 = vld [vmem:[%s1088_s1 + $0x164] ss:$16 sps:$4 sm:$0xff]   ;;  %v805_v57 = vld [vmem:[%s1088_s1 + $0x16c] ss:$16 sps:$4 sm:$0xff]   ;;  %v807_v59 = vld [vmem:[%s1088_s1 + $0x160] ss:$16 sps:$4 sm:$0xff]  }
  0x13   :  { %439 = vmatpush1.bf16.msra.mxu0 %v759_v18  ;;  %480 = vmatpush1.bf16.msra.mxu1 %v760_v19  ;;  %v808_v60 = vld [vmem:[%s1088_s1 + $0x168] ss:$16 sps:$4 sm:$0xff]   ;;  %v809_v61 = vld [vmem:[%s1088_s1 + $0x144] ss:$16 sps:$4 sm:$0xff]   ;;  %v811_v62 = vld [vmem:[%s1088_s1 + $0x14c] ss:$16 sps:$4 sm:$0xff]   ;;  %v100_v9 = vrot.slane %v663_v52, %v99_v51 }
  0x14   :  { %440 = vmatprep.subr.bf16.mxu0 %v761_v20  ;;  %481 = vmatprep.subr.bf16.mxu1 %v763_v21  ;;  %v107_v58 = vrot.slane %v93_v55, %v99_v51  ;;  %v813_v63 = vld [vmem:[%s1088_s1 + $0x140] ss:$16 sps:$4 sm:$0xff]   ;;  %v814_v0 = vld [vmem:[%s1088_s1 + $0x148] ss:$16 sps:$4 sm:$0xff]   ;;  %v815_v1 = vld [vmem:[%s1088_s1 + $0x124] ss:$16 sps:$4 sm:$0xff]  }
  0x15   :  { %v817_v2 = vld [vmem:[%s1088_s1 + $0x12c] ss:$16 sps:$4 sm:$0xff]   ;;  %v819_v3 = vld [vmem:[%s1088_s1 + $0x120] ss:$16 sps:$4 sm:$0xff]   ;;  %v820_v4 = vld [vmem:[%s1088_s1 + $0x128] ss:$16 sps:$4 sm:$0xff]  }
  0x16   :  { %462 = vmatprep.mubr.bf16.mxu0 %v107_v58  ;;  %503 = vmatprep.mubr.bf16.mxu1 %v107_v58  ;;  %v821_v5 = vld [vmem:[%s1088_s1 + $0x104] ss:$16 sps:$4 sm:$0xff]   ;;  %v823_v6 = vld [vmem:[%s1088_s1 + $0x10c] ss:$16 sps:$4 sm:$0xff]   ;;  %v825_v7 = vld [vmem:[%s1088_s1 + $0x100] ss:$16 sps:$4 sm:$0xff]  }
  0x17   :  { %441 = vmatpush1.bf16.msra.mxu0 %v765_v22  ;;  %482 = vmatpush1.bf16.msra.mxu1 %v766_v23  ;;  %v826_v8 = vld [vmem:[%s1088_s1 + $0x108] ss:$16 sps:$4 sm:$0xff]   ;;  %v828_v10 = vmov 1983009808  }
  0x18   :  { %442 = vmatprep.subr.bf16.mxu0 %v767_v24  ;;  %483 = vmatprep.subr.bf16.mxu1 %v769_v25  ;;  %v519_v11 = vunpack.c.l.s4 %v828_v10 }
  0x1a   :  { %v520_v12 = vunpack.c.0.s8 %v519_v11 }
  0x1b   :  { %443 = vmatpush1.bf16.msra.mxu0 %v771_v26  ;;  %484 = vmatpush1.bf16.msra.mxu1 %v772_v27 }
  0x1c   :  { %444 = vmatprep.subr.bf16.mxu0 %v773_v28  ;;  %485 = vmatprep.subr.bf16.mxu1 %v775_v29  ;;  %v523_v15 = vsub.s32 %v520_v12, %v980_v46 }
  0x1f   :  { %445 = vmatpush1.bf16.msra.mxu0 %v777_v30  ;;  %486 = vmatpush1.bf16.msra.mxu1 %v778_v31 }
  0x20   :  { %446 = vmatprep.subr.bf16.mxu0 %v779_v32  ;;  %487 = vmatprep.subr.bf16.mxu1 %v781_v33 }
  0x23   :  { %447 = vmatpush2.bf16.msra.mxu0 %v783_v34  ;;  %488 = vmatpush2.bf16.msra.mxu1 %v784_v35 }
  0x24   :  { %448 = vmatprep.subr.bf16.mxu0 %v785_v36  ;;  %489 = vmatprep.subr.bf16.mxu1 %v787_v37 }
  0x27   :  { %449 = vmatpush2.bf16.msra.mxu0 %v789_v41  ;;  %490 = vmatpush2.bf16.msra.mxu1 %v790_v42 }
  0x28   :  { %450 = vmatprep.subr.bf16.mxu0 %v791_v43  ;;  %491 = vmatprep.subr.bf16.mxu1 %v793_v44 }
  0x2b   :  { %451 = vmatpush2.bf16.msra.mxu0 %v795_v47  ;;  %492 = vmatpush2.bf16.msra.mxu1 %v796_v48 }
  0x2c   :  { %452 = vmatprep.subr.bf16.mxu0 %v797_v49  ;;  %493 = vmatprep.subr.bf16.mxu1 %v799_v50 }
  0x2f   :  { %453 = vmatpush2.bf16.msra.mxu0 %v801_v53  ;;  %494 = vmatpush2.bf16.msra.mxu1 %v802_v54 }
  0x30   :  { %454 = vmatprep.subr.bf16.mxu0 %v803_v56  ;;  %495 = vmatprep.subr.bf16.mxu1 %v805_v57 }
  0x33   :  { %455 = vmatpush2.bf16.msra.mxu0 %v807_v59  ;;  %496 = vmatpush2.bf16.msra.mxu1 %v808_v60 }
  0x34   :  { %456 = vmatprep.subr.bf16.mxu0 %v809_v61  ;;  %497 = vmatprep.subr.bf16.mxu1 %v811_v62 }
  0x37   :  { %457 = vmatpush2.bf16.msra.mxu0 %v813_v63  ;;  %498 = vmatpush2.bf16.msra.mxu1 %v814_v0 }
  0x38   :  { %458 = vmatprep.subr.bf16.mxu0 %v815_v1  ;;  %499 = vmatprep.subr.bf16.mxu1 %v817_v2 }
  0x3b   :  { %459 = vmatpush2.bf16.msra.mxu0 %v819_v3  ;;  %500 = vmatpush2.bf16.msra.mxu1 %v820_v4 }
  0x3c   :  { %460 = vmatprep.subr.bf16.mxu0 %v821_v5  ;;  %501 = vmatprep.subr.bf16.mxu1 %v823_v6 }
  0x3f   :  { %461 = vmatpush2.bf16.msra.mxu0 %v825_v7  ;;  %502 = vmatpush2.bf16.msra.mxu1 %v826_v8 }
  0x42   :  { %463 = vmatmul.mubr.bf16.vlgmr.msra.gmra.mxu0 %v100_v9  ;;  %504 = vmatmul.mubr.bf16.vlgmr.msra.gmra.mxu1 %v100_v9 }
 0x102   :  { %v464_v13 = vpop.f32.mrf.mxu0  ;;  %v505_v14 = vpop.f32.mrf.mxu1 }
 0x104   :  { %v466_v16 = vpop.f32.mrf.mxu0  ;;  %v507_v17 = vpop.f32.mrf.mxu1 }
 0x105   :  { %v516_v18 = vcombine.low %v464_v13, %v466_v16  ;;  %v517_v19 = vcombine.low %v505_v14, %v507_v17 }
 0x106   :  { %v468_v20 = vpop.f32.mrf.mxu0  ;;  %v509_v21 = vpop.f32.mrf.mxu1 }
 0x107   :  { %v524_v22 = vrot.slane %v516_v18, %v523_v15  ;;  %v531_v23 = vrot.slane %v517_v19, %v523_v15 }
 0x108   :  { %v469_v24 = vpop.f32.mrf.mxu0  ;;  %v510_v25 = vpop.f32.mrf.mxu1 }
 0x109   :  { %v532_v26 = vcombine.low %v524_v22, %v531_v23  ;;  %v728_v27 = vcombine.low %v531_v23, %v531_v23 }
 0x10b   :  { %540 = vst [vmem:[%s1090_s2] sm:$0xff] %v532_v26  ;;  %v549_v28 = vrot.slane %v532_v26, %v523_v15  ;;  %v556_v29 = vrot.slane %v728_v27, %v523_v15  ;;  %v596_v30 = vmul.f32 %v532_v26, %v532_v26 }
 0x10d   :  { %v557_v31 = vcombine.high %v549_v28, %v549_v28  ;;  %v558_v32 = vcombine.high %v556_v29, %v556_v29  ;;  %v564_v33 = vsel %vm563_vm0, %v549_v28, 0.0  ;;  %v578_v34 = vsel %vm563_vm0, %v556_v29, 0.0 }
 0x10e   :  { %v565_v35 = vrot.slane %v564_v33, 4  ;;  %v579_v36 = vrot.slane %v578_v34, 4  ;;  %v598_v37 = vcombine.high %v596_v30, %v596_v30  ;;  %v605_v38 = vrot.slane %v596_v30, %v523_v15 }
 0x10f   :  { %v571_v39 = vsel %vm563_vm0, %v557_v31, 0.0  ;;  %v585_v40 = vsel %vm563_vm0, %v558_v32, 0.0 }
 0x110   :  { %v566_v41 = vadd.f32 %v565_v35, %v564_v33  ;;  %v572_v42 = vrot.slane %v571_v39, 4  ;;  %v580_v43 = vadd.f32 %v579_v36, %v578_v34  ;;  %v586_v44 = vrot.slane %v585_v40, 4 }
 0x111   :  { %v612_v45 = vrot.slane %v598_v37, %v523_v15  ;;  %v613_v46 = vcombine.high %v605_v38, %v605_v38  ;;  %v619_v47 = vsel %vm563_vm0, %v605_v38, 0.0 }
 0x112   :  { %v567_v48 = vrot.slane %v566_v41, 2  ;;  %v573_v49 = vadd.f32 %v572_v42, %v571_v39  ;;  %v581_v50 = vrot.slane %v580_v43, 2  ;;  %v587_v51 = vadd.f32 %v586_v44, %v585_v40 }
 0x113   :  { %v614_v52 = vcombine.high %v612_v45, %v612_v45  ;;  %v620_v53 = vrot.slane %v619_v47, 4  ;;  %v626_v54 = vsel %vm563_vm0, %v613_v46, 0.0  ;;  %v633_v55 = vsel %vm563_vm0, %v612_v45, 0.0 }
 0x114   :  { %v568_v56 = vadd.f32 %v567_v48, %v566_v41  ;;  %v574_v57 = vrot.slane %v573_v49, 2  ;;  %v582_v58 = vadd.f32 %v581_v50, %v580_v43  ;;  %v588_v59 = vrot.slane %v587_v51, 2 }
 0x115   :  { %v621_v60 = vadd.f32 %v620_v53, %v619_v47  ;;  %v627_v61 = vrot.slane %v626_v54, 4  ;;  %v634_v62 = vrot.slane %v633_v55, 4  ;;  %v640_v63 = vsel %vm563_vm0, %v614_v52, 0.0 }
 0x116   :  { %v569_v0 = vrot.slane %v568_v56, 1  ;;  %v575_v1 = vadd.f32 %v574_v57, %v573_v49  ;;  %v583_v2 = vrot.slane %v582_v58, 1  ;;  %v589_v3 = vadd.f32 %v588_v59, %v587_v51 }
 0x117   :  { %v622_v4 = vrot.slane %v621_v60, 2  ;;  %v628_v5 = vadd.f32 %v627_v61, %v626_v54  ;;  %v635_v6 = vadd.f32 %v634_v62, %v633_v55  ;;  %v641_v7 = vrot.slane %v640_v63, 4 }
 0x118   :  { %v570_v8 = vadd.f32 %v569_v0, %v568_v56  ;;  %v576_v9 = vrot.slane %v575_v1, 1  ;;  %v584_v10 = vadd.f32 %v583_v2, %v582_v58  ;;  %v590_v11 = vrot.slane %v589_v3, 1 }
 0x119   :  { %v623_v12 = vadd.f32 %v622_v4, %v621_v60  ;;  %v629_v13 = vrot.slane %v628_v5, 2  ;;  %v636_v14 = vrot.slane %v635_v6, 2  ;;  %v642_v15 = vadd.f32 %v641_v7, %v640_v63 }
 0x11a   :  { %v577_v16 = vadd.f32 %v576_v9, %v575_v1  ;;  %v591_v17 = vadd.f32 %v590_v11, %v589_v3  ;;  %592 = vst [vmem:[%s1091_s3] sm:$0xff] %v570_v8  ;;  %594 = vst [vmem:[%s1091_s3 + $0x10] sm:$0xff] %v584_v10 }
 0x11b   :  { %v624_v18 = vrot.slane %v623_v12, 1  ;;  %v630_v19 = vadd.f32 %v629_v13, %v628_v5  ;;  %v637_v20 = vadd.f32 %v636_v14, %v635_v6  ;;  %v643_v21 = vrot.slane %v642_v15, 2 }
 0x11c   :  { %593 = vst [vmem:[%s1091_s3 + $0x8] sm:$0xff] %v577_v16  ;;  %595 = vst [vmem:[%s1091_s3 + $0x18] sm:$0xff] %v591_v17 }
 0x11d   :  { %v625_v22 = vadd.f32 %v624_v18, %v623_v12  ;;  %v631_v23 = vrot.slane %v630_v19, 1  ;;  %v638_v24 = vrot.slane %v637_v20, 1  ;;  %v644_v25 = vadd.f32 %v643_v21, %v642_v15 }
 0x11f   :  { %v632_v26 = vadd.f32 %v631_v23, %v630_v19  ;;  %v639_v27 = vadd.f32 %v638_v24, %v637_v20  ;;  %v645_v28 = vrot.slane %v644_v25, 1  ;;  %647 = vst [vmem:[%s1092_s4] sm:$0xff] %v625_v22 }
 0x121   :  { %v646_v29 = vadd.f32 %v645_v28, %v644_v25  ;;  %648 = vst [vmem:[%s1092_s4 + $0x8] sm:$0xff] %v632_v26  ;;  %649 = vst [vmem:[%s1092_s4 + $0x10] sm:$0xff] %v639_v27 }
 0x123   :  { %650 = vst [vmem:[%s1092_s4 + $0x18] sm:$0xff] %v646_v29 }

// kernel: resnet18_forward.72
= control target key start
LH: loop header
LB: loop body
LE: loop exit
PB: predicated region body
PF: predicated region fallthrough
CT: control target
= control target key end

     0   :  { %s331_s1 = inlined_call_operand.vmem [shape: f32[8,512], index: 1, kind: input, shape index: {}]   ;;  %s332_s2 = inlined_call_operand.vmem [shape: f32[8,512], index: 2, kind: input, shape index: {}]   ;;  %s333_s3 = inlined_call_operand.vmem [shape: f32[1,512], index: 3, kind: input, shape index: {}]   ;;  %s334_s4 = inlined_call_operand.vmem [shape: f32[1,512], index: 4, kind: input, shape index: {}]   ;;  %s335_s0 = inlined_call_operand.vmem [shape: f32[2,512], index: 0, kind: input, shape index: {}]   ;;  %s336_s5 = inlined_call_operand.vmem [shape: f32[2,512], index: 5, kind: output, shape index: {}]  }
   0x1   :  { %v20_v0 = vld [vmem:[%s331_s1] sm:$0xff]  ;;  %v21_v1 = vld [vmem:[%s331_s1 + $0x8] sm:$0xff]  ;;  %v22_v2 = vld [vmem:[%s331_s1 + $0x10] sm:$0xff] }
   0x2   :  { %v23_v3 = vld [vmem:[%s331_s1 + $0x18] sm:$0xff]  ;;  %v24_v4 = vrot.slane %v20_v0, 4  ;;  %v30_v5 = vrot.slane %v21_v1, 4  ;;  %v36_v6 = vrot.slane %v22_v2, 4  ;;  %v52_v7 = vld [vmem:[%s332_s2] sm:$0xff]  ;;  %v53_v8 = vld [vmem:[%s332_s2 + $0x8] sm:$0xff] }
   0x3   :  { %v42_v9 = vrot.slane %v23_v3, 4  ;;  %v54_v10 = vld [vmem:[%s332_s2 + $0x10] sm:$0xff]  ;;  %v55_v11 = vld [vmem:[%s332_s2 + $0x18] sm:$0xff]  ;;  %v56_v12 = vrot.slane %v52_v7, 4  ;;  %v62_v13 = vrot.slane %v53_v8, 4 }
   0x4   :  { %v25_v14 = vadd.f32 %v24_v4, %v20_v0  ;;  %v31_v15 = vadd.f32 %v30_v5, %v21_v1  ;;  %v37_v16 = vadd.f32 %v36_v6, %v22_v2  ;;  %v68_v17 = vrot.slane %v54_v10, 4 }
   0x5   :  { %v43_v18 = vadd.f32 %v42_v9, %v23_v3  ;;  %v57_v19 = vadd.f32 %v56_v12, %v52_v7  ;;  %v63_v20 = vadd.f32 %v62_v13, %v53_v8  ;;  %v74_v21 = vrot.slane %v55_v11, 4 }
   0x6   :  { %v26_v22 = vrot.slane %v25_v14, 2  ;;  %v32_v23 = vrot.slane %v31_v15, 2  ;;  %v38_v24 = vrot.slane %v37_v16, 2  ;;  %v69_v25 = vadd.f32 %v68_v17, %v54_v10 }
   0x7   :  { %v44_v26 = vrot.slane %v43_v18, 2  ;;  %v58_v27 = vrot.slane %v57_v19, 2  ;;  %v64_v28 = vrot.slane %v63_v20, 2  ;;  %v75_v29 = vadd.f32 %v74_v21, %v55_v11 }
   0x8   :  { %v27_v30 = vadd.f32 %v26_v22, %v25_v14  ;;  %v33_v31 = vadd.f32 %v32_v23, %v31_v15  ;;  %v39_v32 = vadd.f32 %v38_v24, %v37_v16  ;;  %v70_v33 = vrot.slane %v69_v25, 2 }
   0x9   :  { %v45_v34 = vadd.f32 %v44_v26, %v43_v18  ;;  %v59_v35 = vadd.f32 %v58_v27, %v57_v19  ;;  %v65_v36 = vadd.f32 %v64_v28, %v63_v20  ;;  %v76_v37 = vrot.slane %v75_v29, 2 }
   0xa   :  { %v28_v38 = vrot.slane %v27_v30, 1  ;;  %v34_v39 = vrot.slane %v33_v31, 1  ;;  %v40_v40 = vrot.slane %v39_v32, 1  ;;  %v71_v41 = vadd.f32 %v70_v33, %v69_v25 }
   0xb   :  { %v46_v42 = vrot.slane %v45_v34, 1  ;;  %v60_v43 = vrot.slane %v59_v35, 1  ;;  %v66_v44 = vrot.slane %v65_v36, 1  ;;  %v77_v45 = vadd.f32 %v76_v37, %v75_v29 }
   0xc   :  { %v29_v46 = vadd.f32 %v28_v38, %v27_v30  ;;  %v35_v47 = vadd.f32 %v34_v39, %v33_v31  ;;  %v41_v48 = vadd.f32 %v40_v40, %v39_v32  ;;  %v72_v49 = vrot.slane %v71_v41, 1  ;;  %v96_v31 = vld [vmem:[%s333_s3] sm:$0xf] }
   0xd   :  { %v47_v50 = vadd.f32 %v46_v42, %v45_v34  ;;  %v61_v51 = vadd.f32 %v60_v43, %v59_v35  ;;  %v67_v52 = vadd.f32 %v66_v44, %v65_v36  ;;  %v78_v53 = vrot.slane %v77_v45, 1 }
   0xe   :  { %v48_v54 = vmul.f32 0.0625, %v29_v46  ;;  %v49_v55 = vmul.f32 0.0625, %v35_v47  ;;  %v50_v56 = vmul.f32 0.0625, %v41_v48  ;;  %v73_v57 = vadd.f32 %v72_v49, %v71_v41 }
   0xf   :  { %v51_v58 = vmul.f32 0.0625, %v47_v50  ;;  %v79_v59 = vadd.f32 %v78_v53, %v77_v45  ;;  %v80_v60 = vmul.f32 0.0625, %v61_v51  ;;  %v81_v61 = vmul.f32 0.0625, %v67_v52 }
  0x10   :  { %v82_v62 = vmul.f32 0.0625, %v73_v57  ;;  %v84_v63 = vmul.f32 %v48_v54, %v48_v54  ;;  %v85_v0 = vmul.f32 %v49_v55, %v49_v55  ;;  %v86_v1 = vmul.f32 %v50_v56, %v50_v56 }
  0x11   :  { %v83_v2 = vmul.f32 0.0625, %v79_v59  ;;  %v87_v3 = vmul.f32 %v51_v58, %v51_v58  ;;  %v263_v16 = vmov 1966171168   ;;  %v114_v18 = vlaneseq }
  0x12   :  { %v88_v4 = vsub.f32 %v80_v60, %v84_v63  ;;  %v89_v5 = vsub.f32 %v81_v61, %v85_v0  ;;  %v90_v6 = vsub.f32 %v82_v62, %v86_v1  ;;  %v112_v17 = vunpack.c.l.s4 %v263_v16  ;;  %v135_v61 = vld [vmem:[%s334_s4] sm:$0xf] }
  0x13   :  { %v91_v7 = vsub.f32 %v83_v2, %v87_v3  ;;  %v115_v20 = vshrl.u32 %v114_v18, 7  ;;  %v264_v37 = vmov 1983009808   ;;  %v191_v3 = vld [vmem:[%s335_s0] sm:$0xff] }
  0x14   :  { %v92_v8 = vmax.f32 %v88_v4, 0.0  ;;  %v93_v9 = vmax.f32 %v89_v5, 0.0  ;;  %v94_v10 = vmax.f32 %v90_v6, 0.0  ;;  %v113_v19 = vunpack.c.0.s8 %v112_v17 }
  0x15   :  { %v95_v11 = vmax.f32 %v91_v7, 0.0  ;;  %v139_v32 = vsub.s32 0, %v115_v20  ;;  %v143_v34 = vsub.s32 1, %v115_v20  ;;  %v147_v35 = vsub.s32 2, %v115_v20 }
  0x16   :  { %v97_v12 = vadd.f32 1e-05, %v92_v8  ;;  %v98_v13 = vadd.f32 1e-05, %v93_v9  ;;  %v99_v14 = vadd.f32 1e-05, %v94_v10  ;;  %v116_v22 = vsub.s32 %v113_v19, %v115_v20 }
  0x17   :  { %v100_v15 = vadd.f32 1e-05, %v95_v11  ;;  %v151_v36 = vsub.s32 3, %v115_v20  ;;  %v195_v38 = vunpack.c.l.s4 %v264_v37 }
  0x18   :  { %255 = vrsqrt.f32 %v97_v12 }
  0x19   :  { %257 = vrsqrt.f32 %v98_v13  ;;  %v196_v44 = vunpack.c.0.s8 %v195_v38 }
  0x1a   :  { %259 = vrsqrt.f32 %v99_v14 }
  0x1b   :  { %261 = vrsqrt.f32 %v100_v15  ;;  %v199_v53 = vsub.s32 %v196_v44, %v115_v20 }
  0x25   :  { %v256_v21 = vpop.eup %255 }
  0x26   :  { %v258_v23 = vpop.eup %257 }
  0x27   :  { %v260_v24 = vpop.eup %259  ;;  %v109_v25 = vcombine.low %v256_v21, %v258_v23 }
  0x28   :  { %v262_v26 = vpop.eup %261 }
  0x29   :  { %v110_v27 = vcombine.low %v260_v24, %v262_v26  ;;  %v117_v28 = vrot.slane %v109_v25, %v116_v22 }
  0x2b   :  { %v124_v29 = vrot.slane %v110_v27, %v116_v22 }
  0x2d   :  { %v125_v30 = vcombine.low %v117_v28, %v124_v29 }
  0x2f   :  { %v132_v33 = vrot.slane %v125_v30, %v116_v22 }
  0x31   :  { %v134_v39 = vmul.f32 %v132_v33, %v96_v31 }
  0x33   :  { %v140_v40 = vrot.slane %v134_v39, %v139_v32  ;;  %v144_v41 = vrot.slane %v134_v39, %v143_v34  ;;  %v148_v42 = vrot.slane %v134_v39, %v147_v35  ;;  %v152_v43 = vrot.slane %v134_v39, %v151_v36 }
  0x35   :  { %v157_v45 = vmul.f32 %v140_v40, %v48_v54  ;;  %v158_v46 = vmul.f32 %v144_v41, %v49_v55  ;;  %v159_v47 = vmul.f32 %v148_v42, %v50_v56  ;;  %v160_v48 = vmul.f32 %v152_v43, %v51_v58 }
  0x36   :  { %v192_v51 = vcombine.low %v140_v40, %v144_v41  ;;  %v193_v52 = vcombine.low %v148_v42, %v152_v43 }
  0x37   :  { %v165_v49 = vcombine.low %v157_v45, %v158_v46  ;;  %v166_v50 = vcombine.low %v159_v47, %v160_v48 }
  0x38   :  { %v200_v62 = vrot.slane %v192_v51, %v199_v53  ;;  %v207_v63 = vrot.slane %v193_v52, %v199_v53 }
  0x39   :  { %v173_v57 = vrot.slane %v165_v49, %v116_v22  ;;  %v180_v59 = vrot.slane %v166_v50, %v116_v22 }
  0x3a   :  { %v208_v54 = vcombine.low %v200_v62, %v207_v63 }
  0x3b   :  { %v181_v60 = vcombine.low %v173_v57, %v180_v59 }
  0x3c   :  { %v210_v6 = vmul.f32 %v208_v54, %v191_v3 }
  0x3d   :  { %v188_v0 = vrot.slane %v181_v60, %v116_v22 }
  0x3f   :  { %v190_v1 = vsub.f32 %v135_v61, %v188_v0 }
  0x41   :  { %v215_v55 = vrot.slane %v190_v1, %v139_v32  ;;  %v219_v56 = vrot.slane %v190_v1, %v143_v34  ;;  %v223_v58 = vrot.slane %v190_v1, %v147_v35  ;;  %v227_v2 = vrot.slane %v190_v1, %v151_v36 }
  0x43   :  { %v228_v4 = vcombine.low %v215_v55, %v219_v56  ;;  %v229_v5 = vcombine.low %v223_v58, %v227_v2 }
  0x45   :  { %v236_v7 = vrot.slane %v228_v4, %v199_v53  ;;  %v243_v8 = vrot.slane %v229_v5, %v199_v53 }
  0x47   :  { %v244_v9 = vcombine.low %v236_v7, %v243_v8 }
  0x49   :  { %v246_v10 = vadd.f32 %v244_v9, %v210_v6 }
  0x4b   :  { %v247_v11 = vmax.f32 %v246_v10, 0.0 }
  0x4d   :  { %248 = vst [vmem:[%s336_s5] sm:$0xff] %v247_v11 }

// kernel: resnet18_forward.71
= control target key start
LH: loop header
LB: loop body
LE: loop exit
PB: predicated region body
PF: predicated region fallthrough
CT: control target
= control target key end

     0   :  { %s1304_s15 = smov 0   ;;  %s1306_s16 = smov 0   ;;  %s1456_s0 = inlined_call_operand.vmem [shape: bf16[2,2304], index: 0, kind: input, shape index: {}]   ;;  %s1457_s1 = inlined_call_operand.vmem [shape: bf16[2304,512], index: 1, kind: input, shape index: {}]   ;;  %s1458_s2 = inlined_call_operand.vmem [shape: f32[2,512], index: 2, kind: output, shape index: {0}]   ;;  %s1459_s3 = inlined_call_operand.vmem [shape: f32[8,512], index: 3, kind: output, shape index: {1}]   ;;  %s1460_s4 = inlined_call_operand.vmem [shape: f32[8,512], index: 4, kind: output, shape index: {2}]  }
   0x1   :  { %s1308_s17 = smov 0  }
   0x2 LB: > { %s24_s18 = sadd.s32 1, %s1270_s16  ;;  %p1050_p0 = scmp.ge.s32.totalorder %s1274_s17, 1  ;;  %s1274_s17 = sphi %s1308_s17, %s15_s17   ;;  %s1270_s16 = sphi %s1306_s16, %s1462_s16   ;;  %s1266_s15 = sphi %s1304_s15, %s1461_s15  }
   0x3   : > { %p25_p1 = scmp.ge.s32.totalorder %s24_s18, 9  ;;  %p197_p2 = scmp.lt.s32.totalorder %s1274_s17, 10 }
   0x5   : > { %s1464_s18 = smov (%p25_p1, %s24_s18), 0  ;;  %p198_p3 = pnand %p1050_p0, %p197_p2 }
   0x6   : > { %s1051_s19 = sshll.u32 (!%p198_p3), %s1266_s15, 1  ;;  %s1052_s20 = sshll.u32 (!%p198_p3), %s1266_s15, 5 }
   0x7   : > { %201 = sbr.rel (%p198_p3) target bundleno = 322 (0x142), region = 28  ;;  %p245_p4 = scmp.lt.s32.totalorder (!%p198_p3), %s1051_s19, 17 }
   0x8   : > { %p252_p5 = scmp.lt.s32.totalorder (!%p198_p3), %s1052_s20, 287  ;;  %p1055_p6 = scmp.ne.s32.totalorder (!%p198_p3), %s1266_s15, 0 }
   0xc   : > { %s1466_s19 = smov (!%p245_p4, %s1051_s19), 17  ;;  %s1468_s20 = smov (!%p252_p5, %s1052_s20), 287 }
   0xd   : > { %s249_s23 = scalar_lea.vmem %s1456_s0, %s1466_s19  ;;  %s1127_s24 = sshll.u32 %s1468_s20, 4 }
   0xe   : > { %s1335_s27 = scalar_lea.vmem %s1457_s1, %s1127_s24  ;;  %276 = sbr.rel (%p1055_p6) target bundleno = 21 (0x15), region = 32 }
  0x13   : > { %v1276_v0 = vmov 0.0  }
  0x14   : > { %277 = vst [vmem:[#allocation2] sm:$0xff] %v1276_v0 }
  0x15 PF: > { %v1155_v1 = vld [vmem:[%s1335_s27 + $0xe4] ss:$16 sps:$4 sm:$0xff]   ;;  %v1157_v2 = vld [vmem:[%s1335_s27 + $0xec] ss:$16 sps:$4 sm:$0xff]   ;;  %v1159_v3 = vld [vmem:[%s1335_s27 + $0xe0] ss:$16 sps:$4 sm:$0xff]   ;;  %v356_v41 = vlaneseq }
  0x16   : > { %689 = vmatprep.subr.bf16.mxu0 %v1155_v1  ;;  %v1160_v4 = vld [vmem:[%s1335_s27 + $0xe8] ss:$16 sps:$4 sm:$0xff]   ;;  %730 = vmatprep.subr.bf16.mxu1 %v1157_v2  ;;  %v1161_v5 = vld [vmem:[%s1335_s27 + $0xc4] ss:$16 sps:$4 sm:$0xff]   ;;  %v1163_v6 = vld [vmem:[%s1335_s27 + $0xcc] ss:$16 sps:$4 sm:$0xff]  }
  0x17   : > { %690 = vmatpush1.bf16.msra.mxu0 %v1159_v3  ;;  %731 = vmatpush1.bf16.msra.mxu1 %v1160_v4  ;;  %v1165_v7 = vld [vmem:[%s1335_s27 + $0xc0] ss:$16 sps:$4 sm:$0xff]   ;;  %v1166_v8 = vld [vmem:[%s1335_s27 + $0xc8] ss:$16 sps:$4 sm:$0xff]   ;;  %v1167_v9 = vld [vmem:[%s1335_s27 + $0xa4] ss:$16 sps:$4 sm:$0xff]  }
  0x18   : > { %691 = vmatprep.subr.bf16.mxu0 %v1161_v5  ;;  %732 = vmatprep.subr.bf16.mxu1 %v1163_v6  ;;  %v1169_v10 = vld [vmem:[%s1335_s27 + $0xac] ss:$16 sps:$4 sm:$0xff]   ;;  %v1171_v11 = vld [vmem:[%s1335_s27 + $0xa0] ss:$16 sps:$4 sm:$0xff]   ;;  %v1172_v12 = vld [vmem:[%s1335_s27 + $0xa8] ss:$16 sps:$4 sm:$0xff]  }
  0x19   : > { %v1173_v13 = vld [vmem:[%s1335_s27 + $0x84] ss:$16 sps:$4 sm:$0xff]   ;;  %v1175_v14 = vld [vmem:[%s1335_s27 + $0x8c] ss:$16 sps:$4 sm:$0xff]   ;;  %v1177_v15 = vld [vmem:[%s1335_s27 + $0x80] ss:$16 sps:$4 sm:$0xff]  }
  0x1a   : > { %v1178_v16 = vld [vmem:[%s1335_s27 + $0x88] ss:$16 sps:$4 sm:$0xff]   ;;  %v1179_v17 = vld [vmem:[%s1335_s27 + $0x64] ss:$16 sps:$4 sm:$0xff]   ;;  %v1181_v18 = vld [vmem:[%s1335_s27 + $0x6c] ss:$16 sps:$4 sm:$0xff]  }
  0x1b   : > { %692 = vmatpush1.bf16.msra.mxu0 %v1165_v7  ;;  %733 = vmatpush1.bf16.msra.mxu1 %v1166_v8  ;;  %v1183_v19 = vld [vmem:[%s1335_s27 + $0x60] ss:$16 sps:$4 sm:$0xff]   ;;  %v1184_v20 = vld [vmem:[%s1335_s27 + $0x68] ss:$16 sps:$4 sm:$0xff]   ;;  %v1185_v21 = vld [vmem:[%s1335_s27 + $0x44] ss:$16 sps:$4 sm:$0xff]  }
  0x1c   : > { %693 = vmatprep.subr.bf16.mxu0 %v1167_v9  ;;  %734 = vmatprep.subr.bf16.mxu1 %v1169_v10  ;;  %v1187_v22 = vld [vmem:[%s1335_s27 + $0x4c] ss:$16 sps:$4 sm:$0xff]   ;;  %v1189_v23 = vld [vmem:[%s1335_s27 + $0x40] ss:$16 sps:$4 sm:$0xff]   ;;  %v1190_v24 = vld [vmem:[%s1335_s27 + $0x48] ss:$16 sps:$4 sm:$0xff]  }
  0x1d   : > { %v1191_v25 = vld [vmem:[%s1335_s27 + $0x24] ss:$16 sps:$4 sm:$0xff]   ;;  %v1193_v26 = vld [vmem:[%s1335_s27 + $0x2c] ss:$16 sps:$4 sm:$0xff]   ;;  %v1195_v27 = vld [vmem:[%s1335_s27 + $0x20] ss:$16 sps:$4 sm:$0xff]  }
  0x1e   : > { %v1196_v28 = vld [vmem:[%s1335_s27 + $0x28] ss:$16 sps:$4 sm:$0xff]   ;;  %v1197_v29 = vld [vmem:[%s1335_s27 + $0x4] ss:$16 sps:$4 sm:$0xff]   ;;  %v1199_v30 = vld [vmem:[%s1335_s27 + $0xc] ss:$16 sps:$4 sm:$0xff]  }
  0x1f   : > { %694 = vmatpush1.bf16.msra.mxu0 %v1171_v11  ;;  %735 = vmatpush1.bf16.msra.mxu1 %v1172_v12  ;;  %v1201_v31 = vld [vmem:[%s1335_s27] ss:$16 sps:$4 sm:$0xff]   ;;  %v1202_v32 = vld [vmem:[%s1335_s27 + $0x8] ss:$16 sps:$4 sm:$0xff]   ;;  %v1203_v33 = vld [vmem:[%s1335_s27 + $0x1e4] ss:$16 sps:$4 sm:$0xff]  }
  0x20   : > { %695 = vmatprep.subr.bf16.mxu0 %v1173_v13  ;;  %736 = vmatprep.subr.bf16.mxu1 %v1175_v14  ;;  %v1205_v34 = vld [vmem:[%s1335_s27 + $0x1ec] ss:$16 sps:$4 sm:$0xff]   ;;  %v1207_v35 = vld [vmem:[%s1335_s27 + $0x1e0] ss:$16 sps:$4 sm:$0xff]   ;;  %v1208_v36 = vld [vmem:[%s1335_s27 + $0x1e8] ss:$16 sps:$4 sm:$0xff]  }
  0x21   : > { %v1209_v37 = vld [vmem:[%s1335_s27 + $0x1c4] ss:$16 sps:$4 sm:$0xff]   ;;  %v1211_v38 = vld [vmem:[%s1335_s27 + $0x1cc] ss:$16 sps:$4 sm:$0xff]   ;;  %v1277_v39 = vmov 1966171168  }
  0x22   : > { %v354_v40 = vunpack.c.l.s4 %v1277_v39  ;;  %v1213_v42 = vld [vmem:[%s1335_s27 + $0x1c0] ss:$16 sps:$4 sm:$0xff]   ;;  %v1214_v43 = vld [vmem:[%s1335_s27 + $0x1c8] ss:$16 sps:$4 sm:$0xff]   ;;  %v1215_v44 = vld [vmem:[%s1335_s27 + $0x1a4] ss:$16 sps:$4 sm:$0xff]  }
  0x23   : > { %696 = vmatpush1.bf16.msra.mxu0 %v1177_v15  ;;  %737 = vmatpush1.bf16.msra.mxu1 %v1178_v16  ;;  %v1217_v45 = vld [vmem:[%s1335_s27 + $0x1ac] ss:$16 sps:$4 sm:$0xff]   ;;  %v1380_v47 = vshrl.u32 %v356_v41, 7  ;;  %v1219_v48 = vld [vmem:[%s1335_s27 + $0x1a0] ss:$16 sps:$4 sm:$0xff]   ;;  %p1121_p7 = scmp.ne.s32.totalorder %s1266_s15, 8 }
  0x24   : > { %697 = vmatprep.subr.bf16.mxu0 %v1179_v17  ;;  %738 = vmatprep.subr.bf16.mxu1 %v1181_v18  ;;  %v355_v46 = vunpack.c.0.s8 %v354_v40  ;;  %v1220_v49 = vld [vmem:[%s1335_s27 + $0x1a8] ss:$16 sps:$4 sm:$0xff]   ;;  %v1221_v50 = vld [vmem:[%s1335_s27 + $0x184] ss:$16 sps:$4 sm:$0xff]   ;;  %v1223_v51 = vld [vmem:[%s1335_s27 + $0x18c] ss:$16 sps:$4 sm:$0xff]  }
  0x25   : > { %v1056_v53 = vld.sshfl [vmem:[%s249_s23] sm:$0x11 pattern:$0x75316420]  ;;  %v1226_v55 = vld [vmem:[%s1335_s27 + $0x188] ss:$16 sps:$4 sm:$0xff]  }
  0x26   : > { %v358_v52 = vsub.s32 %v355_v46, %v1380_v47  ;;  %v1225_v54 = vld [vmem:[%s1335_s27 + $0x180] ss:$16 sps:$4 sm:$0xff]   ;;  %v352_v56 = vcombine.high %v1056_v53, %v1056_v53  ;;  %v1227_v57 = vld [vmem:[%s1335_s27 + $0x164] ss:$16 sps:$4 sm:$0xff]   ;;  %v1229_v58 = vld [vmem:[%s1335_s27 + $0x16c] ss:$16 sps:$4 sm:$0xff]  }
  0x27   : > { %698 = vmatpush1.bf16.msra.mxu0 %v1183_v19  ;;  %739 = vmatpush1.bf16.msra.mxu1 %v1184_v20  ;;  %v1231_v60 = vld [vmem:[%s1335_s27 + $0x160] ss:$16 sps:$4 sm:$0xff]   ;;  %v1232_v61 = vld [vmem:[%s1335_s27 + $0x168] ss:$16 sps:$4 sm:$0xff]   ;;  %v1233_v62 = vld [vmem:[%s1335_s27 + $0x144] ss:$16 sps:$4 sm:$0xff]  }
  0x28   : > { %699 = vmatprep.subr.bf16.mxu0 %v1185_v21  ;;  %740 = vmatprep.subr.bf16.mxu1 %v1187_v22  ;;  %v366_v59 = vrot.slane %v352_v56, %v358_v52  ;;  %v1235_v63 = vld [vmem:[%s1335_s27 + $0x14c] ss:$16 sps:$4 sm:$0xff]   ;;  %v1237_v0 = vld [vmem:[%s1335_s27 + $0x140] ss:$16 sps:$4 sm:$0xff]   ;;  %v1238_v1 = vld [vmem:[%s1335_s27 + $0x148] ss:$16 sps:$4 sm:$0xff]   ;;  %v359_v10 = vrot.slane %v1056_v53, %v358_v52 }
  0x29   : > { %v1239_v2 = vld [vmem:[%s1335_s27 + $0x124] ss:$16 sps:$4 sm:$0xff]   ;;  %v1241_v3 = vld [vmem:[%s1335_s27 + $0x12c] ss:$16 sps:$4 sm:$0xff]   ;;  %v1243_v4 = vld [vmem:[%s1335_s27 + $0x120] ss:$16 sps:$4 sm:$0xff]  }
  0x2a   : > { %721 = vmatprep.mubr.bf16.mxu0 %v366_v59  ;;  %762 = vmatprep.mubr.bf16.mxu1 %v366_v59  ;;  %v1244_v5 = vld [vmem:[%s1335_s27 + $0x128] ss:$16 sps:$4 sm:$0xff]   ;;  %v1245_v6 = vld [vmem:[%s1335_s27 + $0x104] ss:$16 sps:$4 sm:$0xff]   ;;  %v1247_v7 = vld [vmem:[%s1335_s27 + $0x10c] ss:$16 sps:$4 sm:$0xff]  }
  0x2b   : > { %700 = vmatpush1.bf16.msra.mxu0 %v1189_v23  ;;  %741 = vmatpush1.bf16.msra.mxu1 %v1190_v24  ;;  %v1249_v8 = vld [vmem:[%s1335_s27 + $0x100] ss:$16 sps:$4 sm:$0xff]   ;;  %v1250_v9 = vld [vmem:[%s1335_s27 + $0x108] ss:$16 sps:$4 sm:$0xff]   ;;  %v1278_v11 = vmov 1983009808  }
  0x2c   : > { %701 = vmatprep.subr.bf16.mxu0 %v1191_v25  ;;  %742 = vmatprep.subr.bf16.mxu1 %v1193_v26  ;;  %v778_v12 = vunpack.c.l.s4 %v1278_v11  ;;  %v278_v25 = vld [vmem:[#allocation2] sm:$0xff] }
  0x2e   : > { %v779_v13 = vunpack.c.0.s8 %v778_v12 }
  0x2f   : > { %702 = vmatpush1.bf16.msra.mxu0 %v1195_v27  ;;  %743 = vmatpush1.bf16.msra.mxu1 %v1196_v28 }
  0x30   : > { %703 = vmatprep.subr.bf16.mxu0 %v1197_v29  ;;  %744 = vmatprep.subr.bf16.mxu1 %v1199_v30  ;;  %v782_v16 = vsub.s32 %v779_v13, %v1380_v47 }
  0x33   : > { %704 = vmatpush1.bf16.msra.mxu0 %v1201_v31  ;;  %745 = vmatpush1.bf16.msra.mxu1 %v1202_v32 }
  0x34   : > { %705 = vmatprep.subr.bf16.mxu0 %v1203_v33  ;;  %746 = vmatprep.subr.bf16.mxu1 %v1205_v34 }
  0x37   : > { %706 = vmatpush2.bf16.msra.mxu0 %v1207_v35  ;;  %747 = vmatpush2.bf16.msra.mxu1 %v1208_v36 }
  0x38   : > { %707 = vmatprep.subr.bf16.mxu0 %v1209_v37  ;;  %748 = vmatprep.subr.bf16.mxu1 %v1211_v38 }
  0x3b   : > { %708 = vmatpush2.bf16.msra.mxu0 %v1213_v42  ;;  %749 = vmatpush2.bf16.msra.mxu1 %v1214_v43 }
  0x3c   : > { %709 = vmatprep.subr.bf16.mxu0 %v1215_v44  ;;  %750 = vmatprep.subr.bf16.mxu1 %v1217_v45 }
  0x3f   : > { %710 = vmatpush2.bf16.msra.mxu0 %v1219_v48  ;;  %751 = vmatpush2.bf16.msra.mxu1 %v1220_v49 }
  0x40   : > { %711 = vmatprep.subr.bf16.mxu0 %v1221_v50  ;;  %752 = vmatprep.subr.bf16.mxu1 %v1223_v51 }
  0x43   : > { %712 = vmatpush2.bf16.msra.mxu0 %v1225_v54  ;;  %753 = vmatpush2.bf16.msra.mxu1 %v1226_v55 }
  0x44   : > { %713 = vmatprep.subr.bf16.mxu0 %v1227_v57  ;;  %754 = vmatprep.subr.bf16.mxu1 %v1229_v58 }
  0x47   : > { %714 = vmatpush2.bf16.msra.mxu0 %v1231_v60  ;;  %755 = vmatpush2.bf16.msra.mxu1 %v1232_v61 }
  0x48   : > { %715 = vmatprep.subr.bf16.mxu0 %v1233_v62  ;;  %756 = vmatprep.subr.bf16.mxu1 %v1235_v63 }
  0x4b   : > { %716 = vmatpush2.bf16.msra.mxu0 %v1237_v0  ;;  %757 = vmatpush2.bf16.msra.mxu1 %v1238_v1 }
  0x4c   : > { %717 = vmatprep.subr.bf16.mxu0 %v1239_v2  ;;  %758 = vmatprep.subr.bf16.mxu1 %v1241_v3 }
  0x4f   : > { %718 = vmatpush2.bf16.msra.mxu0 %v1243_v4  ;;  %759 = vmatpush2.bf16.msra.mxu1 %v1244_v5 }
  0x50   : > { %719 = vmatprep.subr.bf16.mxu0 %v1245_v6  ;;  %760 = vmatprep.subr.bf16.mxu1 %v1247_v7 }
  0x53   : > { %720 = vmatpush2.bf16.msra.mxu0 %v1249_v8  ;;  %761 = vmatpush2.bf16.msra.mxu1 %v1250_v9 }
  0x56   : > { %722 = vmatmul.mubr.bf16.vlgmr.msra.gmra.mxu0 %v359_v10  ;;  %763 = vmatmul.mubr.bf16.vlgmr.msra.gmra.mxu1 %v359_v10 }
 0x116   : > { %v723_v14 = vpop.f32.mrf.mxu0  ;;  %v764_v15 = vpop.f32.mrf.mxu1 }
 0x118   : > { %v725_v17 = vpop.f32.mrf.mxu0  ;;  %v766_v18 = vpop.f32.mrf.mxu1 }
 0x119   : > { %v775_v19 = vcombine.low %v723_v14, %v725_v17  ;;  %v776_v20 = vcombine.low %v764_v15, %v766_v18 }
 0x11a   : > { %v727_v21 = vpop.f32.mrf.mxu0  ;;  %v768_v22 = vpop.f32.mrf.mxu1 }
 0x11b   : > { %v783_v23 = vrot.slane %v775_v19, %v782_v16  ;;  %v790_v24 = vrot.slane %v776_v20, %v782_v16 }
 0x11c   : > { %v728_v26 = vpop.f32.mrf.mxu0  ;;  %v769_v27 = vpop.f32.mrf.mxu1 }
 0x11d   : > { %v791_v28 = vcombine.low %v783_v23, %v790_v24  ;;  %798 = sbr.rel (%p1121_p7) target bundleno = 322 (0x142), region = 36 }
 0x11f   : > { %v793_v29 = vadd.f32 %v791_v28, %v278_v25 }
 0x121   : > { %794 = vst [vmem:[#allocation2] sm:$0xff] %v793_v29 }
 0x122   : > { %vm823_vm0 = vcmask 1041408  }
 0x128   : > { %v799_v30 = vld [vmem:[#allocation2] sm:$0xff] }
 0x129   : > { %800 = vst [vmem:[%s1458_s2] sm:$0xff] %v799_v30  ;;  %v856_v31 = vmul.f32 %v799_v30, %v799_v30  ;;  %v809_v32 = vrot.slane %v799_v30, %v782_v16  ;;  %v802_v33 = vcombine.high %v799_v30, %v799_v30 }
 0x12b   : > { %v824_v34 = vsel %vm823_vm0, %v809_v32, 0.0  ;;  %v817_v35 = vcombine.high %v809_v32, %v809_v32  ;;  %v816_v36 = vrot.slane %v802_v33, %v782_v16  ;;  %v865_v37 = vrot.slane %v856_v31, %v782_v16 }
 0x12c   : > { %v825_v38 = vrot.slane %v824_v34, 4  ;;  %v858_v39 = vcombine.high %v856_v31, %v856_v31 }
 0x12d   : > { %v831_v40 = vsel %vm823_vm0, %v817_v35, 0.0  ;;  %v838_v41 = vsel %vm823_vm0, %v816_v36, 0.0  ;;  %v818_v42 = vcombine.high %v816_v36, %v816_v36  ;;  %v879_v43 = vsel %vm823_vm0, %v865_v37, 0.0 }
 0x12e   : > { %v826_v44 = vadd.f32 %v825_v38, %v824_v34  ;;  %v832_v45 = vrot.slane %v831_v40, 4  ;;  %v839_v46 = vrot.slane %v838_v41, 4  ;;  %v880_v47 = vrot.slane %v879_v43, 4 }
 0x12f   : > { %v845_v48 = vsel %vm823_vm0, %v818_v42, 0.0  ;;  %v873_v49 = vcombine.high %v865_v37, %v865_v37  ;;  %v872_v50 = vrot.slane %v858_v39, %v782_v16 }
 0x130   : > { %v827_v51 = vrot.slane %v826_v44, 2  ;;  %v833_v52 = vadd.f32 %v832_v45, %v831_v40  ;;  %v840_v53 = vadd.f32 %v839_v46, %v838_v41  ;;  %v846_v54 = vrot.slane %v845_v48, 4 }
 0x131   : > { %v881_v55 = vadd.f32 %v880_v47, %v879_v43  ;;  %v886_v56 = vsel %vm823_vm0, %v873_v49, 0.0  ;;  %v893_v57 = vsel %vm823_vm0, %v872_v50, 0.0  ;;  %v874_v58 = vcombine.high %v872_v50, %v872_v50 }
 0x132   : > { %v828_v59 = vadd.f32 %v827_v51, %v826_v44  ;;  %v834_v60 = vrot.slane %v833_v52, 2  ;;  %v841_v61 = vrot.slane %v840_v53, 2  ;;  %v847_v62 = vadd.f32 %v846_v54, %v845_v48 }
 0x133   : > { %v882_v63 = vrot.slane %v881_v55, 2  ;;  %v887_v0 = vrot.slane %v886_v56, 4  ;;  %v894_v1 = vrot.slane %v893_v57, 4  ;;  %v900_v2 = vsel %vm823_vm0, %v874_v58, 0.0 }
 0x134   : > { %v829_v3 = vrot.slane %v828_v59, 1  ;;  %v835_v4 = vadd.f32 %v834_v60, %v833_v52  ;;  %v842_v5 = vadd.f32 %v841_v61, %v840_v53  ;;  %v848_v6 = vrot.slane %v847_v62, 2 }
 0x135   : > { %v883_v7 = vadd.f32 %v882_v63, %v881_v55  ;;  %v888_v8 = vadd.f32 %v887_v0, %v886_v56  ;;  %v895_v9 = vadd.f32 %v894_v1, %v893_v57  ;;  %v901_v10 = vrot.slane %v900_v2, 4 }
 0x136   : > { %v830_v11 = vadd.f32 %v829_v3, %v828_v59  ;;  %v836_v12 = vrot.slane %v835_v4, 1  ;;  %v843_v13 = vrot.slane %v842_v5, 1  ;;  %v849_v14 = vadd.f32 %v848_v6, %v847_v62 }
 0x137   : > { %v884_v15 = vrot.slane %v883_v7, 1  ;;  %v889_v16 = vrot.slane %v888_v8, 2  ;;  %v896_v17 = vrot.slane %v895_v9, 2  ;;  %v902_v18 = vadd.f32 %v901_v10, %v900_v2 }
 0x138   : > { %852 = vst [vmem:[%s1459_s3] sm:$0xff] %v830_v11  ;;  %v837_v19 = vadd.f32 %v836_v12, %v835_v4  ;;  %v844_v20 = vadd.f32 %v843_v13, %v842_v5  ;;  %v850_v21 = vrot.slane %v849_v14, 1 }
 0x139   : > { %v885_v22 = vadd.f32 %v884_v15, %v883_v7  ;;  %v890_v23 = vadd.f32 %v889_v16, %v888_v8  ;;  %v897_v24 = vadd.f32 %v896_v17, %v895_v9  ;;  %v903_v25 = vrot.slane %v902_v18, 2 }
 0x13a   : > { %853 = vst [vmem:[%s1459_s3 + $0x8] sm:$0xff] %v837_v19  ;;  %854 = vst [vmem:[%s1459_s3 + $0x10] sm:$0xff] %v844_v20  ;;  %v851_v26 = vadd.f32 %v850_v21, %v849_v14 }
 0x13b   : > { %907 = vst [vmem:[%s1460_s4] sm:$0xff] %v885_v22  ;;  %v891_v27 = vrot.slane %v890_v23, 1  ;;  %v898_v28 = vrot.slane %v897_v24, 1  ;;  %v904_v29 = vadd.f32 %v903_v25, %v902_v18 }
 0x13c   : > { %855 = vst [vmem:[%s1459_s3 + $0x18] sm:$0xff] %v851_v26 }
 0x13d   : > { %v892_v30 = vadd.f32 %v891_v27, %v890_v23  ;;  %v899_v31 = vadd.f32 %v898_v28, %v897_v24  ;;  %v905_v32 = vrot.slane %v904_v29, 1 }
 0x13f   : > { %908 = vst [vmem:[%s1460_s4 + $0x8] sm:$0xff] %v892_v30  ;;  %909 = vst [vmem:[%s1460_s4 + $0x10] sm:$0xff] %v899_v31  ;;  %v906_v33 = vadd.f32 %v905_v32, %v904_v29 }
 0x141   : > { %910 = vst [vmem:[%s1460_s4 + $0x18] sm:$0xff] %v906_v33 }
 0x142 PF: > { %s15_s17 = sadd.s32 1, %s1274_s17   ;;  %s1461_s15 = smov %s1270_s16 }
 0x143   : > { %p12_p8 = scmp.ge.s32.totalorder %s15_s17, 11   ;;  %s1462_s16 = smov %s1464_s18 }
 0x145   :  { %14 = sbr.rel (!%p12_p8) target bundleno = 2 (0x2), region = 93 }

// kernel: resnet18_forward.76
= control target key start
LH: loop header
LB: loop body
LE: loop exit
PB: predicated region body
PF: predicated region fallthrough
CT: control target
= control target key end

     0   :  { %s344_s1 = inlined_call_operand.vmem [shape: f32[8,512], index: 1, kind: input, shape index: {}]   ;;  %s345_s2 = inlined_call_operand.vmem [shape: f32[8,512], index: 2, kind: input, shape index: {}]   ;;  %s346_s3 = inlined_call_operand.vmem [shape: f32[1,512], index: 3, kind: input, shape index: {}]   ;;  %s347_s4 = inlined_call_operand.vmem [shape: f32[1,512], index: 4, kind: input, shape index: {}]   ;;  %s348_s0 = inlined_call_operand.vmem [shape: f32[2,512], index: 0, kind: input, shape index: {}]   ;;  %s349_s5 = inlined_call_operand.vmem [shape: f32[2,512], index: 5, kind: input, shape index: {}]   ;;  %s350_s6 = inlined_call_operand.vmem [shape: f32[2,512], index: 6, kind: output, shape index: {}]  }
   0x1   :  { %v23_v0 = vld [vmem:[%s344_s1] sm:$0xff]  ;;  %v24_v1 = vld [vmem:[%s344_s1 + $0x8] sm:$0xff]  ;;  %v25_v2 = vld [vmem:[%s344_s1 + $0x10] sm:$0xff] }
   0x2   :  { %v26_v3 = vld [vmem:[%s344_s1 + $0x18] sm:$0xff]  ;;  %v27_v4 = vrot.slane %v23_v0, 4  ;;  %v33_v5 = vrot.slane %v24_v1, 4  ;;  %v39_v6 = vrot.slane %v25_v2, 4  ;;  %v55_v7 = vld [vmem:[%s345_s2] sm:$0xff]  ;;  %v56_v8 = vld [vmem:[%s345_s2 + $0x8] sm:$0xff] }
   0x3   :  { %v45_v9 = vrot.slane %v26_v3, 4  ;;  %v57_v10 = vld [vmem:[%s345_s2 + $0x10] sm:$0xff]  ;;  %v58_v11 = vld [vmem:[%s345_s2 + $0x18] sm:$0xff]  ;;  %v59_v12 = vrot.slane %v55_v7, 4  ;;  %v65_v13 = vrot.slane %v56_v8, 4 }
   0x4   :  { %v28_v14 = vadd.f32 %v27_v4, %v23_v0  ;;  %v34_v15 = vadd.f32 %v33_v5, %v24_v1  ;;  %v40_v16 = vadd.f32 %v39_v6, %v25_v2  ;;  %v71_v17 = vrot.slane %v57_v10, 4 }
   0x5   :  { %v46_v18 = vadd.f32 %v45_v9, %v26_v3  ;;  %v60_v19 = vadd.f32 %v59_v12, %v55_v7  ;;  %v66_v20 = vadd.f32 %v65_v13, %v56_v8  ;;  %v77_v21 = vrot.slane %v58_v11, 4 }
   0x6   :  { %v29_v22 = vrot.slane %v28_v14, 2  ;;  %v35_v23 = vrot.slane %v34_v15, 2  ;;  %v41_v24 = vrot.slane %v40_v16, 2  ;;  %v72_v25 = vadd.f32 %v71_v17, %v57_v10 }
   0x7   :  { %v47_v26 = vrot.slane %v46_v18, 2  ;;  %v61_v27 = vrot.slane %v60_v19, 2  ;;  %v67_v28 = vrot.slane %v66_v20, 2  ;;  %v78_v29 = vadd.f32 %v77_v21, %v58_v11 }
   0x8   :  { %v30_v30 = vadd.f32 %v29_v22, %v28_v14  ;;  %v36_v31 = vadd.f32 %v35_v23, %v34_v15  ;;  %v42_v32 = vadd.f32 %v41_v24, %v40_v16  ;;  %v73_v33 = vrot.slane %v72_v25, 2 }
   0x9   :  { %v48_v34 = vadd.f32 %v47_v26, %v46_v18  ;;  %v62_v35 = vadd.f32 %v61_v27, %v60_v19  ;;  %v68_v36 = vadd.f32 %v67_v28, %v66_v20  ;;  %v79_v37 = vrot.slane %v78_v29, 2 }
   0xa   :  { %v31_v38 = vrot.slane %v30_v30, 1  ;;  %v37_v39 = vrot.slane %v36_v31, 1  ;;  %v43_v40 = vrot.slane %v42_v32, 1  ;;  %v74_v41 = vadd.f32 %v73_v33, %v72_v25 }
   0xb   :  { %v49_v42 = vrot.slane %v48_v34, 1  ;;  %v63_v43 = vrot.slane %v62_v35, 1  ;;  %v69_v44 = vrot.slane %v68_v36, 1  ;;  %v80_v45 = vadd.f32 %v79_v37, %v78_v29 }
   0xc   :  { %v32_v46 = vadd.f32 %v31_v38, %v30_v30  ;;  %v38_v47 = vadd.f32 %v37_v39, %v36_v31  ;;  %v44_v48 = vadd.f32 %v43_v40, %v42_v32  ;;  %v75_v49 = vrot.slane %v74_v41, 1  ;;  %v99_v31 = vld [vmem:[%s346_s3] sm:$0xf] }
   0xd   :  { %v50_v50 = vadd.f32 %v49_v42, %v48_v34  ;;  %v64_v51 = vadd.f32 %v63_v43, %v62_v35  ;;  %v70_v52 = vadd.f32 %v69_v44, %v68_v36  ;;  %v81_v53 = vrot.slane %v80_v45, 1 }
   0xe   :  { %v51_v54 = vmul.f32 0.0625, %v32_v46  ;;  %v52_v55 = vmul.f32 0.0625, %v38_v47  ;;  %v53_v56 = vmul.f32 0.0625, %v44_v48  ;;  %v76_v57 = vadd.f32 %v75_v49, %v74_v41 }
   0xf   :  { %v54_v58 = vmul.f32 0.0625, %v50_v50  ;;  %v82_v59 = vadd.f32 %v81_v53, %v80_v45  ;;  %v83_v60 = vmul.f32 0.0625, %v64_v51  ;;  %v84_v61 = vmul.f32 0.0625, %v70_v52 }
  0x10   :  { %v85_v62 = vmul.f32 0.0625, %v76_v57  ;;  %v87_v63 = vmul.f32 %v51_v54, %v51_v54  ;;  %v88_v0 = vmul.f32 %v52_v55, %v52_v55  ;;  %v89_v1 = vmul.f32 %v53_v56, %v53_v56 }
  0x11   :  { %v86_v2 = vmul.f32 0.0625, %v82_v59  ;;  %v90_v3 = vmul.f32 %v54_v58, %v54_v58  ;;  %v268_v16 = vmov 1966171168   ;;  %v117_v18 = vlaneseq }
  0x12   :  { %v91_v4 = vsub.f32 %v83_v60, %v87_v63  ;;  %v92_v5 = vsub.f32 %v84_v61, %v88_v0  ;;  %v93_v6 = vsub.f32 %v85_v62, %v89_v1  ;;  %v115_v17 = vunpack.c.l.s4 %v268_v16  ;;  %v138_v61 = vld [vmem:[%s347_s4] sm:$0xf] }
  0x13   :  { %v94_v7 = vsub.f32 %v86_v2, %v90_v3  ;;  %v118_v20 = vshrl.u32 %v117_v18, 7  ;;  %v269_v37 = vmov 1983009808   ;;  %v194_v3 = vld [vmem:[%s348_s0] sm:$0xff] }
  0x14   :  { %v95_v8 = vmax.f32 %v91_v4, 0.0  ;;  %v96_v9 = vmax.f32 %v92_v5, 0.0  ;;  %v97_v10 = vmax.f32 %v93_v6, 0.0  ;;  %v116_v19 = vunpack.c.0.s8 %v115_v17 }
  0x15   :  { %v98_v11 = vmax.f32 %v94_v7, 0.0  ;;  %v142_v32 = vsub.s32 0, %v118_v20  ;;  %v146_v34 = vsub.s32 1, %v118_v20  ;;  %v150_v35 = vsub.s32 2, %v118_v20 }
  0x16   :  { %v100_v12 = vadd.f32 1e-05, %v95_v8  ;;  %v101_v13 = vadd.f32 1e-05, %v96_v9  ;;  %v102_v14 = vadd.f32 1e-05, %v97_v10  ;;  %v119_v22 = vsub.s32 %v116_v19, %v118_v20 }
  0x17   :  { %v103_v15 = vadd.f32 1e-05, %v98_v11  ;;  %v154_v36 = vsub.s32 3, %v118_v20  ;;  %v198_v38 = vunpack.c.l.s4 %v269_v37  ;;  %v250_v10 = vld [vmem:[%s349_s5] sm:$0xff] }
  0x18   :  { %260 = vrsqrt.f32 %v100_v12 }
  0x19   :  { %262 = vrsqrt.f32 %v101_v13  ;;  %v199_v44 = vunpack.c.0.s8 %v198_v38 }
  0x1a   :  { %264 = vrsqrt.f32 %v102_v14 }
  0x1b   :  { %266 = vrsqrt.f32 %v103_v15  ;;  %v202_v53 = vsub.s32 %v199_v44, %v118_v20 }
  0x25   :  { %v261_v21 = vpop.eup %260 }
  0x26   :  { %v263_v23 = vpop.eup %262 }
  0x27   :  { %v265_v24 = vpop.eup %264  ;;  %v112_v25 = vcombine.low %v261_v21, %v263_v23 }
  0x28   :  { %v267_v26 = vpop.eup %266 }
  0x29   :  { %v113_v27 = vcombine.low %v265_v24, %v267_v26  ;;  %v120_v28 = vrot.slane %v112_v25, %v119_v22 }
  0x2b   :  { %v127_v29 = vrot.slane %v113_v27, %v119_v22 }
  0x2d   :  { %v128_v30 = vcombine.low %v120_v28, %v127_v29 }
  0x2f   :  { %v135_v33 = vrot.slane %v128_v30, %v119_v22 }
  0x31   :  { %v137_v39 = vmul.f32 %v135_v33, %v99_v31 }
  0x33   :  { %v143_v40 = vrot.slane %v137_v39, %v142_v32  ;;  %v147_v41 = vrot.slane %v137_v39, %v146_v34  ;;  %v151_v42 = vrot.slane %v137_v39, %v150_v35  ;;  %v155_v43 = vrot.slane %v137_v39, %v154_v36 }
  0x35   :  { %v160_v45 = vmul.f32 %v143_v40, %v51_v54  ;;  %v161_v46 = vmul.f32 %v147_v41, %v52_v55  ;;  %v162_v47 = vmul.f32 %v151_v42, %v53_v56  ;;  %v163_v48 = vmul.f32 %v155_v43, %v54_v58 }
  0x36   :  { %v195_v51 = vcombine.low %v143_v40, %v147_v41  ;;  %v196_v52 = vcombine.low %v151_v42, %v155_v43 }
  0x37   :  { %v168_v49 = vcombine.low %v160_v45, %v161_v46  ;;  %v169_v50 = vcombine.low %v162_v47, %v163_v48 }
  0x38   :  { %v203_v62 = vrot.slane %v195_v51, %v202_v53  ;;  %v210_v63 = vrot.slane %v196_v52, %v202_v53 }
  0x39   :  { %v176_v57 = vrot.slane %v168_v49, %v119_v22  ;;  %v183_v59 = vrot.slane %v169_v50, %v119_v22 }
  0x3a   :  { %v211_v54 = vcombine.low %v203_v62, %v210_v63 }
  0x3b   :  { %v184_v60 = vcombine.low %v176_v57, %v183_v59 }
  0x3c   :  { %v213_v6 = vmul.f32 %v211_v54, %v194_v3 }
  0x3d   :  { %v191_v0 = vrot.slane %v184_v60, %v119_v22 }
  0x3f   :  { %v193_v1 = vsub.f32 %v138_v61, %v191_v0 }
  0x41   :  { %v218_v55 = vrot.slane %v193_v1, %v142_v32  ;;  %v222_v56 = vrot.slane %v193_v1, %v146_v34  ;;  %v226_v58 = vrot.slane %v193_v1, %v150_v35  ;;  %v230_v2 = vrot.slane %v193_v1, %v154_v36 }
  0x43   :  { %v231_v4 = vcombine.low %v218_v55, %v222_v56  ;;  %v232_v5 = vcombine.low %v226_v58, %v230_v2 }
  0x45   :  { %v239_v7 = vrot.slane %v231_v4, %v202_v53  ;;  %v246_v8 = vrot.slane %v232_v5, %v202_v53 }
  0x47   :  { %v247_v9 = vcombine.low %v239_v7, %v246_v8 }
  0x49   :  { %v249_v11 = vadd.f32 %v247_v9, %v213_v6 }
  0x4b   :  { %v251_v12 = vadd.f32 %v250_v10, %v249_v11 }
  0x4d   :  { %v252_v13 = vmax.f32 %v251_v12, 0.0 }
  0x4f   :  { %253 = vst [vmem:[%s350_s6] sm:$0xff] %v252_v13 }

// kernel: resnet18_forward.75
= control target key start
LH: loop header
LB: loop body
LE: loop exit
PB: predicated region body
PF: predicated region fallthrough
CT: control target
= control target key end

     0   :  { %s1304_s15 = smov 0   ;;  %s1306_s16 = smov 0   ;;  %s1456_s0 = inlined_call_operand.vmem [shape: bf16[2,4608], index: 0, kind: input, shape index: {}]   ;;  %s1457_s1 = inlined_call_operand.vmem [shape: bf16[4608,512], index: 1, kind: input, shape index: {}]   ;;  %s1458_s2 = inlined_call_operand.vmem [shape: f32[2,512], index: 2, kind: output, shape index: {0}]   ;;  %s1459_s3 = inlined_call_operand.vmem [shape: f32[8,512], index: 3, kind: output, shape index: {1}]   ;;  %s1460_s4 = inlined_call_operand.vmem [shape: f32[8,512], index: 4, kind: output, shape index: {2}]  }
   0x1   :  { %s1308_s17 = smov 0  }
   0x2 LB: > { %s24_s18 = sadd.s32 1, %s1270_s16  ;;  %p1050_p0 = scmp.ge.s32.totalorder %s1274_s17, 1  ;;  %s1274_s17 = sphi %s1308_s17, %s15_s17   ;;  %s1270_s16 = sphi %s1306_s16, %s1462_s16   ;;  %s1266_s15 = sphi %s1304_s15, %s1461_s15  }
   0x3   : > { %p25_p1 = scmp.ge.s32.totalorder %s24_s18, 18  ;;  %p197_p2 = scmp.lt.s32.totalorder %s1274_s17, 19 }
   0x5   : > { %s1464_s18 = smov (%p25_p1, %s24_s18), 0  ;;  %p198_p3 = pnand %p1050_p0, %p197_p2 }
   0x6   : > { %s1051_s19 = sshll.u32 (!%p198_p3), %s1266_s15, 1  ;;  %s1052_s20 = sshll.u32 (!%p198_p3), %s1266_s15, 5 }
   0x7   : > { %201 = sbr.rel (%p198_p3) target bundleno = 322 (0x142), region = 28  ;;  %p245_p4 = scmp.lt.s32.totalorder (!%p198_p3), %s1051_s19, 35 }
   0x8   : > { %p252_p5 = scmp.lt.s32.totalorder (!%p198_p3), %s1052_s20, 575  ;;  %p1055_p6 = scmp.ne.s32.totalorder (!%p198_p3), %s1266_s15, 0 }
   0xc   : > { %s1466_s19 = smov (!%p245_p4, %s1051_s19), 35  ;;  %s1468_s20 = smov (!%p252_p5, %s1052_s20), 575 }
   0xd   : > { %s249_s23 = scalar_lea.vmem %s1456_s0, %s1466_s19  ;;  %s1127_s24 = sshll.u32 %s1468_s20, 4 }
   0xe   : > { %s1335_s27 = scalar_lea.vmem %s1457_s1, %s1127_s24  ;;  %276 = sbr.rel (%p1055_p6) target bundleno = 21 (0x15), region = 32 }
  0x13   : > { %v1276_v0 = vmov 0.0  }
  0x14   : > { %277 = vst [vmem:[#allocation2] sm:$0xff] %v1276_v0 }
  0x15 PF: > { %v1155_v1 = vld [vmem:[%s1335_s27 + $0xe4] ss:$16 sps:$4 sm:$0xff]   ;;  %v1157_v2 = vld [vmem:[%s1335_s27 + $0xec] ss:$16 sps:$4 sm:$0xff]   ;;  %v1159_v3 = vld [vmem:[%s1335_s27 + $0xe0] ss:$16 sps:$4 sm:$0xff]   ;;  %v356_v41 = vlaneseq }
  0x16   : > { %689 = vmatprep.subr.bf16.mxu0 %v1155_v1  ;;  %v1160_v4 = vld [vmem:[%s1335_s27 + $0xe8] ss:$16 sps:$4 sm:$0xff]   ;;  %730 = vmatprep.subr.bf16.mxu1 %v1157_v2  ;;  %v1161_v5 = vld [vmem:[%s1335_s27 + $0xc4] ss:$16 sps:$4 sm:$0xff]   ;;  %v1163_v6 = vld [vmem:[%s1335_s27 + $0xcc] ss:$16 sps:$4 sm:$0xff]  }
  0x17   : > { %690 = vmatpush1.bf16.msra.mxu0 %v1159_v3  ;;  %731 = vmatpush1.bf16.msra.mxu1 %v1160_v4  ;;  %v1165_v7 = vld [vmem:[%s1335_s27 + $0xc0] ss:$16 sps:$4 sm:$0xff]   ;;  %v1166_v8 = vld [vmem:[%s1335_s27 + $0xc8] ss:$16 sps:$4 sm:$0xff]   ;;  %v1167_v9 = vld [vmem:[%s1335_s27 + $0xa4] ss:$16 sps:$4 sm:$0xff]  }
  0x18   : > { %691 = vmatprep.subr.bf16.mxu0 %v1161_v5  ;;  %732 = vmatprep.subr.bf16.mxu1 %v1163_v6  ;;  %v1169_v10 = vld [vmem:[%s1335_s27 + $0xac] ss:$16 sps:$4 sm:$0xff]   ;;  %v1171_v11 = vld [vmem:[%s1335_s27 + $0xa0] ss:$16 sps:$4 sm:$0xff]   ;;  %v1172_v12 = vld [vmem:[%s1335_s27 + $0xa8] ss:$16 sps:$4 sm:$0xff]  }
  0x19   : > { %v1173_v13 = vld [vmem:[%s1335_s27 + $0x84] ss:$16 sps:$4 sm:$0xff]   ;;  %v1175_v14 = vld [vmem:[%s1335_s27 + $0x8c] ss:$16 sps:$4 sm:$0xff]   ;;  %v1177_v15 = vld [vmem:[%s1335_s27 + $0x80] ss:$16 sps:$4 sm:$0xff]  }
  0x1a   : > { %v1178_v16 = vld [vmem:[%s1335_s27 + $0x88] ss:$16 sps:$4 sm:$0xff]   ;;  %v1179_v17 = vld [vmem:[%s1335_s27 + $0x64] ss:$16 sps:$4 sm:$0xff]   ;;  %v1181_v18 = vld [vmem:[%s1335_s27 + $0x6c] ss:$16 sps:$4 sm:$0xff]  }
  0x1b   : > { %692 = vmatpush1.bf16.msra.mxu0 %v1165_v7  ;;  %733 = vmatpush1.bf16.msra.mxu1 %v1166_v8  ;;  %v1183_v19 = vld [vmem:[%s1335_s27 + $0x60] ss:$16 sps:$4 sm:$0xff]   ;;  %v1184_v20 = vld [vmem:[%s1335_s27 + $0x68] ss:$16 sps:$4 sm:$0xff]   ;;  %v1185_v21 = vld [vmem:[%s1335_s27 + $0x44] ss:$16 sps:$4 sm:$0xff]  }
  0x1c   : > { %693 = vmatprep.subr.bf16.mxu0 %v1167_v9  ;;  %734 = vmatprep.subr.bf16.mxu1 %v1169_v10  ;;  %v1187_v22 = vld [vmem:[%s1335_s27 + $0x4c] ss:$16 sps:$4 sm:$0xff]   ;;  %v1189_v23 = vld [vmem:[%s1335_s27 + $0x40] ss:$16 sps:$4 sm:$0xff]   ;;  %v1190_v24 = vld [vmem:[%s1335_s27 + $0x48] ss:$16 sps:$4 sm:$0xff]  }
  0x1d   : > { %v1191_v25 = vld [vmem:[%s1335_s27 + $0x24] ss:$16 sps:$4 sm:$0xff]   ;;  %v1193_v26 = vld [vmem:[%s1335_s27 + $0x2c] ss:$16 sps:$4 sm:$0xff]   ;;  %v1195_v27 = vld [vmem:[%s1335_s27 + $0x20] ss:$16 sps:$4 sm:$0xff]  }
  0x1e   : > { %v1196_v28 = vld [vmem:[%s1335_s27 + $0x28] ss:$16 sps:$4 sm:$0xff]   ;;  %v1197_v29 = vld [vmem:[%s1335_s27 + $0x4] ss:$16 sps:$4 sm:$0xff]   ;;  %v1199_v30 = vld [vmem:[%s1335_s27 + $0xc] ss:$16 sps:$4 sm:$0xff]  }
  0x1f   : > { %694 = vmatpush1.bf16.msra.mxu0 %v1171_v11  ;;  %735 = vmatpush1.bf16.msra.mxu1 %v1172_v12  ;;  %v1201_v31 = vld [vmem:[%s1335_s27] ss:$16 sps:$4 sm:$0xff]   ;;  %v1202_v32 = vld [vmem:[%s1335_s27 + $0x8] ss:$16 sps:$4 sm:$0xff]   ;;  %v1203_v33 = vld [vmem:[%s1335_s27 + $0x1e4] ss:$16 sps:$4 sm:$0xff]  }
  0x20   : > { %695 = vmatprep.subr.bf16.mxu0 %v1173_v13  ;;  %736 = vmatprep.subr.bf16.mxu1 %v1175_v14  ;;  %v1205_v34 = vld [vmem:[%s1335_s27 + $0x1ec] ss:$16 sps:$4 sm:$0xff]   ;;  %v1207_v35 = vld [vmem:[%s1335_s27 + $0x1e0] ss:$16 sps:$4 sm:$0xff]   ;;  %v1208_v36 = vld [vmem:[%s1335_s27 + $0x1e8] ss:$16 sps:$4 sm:$0xff]  }
  0x21   : > { %v1209_v37 = vld [vmem:[%s1335_s27 + $0x1c4] ss:$16 sps:$4 sm:$0xff]   ;;  %v1211_v38 = vld [vmem:[%s1335_s27 + $0x1cc] ss:$16 sps:$4 sm:$0xff]   ;;  %v1277_v39 = vmov 1966171168  }
  0x22   : > { %v354_v40 = vunpack.c.l.s4 %v1277_v39  ;;  %v1213_v42 = vld [vmem:[%s1335_s27 + $0x1c0] ss:$16 sps:$4 sm:$0xff]   ;;  %v1214_v43 = vld [vmem:[%s1335_s27 + $0x1c8] ss:$16 sps:$4 sm:$0xff]   ;;  %v1215_v44 = vld [vmem:[%s1335_s27 + $0x1a4] ss:$16 sps:$4 sm:$0xff]  }
  0x23   : > { %696 = vmatpush1.bf16.msra.mxu0 %v1177_v15  ;;  %737 = vmatpush1.bf16.msra.mxu1 %v1178_v16  ;;  %v1217_v45 = vld [vmem:[%s1335_s27 + $0x1ac] ss:$16 sps:$4 sm:$0xff]   ;;  %v1380_v47 = vshrl.u32 %v356_v41, 7  ;;  %v1219_v48 = vld [vmem:[%s1335_s27 + $0x1a0] ss:$16 sps:$4 sm:$0xff]   ;;  %p1121_p7 = scmp.ne.s32.totalorder %s1266_s15, 17 }
  0x24   : > { %697 = vmatprep.subr.bf16.mxu0 %v1179_v17  ;;  %738 = vmatprep.subr.bf16.mxu1 %v1181_v18  ;;  %v355_v46 = vunpack.c.0.s8 %v354_v40  ;;  %v1220_v49 = vld [vmem:[%s1335_s27 + $0x1a8] ss:$16 sps:$4 sm:$0xff]   ;;  %v1221_v50 = vld [vmem:[%s1335_s27 + $0x184] ss:$16 sps:$4 sm:$0xff]   ;;  %v1223_v51 = vld [vmem:[%s1335_s27 + $0x18c] ss:$16 sps:$4 sm:$0xff]  }
  0x25   : > { %v1056_v53 = vld.sshfl [vmem:[%s249_s23] sm:$0x11 pattern:$0x75316420]  ;;  %v1226_v55 = vld [vmem:[%s1335_s27 + $0x188] ss:$16 sps:$4 sm:$0xff]  }
  0x26   : > { %v358_v52 = vsub.s32 %v355_v46, %v1380_v47  ;;  %v1225_v54 = vld [vmem:[%s1335_s27 + $0x180] ss:$16 sps:$4 sm:$0xff]   ;;  %v352_v56 = vcombine.high %v1056_v53, %v1056_v53  ;;  %v1227_v57 = vld [vmem:[%s1335_s27 + $0x164] ss:$16 sps:$4 sm:$0xff]   ;;  %v1229_v58 = vld [vmem:[%s1335_s27 + $0x16c] ss:$16 sps:$4 sm:$0xff]  }
  0x27   : > { %698 = vmatpush1.bf16.msra.mxu0 %v1183_v19  ;;  %739 = vmatpush1.bf16.msra.mxu1 %v1184_v20  ;;  %v1231_v60 = vld [vmem:[%s1335_s27 + $0x160] ss:$16 sps:$4 sm:$0xff]   ;;  %v1232_v61 = vld [vmem:[%s1335_s27 + $0x168] ss:$16 sps:$4 sm:$0xff]   ;;  %v1233_v62 = vld [vmem:[%s1335_s27 + $0x144] ss:$16 sps:$4 sm:$0xff]  }
  0x28   : > { %699 = vmatprep.subr.bf16.mxu0 %v1185_v21  ;;  %740 = vmatprep.subr.bf16.mxu1 %v1187_v22  ;;  %v366_v59 = vrot.slane %v352_v56, %v358_v52  ;;  %v1235_v63 = vld [vmem:[%s1335_s27 + $0x14c] ss:$16 sps:$4 sm:$0xff]   ;;  %v1237_v0 = vld [vmem:[%s1335_s27 + $0x140] ss:$16 sps:$4 sm:$0xff]   ;;  %v1238_v1 = vld [vmem:[%s1335_s27 + $0x148] ss:$16 sps:$4 sm:$0xff]   ;;  %v359_v10 = vrot.slane %v1056_v53, %v358_v52 }
  0x29   : > { %v1239_v2 = vld [vmem:[%s1335_s27 + $0x124] ss:$16 sps:$4 sm:$0xff]   ;;  %v1241_v3 = vld [vmem:[%s1335_s27 + $0x12c] ss:$16 sps:$4 sm:$0xff]   ;;  %v1243_v4 = vld [vmem:[%s1335_s27 + $0x120] ss:$16 sps:$4 sm:$0xff]  }
  0x2a   : > { %721 = vmatprep.mubr.bf16.mxu0 %v366_v59  ;;  %762 = vmatprep.mubr.bf16.mxu1 %v366_v59  ;;  %v1244_v5 = vld [vmem:[%s1335_s27 + $0x128] ss:$16 sps:$4 sm:$0xff]   ;;  %v1245_v6 = vld [vmem:[%s1335_s27 + $0x104] ss:$16 sps:$4 sm:$0xff]   ;;  %v1247_v7 = vld [vmem:[%s1335_s27 + $0x10c] ss:$16 sps:$4 sm:$0xff]  }
  0x2b   : > { %700 = vmatpush1.bf16.msra.mxu0 %v1189_v23  ;;  %741 = vmatpush1.bf16.msra.mxu1 %v1190_v24  ;;  %v1249_v8 = vld [vmem:[%s1335_s27 + $0x100] ss:$16 sps:$4 sm:$0xff]   ;;  %v1250_v9 = vld [vmem:[%s1335_s27 + $0x108] ss:$16 sps:$4 sm:$0xff]   ;;  %v1278_v11 = vmov 1983009808  }
  0x2c   : > { %701 = vmatprep.subr.bf16.mxu0 %v1191_v25  ;;  %742 = vmatprep.subr.bf16.mxu1 %v1193_v26  ;;  %v778_v12 = vunpack.c.l.s4 %v1278_v11  ;;  %v278_v25 = vld [vmem:[#allocation2] sm:$0xff] }
  0x2e   : > { %v779_v13 = vunpack.c.0.s8 %v778_v12 }
  0x2f   : > { %702 = vmatpush1.bf16.msra.mxu0 %v1195_v27  ;;  %743 = vmatpush1.bf16.msra.mxu1 %v1196_v28 }
  0x30   : > { %703 = vmatprep.subr.bf16.mxu0 %v1197_v29  ;;  %744 = vmatprep.subr.bf16.mxu1 %v1199_v30  ;;  %v782_v16 = vsub.s32 %v779_v13, %v1380_v47 }
  0x33   : > { %704 = vmatpush1.bf16.msra.mxu0 %v1201_v31  ;;  %745 = vmatpush1.bf16.msra.mxu1 %v1202_v32 }
  0x34   : > { %705 = vmatprep.subr.bf16.mxu0 %v1203_v33  ;;  %746 = vmatprep.subr.bf16.mxu1 %v1205_v34 }
  0x37   : > { %706 = vmatpush2.bf16.msra.mxu0 %v1207_v35  ;;  %747 = vmatpush2.bf16.msra.mxu1 %v1208_v36 }
  0x38   : > { %707 = vmatprep.subr.bf16.mxu0 %v1209_v37  ;;  %748 = vmatprep.subr.bf16.mxu1 %v1211_v38 }
  0x3b   : > { %708 = vmatpush2.bf16.msra.mxu0 %v1213_v42  ;;  %749 = vmatpush2.bf16.msra.mxu1 %v1214_v43 }
  0x3c   : > { %709 = vmatprep.subr.bf16.mxu0 %v1215_v44  ;;  %750 = vmatprep.subr.bf16.mxu1 %v1217_v45 }
  0x3f   : > { %710 = vmatpush2.bf16.msra.mxu0 %v1219_v48  ;;  %751 = vmatpush2.bf16.msra.mxu1 %v1220_v49 }
  0x40   : > { %711 = vmatprep.subr.bf16.mxu0 %v1221_v50  ;;  %752 = vmatprep.subr.bf16.mxu1 %v1223_v51 }
  0x43   : > { %712 = vmatpush2.bf16.msra.mxu0 %v1225_v54  ;;  %753 = vmatpush2.bf16.msra.mxu1 %v1226_v55 }
  0x44   : > { %713 = vmatprep.subr.bf16.mxu0 %v1227_v57  ;;  %754 = vmatprep.subr.bf16.mxu1 %v1229_v58 }
  0x47   : > { %714 = vmatpush2.bf16.msra.mxu0 %v1231_v60  ;;  %755 = vmatpush2.bf16.msra.mxu1 %v1232_v61 }
  0x48   : > { %715 = vmatprep.subr.bf16.mxu0 %v1233_v62  ;;  %756 = vmatprep.subr.bf16.mxu1 %v1235_v63 }
  0x4b   : > { %716 = vmatpush2.bf16.msra.mxu0 %v1237_v0  ;;  %757 = vmatpush2.bf16.msra.mxu1 %v1238_v1 }
  0x4c   : > { %717 = vmatprep.subr.bf16.mxu0 %v1239_v2  ;;  %758 = vmatprep.subr.bf16.mxu1 %v1241_v3 }
  0x4f   : > { %718 = vmatpush2.bf16.msra.mxu0 %v1243_v4  ;;  %759 = vmatpush2.bf16.msra.mxu1 %v1244_v5 }
  0x50   : > { %719 = vmatprep.subr.bf16.mxu0 %v1245_v6  ;;  %760 = vmatprep.subr.bf16.mxu1 %v1247_v7 }
  0x53   : > { %720 = vmatpush2.bf16.msra.mxu0 %v1249_v8  ;;  %761 = vmatpush2.bf16.msra.mxu1 %v1250_v9 }
  0x56   : > { %722 = vmatmul.mubr.bf16.vlgmr.msra.gmra.mxu0 %v359_v10  ;;  %763 = vmatmul.mubr.bf16.vlgmr.msra.gmra.mxu1 %v359_v10 }
 0x116   : > { %v723_v14 = vpop.f32.mrf.mxu0  ;;  %v764_v15 = vpop.f32.mrf.mxu1 }
 0x118   : > { %v725_v17 = vpop.f32.mrf.mxu0  ;;  %v766_v18 = vpop.f32.mrf.mxu1 }
 0x119   : > { %v775_v19 = vcombine.low %v723_v14, %v725_v17  ;;  %v776_v20 = vcombine.low %v764_v15, %v766_v18 }
 0x11a   : > { %v727_v21 = vpop.f32.mrf.mxu0  ;;  %v768_v22 = vpop.f32.mrf.mxu1 }
 0x11b   : > { %v783_v23 = vrot.slane %v775_v19, %v782_v16  ;;  %v790_v24 = vrot.slane %v776_v20, %v782_v16 }
 0x11c   : > { %v728_v26 = vpop.f32.mrf.mxu0  ;;  %v769_v27 = vpop.f32.mrf.mxu1 }
 0x11d   : > { %v791_v28 = vcombine.low %v783_v23, %v790_v24  ;;  %798 = sbr.rel (%p1121_p7) target bundleno = 322 (0x142), region = 36 }
 0x11f   : > { %v793_v29 = vadd.f32 %v791_v28, %v278_v25 }
 0x121   : > { %794 = vst [vmem:[#allocation2] sm:$0xff] %v793_v29 }
 0x122   : > { %vm823_vm0 = vcmask 1041408  }
 0x128   : > { %v799_v30 = vld [vmem:[#allocation2] sm:$0xff] }
 0x129   : > { %800 = vst [vmem:[%s1458_s2] sm:$0xff] %v799_v30  ;;  %v856_v31 = vmul.f32 %v799_v30, %v799_v30  ;;  %v809_v32 = vrot.slane %v799_v30, %v782_v16  ;;  %v802_v33 = vcombine.high %v799_v30, %v799_v30 }
 0x12b   : > { %v824_v34 = vsel %vm823_vm0, %v809_v32, 0.0  ;;  %v817_v35 = vcombine.high %v809_v32, %v809_v32  ;;  %v816_v36 = vrot.slane %v802_v33, %v782_v16  ;;  %v865_v37 = vrot.slane %v856_v31, %v782_v16 }
 0x12c   : > { %v825_v38 = vrot.slane %v824_v34, 4  ;;  %v858_v39 = vcombine.high %v856_v31, %v856_v31 }
 0x12d   : > { %v831_v40 = vsel %vm823_vm0, %v817_v35, 0.0  ;;  %v838_v41 = vsel %vm823_vm0, %v816_v36, 0.0  ;;  %v818_v42 = vcombine.high %v816_v36, %v816_v36  ;;  %v879_v43 = vsel %vm823_vm0, %v865_v37, 0.0 }
 0x12e   : > { %v826_v44 = vadd.f32 %v825_v38, %v824_v34  ;;  %v832_v45 = vrot.slane %v831_v40, 4  ;;  %v839_v46 = vrot.slane %v838_v41, 4  ;;  %v880_v47 = vrot.slane %v879_v43, 4 }
 0x12f   : > { %v845_v48 = vsel %vm823_vm0, %v818_v42, 0.0  ;;  %v873_v49 = vcombine.high %v865_v37, %v865_v37  ;;  %v872_v50 = vrot.slane %v858_v39, %v782_v16 }
 0x130   : > { %v827_v51 = vrot.slane %v826_v44, 2  ;;  %v833_v52 = vadd.f32 %v832_v45, %v831_v40  ;;  %v840_v53 = vadd.f32 %v839_v46, %v838_v41  ;;  %v846_v54 = vrot.slane %v845_v48, 4 }
 0x131   : > { %v881_v55 = vadd.f32 %v880_v47, %v879_v43  ;;  %v886_v56 = vsel %vm823_vm0, %v873_v49, 0.0  ;;  %v893_v57 = vsel %vm823_vm0, %v872_v50, 0.0  ;;  %v874_v58 = vcombine.high %v872_v50, %v872_v50 }
 0x132   : > { %v828_v59 = vadd.f32 %v827_v51, %v826_v44  ;;  %v834_v60 = vrot.slane %v833_v52, 2  ;;  %v841_v61 = vrot.slane %v840_v53, 2  ;;  %v847_v62 = vadd.f32 %v846_v54, %v845_v48 }
 0x133   : > { %v882_v63 = vrot.slane %v881_v55, 2  ;;  %v887_v0 = vrot.slane %v886_v56, 4  ;;  %v894_v1 = vrot.slane %v893_v57, 4  ;;  %v900_v2 = vsel %vm823_vm0, %v874_v58, 0.0 }
 0x134   : > { %v829_v3 = vrot.slane %v828_v59, 1  ;;  %v835_v4 = vadd.f32 %v834_v60, %v833_v52  ;;  %v842_v5 = vadd.f32 %v841_v61, %v840_v53  ;;  %v848_v6 = vrot.slane %v847_v62, 2 }
 0x135   : > { %v883_v7 = vadd.f32 %v882_v63, %v881_v55  ;;  %v888_v8 = vadd.f32 %v887_v0, %v886_v56  ;;  %v895_v9 = vadd.f32 %v894_v1, %v893_v57  ;;  %v901_v10 = vrot.slane %v900_v2, 4 }
 0x136   : > { %v830_v11 = vadd.f32 %v829_v3, %v828_v59  ;;  %v836_v12 = vrot.slane %v835_v4, 1  ;;  %v843_v13 = vrot.slane %v842_v5, 1  ;;  %v849_v14 = vadd.f32 %v848_v6, %v847_v62 }
 0x137   : > { %v884_v15 = vrot.slane %v883_v7, 1  ;;  %v889_v16 = vrot.slane %v888_v8, 2  ;;  %v896_v17 = vrot.slane %v895_v9, 2  ;;  %v902_v18 = vadd.f32 %v901_v10, %v900_v2 }
 0x138   : > { %852 = vst [vmem:[%s1459_s3] sm:$0xff] %v830_v11  ;;  %v837_v19 = vadd.f32 %v836_v12, %v835_v4  ;;  %v844_v20 = vadd.f32 %v843_v13, %v842_v5  ;;  %v850_v21 = vrot.slane %v849_v14, 1 }
 0x139   : > { %v885_v22 = vadd.f32 %v884_v15, %v883_v7  ;;  %v890_v23 = vadd.f32 %v889_v16, %v888_v8  ;;  %v897_v24 = vadd.f32 %v896_v17, %v895_v9  ;;  %v903_v25 = vrot.slane %v902_v18, 2 }
 0x13a   : > { %853 = vst [vmem:[%s1459_s3 + $0x8] sm:$0xff] %v837_v19  ;;  %854 = vst [vmem:[%s1459_s3 + $0x10] sm:$0xff] %v844_v20  ;;  %v851_v26 = vadd.f32 %v850_v21, %v849_v14 }
 0x13b   : > { %907 = vst [vmem:[%s1460_s4] sm:$0xff] %v885_v22  ;;  %v891_v27 = vrot.slane %v890_v23, 1  ;;  %v898_v28 = vrot.slane %v897_v24, 1  ;;  %v904_v29 = vadd.f32 %v903_v25, %v902_v18 }
 0x13c   : > { %855 = vst [vmem:[%s1459_s3 + $0x18] sm:$0xff] %v851_v26 }
 0x13d   : > { %v892_v30 = vadd.f32 %v891_v27, %v890_v23  ;;  %v899_v31 = vadd.f32 %v898_v28, %v897_v24  ;;  %v905_v32 = vrot.slane %v904_v29, 1 }
 0x13f   : > { %908 = vst [vmem:[%s1460_s4 + $0x8] sm:$0xff] %v892_v30  ;;  %909 = vst [vmem:[%s1460_s4 + $0x10] sm:$0xff] %v899_v31  ;;  %v906_v33 = vadd.f32 %v905_v32, %v904_v29 }
 0x141   : > { %910 = vst [vmem:[%s1460_s4 + $0x18] sm:$0xff] %v906_v33 }
 0x142 PF: > { %s15_s17 = sadd.s32 1, %s1274_s17   ;;  %s1461_s15 = smov %s1270_s16 }
 0x143   : > { %p12_p8 = scmp.ge.s32.totalorder %s15_s17, 20   ;;  %s1462_s16 = smov %s1464_s18 }
 0x145   :  { %14 = sbr.rel (!%p12_p8) target bundleno = 2 (0x2), region = 93 }

// kernel: resnet18_forward.81
= control target key start
LH: loop header
LB: loop body
LE: loop exit
PB: predicated region body
PF: predicated region fallthrough
CT: control target
= control target key end

     0   :  { %v39_v21 = vlaneseq  ;;  %vm367_vm0 = vcmask 1041409   ;;  %vm370_vm1 = vcmask 1042434   ;;  %vm373_vm2 = vcmask 1043459   ;;  %s1075_s1 = inlined_call_operand.vmem [shape: bf16[512,128], index: 1, kind: input, shape index: {}]   ;;  %s1076_s0 = inlined_call_operand.vmem [shape: f32[8,1,512], index: 0, kind: input, shape index: {}]   ;;  %s1077_s2 = inlined_call_operand.vmem [shape: f32[1,128], index: 2, kind: input, shape index: {}]   ;;  %s1078_s3 = inlined_call_operand.vmem [shape: f32[8,128], index: 3, kind: output, shape index: {}]  }
   0x1   :  { %v791_v0 = vld [vmem:[%s1075_s1 + $0x78] sm:$0xff]   ;;  %v795_v4 = vld [vmem:[%s1075_s1 + $0x70] sm:$0xff]   ;;  %v799_v8 = vld [vmem:[%s1075_s1 + $0x68] sm:$0xff]   ;;  %vm376_vm3 = vcmask 1044484   ;;  %vm379_vm4 = vcmask 1045509   ;;  %vm382_vm5 = vcmask 1046534  }
   0x2   :  { %v792_v1 = vld [vmem:[%s1075_s1 + $0xf8] sm:$0xff]   ;;  %747 = vmatprep.subr.bf16.mxu0 %v791_v0  ;;  %v796_v5 = vld [vmem:[%s1075_s1 + $0xf0] sm:$0xff]   ;;  %v800_v9 = vld [vmem:[%s1075_s1 + $0xe8] sm:$0xff]   ;;  %v40_v26 = vshrl.u32 %v39_v21, 7  ;;  %vm385_vm6 = vcmask 1047559  }
   0x3   :  { %v793_v2 = vld [vmem:[%s1075_s1 + $0x38] sm:$0xff]   ;;  %769 = vmatprep.subr.bf16.mxu1 %v792_v1  ;;  %v797_v6 = vld [vmem:[%s1075_s1 + $0x30] sm:$0xff]   ;;  %v801_v10 = vld [vmem:[%s1075_s1 + $0x28] sm:$0xff]  }
   0x4   :  { %v794_v3 = vld [vmem:[%s1075_s1 + $0xb8] sm:$0xff]   ;;  %748 = vmatpush3.bf16.msra.mxu0 %v793_v2  ;;  %v798_v7 = vld [vmem:[%s1075_s1 + $0xb0] sm:$0xff]   ;;  %v802_v11 = vld [vmem:[%s1075_s1 + $0xa8] sm:$0xff]   ;;  %v45_v31 = vsub.s32 1, %v40_v26  ;;  %v933_v33 = vsub.s32 3, %v40_v26  ;;  %v938_v35 = vsub.s32 0, %v40_v26 }
   0x5   :  { %770 = vmatpush3.bf16.msra.mxu1 %v794_v3  ;;  %749 = vmatprep.subr.bf16.mxu0 %v795_v4  ;;  %v803_v12 = vld [vmem:[%s1075_s1 + $0x60] sm:$0xff]   ;;  %v807_v16 = vld [vmem:[%s1075_s1 + $0x58] sm:$0xff]   ;;  %v811_v20 = vld [vmem:[%s1075_s1 + $0x50] sm:$0xff]   ;;  %v943_v37 = vsub.s32 2, %v40_v26 }
   0x6   :  { %771 = vmatprep.subr.bf16.mxu1 %v796_v5  ;;  %v804_v13 = vld [vmem:[%s1075_s1 + $0xe0] sm:$0xff]   ;;  %v808_v17 = vld [vmem:[%s1075_s1 + $0xd8] sm:$0xff]   ;;  %v812_v22 = vld [vmem:[%s1075_s1 + $0xd0] sm:$0xff]  }
   0x7   :  { %v805_v14 = vld [vmem:[%s1075_s1 + $0x20] sm:$0xff]   ;;  %v809_v18 = vld [vmem:[%s1075_s1 + $0x18] sm:$0xff]   ;;  %v813_v23 = vld [vmem:[%s1075_s1 + $0x10] sm:$0xff]  }
   0x8   :  { %750 = vmatpush3.bf16.msra.mxu0 %v797_v6  ;;  %v806_v15 = vld [vmem:[%s1075_s1 + $0xa0] sm:$0xff]   ;;  %v810_v19 = vld [vmem:[%s1075_s1 + $0x98] sm:$0xff]   ;;  %v814_v24 = vld [vmem:[%s1075_s1 + $0x90] sm:$0xff]  }
   0x9   :  { %772 = vmatpush3.bf16.msra.mxu1 %v798_v7  ;;  %751 = vmatprep.subr.bf16.mxu0 %v799_v8  ;;  %v815_v25 = vld [vmem:[%s1075_s1 + $0x48] sm:$0xff]   ;;  %v819_v30 = vld [vmem:[%s1075_s1 + $0x40] sm:$0xff]   ;;  %v968_v42 = vld [vmem:[%s1076_s0 + $0x10] sm:$0xf] }
   0xa   :  { %773 = vmatprep.subr.bf16.mxu1 %v800_v9  ;;  %v816_v27 = vld [vmem:[%s1075_s1 + $0xc8] sm:$0xff]   ;;  %v820_v32 = vld [vmem:[%s1075_s1 + $0xc0] sm:$0xff]   ;;  %v973_v43 = vld [vmem:[%s1076_s0 + $0x14] sm:$0xf]  ;;  %v110_v51 = vrot.slane %v968_v42, %v45_v31 }
   0xb   :  { %v817_v28 = vld [vmem:[%s1075_s1 + $0x8] sm:$0xff]   ;;  %v821_v34 = vld [vmem:[%s1075_s1] sm:$0xff]   ;;  %v983_v48 = vld [vmem:[%s1076_s0 + $0x18] sm:$0xf]  ;;  %v126_v52 = vrot.slane %v973_v43, %v45_v31 }
   0xc   :  { %752 = vmatpush3.bf16.msra.mxu0 %v801_v10  ;;  %v818_v29 = vld [vmem:[%s1075_s1 + $0x88] sm:$0xff]   ;;  %v822_v36 = vld [vmem:[%s1075_s1 + $0x80] sm:$0xff]   ;;  %v988_v49 = vld [vmem:[%s1076_s0 + $0x1c] sm:$0xf]  ;;  %v142_v54 = vrot.slane %v983_v48, %v45_v31  ;;  %v216_v60 = vpack.c.bf16 %v110_v51, %v110_v51  ;;  %v150_v21 = vrot.slane %v983_v48, %v933_v33 }
   0xd   :  { %774 = vmatpush3.bf16.msra.mxu1 %v802_v11  ;;  %753 = vmatprep.subr.bf16.mxu0 %v803_v12  ;;  %v948_v38 = vld [vmem:[%s1076_s0] sm:$0xf]  ;;  %v953_v39 = vld [vmem:[%s1076_s0 + $0x4] sm:$0xf]  ;;  %v958_v40 = vld [vmem:[%s1076_s0 + $0x8] sm:$0xf]  ;;  %v158_v55 = vrot.slane %v988_v49, %v45_v31  ;;  %v220_v61 = vpack.c.bf16 %v126_v52, %v126_v52 }
   0xe   :  { %775 = vmatprep.subr.bf16.mxu1 %v804_v13  ;;  %v963_v41 = vld [vmem:[%s1076_s0 + $0xc] sm:$0xf]  ;;  %v46_v44 = vrot.slane %v948_v38, %v45_v31  ;;  %v62_v45 = vrot.slane %v953_v39, %v45_v31  ;;  %v78_v46 = vrot.slane %v958_v40, %v45_v31  ;;  %v54_v47 = vrot.slane %v948_v38, %v933_v33 }
   0xf   :  { %v94_v50 = vrot.slane %v963_v41, %v45_v31  ;;  %v70_v53 = vrot.slane %v953_v39, %v933_v33  ;;  %v224_v62 = vpack.c.bf16 %v142_v54, %v142_v54  ;;  %v228_v63 = vpack.c.bf16 %v158_v55, %v158_v55 }
  0x10   :  { %754 = vmatpush3.bf16.msra.mxu0 %v805_v14  ;;  %v200_v56 = vpack.c.bf16 %v46_v44, %v46_v44  ;;  %v204_v57 = vpack.c.bf16 %v62_v45, %v62_v45  ;;  %v208_v58 = vpack.c.bf16 %v78_v46, %v78_v46  ;;  %v351_v4 = vunpack.c.l.b16 %v216_v60 }
  0x11   :  { %776 = vmatpush3.bf16.msra.mxu1 %v806_v15  ;;  %755 = vmatprep.subr.bf16.mxu0 %v807_v16  ;;  %v212_v59 = vpack.c.bf16 %v94_v50, %v94_v50  ;;  %v355_v5 = vunpack.c.l.b16 %v220_v61  ;;  %v359_v6 = vunpack.c.l.b16 %v224_v62  ;;  %v363_v7 = vunpack.c.l.b16 %v228_v63 }
  0x12   :  { %777 = vmatprep.subr.bf16.mxu1 %v808_v17  ;;  %v335_v0 = vunpack.c.l.b16 %v200_v56  ;;  %v339_v1 = vunpack.c.l.b16 %v204_v57  ;;  %v343_v2 = vunpack.c.l.b16 %v208_v58  ;;  %v86_v9 = vrot.slane %v958_v40, %v933_v33 }
  0x13   :  { %v347_v3 = vunpack.c.l.b16 %v212_v59  ;;  %v393_v12 = vrot.slane %v351_v4, 4  ;;  %v395_v13 = vrot.slane %v355_v5, 3  ;;  %v397_v15 = vrot.slane %v359_v6, 2 }
  0x14   :  { %756 = vmatpush3.bf16.msra.mxu0 %v809_v18  ;;  %v387_v8 = vrot.slane %v339_v1, 7  ;;  %v389_v10 = vrot.slane %v343_v2, 6  ;;  %v399_v16 = vrot.slane %v363_v7, 1  ;;  %v102_v17 = vrot.slane %v963_v41, %v933_v33 }
  0x15   :  { %778 = vmatpush3.bf16.msra.mxu1 %v810_v19  ;;  %757 = vmatprep.subr.bf16.mxu0 %v811_v20  ;;  %v391_v11 = vrot.slane %v347_v3, 5  ;;  %v118_v19 = vrot.slane %v968_v42, %v933_v33  ;;  %v134_v20 = vrot.slane %v973_v43, %v933_v33  ;;  %v42_v63 = vrot.slane %v948_v38, %v938_v35 }
  0x16   :  { %779 = vmatprep.subr.bf16.mxu1 %v812_v22  ;;  %v388_v14 = vsel %vm367_vm0, %v387_v8, %v335_v0  ;;  %v58_v1 = vrot.slane %v953_v39, %v938_v35  ;;  %v74_v2 = vrot.slane %v958_v40, %v938_v35  ;;  %v90_v3 = vrot.slane %v963_v41, %v938_v35 }
  0x17   :  { %v390_v18 = vsel %vm370_vm1, %v389_v10, %v388_v14  ;;  %v222_v31 = vpack.c.bf16 %v134_v20, %v134_v20  ;;  %v106_v5 = vrot.slane %v968_v42, %v938_v35  ;;  %v122_v6 = vrot.slane %v973_v43, %v938_v35 }
  0x18   :  { %758 = vmatpush3.bf16.msra.mxu0 %v813_v23  ;;  %v392_v22 = vsel %vm373_vm2, %v391_v11, %v390_v18  ;;  %v166_v23 = vrot.slane %v988_v49, %v933_v33  ;;  %v138_v7 = vrot.slane %v983_v48, %v938_v35  ;;  %v199_v10 = vpack.c.bf16 %v42_v63, %v42_v63 }
  0x19   :  { %780 = vmatpush3.bf16.msra.mxu1 %v814_v24  ;;  %759 = vmatprep.subr.bf16.mxu0 %v815_v25  ;;  %v202_v24 = vpack.c.bf16 %v54_v47, %v54_v47  ;;  %v206_v25 = vpack.c.bf16 %v70_v53, %v70_v53  ;;  %v394_v26 = vsel %vm376_vm3, %v393_v12, %v392_v22  ;;  %v357_v51 = vunpack.c.l.b16 %v222_v31 }
  0x1a   :  { %781 = vmatprep.subr.bf16.mxu1 %v816_v27  ;;  %v210_v27 = vpack.c.bf16 %v86_v9, %v86_v9  ;;  %v154_v9 = vrot.slane %v988_v49, %v938_v35  ;;  %v203_v11 = vpack.c.bf16 %v58_v1, %v58_v1  ;;  %v211_v14 = vpack.c.bf16 %v90_v3, %v90_v3 }
  0x1b   :  { %v337_v44 = vunpack.c.l.b16 %v202_v24  ;;  %v341_v45 = vunpack.c.l.b16 %v206_v25  ;;  %v423_v59 = vrot.slane %v357_v51, 3  ;;  %v223_v18 = vpack.c.bf16 %v138_v7, %v138_v7 }
  0x1c   :  { %760 = vmatpush3.bf16.msra.mxu0 %v817_v28  ;;  %v214_v28 = vpack.c.bf16 %v102_v17, %v102_v17  ;;  %v345_v46 = vunpack.c.l.b16 %v210_v27  ;;  %v219_v17 = vpack.c.bf16 %v122_v6, %v122_v6  ;;  %v338_v22 = vunpack.c.l.b16 %v203_v11 }
  0x1d   :  { %782 = vmatpush3.bf16.msra.mxu1 %v818_v29  ;;  %761 = vmatprep.subr.bf16.mxu0 %v819_v30  ;;  %v218_v29 = vpack.c.bf16 %v118_v19, %v118_v19  ;;  %v396_v30 = vsel %vm379_vm4, %v395_v13, %v394_v26  ;;  %v415_v55 = vrot.slane %v341_v45, 7  ;;  %v207_v13 = vpack.c.bf16 %v74_v2, %v74_v2 }
  0x1e   :  { %783 = vmatprep.subr.bf16.mxu1 %v820_v32  ;;  %v226_v32 = vpack.c.bf16 %v150_v21, %v150_v21  ;;  %v349_v33 = vunpack.c.l.b16 %v214_v28  ;;  %v417_v56 = vrot.slane %v345_v46, 6  ;;  %v227_v19 = vpack.c.bf16 %v154_v9, %v154_v9 }
  0x1f   :  { %v353_v47 = vunpack.c.l.b16 %v218_v29  ;;  %v416_v60 = vsel %vm367_vm0, %v415_v55, %v337_v44  ;;  %v334_v21 = vunpack.c.l.b16 %v199_v10  ;;  %v346_v25 = vunpack.c.l.b16 %v211_v14 }
  0x20   :  { %762 = vmatpush3.bf16.msra.mxu0 %v821_v34  ;;  %v230_v34 = vpack.c.bf16 %v166_v23, %v166_v23  ;;  %v361_v53 = vunpack.c.l.b16 %v226_v32  ;;  %v419_v57 = vrot.slane %v349_v33, 5  ;;  %v418_v0 = vsel %vm370_vm1, %v417_v56, %v416_v60 }
  0x21   :  { %784 = vmatpush3.bf16.msra.mxu1 %v822_v36  ;;  %v398_v36 = vsel %vm382_vm5, %v397_v15, %v396_v30  ;;  %v421_v58 = vrot.slane %v353_v47, 4  ;;  %v215_v15 = vpack.c.bf16 %v106_v5, %v106_v5  ;;  %v342_v23 = vunpack.c.l.b16 %v207_v13 }
  0x22   :  { %v400_v50 = vsel %vm385_vm6, %v399_v16, %v398_v36  ;;  %v365_v54 = vunpack.c.l.b16 %v230_v34  ;;  %v425_v61 = vrot.slane %v361_v53, 2  ;;  %v420_v4 = vsel %vm373_vm2, %v419_v57, %v418_v0 }
  0x23   :  { %v430_v52 = vpack.c.b16 %v400_v50, %v400_v50  ;;  %v422_v8 = vsel %vm376_vm3, %v421_v58, %v420_v4  ;;  %v350_v35 = vunpack.c.l.b16 %v215_v15  ;;  %v354_v26 = vunpack.c.l.b16 %v219_v17 }
  0x24   :  { %v427_v62 = vrot.slane %v365_v54, 1  ;;  %v424_v12 = vsel %vm379_vm4, %v423_v59, %v422_v8  ;;  %v358_v27 = vunpack.c.l.b16 %v223_v18  ;;  %v362_v28 = vunpack.c.l.b16 %v227_v19 }
  0x25   :  { %661 = vmatprep.mubr.bf16.mxu0 %v430_v52  ;;  %v426_v16 = vsel %vm382_vm5, %v425_v61, %v424_v12  ;;  %v366_v29 = vrot.slane %v338_v22, 7  ;;  %v369_v30 = vrot.slane %v342_v23, 6  ;;  %v372_v31 = vrot.slane %v346_v25, 5  ;;  %v714_v25 = vld [vmem:[%s1077_s2] ss:$0 sm:$0xff] }
  0x26   :  { %v428_v20 = vsel %vm385_vm6, %v427_v62, %v426_v16  ;;  %v375_v32 = vrot.slane %v350_v35, 4  ;;  %v378_v34 = vrot.slane %v354_v26, 3  ;;  %v50_v36 = vrot.slane %v948_v38, %v943_v37 }
  0x27   :  { %v432_v24 = vpack.c.b16 %v428_v20, %v428_v20  ;;  %v368_v44 = vsel %vm367_vm0, %v366_v29, %v334_v21  ;;  %v381_v45 = vrot.slane %v358_v27, 2  ;;  %v384_v46 = vrot.slane %v362_v28, 1 }
  0x28   :  { %v66_v50 = vrot.slane %v953_v39, %v943_v37  ;;  %v371_v33 = vsel %vm370_vm1, %v369_v30, %v368_v44  ;;  %v82_v47 = vrot.slane %v958_v40, %v943_v37  ;;  %v98_v51 = vrot.slane %v963_v41, %v943_v37 }
  0x29   :  { %701 = vmatprep.mubr.bf16.mxu1 %v432_v24  ;;  %v114_v52 = vrot.slane %v968_v42, %v943_v37  ;;  %v374_v38 = vsel %vm373_vm2, %v372_v31, %v371_v33  ;;  %v130_v53 = vrot.slane %v973_v43, %v943_v37  ;;  %v146_v54 = vrot.slane %v983_v48, %v943_v37 }
  0x2a   :  { %v162_v39 = vrot.slane %v988_v49, %v943_v37  ;;  %v377_v55 = vsel %vm376_vm3, %v375_v32, %v374_v38  ;;  %v201_v40 = vpack.c.bf16 %v50_v36, %v50_v36  ;;  %v205_v56 = vpack.c.bf16 %v66_v50, %v66_v50 }
  0x2b   :  { %v209_v57 = vpack.c.bf16 %v82_v47, %v82_v47  ;;  %v380_v41 = vsel %vm379_vm4, %v378_v34, %v377_v55  ;;  %v213_v58 = vpack.c.bf16 %v98_v51, %v98_v51  ;;  %v217_v42 = vpack.c.bf16 %v114_v52, %v114_v52 }
  0x2c   :  { %v221_v59 = vpack.c.bf16 %v130_v53, %v130_v53  ;;  %v383_v60 = vsel %vm382_vm5, %v381_v45, %v380_v41  ;;  %v225_v61 = vpack.c.bf16 %v146_v54, %v146_v54  ;;  %v229_v43 = vpack.c.bf16 %v162_v39, %v162_v39 }
  0x2d   :  { %v336_v62 = vunpack.c.l.b16 %v201_v40  ;;  %v386_v48 = vsel %vm385_vm6, %v384_v46, %v383_v60  ;;  %v340_v63 = vunpack.c.l.b16 %v205_v56  ;;  %v344_v0 = vunpack.c.l.b16 %v209_v57 }
  0x2e   :  { %v348_v37 = vunpack.c.l.b16 %v213_v58  ;;  %v429_v49 = vpack.c.b16 %v386_v48, %v386_v48  ;;  %v352_v1 = vunpack.c.l.b16 %v217_v42  ;;  %v356_v2 = vunpack.c.l.b16 %v221_v59 }
  0x2f   :  { %v360_v3 = vunpack.c.l.b16 %v225_v61  ;;  %v364_v4 = vunpack.c.l.b16 %v229_v43  ;;  %v401_v5 = vrot.slane %v340_v63, 7  ;;  %v403_v6 = vrot.slane %v344_v0, 6 }
  0x30   :  { %v405_v7 = vrot.slane %v348_v37, 5  ;;  %662 = vmatmul.mubr.bf16.vlgmr.msra.gmra.mxu0 %v429_v49  ;;  %v407_v8 = vrot.slane %v352_v1, 4  ;;  %v409_v10 = vrot.slane %v356_v2, 3 }
  0x31   :  { %v402_v9 = vsel %vm367_vm0, %v401_v5, %v336_v62  ;;  %v411_v12 = vrot.slane %v360_v3, 2  ;;  %v413_v14 = vrot.slane %v364_v4, 1 }
  0x32   :  { %v404_v11 = vsel %vm370_vm1, %v403_v6, %v402_v9 }
  0x33   :  { %v406_v13 = vsel %vm373_vm2, %v405_v7, %v404_v11 }
  0x34   :  { %v408_v15 = vsel %vm376_vm3, %v407_v8, %v406_v13 }
  0x35   :  { %v410_v16 = vsel %vm379_vm4, %v409_v10, %v408_v15 }
  0x36   :  { %v412_v17 = vsel %vm382_vm5, %v411_v12, %v410_v16 }
  0x37   :  { %v414_v18 = vsel %vm385_vm6, %v413_v14, %v412_v17 }
  0x38   :  { %v431_v19 = vpack.c.b16 %v414_v18, %v414_v18 }
  0x3a   :  { %702 = vmatmul.mubr.bf16.vlgmr.msra.gmra.mxu1 %v431_v19 }
  0xf0   :  { %v763_v20 = vpop.f32.mrf.mxu0 }
  0xf2   :  { %v764_v21 = vpop.f32.mrf.mxu0 }
  0xf3   :  { %v765_v24 = vadd.f32 %v764_v21, %v763_v20 }
  0xf4   :  { %v766_v22 = vpop.f32.mrf.mxu0 }
  0xf5   :  { %v664_v26 = vadd.f32 %v765_v24, %v714_v25 }
  0xf6   :  { %v767_v23 = vpop.f32.mrf.mxu0 }
  0xfa   :  { %v785_v35 = vpop.f32.mrf.mxu1 }
  0xfc   :  { %v786_v27 = vpop.f32.mrf.mxu1 }
  0xfd   :  { %v787_v28 = vadd.f32 %v786_v27, %v785_v35 }
  0xfe   :  { %v788_v29 = vpop.f32.mrf.mxu1 }
  0xff   :  { %v704_v30 = vadd.f32 %v787_v28, %v664_v26 }
 0x100   :  { %v789_v31 = vpop.f32.mrf.mxu1 }
 0x101   :  { %709 = vst [vmem:[%s1078_s3] sm:$0xff] %v704_v30 }

</bundles_post_ra>
